<compile_context>
chip_gen: v7x
topology: tpu7x:2x2x1
jax: 0.10.0
libtpu: 0.0.40
codegen_flags: <defaults>
</compile_context>

<pallas_src>
import numpy as np

import jax
import jax.numpy as jnp
from jax.experimental import pallas as pl
from jax.experimental.pallas import tpu as pltpu

BN_EPS = 1e-5
KSIZE = 5
STRIDE = 2


def _conv_out(size):
    return (size - (KSIZE - 1) - 1) // STRIDE + 1


def _full_block(shape):
    zeros = (0,) * len(shape)
    return pl.BlockSpec(shape, lambda i: zeros)


def _make_selection(n, hin, win, hout, wout):
    """0/1 selection tensors for in-kernel im2col.

    g[kh*K+kw, r_in, r_out] = 1  iff  r_in flattens (n, STRIDE*oh+kh, STRIDE*ow+kw)
    and r_out flattens (n, oh, ow), both in (n, h, w) row-major order.
    """
    r_in, r_out = n * hin * win, n * hout * wout
    g = np.zeros((KSIZE * KSIZE, r_in, r_out), np.float32)
    for kh in range(KSIZE):
        for kw in range(KSIZE):
            idx = kh * KSIZE + kw
            for b in range(n):
                for oh in range(hout):
                    for ow in range(wout):
                        ro = (b * hout + oh) * wout + ow
                        ri = (b * hin + STRIDE * oh + kh) * win + STRIDE * ow + kw
                        g[idx, ri, ro] = 1.0
    return g


def _im2col(x):
    """x [N, C, H, W] -> patches [C*K*K, N*OH*OW]; rows (c, kh, kw), cols (n, oh, ow)."""
    n, c, h, w = x.shape
    oh, ow = _conv_out(h), _conv_out(w)
    cols = []
    for kh in range(KSIZE):
        for kw in range(KSIZE):
            cols.append(x[:, :, kh::STRIDE, kw::STRIDE][:, :, :oh, :ow])
    p = jnp.stack(cols, axis=0)            # [K*K, N, C, OH, OW]
    p = p.transpose(2, 0, 1, 3, 4)         # [C, K*K, N, OH, OW]
    return p.reshape(c * KSIZE * KSIZE, n * oh * ow)


def make_dqn_forward(h, w, batch):
    """Build a jitted forward(x, params) matching DQN(h, w).forward (training-mode BN)."""
    oh1, ow1 = _conv_out(h), _conv_out(w)
    oh2, ow2 = _conv_out(oh1), _conv_out(ow1)
    oh3, ow3 = _conv_out(oh2), _conv_out(ow2)
    assert min(oh3, ow3) >= 1, "input too small for three stride-2 5x5 convs"
    c0, c1, c2, c3 = 3, 16, 32, 32
    n_act = 2
    r1 = batch * oh1 * ow1
    r2 = batch * oh2 * ow2
    r3 = batch * oh3 * ow3
    pos3 = oh3 * ow3
    kk = KSIZE * KSIZE

    # Precomputed selection matrices (exact in bf16; DMA'd once per call).
    g2sel = jnp.asarray(_make_selection(batch, oh1, ow1, oh2, ow2), jnp.bfloat16)
    g3sel = jnp.asarray(_make_selection(batch, oh2, ow2, oh3, ow3), jnp.bfloat16)
    # One-hot [r3, batch]: which sample each layer-3 output column belongs to.
    nsel_np = np.zeros((r3, batch), np.float32)
    for rr in range(r3):
        nsel_np[rr, rr // pos3] = 1.0
    nsel = jnp.asarray(nsel_np)

    def kernel(p1_ref, w1_ref, bn1g_ref, bn1b_ref,
               g2_ref, w2_ref, bn2g_ref, bn2b_ref,
               g3_ref, w3_ref, bn3g_ref, bn3b_ref,
               bsel_ref, nsel_ref, bh_ref, out_ref):
        f32 = jnp.float32
        bf16 = jnp.bfloat16

        def bn_relu(z, gamma, beta):
            # BatchNorm2d, training mode: biased batch stats over (N, H, W) ==
            # over the lane axis of the [C, R] layout.  Conv bias omitted
            # upstream: the mean subtraction cancels it exactly.
            mean = jnp.mean(z, axis=1, keepdims=True)
            zc = z - mean
            var = jnp.mean(zc * zc, axis=1, keepdims=True)
            y = gamma * (zc * jax.lax.rsqrt(var + BN_EPS)) + beta
            return jnp.maximum(y, 0.0)

        # ---- conv1 + bn1 + relu: one matmul on pre-im2col'd patches ---------
        z1 = jnp.dot(w1_ref[...], p1_ref[...], preferred_element_type=f32)   # [c1, r1]
        x1 = bn_relu(z1, bn1g_ref[...], bn1b_ref[...]).astype(bf16)

        # ---- conv2 + bn2 + relu: in-kernel im2col via selection matmuls -----
        z2 = jnp.zeros((c2, r2), f32)
        for idx in range(kk):
            patch = jnp.dot(x1, g2_ref[idx], preferred_element_type=f32)     # [c1, r2]
            z2 = z2 + jnp.dot(w2_ref[idx], patch.astype(bf16),
                              preferred_element_type=f32)                    # [c2, r2]
        x2 = bn_relu(z2, bn2g_ref[...], bn2b_ref[...]).astype(bf16)

        # ---- conv3 + bn3 + relu ----------------------------------------------
        z3 = jnp.zeros((c3, r3), f32)
        for idx in range(kk):
            patch = jnp.dot(x2, g3_ref[idx], preferred_element_type=f32)     # [c2, r3]
            z3 = z3 + jnp.dot(w3_ref[idx], patch.astype(bf16),
                              preferred_element_type=f32)                    # [c3, r3]
        x3 = bn_relu(z3, bn3g_ref[...], bn3b_ref[...])                        # [c3, r3] f32

        # ---- head: Linear(c3*oh3*ow3 -> 2) on torch .view(N, -1) order ------
        # bsel[a, c, r3] = W_head[a, c*pos3 + (r3 % pos3)]
        t = jnp.sum(bsel_ref[...] * x3[None, :, :], axis=1)                  # [A, r3]
        out_ref[...] = (jnp.dot(t, nsel_ref[...], preferred_element_type=f32)
                        + bh_ref[...])                                       # [A, N]

    fused = pl.pallas_call(
        kernel,
        out_shape=jax.ShapeDtypeStruct((n_act, batch), jnp.float32),
        grid=(1,),
        in_specs=[
            _full_block((c0 * kk, r1)),      # patches (layer 1)
            _full_block((c1, c0 * kk)),      # w1
            _full_block((c1, 1)), _full_block((c1, 1)),
            _full_block((kk, r1, r2)),       # selection for conv2
            _full_block((kk, c2, c1)),       # w2 per-(kh,kw) blocks
            _full_block((c2, 1)), _full_block((c2, 1)),
            _full_block((kk, r2, r3)),       # selection for conv3
            _full_block((kk, c3, c2)),       # w3 per-(kh,kw) blocks
            _full_block((c3, 1)), _full_block((c3, 1)),
            _full_block((n_act, c3, r3)),    # head weight, broadcast over samples
            _full_block((r3, batch)),        # column -> sample one-hot
            _full_block((n_act, 1)),         # head bias
        ],
        out_specs=_full_block((n_act, batch)),
        compiler_params=pltpu.CompilerParams(
            dimension_semantics=("arbitrary",),
            vmem_limit_bytes=40 * 1024 * 1024,
        ),
    )

    @jax.jit
    def forward(x, params):
        bf16 = jnp.bfloat16
        p1 = _im2col(x).astype(bf16)                                          # [75, r1]
        w1m = params["w1"].reshape(c1, c0 * kk).astype(bf16)
        w2b = params["w2"].transpose(2, 3, 0, 1).reshape(kk, c2, c1).astype(bf16)
        w3b = params["w3"].transpose(2, 3, 0, 1).reshape(kk, c3, c2).astype(bf16)
        wh3 = params["wh"].reshape(n_act, c3, pos3)
        bsel = jnp.tile(wh3[:, :, None, :], (1, 1, batch, 1)).reshape(n_act, c3, r3)
        bsel = bsel.astype(jnp.float32)
        out = fused(
            p1, w1m,
            params["g1"].reshape(c1, 1), params["be1"].reshape(c1, 1),
            g2sel, w2b,
            params["g2"].reshape(c2, 1), params["be2"].reshape(c2, 1),
            g3sel, w3b,
            params["g3"].reshape(c3, 1), params["be3"].reshape(c3, 1),
            bsel, nsel, params["bh"].reshape(n_act, 1),
        )                                                                     # [A, N]
        return out.T                                                          # [N, A]

    return forward


def reference_forward(x, params):
    """Pure-XLA reference with exact DQN.forward semantics (training-mode BN, with conv bias)."""
    def conv_bn_relu(y, wt, b, gamma, beta):
        y = jax.lax.conv_general_dilated(
            y, wt, window_strides=(STRIDE, STRIDE), padding="VALID",
            dimension_numbers=("NCHW", "OIHW", "NCHW"))
        y = y + b[None, :, None, None]
        mean = jnp.mean(y, axis=(0, 2, 3), keepdims=True)
        var = jnp.mean((y - mean) ** 2, axis=(0, 2, 3), keepdims=True)
        y = (gamma[None, :, None, None] * (y - mean) * jax.lax.rsqrt(var + BN_EPS)
             + beta[None, :, None, None])
        return jnp.maximum(y, 0.0)

    y = conv_bn_relu(x, params["w1"], params["b1"], params["g1"], params["be1"])
    y = conv_bn_relu(y, params["w2"], params["b2"], params["g2"], params["be2"])
    y = conv_bn_relu(y, params["w3"], params["b3"], params["g3"], params["be3"])
    flat = y.reshape(y.shape[0], -1)
    return flat @ params["wh"].T + params["bh"]


def init_params(key, feat):
    ks = jax.random.split(key, 14)
    s = 0.1
    # Conv biases b1/b2/b3 mirror the torch module and feed the XLA reference;
    # the Pallas kernel omits them (training-mode BN cancels them exactly).
    return {
        "w1": s * jax.random.normal(ks[0], (16, 3, 5, 5), jnp.float32),
        "b1": s * jax.random.normal(ks[1], (16,), jnp.float32),
        "g1": 1.0 + s * jax.random.normal(ks[2], (16,), jnp.float32),
        "be1": s * jax.random.normal(ks[3], (16,), jnp.float32),
        "w2": s * jax.random.normal(ks[4], (32, 16, 5, 5), jnp.float32),
        "b2": s * jax.random.normal(ks[5], (32,), jnp.float32),
        "g2": 1.0 + s * jax.random.normal(ks[6], (32,), jnp.float32),
        "be2": s * jax.random.normal(ks[7], (32,), jnp.float32),
        "w3": s * jax.random.normal(ks[8], (32, 32, 5, 5), jnp.float32),
        "b3": s * jax.random.normal(ks[9], (32,), jnp.float32),
        "g3": 1.0 + s * jax.random.normal(ks[10], (32,), jnp.float32),
        "be3": s * jax.random.normal(ks[11], (32,), jnp.float32),
        "wh": s * jax.random.normal(ks[12], (2, feat), jnp.float32),
        "bh": s * jax.random.normal(ks[13], (2,), jnp.float32),
    }


if __name__ == "__main__":
    batch, h, w = 2, 40, 40          # DQN(40, 40): spatial 40 -> 18 -> 7 -> 2, head in = 32*2*2
    feat = 32 * _conv_out(_conv_out(_conv_out(h))) * _conv_out(_conv_out(_conv_out(w)))

    key = jax.random.PRNGKey(0)
    kx, kp = jax.random.split(key)
    x = jax.random.normal(kx, (batch, 3, h, w), jnp.float32)
    params = init_params(kp, feat)

    forward = make_dqn_forward(h, w, batch)
    out = jax.block_until_ready(forward(x, params))

    assert out.shape == (batch, 2)
    assert bool(jnp.all(jnp.isfinite(out)))

    ref = jax.block_until_ready(reference_forward(x, params))
    max_err = float(jnp.max(jnp.abs(out - ref)))
    assert max_err < 1e-1, f"mismatch vs XLA reference: max abs err = {max_err}"

    print("KERNEL_OK")
</pallas_src>

<mosaic_0001>
module attributes {stable_mosaic.version = 11 : i64} {
  func.func @kernel(%arg0: i32, %arg1: memref<75x648xbf16, #tpu.memory_space<vmem>>, %arg2: memref<16x75xbf16, #tpu.memory_space<vmem>>, %arg3: memref<16x1xf32, #tpu.memory_space<vmem>>, %arg4: memref<16x1xf32, #tpu.memory_space<vmem>>, %arg5: memref<25x648x98xbf16, #tpu.memory_space<vmem>>, %arg6: memref<25x32x16xbf16, #tpu.memory_space<vmem>>, %arg7: memref<32x1xf32, #tpu.memory_space<vmem>>, %arg8: memref<32x1xf32, #tpu.memory_space<vmem>>, %arg9: memref<25x98x8xbf16, #tpu.memory_space<vmem>>, %arg10: memref<25x32x32xbf16, #tpu.memory_space<vmem>>, %arg11: memref<32x1xf32, #tpu.memory_space<vmem>>, %arg12: memref<32x1xf32, #tpu.memory_space<vmem>>, %arg13: memref<2x32x8xf32, #tpu.memory_space<vmem>>, %arg14: memref<8x2xf32, #tpu.memory_space<vmem>>, %arg15: memref<2x1xf32, #tpu.memory_space<vmem>>, %arg16: memref<2x2xf32, #tpu.memory_space<vmem>>) attributes {dimension_semantics = [#tpu.dimension_semantics<arbitrary>], iteration_bounds = array<i64: 1>, scalar_prefetch = 0 : i64, scratch_operands = 0 : i64, tpu.core_type = #tpu.core_type<tc>, window_params = [{pipeline_mode = #tpu.pipeline_mode<synchronous>, transform_indices = @transform_0, window_bounds = array<i64: 75, 648>}, {pipeline_mode = #tpu.pipeline_mode<synchronous>, transform_indices = @transform_1, window_bounds = array<i64: 16, 75>}, {pipeline_mode = #tpu.pipeline_mode<synchronous>, transform_indices = @transform_2, window_bounds = array<i64: 16, 1>}, {pipeline_mode = #tpu.pipeline_mode<synchronous>, transform_indices = @transform_3, window_bounds = array<i64: 16, 1>}, {pipeline_mode = #tpu.pipeline_mode<synchronous>, transform_indices = @transform_4, window_bounds = array<i64: 25, 648, 98>}, {pipeline_mode = #tpu.pipeline_mode<synchronous>, transform_indices = @transform_5, window_bounds = array<i64: 25, 32, 16>}, {pipeline_mode = #tpu.pipeline_mode<synchronous>, transform_indices = @transform_6, window_bounds = array<i64: 32, 1>}, {pipeline_mode = #tpu.pipeline_mode<synchronous>, transform_indices = @transform_7, window_bounds = array<i64: 32, 1>}, {pipeline_mode = #tpu.pipeline_mode<synchronous>, transform_indices = @transform_8, window_bounds = array<i64: 25, 98, 8>}, {pipeline_mode = #tpu.pipeline_mode<synchronous>, transform_indices = @transform_9, window_bounds = array<i64: 25, 32, 32>}, {pipeline_mode = #tpu.pipeline_mode<synchronous>, transform_indices = @transform_10, window_bounds = array<i64: 32, 1>}, {pipeline_mode = #tpu.pipeline_mode<synchronous>, transform_indices = @transform_11, window_bounds = array<i64: 32, 1>}, {pipeline_mode = #tpu.pipeline_mode<synchronous>, transform_indices = @transform_12, window_bounds = array<i64: 2, 32, 8>}, {pipeline_mode = #tpu.pipeline_mode<synchronous>, transform_indices = @transform_13, window_bounds = array<i64: 8, 2>}, {pipeline_mode = #tpu.pipeline_mode<synchronous>, transform_indices = @transform_14, window_bounds = array<i64: 2, 1>}, {pipeline_mode = #tpu.pipeline_mode<synchronous>, transform_indices = @transform_15, window_bounds = array<i64: 2, 2>}]} {
    %c0 = arith.constant 0 : index
    %c0_0 = arith.constant 0 : index
    %0 = vector.load %arg2[%c0, %c0_0] : memref<16x75xbf16, #tpu.memory_space<vmem>>, vector<16x75xbf16>
    %c0_1 = arith.constant 0 : index
    %c0_2 = arith.constant 0 : index
    %1 = vector.load %arg1[%c0_1, %c0_2] : memref<75x648xbf16, #tpu.memory_space<vmem>>, vector<75x648xbf16>
    %cst = arith.constant dense<0.000000e+00> : vector<16x648xf32>
    %2 = tpu.matmul %0, %1, %cst {dimension_numbers = #tpu.dot_dimension_numbers<[1], [0], [0], [1], [0, 0, 1, 1], [], []>} : vector<16x75xbf16>, vector<75x648xbf16>, vector<16x648xf32> -> vector<16x648xf32>
    %c0_3 = arith.constant 0 : index
    %c0_4 = arith.constant 0 : index
    %3 = vector.load %arg3[%c0_3, %c0_4] : memref<16x1xf32, #tpu.memory_space<vmem>>, vector<16x1xf32>
    %c0_5 = arith.constant 0 : index
    %c0_6 = arith.constant 0 : index
    %4 = vector.load %arg4[%c0_5, %c0_6] : memref<16x1xf32, #tpu.memory_space<vmem>>, vector<16x1xf32>
    %cst_7 = arith.constant dense<0.000000e+00> : vector<16xf32>
    %5 = vector.multi_reduction <add>, %2, %cst_7 [1] : vector<16x648xf32> to vector<16xf32>
    %6 = vector.shape_cast %5 : vector<16xf32> to vector<16x1xf32>
    %cst_8 = arith.constant 6.480000e+02 : f32
    %7 = vector.broadcast %cst_8 : f32 to vector<16x1xf32>
    %8 = arith.divf %6, %7 : vector<16x1xf32>
    %9 = vector.broadcast %8 : vector<16x1xf32> to vector<16x648xf32>
    %10 = arith.subf %2, %9 : vector<16x648xf32>
    %11 = arith.mulf %10, %10 : vector<16x648xf32>
    %cst_9 = arith.constant dense<0.000000e+00> : vector<16xf32>
    %12 = vector.multi_reduction <add>, %11, %cst_9 [1] : vector<16x648xf32> to vector<16xf32>
    %13 = vector.shape_cast %12 : vector<16xf32> to vector<16x1xf32>
    %cst_10 = arith.constant 6.480000e+02 : f32
    %14 = vector.broadcast %cst_10 : f32 to vector<16x1xf32>
    %15 = arith.divf %13, %14 : vector<16x1xf32>
    %cst_11 = arith.constant 9.99999974E-6 : f32
    %16 = vector.broadcast %cst_11 : f32 to vector<16x1xf32>
    %17 = arith.addf %15, %16 : vector<16x1xf32>
    %18 = math.rsqrt %17 : vector<16x1xf32>
    %19 = vector.broadcast %18 : vector<16x1xf32> to vector<16x648xf32>
    %20 = arith.mulf %10, %19 : vector<16x648xf32>
    %21 = vector.broadcast %3 : vector<16x1xf32> to vector<16x648xf32>
    %22 = arith.mulf %21, %20 : vector<16x648xf32>
    %23 = vector.broadcast %4 : vector<16x1xf32> to vector<16x648xf32>
    %24 = arith.addf %22, %23 : vector<16x648xf32>
    %cst_12 = arith.constant 0.000000e+00 : f32
    %25 = vector.broadcast %cst_12 : f32 to vector<16x648xf32>
    %26 = arith.maximumf %24, %25 : vector<16x648xf32>
    %27 = arith.truncf %26 : vector<16x648xf32> to vector<16x648xbf16>
    %cst_13 = arith.constant 0.000000e+00 : f32
    %28 = vector.broadcast %cst_13 : f32 to vector<32x98xf32>
    %c0_14 = arith.constant 0 : index
    %c0_15 = arith.constant 0 : index
    %c0_16 = arith.constant 0 : index
    %29 = vector.load %arg5[%c0_14, %c0_15, %c0_16] : memref<25x648x98xbf16, #tpu.memory_space<vmem>>, vector<1x648x98xbf16>
    %30 = vector.shape_cast %29 : vector<1x648x98xbf16> to vector<648x98xbf16>
    %cst_17 = arith.constant dense<0.000000e+00> : vector<16x98xf32>
    %31 = tpu.matmul %27, %30, %cst_17 {dimension_numbers = #tpu.dot_dimension_numbers<[1], [0], [0], [1], [0, 0, 1, 1], [], []>} : vector<16x648xbf16>, vector<648x98xbf16>, vector<16x98xf32> -> vector<16x98xf32>
    %c0_18 = arith.constant 0 : index
    %c0_19 = arith.constant 0 : index
    %c0_20 = arith.constant 0 : index
    %32 = vector.load %arg6[%c0_18, %c0_19, %c0_20] : memref<25x32x16xbf16, #tpu.memory_space<vmem>>, vector<1x32x16xbf16>
    %33 = vector.shape_cast %32 : vector<1x32x16xbf16> to vector<32x16xbf16>
    %34 = arith.truncf %31 : vector<16x98xf32> to vector<16x98xbf16>
    %cst_21 = arith.constant dense<0.000000e+00> : vector<32x98xf32>
    %35 = tpu.matmul %33, %34, %cst_21 {dimension_numbers = #tpu.dot_dimension_numbers<[1], [0], [0], [1], [0, 0, 1, 1], [], []>} : vector<32x16xbf16>, vector<16x98xbf16>, vector<32x98xf32> -> vector<32x98xf32>
    %36 = arith.addf %28, %35 : vector<32x98xf32>
    %c1 = arith.constant 1 : index
    %c0_22 = arith.constant 0 : index
    %c0_23 = arith.constant 0 : index
    %37 = vector.load %arg5[%c1, %c0_22, %c0_23] : memref<25x648x98xbf16, #tpu.memory_space<vmem>>, vector<1x648x98xbf16>
    %38 = vector.shape_cast %37 : vector<1x648x98xbf16> to vector<648x98xbf16>
    %cst_24 = arith.constant dense<0.000000e+00> : vector<16x98xf32>
    %39 = tpu.matmul %27, %38, %cst_24 {dimension_numbers = #tpu.dot_dimension_numbers<[1], [0], [0], [1], [0, 0, 1, 1], [], []>} : vector<16x648xbf16>, vector<648x98xbf16>, vector<16x98xf32> -> vector<16x98xf32>
    %c1_25 = arith.constant 1 : index
    %c0_26 = arith.constant 0 : index
    %c0_27 = arith.constant 0 : index
    %40 = vector.load %arg6[%c1_25, %c0_26, %c0_27] : memref<25x32x16xbf16, #tpu.memory_space<vmem>>, vector<1x32x16xbf16>
    %41 = vector.shape_cast %40 : vector<1x32x16xbf16> to vector<32x16xbf16>
    %42 = arith.truncf %39 : vector<16x98xf32> to vector<16x98xbf16>
    %cst_28 = arith.constant dense<0.000000e+00> : vector<32x98xf32>
    %43 = tpu.matmul %41, %42, %cst_28 {dimension_numbers = #tpu.dot_dimension_numbers<[1], [0], [0], [1], [0, 0, 1, 1], [], []>} : vector<32x16xbf16>, vector<16x98xbf16>, vector<32x98xf32> -> vector<32x98xf32>
    %44 = arith.addf %36, %43 : vector<32x98xf32>
    %c2 = arith.constant 2 : index
    %c0_29 = arith.constant 0 : index
    %c0_30 = arith.constant 0 : index
    %45 = vector.load %arg5[%c2, %c0_29, %c0_30] : memref<25x648x98xbf16, #tpu.memory_space<vmem>>, vector<1x648x98xbf16>
    %46 = vector.shape_cast %45 : vector<1x648x98xbf16> to vector<648x98xbf16>
    %cst_31 = arith.constant dense<0.000000e+00> : vector<16x98xf32>
    %47 = tpu.matmul %27, %46, %cst_31 {dimension_numbers = #tpu.dot_dimension_numbers<[1], [0], [0], [1], [0, 0, 1, 1], [], []>} : vector<16x648xbf16>, vector<648x98xbf16>, vector<16x98xf32> -> vector<16x98xf32>
    %c2_32 = arith.constant 2 : index
    %c0_33 = arith.constant 0 : index
    %c0_34 = arith.constant 0 : index
    %48 = vector.load %arg6[%c2_32, %c0_33, %c0_34] : memref<25x32x16xbf16, #tpu.memory_space<vmem>>, vector<1x32x16xbf16>
    %49 = vector.shape_cast %48 : vector<1x32x16xbf16> to vector<32x16xbf16>
    %50 = arith.truncf %47 : vector<16x98xf32> to vector<16x98xbf16>
    %cst_35 = arith.constant dense<0.000000e+00> : vector<32x98xf32>
    %51 = tpu.matmul %49, %50, %cst_35 {dimension_numbers = #tpu.dot_dimension_numbers<[1], [0], [0], [1], [0, 0, 1, 1], [], []>} : vector<32x16xbf16>, vector<16x98xbf16>, vector<32x98xf32> -> vector<32x98xf32>
    %52 = arith.addf %44, %51 : vector<32x98xf32>
    %c3 = arith.constant 3 : index
    %c0_36 = arith.constant 0 : index
    %c0_37 = arith.constant 0 : index
    %53 = vector.load %arg5[%c3, %c0_36, %c0_37] : memref<25x648x98xbf16, #tpu.memory_space<vmem>>, vector<1x648x98xbf16>
    %54 = vector.shape_cast %53 : vector<1x648x98xbf16> to vector<648x98xbf16>
    %cst_38 = arith.constant dense<0.000000e+00> : vector<16x98xf32>
    %55 = tpu.matmul %27, %54, %cst_38 {dimension_numbers = #tpu.dot_dimension_numbers<[1], [0], [0], [1], [0, 0, 1, 1], [], []>} : vector<16x648xbf16>, vector<648x98xbf16>, vector<16x98xf32> -> vector<16x98xf32>
    %c3_39 = arith.constant 3 : index
    %c0_40 = arith.constant 0 : index
    %c0_41 = arith.constant 0 : index
    %56 = vector.load %arg6[%c3_39, %c0_40, %c0_41] : memref<25x32x16xbf16, #tpu.memory_space<vmem>>, vector<1x32x16xbf16>
    %57 = vector.shape_cast %56 : vector<1x32x16xbf16> to vector<32x16xbf16>
    %58 = arith.truncf %55 : vector<16x98xf32> to vector<16x98xbf16>
    %cst_42 = arith.constant dense<0.000000e+00> : vector<32x98xf32>
    %59 = tpu.matmul %57, %58, %cst_42 {dimension_numbers = #tpu.dot_dimension_numbers<[1], [0], [0], [1], [0, 0, 1, 1], [], []>} : vector<32x16xbf16>, vector<16x98xbf16>, vector<32x98xf32> -> vector<32x98xf32>
    %60 = arith.addf %52, %59 : vector<32x98xf32>
    %c4 = arith.constant 4 : index
    %c0_43 = arith.constant 0 : index
    %c0_44 = arith.constant 0 : index
    %61 = vector.load %arg5[%c4, %c0_43, %c0_44] : memref<25x648x98xbf16, #tpu.memory_space<vmem>>, vector<1x648x98xbf16>
    %62 = vector.shape_cast %61 : vector<1x648x98xbf16> to vector<648x98xbf16>
    %cst_45 = arith.constant dense<0.000000e+00> : vector<16x98xf32>
    %63 = tpu.matmul %27, %62, %cst_45 {dimension_numbers = #tpu.dot_dimension_numbers<[1], [0], [0], [1], [0, 0, 1, 1], [], []>} : vector<16x648xbf16>, vector<648x98xbf16>, vector<16x98xf32> -> vector<16x98xf32>
    %c4_46 = arith.constant 4 : index
    %c0_47 = arith.constant 0 : index
    %c0_48 = arith.constant 0 : index
    %64 = vector.load %arg6[%c4_46, %c0_47, %c0_48] : memref<25x32x16xbf16, #tpu.memory_space<vmem>>, vector<1x32x16xbf16>
    %65 = vector.shape_cast %64 : vector<1x32x16xbf16> to vector<32x16xbf16>
    %66 = arith.truncf %63 : vector<16x98xf32> to vector<16x98xbf16>
    %cst_49 = arith.constant dense<0.000000e+00> : vector<32x98xf32>
    %67 = tpu.matmul %65, %66, %cst_49 {dimension_numbers = #tpu.dot_dimension_numbers<[1], [0], [0], [1], [0, 0, 1, 1], [], []>} : vector<32x16xbf16>, vector<16x98xbf16>, vector<32x98xf32> -> vector<32x98xf32>
    %68 = arith.addf %60, %67 : vector<32x98xf32>
    %c5 = arith.constant 5 : index
    %c0_50 = arith.constant 0 : index
    %c0_51 = arith.constant 0 : index
    %69 = vector.load %arg5[%c5, %c0_50, %c0_51] : memref<25x648x98xbf16, #tpu.memory_space<vmem>>, vector<1x648x98xbf16>
    %70 = vector.shape_cast %69 : vector<1x648x98xbf16> to vector<648x98xbf16>
    %cst_52 = arith.constant dense<0.000000e+00> : vector<16x98xf32>
    %71 = tpu.matmul %27, %70, %cst_52 {dimension_numbers = #tpu.dot_dimension_numbers<[1], [0], [0], [1], [0, 0, 1, 1], [], []>} : vector<16x648xbf16>, vector<648x98xbf16>, vector<16x98xf32> -> vector<16x98xf32>
    %c5_53 = arith.constant 5 : index
    %c0_54 = arith.constant 0 : index
    %c0_55 = arith.constant 0 : index
    %72 = vector.load %arg6[%c5_53, %c0_54, %c0_55] : memref<25x32x16xbf16, #tpu.memory_space<vmem>>, vector<1x32x16xbf16>
    %73 = vector.shape_cast %72 : vector<1x32x16xbf16> to vector<32x16xbf16>
    %74 = arith.truncf %71 : vector<16x98xf32> to vector<16x98xbf16>
    %cst_56 = arith.constant dense<0.000000e+00> : vector<32x98xf32>
    %75 = tpu.matmul %73, %74, %cst_56 {dimension_numbers = #tpu.dot_dimension_numbers<[1], [0], [0], [1], [0, 0, 1, 1], [], []>} : vector<32x16xbf16>, vector<16x98xbf16>, vector<32x98xf32> -> vector<32x98xf32>
    %76 = arith.addf %68, %75 : vector<32x98xf32>
    %c6 = arith.constant 6 : index
    %c0_57 = arith.constant 0 : index
    %c0_58 = arith.constant 0 : index
    %77 = vector.load %arg5[%c6, %c0_57, %c0_58] : memref<25x648x98xbf16, #tpu.memory_space<vmem>>, vector<1x648x98xbf16>
    %78 = vector.shape_cast %77 : vector<1x648x98xbf16> to vector<648x98xbf16>
    %cst_59 = arith.constant dense<0.000000e+00> : vector<16x98xf32>
    %79 = tpu.matmul %27, %78, %cst_59 {dimension_numbers = #tpu.dot_dimension_numbers<[1], [0], [0], [1], [0, 0, 1, 1], [], []>} : vector<16x648xbf16>, vector<648x98xbf16>, vector<16x98xf32> -> vector<16x98xf32>
    %c6_60 = arith.constant 6 : index
    %c0_61 = arith.constant 0 : index
    %c0_62 = arith.constant 0 : index
    %80 = vector.load %arg6[%c6_60, %c0_61, %c0_62] : memref<25x32x16xbf16, #tpu.memory_space<vmem>>, vector<1x32x16xbf16>
    %81 = vector.shape_cast %80 : vector<1x32x16xbf16> to vector<32x16xbf16>
    %82 = arith.truncf %79 : vector<16x98xf32> to vector<16x98xbf16>
    %cst_63 = arith.constant dense<0.000000e+00> : vector<32x98xf32>
    %83 = tpu.matmul %81, %82, %cst_63 {dimension_numbers = #tpu.dot_dimension_numbers<[1], [0], [0], [1], [0, 0, 1, 1], [], []>} : vector<32x16xbf16>, vector<16x98xbf16>, vector<32x98xf32> -> vector<32x98xf32>
    %84 = arith.addf %76, %83 : vector<32x98xf32>
    %c7 = arith.constant 7 : index
    %c0_64 = arith.constant 0 : index
    %c0_65 = arith.constant 0 : index
    %85 = vector.load %arg5[%c7, %c0_64, %c0_65] : memref<25x648x98xbf16, #tpu.memory_space<vmem>>, vector<1x648x98xbf16>
    %86 = vector.shape_cast %85 : vector<1x648x98xbf16> to vector<648x98xbf16>
    %cst_66 = arith.constant dense<0.000000e+00> : vector<16x98xf32>
    %87 = tpu.matmul %27, %86, %cst_66 {dimension_numbers = #tpu.dot_dimension_numbers<[1], [0], [0], [1], [0, 0, 1, 1], [], []>} : vector<16x648xbf16>, vector<648x98xbf16>, vector<16x98xf32> -> vector<16x98xf32>
    %c7_67 = arith.constant 7 : index
    %c0_68 = arith.constant 0 : index
    %c0_69 = arith.constant 0 : index
    %88 = vector.load %arg6[%c7_67, %c0_68, %c0_69] : memref<25x32x16xbf16, #tpu.memory_space<vmem>>, vector<1x32x16xbf16>
    %89 = vector.shape_cast %88 : vector<1x32x16xbf16> to vector<32x16xbf16>
    %90 = arith.truncf %87 : vector<16x98xf32> to vector<16x98xbf16>
    %cst_70 = arith.constant dense<0.000000e+00> : vector<32x98xf32>
    %91 = tpu.matmul %89, %90, %cst_70 {dimension_numbers = #tpu.dot_dimension_numbers<[1], [0], [0], [1], [0, 0, 1, 1], [], []>} : vector<32x16xbf16>, vector<16x98xbf16>, vector<32x98xf32> -> vector<32x98xf32>
    %92 = arith.addf %84, %91 : vector<32x98xf32>
    %c8 = arith.constant 8 : index
    %c0_71 = arith.constant 0 : index
    %c0_72 = arith.constant 0 : index
    %93 = vector.load %arg5[%c8, %c0_71, %c0_72] : memref<25x648x98xbf16, #tpu.memory_space<vmem>>, vector<1x648x98xbf16>
    %94 = vector.shape_cast %93 : vector<1x648x98xbf16> to vector<648x98xbf16>
    %cst_73 = arith.constant dense<0.000000e+00> : vector<16x98xf32>
    %95 = tpu.matmul %27, %94, %cst_73 {dimension_numbers = #tpu.dot_dimension_numbers<[1], [0], [0], [1], [0, 0, 1, 1], [], []>} : vector<16x648xbf16>, vector<648x98xbf16>, vector<16x98xf32> -> vector<16x98xf32>
    %c8_74 = arith.constant 8 : index
    %c0_75 = arith.constant 0 : index
    %c0_76 = arith.constant 0 : index
    %96 = vector.load %arg6[%c8_74, %c0_75, %c0_76] : memref<25x32x16xbf16, #tpu.memory_space<vmem>>, vector<1x32x16xbf16>
    %97 = vector.shape_cast %96 : vector<1x32x16xbf16> to vector<32x16xbf16>
    %98 = arith.truncf %95 : vector<16x98xf32> to vector<16x98xbf16>
    %cst_77 = arith.constant dense<0.000000e+00> : vector<32x98xf32>
    %99 = tpu.matmul %97, %98, %cst_77 {dimension_numbers = #tpu.dot_dimension_numbers<[1], [0], [0], [1], [0, 0, 1, 1], [], []>} : vector<32x16xbf16>, vector<16x98xbf16>, vector<32x98xf32> -> vector<32x98xf32>
    %100 = arith.addf %92, %99 : vector<32x98xf32>
    %c9 = arith.constant 9 : index
    %c0_78 = arith.constant 0 : index
    %c0_79 = arith.constant 0 : index
    %101 = vector.load %arg5[%c9, %c0_78, %c0_79] : memref<25x648x98xbf16, #tpu.memory_space<vmem>>, vector<1x648x98xbf16>
    %102 = vector.shape_cast %101 : vector<1x648x98xbf16> to vector<648x98xbf16>
    %cst_80 = arith.constant dense<0.000000e+00> : vector<16x98xf32>
    %103 = tpu.matmul %27, %102, %cst_80 {dimension_numbers = #tpu.dot_dimension_numbers<[1], [0], [0], [1], [0, 0, 1, 1], [], []>} : vector<16x648xbf16>, vector<648x98xbf16>, vector<16x98xf32> -> vector<16x98xf32>
    %c9_81 = arith.constant 9 : index
    %c0_82 = arith.constant 0 : index
    %c0_83 = arith.constant 0 : index
    %104 = vector.load %arg6[%c9_81, %c0_82, %c0_83] : memref<25x32x16xbf16, #tpu.memory_space<vmem>>, vector<1x32x16xbf16>
    %105 = vector.shape_cast %104 : vector<1x32x16xbf16> to vector<32x16xbf16>
    %106 = arith.truncf %103 : vector<16x98xf32> to vector<16x98xbf16>
    %cst_84 = arith.constant dense<0.000000e+00> : vector<32x98xf32>
    %107 = tpu.matmul %105, %106, %cst_84 {dimension_numbers = #tpu.dot_dimension_numbers<[1], [0], [0], [1], [0, 0, 1, 1], [], []>} : vector<32x16xbf16>, vector<16x98xbf16>, vector<32x98xf32> -> vector<32x98xf32>
    %108 = arith.addf %100, %107 : vector<32x98xf32>
    %c10 = arith.constant 10 : index
    %c0_85 = arith.constant 0 : index
    %c0_86 = arith.constant 0 : index
    %109 = vector.load %arg5[%c10, %c0_85, %c0_86] : memref<25x648x98xbf16, #tpu.memory_space<vmem>>, vector<1x648x98xbf16>
    %110 = vector.shape_cast %109 : vector<1x648x98xbf16> to vector<648x98xbf16>
    %cst_87 = arith.constant dense<0.000000e+00> : vector<16x98xf32>
    %111 = tpu.matmul %27, %110, %cst_87 {dimension_numbers = #tpu.dot_dimension_numbers<[1], [0], [0], [1], [0, 0, 1, 1], [], []>} : vector<16x648xbf16>, vector<648x98xbf16>, vector<16x98xf32> -> vector<16x98xf32>
    %c10_88 = arith.constant 10 : index
    %c0_89 = arith.constant 0 : index
    %c0_90 = arith.constant 0 : index
    %112 = vector.load %arg6[%c10_88, %c0_89, %c0_90] : memref<25x32x16xbf16, #tpu.memory_space<vmem>>, vector<1x32x16xbf16>
    %113 = vector.shape_cast %112 : vector<1x32x16xbf16> to vector<32x16xbf16>
    %114 = arith.truncf %111 : vector<16x98xf32> to vector<16x98xbf16>
    %cst_91 = arith.constant dense<0.000000e+00> : vector<32x98xf32>
    %115 = tpu.matmul %113, %114, %cst_91 {dimension_numbers = #tpu.dot_dimension_numbers<[1], [0], [0], [1], [0, 0, 1, 1], [], []>} : vector<32x16xbf16>, vector<16x98xbf16>, vector<32x98xf32> -> vector<32x98xf32>
    %116 = arith.addf %108, %115 : vector<32x98xf32>
    %c11 = arith.constant 11 : index
    %c0_92 = arith.constant 0 : index
    %c0_93 = arith.constant 0 : index
    %117 = vector.load %arg5[%c11, %c0_92, %c0_93] : memref<25x648x98xbf16, #tpu.memory_space<vmem>>, vector<1x648x98xbf16>
    %118 = vector.shape_cast %117 : vector<1x648x98xbf16> to vector<648x98xbf16>
    %cst_94 = arith.constant dense<0.000000e+00> : vector<16x98xf32>
    %119 = tpu.matmul %27, %118, %cst_94 {dimension_numbers = #tpu.dot_dimension_numbers<[1], [0], [0], [1], [0, 0, 1, 1], [], []>} : vector<16x648xbf16>, vector<648x98xbf16>, vector<16x98xf32> -> vector<16x98xf32>
    %c11_95 = arith.constant 11 : index
    %c0_96 = arith.constant 0 : index
    %c0_97 = arith.constant 0 : index
    %120 = vector.load %arg6[%c11_95, %c0_96, %c0_97] : memref<25x32x16xbf16, #tpu.memory_space<vmem>>, vector<1x32x16xbf16>
    %121 = vector.shape_cast %120 : vector<1x32x16xbf16> to vector<32x16xbf16>
    %122 = arith.truncf %119 : vector<16x98xf32> to vector<16x98xbf16>
    %cst_98 = arith.constant dense<0.000000e+00> : vector<32x98xf32>
    %123 = tpu.matmul %121, %122, %cst_98 {dimension_numbers = #tpu.dot_dimension_numbers<[1], [0], [0], [1], [0, 0, 1, 1], [], []>} : vector<32x16xbf16>, vector<16x98xbf16>, vector<32x98xf32> -> vector<32x98xf32>
    %124 = arith.addf %116, %123 : vector<32x98xf32>
    %c12 = arith.constant 12 : index
    %c0_99 = arith.constant 0 : index
    %c0_100 = arith.constant 0 : index
    %125 = vector.load %arg5[%c12, %c0_99, %c0_100] : memref<25x648x98xbf16, #tpu.memory_space<vmem>>, vector<1x648x98xbf16>
    %126 = vector.shape_cast %125 : vector<1x648x98xbf16> to vector<648x98xbf16>
    %cst_101 = arith.constant dense<0.000000e+00> : vector<16x98xf32>
    %127 = tpu.matmul %27, %126, %cst_101 {dimension_numbers = #tpu.dot_dimension_numbers<[1], [0], [0], [1], [0, 0, 1, 1], [], []>} : vector<16x648xbf16>, vector<648x98xbf16>, vector<16x98xf32> -> vector<16x98xf32>
    %c12_102 = arith.constant 12 : index
    %c0_103 = arith.constant 0 : index
    %c0_104 = arith.constant 0 : index
    %128 = vector.load %arg6[%c12_102, %c0_103, %c0_104] : memref<25x32x16xbf16, #tpu.memory_space<vmem>>, vector<1x32x16xbf16>
    %129 = vector.shape_cast %128 : vector<1x32x16xbf16> to vector<32x16xbf16>
    %130 = arith.truncf %127 : vector<16x98xf32> to vector<16x98xbf16>
    %cst_105 = arith.constant dense<0.000000e+00> : vector<32x98xf32>
    %131 = tpu.matmul %129, %130, %cst_105 {dimension_numbers = #tpu.dot_dimension_numbers<[1], [0], [0], [1], [0, 0, 1, 1], [], []>} : vector<32x16xbf16>, vector<16x98xbf16>, vector<32x98xf32> -> vector<32x98xf32>
    %132 = arith.addf %124, %131 : vector<32x98xf32>
    %c13 = arith.constant 13 : index
    %c0_106 = arith.constant 0 : index
    %c0_107 = arith.constant 0 : index
    %133 = vector.load %arg5[%c13, %c0_106, %c0_107] : memref<25x648x98xbf16, #tpu.memory_space<vmem>>, vector<1x648x98xbf16>
    %134 = vector.shape_cast %133 : vector<1x648x98xbf16> to vector<648x98xbf16>
    %cst_108 = arith.constant dense<0.000000e+00> : vector<16x98xf32>
    %135 = tpu.matmul %27, %134, %cst_108 {dimension_numbers = #tpu.dot_dimension_numbers<[1], [0], [0], [1], [0, 0, 1, 1], [], []>} : vector<16x648xbf16>, vector<648x98xbf16>, vector<16x98xf32> -> vector<16x98xf32>
    %c13_109 = arith.constant 13 : index
    %c0_110 = arith.constant 0 : index
    %c0_111 = arith.constant 0 : index
    %136 = vector.load %arg6[%c13_109, %c0_110, %c0_111] : memref<25x32x16xbf16, #tpu.memory_space<vmem>>, vector<1x32x16xbf16>
    %137 = vector.shape_cast %136 : vector<1x32x16xbf16> to vector<32x16xbf16>
    %138 = arith.truncf %135 : vector<16x98xf32> to vector<16x98xbf16>
    %cst_112 = arith.constant dense<0.000000e+00> : vector<32x98xf32>
    %139 = tpu.matmul %137, %138, %cst_112 {dimension_numbers = #tpu.dot_dimension_numbers<[1], [0], [0], [1], [0, 0, 1, 1], [], []>} : vector<32x16xbf16>, vector<16x98xbf16>, vector<32x98xf32> -> vector<32x98xf32>
    %140 = arith.addf %132, %139 : vector<32x98xf32>
    %c14 = arith.constant 14 : index
    %c0_113 = arith.constant 0 : index
    %c0_114 = arith.constant 0 : index
    %141 = vector.load %arg5[%c14, %c0_113, %c0_114] : memref<25x648x98xbf16, #tpu.memory_space<vmem>>, vector<1x648x98xbf16>
    %142 = vector.shape_cast %141 : vector<1x648x98xbf16> to vector<648x98xbf16>
    %cst_115 = arith.constant dense<0.000000e+00> : vector<16x98xf32>
    %143 = tpu.matmul %27, %142, %cst_115 {dimension_numbers = #tpu.dot_dimension_numbers<[1], [0], [0], [1], [0, 0, 1, 1], [], []>} : vector<16x648xbf16>, vector<648x98xbf16>, vector<16x98xf32> -> vector<16x98xf32>
    %c14_116 = arith.constant 14 : index
    %c0_117 = arith.constant 0 : index
    %c0_118 = arith.constant 0 : index
    %144 = vector.load %arg6[%c14_116, %c0_117, %c0_118] : memref<25x32x16xbf16, #tpu.memory_space<vmem>>, vector<1x32x16xbf16>
    %145 = vector.shape_cast %144 : vector<1x32x16xbf16> to vector<32x16xbf16>
    %146 = arith.truncf %143 : vector<16x98xf32> to vector<16x98xbf16>
    %cst_119 = arith.constant dense<0.000000e+00> : vector<32x98xf32>
    %147 = tpu.matmul %145, %146, %cst_119 {dimension_numbers = #tpu.dot_dimension_numbers<[1], [0], [0], [1], [0, 0, 1, 1], [], []>} : vector<32x16xbf16>, vector<16x98xbf16>, vector<32x98xf32> -> vector<32x98xf32>
    %148 = arith.addf %140, %147 : vector<32x98xf32>
    %c15 = arith.constant 15 : index
    %c0_120 = arith.constant 0 : index
    %c0_121 = arith.constant 0 : index
    %149 = vector.load %arg5[%c15, %c0_120, %c0_121] : memref<25x648x98xbf16, #tpu.memory_space<vmem>>, vector<1x648x98xbf16>
    %150 = vector.shape_cast %149 : vector<1x648x98xbf16> to vector<648x98xbf16>
    %cst_122 = arith.constant dense<0.000000e+00> : vector<16x98xf32>
    %151 = tpu.matmul %27, %150, %cst_122 {dimension_numbers = #tpu.dot_dimension_numbers<[1], [0], [0], [1], [0, 0, 1, 1], [], []>} : vector<16x648xbf16>, vector<648x98xbf16>, vector<16x98xf32> -> vector<16x98xf32>
    %c15_123 = arith.constant 15 : index
    %c0_124 = arith.constant 0 : index
    %c0_125 = arith.constant 0 : index
    %152 = vector.load %arg6[%c15_123, %c0_124, %c0_125] : memref<25x32x16xbf16, #tpu.memory_space<vmem>>, vector<1x32x16xbf16>
    %153 = vector.shape_cast %152 : vector<1x32x16xbf16> to vector<32x16xbf16>
    %154 = arith.truncf %151 : vector<16x98xf32> to vector<16x98xbf16>
    %cst_126 = arith.constant dense<0.000000e+00> : vector<32x98xf32>
    %155 = tpu.matmul %153, %154, %cst_126 {dimension_numbers = #tpu.dot_dimension_numbers<[1], [0], [0], [1], [0, 0, 1, 1], [], []>} : vector<32x16xbf16>, vector<16x98xbf16>, vector<32x98xf32> -> vector<32x98xf32>
    %156 = arith.addf %148, %155 : vector<32x98xf32>
    %c16 = arith.constant 16 : index
    %c0_127 = arith.constant 0 : index
    %c0_128 = arith.constant 0 : index
    %157 = vector.load %arg5[%c16, %c0_127, %c0_128] : memref<25x648x98xbf16, #tpu.memory_space<vmem>>, vector<1x648x98xbf16>
    %158 = vector.shape_cast %157 : vector<1x648x98xbf16> to vector<648x98xbf16>
    %cst_129 = arith.constant dense<0.000000e+00> : vector<16x98xf32>
    %159 = tpu.matmul %27, %158, %cst_129 {dimension_numbers = #tpu.dot_dimension_numbers<[1], [0], [0], [1], [0, 0, 1, 1], [], []>} : vector<16x648xbf16>, vector<648x98xbf16>, vector<16x98xf32> -> vector<16x98xf32>
    %c16_130 = arith.constant 16 : index
    %c0_131 = arith.constant 0 : index
    %c0_132 = arith.constant 0 : index
    %160 = vector.load %arg6[%c16_130, %c0_131, %c0_132] : memref<25x32x16xbf16, #tpu.memory_space<vmem>>, vector<1x32x16xbf16>
    %161 = vector.shape_cast %160 : vector<1x32x16xbf16> to vector<32x16xbf16>
    %162 = arith.truncf %159 : vector<16x98xf32> to vector<16x98xbf16>
    %cst_133 = arith.constant dense<0.000000e+00> : vector<32x98xf32>
    %163 = tpu.matmul %161, %162, %cst_133 {dimension_numbers = #tpu.dot_dimension_numbers<[1], [0], [0], [1], [0, 0, 1, 1], [], []>} : vector<32x16xbf16>, vector<16x98xbf16>, vector<32x98xf32> -> vector<32x98xf32>
    %164 = arith.addf %156, %163 : vector<32x98xf32>
    %c17 = arith.constant 17 : index
    %c0_134 = arith.constant 0 : index
    %c0_135 = arith.constant 0 : index
    %165 = vector.load %arg5[%c17, %c0_134, %c0_135] : memref<25x648x98xbf16, #tpu.memory_space<vmem>>, vector<1x648x98xbf16>
    %166 = vector.shape_cast %165 : vector<1x648x98xbf16> to vector<648x98xbf16>
    %cst_136 = arith.constant dense<0.000000e+00> : vector<16x98xf32>
    %167 = tpu.matmul %27, %166, %cst_136 {dimension_numbers = #tpu.dot_dimension_numbers<[1], [0], [0], [1], [0, 0, 1, 1], [], []>} : vector<16x648xbf16>, vector<648x98xbf16>, vector<16x98xf32> -> vector<16x98xf32>
    %c17_137 = arith.constant 17 : index
    %c0_138 = arith.constant 0 : index
    %c0_139 = arith.constant 0 : index
    %168 = vector.load %arg6[%c17_137, %c0_138, %c0_139] : memref<25x32x16xbf16, #tpu.memory_space<vmem>>, vector<1x32x16xbf16>
    %169 = vector.shape_cast %168 : vector<1x32x16xbf16> to vector<32x16xbf16>
    %170 = arith.truncf %167 : vector<16x98xf32> to vector<16x98xbf16>
    %cst_140 = arith.constant dense<0.000000e+00> : vector<32x98xf32>
    %171 = tpu.matmul %169, %170, %cst_140 {dimension_numbers = #tpu.dot_dimension_numbers<[1], [0], [0], [1], [0, 0, 1, 1], [], []>} : vector<32x16xbf16>, vector<16x98xbf16>, vector<32x98xf32> -> vector<32x98xf32>
    %172 = arith.addf %164, %171 : vector<32x98xf32>
    %c18 = arith.constant 18 : index
    %c0_141 = arith.constant 0 : index
    %c0_142 = arith.constant 0 : index
    %173 = vector.load %arg5[%c18, %c0_141, %c0_142] : memref<25x648x98xbf16, #tpu.memory_space<vmem>>, vector<1x648x98xbf16>
    %174 = vector.shape_cast %173 : vector<1x648x98xbf16> to vector<648x98xbf16>
    %cst_143 = arith.constant dense<0.000000e+00> : vector<16x98xf32>
    %175 = tpu.matmul %27, %174, %cst_143 {dimension_numbers = #tpu.dot_dimension_numbers<[1], [0], [0], [1], [0, 0, 1, 1], [], []>} : vector<16x648xbf16>, vector<648x98xbf16>, vector<16x98xf32> -> vector<16x98xf32>
    %c18_144 = arith.constant 18 : index
    %c0_145 = arith.constant 0 : index
    %c0_146 = arith.constant 0 : index
    %176 = vector.load %arg6[%c18_144, %c0_145, %c0_146] : memref<25x32x16xbf16, #tpu.memory_space<vmem>>, vector<1x32x16xbf16>
    %177 = vector.shape_cast %176 : vector<1x32x16xbf16> to vector<32x16xbf16>
    %178 = arith.truncf %175 : vector<16x98xf32> to vector<16x98xbf16>
    %cst_147 = arith.constant dense<0.000000e+00> : vector<32x98xf32>
    %179 = tpu.matmul %177, %178, %cst_147 {dimension_numbers = #tpu.dot_dimension_numbers<[1], [0], [0], [1], [0, 0, 1, 1], [], []>} : vector<32x16xbf16>, vector<16x98xbf16>, vector<32x98xf32> -> vector<32x98xf32>
    %180 = arith.addf %172, %179 : vector<32x98xf32>
    %c19 = arith.constant 19 : index
    %c0_148 = arith.constant 0 : index
    %c0_149 = arith.constant 0 : index
    %181 = vector.load %arg5[%c19, %c0_148, %c0_149] : memref<25x648x98xbf16, #tpu.memory_space<vmem>>, vector<1x648x98xbf16>
    %182 = vector.shape_cast %181 : vector<1x648x98xbf16> to vector<648x98xbf16>
    %cst_150 = arith.constant dense<0.000000e+00> : vector<16x98xf32>
    %183 = tpu.matmul %27, %182, %cst_150 {dimension_numbers = #tpu.dot_dimension_numbers<[1], [0], [0], [1], [0, 0, 1, 1], [], []>} : vector<16x648xbf16>, vector<648x98xbf16>, vector<16x98xf32> -> vector<16x98xf32>
    %c19_151 = arith.constant 19 : index
    %c0_152 = arith.constant 0 : index
    %c0_153 = arith.constant 0 : index
    %184 = vector.load %arg6[%c19_151, %c0_152, %c0_153] : memref<25x32x16xbf16, #tpu.memory_space<vmem>>, vector<1x32x16xbf16>
    %185 = vector.shape_cast %184 : vector<1x32x16xbf16> to vector<32x16xbf16>
    %186 = arith.truncf %183 : vector<16x98xf32> to vector<16x98xbf16>
    %cst_154 = arith.constant dense<0.000000e+00> : vector<32x98xf32>
    %187 = tpu.matmul %185, %186, %cst_154 {dimension_numbers = #tpu.dot_dimension_numbers<[1], [0], [0], [1], [0, 0, 1, 1], [], []>} : vector<32x16xbf16>, vector<16x98xbf16>, vector<32x98xf32> -> vector<32x98xf32>
    %188 = arith.addf %180, %187 : vector<32x98xf32>
    %c20 = arith.constant 20 : index
    %c0_155 = arith.constant 0 : index
    %c0_156 = arith.constant 0 : index
    %189 = vector.load %arg5[%c20, %c0_155, %c0_156] : memref<25x648x98xbf16, #tpu.memory_space<vmem>>, vector<1x648x98xbf16>
    %190 = vector.shape_cast %189 : vector<1x648x98xbf16> to vector<648x98xbf16>
    %cst_157 = arith.constant dense<0.000000e+00> : vector<16x98xf32>
    %191 = tpu.matmul %27, %190, %cst_157 {dimension_numbers = #tpu.dot_dimension_numbers<[1], [0], [0], [1], [0, 0, 1, 1], [], []>} : vector<16x648xbf16>, vector<648x98xbf16>, vector<16x98xf32> -> vector<16x98xf32>
    %c20_158 = arith.constant 20 : index
    %c0_159 = arith.constant 0 : index
    %c0_160 = arith.constant 0 : index
    %192 = vector.load %arg6[%c20_158, %c0_159, %c0_160] : memref<25x32x16xbf16, #tpu.memory_space<vmem>>, vector<1x32x16xbf16>
    %193 = vector.shape_cast %192 : vector<1x32x16xbf16> to vector<32x16xbf16>
    %194 = arith.truncf %191 : vector<16x98xf32> to vector<16x98xbf16>
    %cst_161 = arith.constant dense<0.000000e+00> : vector<32x98xf32>
    %195 = tpu.matmul %193, %194, %cst_161 {dimension_numbers = #tpu.dot_dimension_numbers<[1], [0], [0], [1], [0, 0, 1, 1], [], []>} : vector<32x16xbf16>, vector<16x98xbf16>, vector<32x98xf32> -> vector<32x98xf32>
    %196 = arith.addf %188, %195 : vector<32x98xf32>
    %c21 = arith.constant 21 : index
    %c0_162 = arith.constant 0 : index
    %c0_163 = arith.constant 0 : index
    %197 = vector.load %arg5[%c21, %c0_162, %c0_163] : memref<25x648x98xbf16, #tpu.memory_space<vmem>>, vector<1x648x98xbf16>
    %198 = vector.shape_cast %197 : vector<1x648x98xbf16> to vector<648x98xbf16>
    %cst_164 = arith.constant dense<0.000000e+00> : vector<16x98xf32>
    %199 = tpu.matmul %27, %198, %cst_164 {dimension_numbers = #tpu.dot_dimension_numbers<[1], [0], [0], [1], [0, 0, 1, 1], [], []>} : vector<16x648xbf16>, vector<648x98xbf16>, vector<16x98xf32> -> vector<16x98xf32>
    %c21_165 = arith.constant 21 : index
    %c0_166 = arith.constant 0 : index
    %c0_167 = arith.constant 0 : index
    %200 = vector.load %arg6[%c21_165, %c0_166, %c0_167] : memref<25x32x16xbf16, #tpu.memory_space<vmem>>, vector<1x32x16xbf16>
    %201 = vector.shape_cast %200 : vector<1x32x16xbf16> to vector<32x16xbf16>
    %202 = arith.truncf %199 : vector<16x98xf32> to vector<16x98xbf16>
    %cst_168 = arith.constant dense<0.000000e+00> : vector<32x98xf32>
    %203 = tpu.matmul %201, %202, %cst_168 {dimension_numbers = #tpu.dot_dimension_numbers<[1], [0], [0], [1], [0, 0, 1, 1], [], []>} : vector<32x16xbf16>, vector<16x98xbf16>, vector<32x98xf32> -> vector<32x98xf32>
    %204 = arith.addf %196, %203 : vector<32x98xf32>
    %c22 = arith.constant 22 : index
    %c0_169 = arith.constant 0 : index
    %c0_170 = arith.constant 0 : index
    %205 = vector.load %arg5[%c22, %c0_169, %c0_170] : memref<25x648x98xbf16, #tpu.memory_space<vmem>>, vector<1x648x98xbf16>
    %206 = vector.shape_cast %205 : vector<1x648x98xbf16> to vector<648x98xbf16>
    %cst_171 = arith.constant dense<0.000000e+00> : vector<16x98xf32>
    %207 = tpu.matmul %27, %206, %cst_171 {dimension_numbers = #tpu.dot_dimension_numbers<[1], [0], [0], [1], [0, 0, 1, 1], [], []>} : vector<16x648xbf16>, vector<648x98xbf16>, vector<16x98xf32> -> vector<16x98xf32>
    %c22_172 = arith.constant 22 : index
    %c0_173 = arith.constant 0 : index
    %c0_174 = arith.constant 0 : index
    %208 = vector.load %arg6[%c22_172, %c0_173, %c0_174] : memref<25x32x16xbf16, #tpu.memory_space<vmem>>, vector<1x32x16xbf16>
    %209 = vector.shape_cast %208 : vector<1x32x16xbf16> to vector<32x16xbf16>
    %210 = arith.truncf %207 : vector<16x98xf32> to vector<16x98xbf16>
    %cst_175 = arith.constant dense<0.000000e+00> : vector<32x98xf32>
    %211 = tpu.matmul %209, %210, %cst_175 {dimension_numbers = #tpu.dot_dimension_numbers<[1], [0], [0], [1], [0, 0, 1, 1], [], []>} : vector<32x16xbf16>, vector<16x98xbf16>, vector<32x98xf32> -> vector<32x98xf32>
    %212 = arith.addf %204, %211 : vector<32x98xf32>
    %c23 = arith.constant 23 : index
    %c0_176 = arith.constant 0 : index
    %c0_177 = arith.constant 0 : index
    %213 = vector.load %arg5[%c23, %c0_176, %c0_177] : memref<25x648x98xbf16, #tpu.memory_space<vmem>>, vector<1x648x98xbf16>
    %214 = vector.shape_cast %213 : vector<1x648x98xbf16> to vector<648x98xbf16>
    %cst_178 = arith.constant dense<0.000000e+00> : vector<16x98xf32>
    %215 = tpu.matmul %27, %214, %cst_178 {dimension_numbers = #tpu.dot_dimension_numbers<[1], [0], [0], [1], [0, 0, 1, 1], [], []>} : vector<16x648xbf16>, vector<648x98xbf16>, vector<16x98xf32> -> vector<16x98xf32>
    %c23_179 = arith.constant 23 : index
    %c0_180 = arith.constant 0 : index
    %c0_181 = arith.constant 0 : index
    %216 = vector.load %arg6[%c23_179, %c0_180, %c0_181] : memref<25x32x16xbf16, #tpu.memory_space<vmem>>, vector<1x32x16xbf16>
    %217 = vector.shape_cast %216 : vector<1x32x16xbf16> to vector<32x16xbf16>
    %218 = arith.truncf %215 : vector<16x98xf32> to vector<16x98xbf16>
    %cst_182 = arith.constant dense<0.000000e+00> : vector<32x98xf32>
    %219 = tpu.matmul %217, %218, %cst_182 {dimension_numbers = #tpu.dot_dimension_numbers<[1], [0], [0], [1], [0, 0, 1, 1], [], []>} : vector<32x16xbf16>, vector<16x98xbf16>, vector<32x98xf32> -> vector<32x98xf32>
    %220 = arith.addf %212, %219 : vector<32x98xf32>
    %c24 = arith.constant 24 : index
    %c0_183 = arith.constant 0 : index
    %c0_184 = arith.constant 0 : index
    %221 = vector.load %arg5[%c24, %c0_183, %c0_184] : memref<25x648x98xbf16, #tpu.memory_space<vmem>>, vector<1x648x98xbf16>
    %222 = vector.shape_cast %221 : vector<1x648x98xbf16> to vector<648x98xbf16>
    %cst_185 = arith.constant dense<0.000000e+00> : vector<16x98xf32>
    %223 = tpu.matmul %27, %222, %cst_185 {dimension_numbers = #tpu.dot_dimension_numbers<[1], [0], [0], [1], [0, 0, 1, 1], [], []>} : vector<16x648xbf16>, vector<648x98xbf16>, vector<16x98xf32> -> vector<16x98xf32>
    %c24_186 = arith.constant 24 : index
    %c0_187 = arith.constant 0 : index
    %c0_188 = arith.constant 0 : index
    %224 = vector.load %arg6[%c24_186, %c0_187, %c0_188] : memref<25x32x16xbf16, #tpu.memory_space<vmem>>, vector<1x32x16xbf16>
    %225 = vector.shape_cast %224 : vector<1x32x16xbf16> to vector<32x16xbf16>
    %226 = arith.truncf %223 : vector<16x98xf32> to vector<16x98xbf16>
    %cst_189 = arith.constant dense<0.000000e+00> : vector<32x98xf32>
    %227 = tpu.matmul %225, %226, %cst_189 {dimension_numbers = #tpu.dot_dimension_numbers<[1], [0], [0], [1], [0, 0, 1, 1], [], []>} : vector<32x16xbf16>, vector<16x98xbf16>, vector<32x98xf32> -> vector<32x98xf32>
    %228 = arith.addf %220, %227 : vector<32x98xf32>
    %c0_190 = arith.constant 0 : index
    %c0_191 = arith.constant 0 : index
    %229 = vector.load %arg7[%c0_190, %c0_191] : memref<32x1xf32, #tpu.memory_space<vmem>>, vector<32x1xf32>
    %c0_192 = arith.constant 0 : index
    %c0_193 = arith.constant 0 : index
    %230 = vector.load %arg8[%c0_192, %c0_193] : memref<32x1xf32, #tpu.memory_space<vmem>>, vector<32x1xf32>
    %cst_194 = arith.constant dense<0.000000e+00> : vector<32xf32>
    %231 = vector.multi_reduction <add>, %228, %cst_194 [1] : vector<32x98xf32> to vector<32xf32>
    %232 = vector.shape_cast %231 : vector<32xf32> to vector<32x1xf32>
    %cst_195 = arith.constant 9.800000e+01 : f32
    %233 = vector.broadcast %cst_195 : f32 to vector<32x1xf32>
    %234 = arith.divf %232, %233 : vector<32x1xf32>
    %235 = vector.broadcast %234 : vector<32x1xf32> to vector<32x98xf32>
    %236 = arith.subf %228, %235 : vector<32x98xf32>
    %237 = arith.mulf %236, %236 : vector<32x98xf32>
    %cst_196 = arith.constant dense<0.000000e+00> : vector<32xf32>
    %238 = vector.multi_reduction <add>, %237, %cst_196 [1] : vector<32x98xf32> to vector<32xf32>
    %239 = vector.shape_cast %238 : vector<32xf32> to vector<32x1xf32>
    %cst_197 = arith.constant 9.800000e+01 : f32
    %240 = vector.broadcast %cst_197 : f32 to vector<32x1xf32>
    %241 = arith.divf %239, %240 : vector<32x1xf32>
    %cst_198 = arith.constant 9.99999974E-6 : f32
    %242 = vector.broadcast %cst_198 : f32 to vector<32x1xf32>
    %243 = arith.addf %241, %242 : vector<32x1xf32>
    %244 = math.rsqrt %243 : vector<32x1xf32>
    %245 = vector.broadcast %244 : vector<32x1xf32> to vector<32x98xf32>
    %246 = arith.mulf %236, %245 : vector<32x98xf32>
    %247 = vector.broadcast %229 : vector<32x1xf32> to vector<32x98xf32>
    %248 = arith.mulf %247, %246 : vector<32x98xf32>
    %249 = vector.broadcast %230 : vector<32x1xf32> to vector<32x98xf32>
    %250 = arith.addf %248, %249 : vector<32x98xf32>
    %cst_199 = arith.constant 0.000000e+00 : f32
    %251 = vector.broadcast %cst_199 : f32 to vector<32x98xf32>
    %252 = arith.maximumf %250, %251 : vector<32x98xf32>
    %253 = arith.truncf %252 : vector<32x98xf32> to vector<32x98xbf16>
    %cst_200 = arith.constant 0.000000e+00 : f32
    %254 = vector.broadcast %cst_200 : f32 to vector<32x8xf32>
    %c0_201 = arith.constant 0 : index
    %c0_202 = arith.constant 0 : index
    %c0_203 = arith.constant 0 : index
    %255 = vector.load %arg9[%c0_201, %c0_202, %c0_203] : memref<25x98x8xbf16, #tpu.memory_space<vmem>>, vector<1x98x8xbf16>
    %256 = vector.shape_cast %255 : vector<1x98x8xbf16> to vector<98x8xbf16>
    %cst_204 = arith.constant dense<0.000000e+00> : vector<32x8xf32>
    %257 = tpu.matmul %253, %256, %cst_204 {dimension_numbers = #tpu.dot_dimension_numbers<[1], [0], [0], [1], [0, 0, 1, 1], [], []>} : vector<32x98xbf16>, vector<98x8xbf16>, vector<32x8xf32> -> vector<32x8xf32>
    %c0_205 = arith.constant 0 : index
    %c0_206 = arith.constant 0 : index
    %c0_207 = arith.constant 0 : index
    %258 = vector.load %arg10[%c0_205, %c0_206, %c0_207] : memref<25x32x32xbf16, #tpu.memory_space<vmem>>, vector<1x32x32xbf16>
    %259 = vector.shape_cast %258 : vector<1x32x32xbf16> to vector<32x32xbf16>
    %260 = arith.truncf %257 : vector<32x8xf32> to vector<32x8xbf16>
    %cst_208 = arith.constant dense<0.000000e+00> : vector<32x8xf32>
    %261 = tpu.matmul %259, %260, %cst_208 {dimension_numbers = #tpu.dot_dimension_numbers<[1], [0], [0], [1], [0, 0, 1, 1], [], []>} : vector<32x32xbf16>, vector<32x8xbf16>, vector<32x8xf32> -> vector<32x8xf32>
    %262 = arith.addf %254, %261 : vector<32x8xf32>
    %c1_209 = arith.constant 1 : index
    %c0_210 = arith.constant 0 : index
    %c0_211 = arith.constant 0 : index
    %263 = vector.load %arg9[%c1_209, %c0_210, %c0_211] : memref<25x98x8xbf16, #tpu.memory_space<vmem>>, vector<1x98x8xbf16>
    %264 = vector.shape_cast %263 : vector<1x98x8xbf16> to vector<98x8xbf16>
    %cst_212 = arith.constant dense<0.000000e+00> : vector<32x8xf32>
    %265 = tpu.matmul %253, %264, %cst_212 {dimension_numbers = #tpu.dot_dimension_numbers<[1], [0], [0], [1], [0, 0, 1, 1], [], []>} : vector<32x98xbf16>, vector<98x8xbf16>, vector<32x8xf32> -> vector<32x8xf32>
    %c1_213 = arith.constant 1 : index
    %c0_214 = arith.constant 0 : index
    %c0_215 = arith.constant 0 : index
    %266 = vector.load %arg10[%c1_213, %c0_214, %c0_215] : memref<25x32x32xbf16, #tpu.memory_space<vmem>>, vector<1x32x32xbf16>
    %267 = vector.shape_cast %266 : vector<1x32x32xbf16> to vector<32x32xbf16>
    %268 = arith.truncf %265 : vector<32x8xf32> to vector<32x8xbf16>
    %cst_216 = arith.constant dense<0.000000e+00> : vector<32x8xf32>
    %269 = tpu.matmul %267, %268, %cst_216 {dimension_numbers = #tpu.dot_dimension_numbers<[1], [0], [0], [1], [0, 0, 1, 1], [], []>} : vector<32x32xbf16>, vector<32x8xbf16>, vector<32x8xf32> -> vector<32x8xf32>
    %270 = arith.addf %262, %269 : vector<32x8xf32>
    %c2_217 = arith.constant 2 : index
    %c0_218 = arith.constant 0 : index
    %c0_219 = arith.constant 0 : index
    %271 = vector.load %arg9[%c2_217, %c0_218, %c0_219] : memref<25x98x8xbf16, #tpu.memory_space<vmem>>, vector<1x98x8xbf16>
    %272 = vector.shape_cast %271 : vector<1x98x8xbf16> to vector<98x8xbf16>
    %cst_220 = arith.constant dense<0.000000e+00> : vector<32x8xf32>
    %273 = tpu.matmul %253, %272, %cst_220 {dimension_numbers = #tpu.dot_dimension_numbers<[1], [0], [0], [1], [0, 0, 1, 1], [], []>} : vector<32x98xbf16>, vector<98x8xbf16>, vector<32x8xf32> -> vector<32x8xf32>
    %c2_221 = arith.constant 2 : index
    %c0_222 = arith.constant 0 : index
    %c0_223 = arith.constant 0 : index
    %274 = vector.load %arg10[%c2_221, %c0_222, %c0_223] : memref<25x32x32xbf16, #tpu.memory_space<vmem>>, vector<1x32x32xbf16>
    %275 = vector.shape_cast %274 : vector<1x32x32xbf16> to vector<32x32xbf16>
    %276 = arith.truncf %273 : vector<32x8xf32> to vector<32x8xbf16>
    %cst_224 = arith.constant dense<0.000000e+00> : vector<32x8xf32>
    %277 = tpu.matmul %275, %276, %cst_224 {dimension_numbers = #tpu.dot_dimension_numbers<[1], [0], [0], [1], [0, 0, 1, 1], [], []>} : vector<32x32xbf16>, vector<32x8xbf16>, vector<32x8xf32> -> vector<32x8xf32>
    %278 = arith.addf %270, %277 : vector<32x8xf32>
    %c3_225 = arith.constant 3 : index
    %c0_226 = arith.constant 0 : index
    %c0_227 = arith.constant 0 : index
    %279 = vector.load %arg9[%c3_225, %c0_226, %c0_227] : memref<25x98x8xbf16, #tpu.memory_space<vmem>>, vector<1x98x8xbf16>
    %280 = vector.shape_cast %279 : vector<1x98x8xbf16> to vector<98x8xbf16>
    %cst_228 = arith.constant dense<0.000000e+00> : vector<32x8xf32>
    %281 = tpu.matmul %253, %280, %cst_228 {dimension_numbers = #tpu.dot_dimension_numbers<[1], [0], [0], [1], [0, 0, 1, 1], [], []>} : vector<32x98xbf16>, vector<98x8xbf16>, vector<32x8xf32> -> vector<32x8xf32>
    %c3_229 = arith.constant 3 : index
    %c0_230 = arith.constant 0 : index
    %c0_231 = arith.constant 0 : index
    %282 = vector.load %arg10[%c3_229, %c0_230, %c0_231] : memref<25x32x32xbf16, #tpu.memory_space<vmem>>, vector<1x32x32xbf16>
    %283 = vector.shape_cast %282 : vector<1x32x32xbf16> to vector<32x32xbf16>
    %284 = arith.truncf %281 : vector<32x8xf32> to vector<32x8xbf16>
    %cst_232 = arith.constant dense<0.000000e+00> : vector<32x8xf32>
    %285 = tpu.matmul %283, %284, %cst_232 {dimension_numbers = #tpu.dot_dimension_numbers<[1], [0], [0], [1], [0, 0, 1, 1], [], []>} : vector<32x32xbf16>, vector<32x8xbf16>, vector<32x8xf32> -> vector<32x8xf32>
    %286 = arith.addf %278, %285 : vector<32x8xf32>
    %c4_233 = arith.constant 4 : index
    %c0_234 = arith.constant 0 : index
    %c0_235 = arith.constant 0 : index
    %287 = vector.load %arg9[%c4_233, %c0_234, %c0_235] : memref<25x98x8xbf16, #tpu.memory_space<vmem>>, vector<1x98x8xbf16>
    %288 = vector.shape_cast %287 : vector<1x98x8xbf16> to vector<98x8xbf16>
    %cst_236 = arith.constant dense<0.000000e+00> : vector<32x8xf32>
    %289 = tpu.matmul %253, %288, %cst_236 {dimension_numbers = #tpu.dot_dimension_numbers<[1], [0], [0], [1], [0, 0, 1, 1], [], []>} : vector<32x98xbf16>, vector<98x8xbf16>, vector<32x8xf32> -> vector<32x8xf32>
    %c4_237 = arith.constant 4 : index
    %c0_238 = arith.constant 0 : index
    %c0_239 = arith.constant 0 : index
    %290 = vector.load %arg10[%c4_237, %c0_238, %c0_239] : memref<25x32x32xbf16, #tpu.memory_space<vmem>>, vector<1x32x32xbf16>
    %291 = vector.shape_cast %290 : vector<1x32x32xbf16> to vector<32x32xbf16>
    %292 = arith.truncf %289 : vector<32x8xf32> to vector<32x8xbf16>
    %cst_240 = arith.constant dense<0.000000e+00> : vector<32x8xf32>
    %293 = tpu.matmul %291, %292, %cst_240 {dimension_numbers = #tpu.dot_dimension_numbers<[1], [0], [0], [1], [0, 0, 1, 1], [], []>} : vector<32x32xbf16>, vector<32x8xbf16>, vector<32x8xf32> -> vector<32x8xf32>
    %294 = arith.addf %286, %293 : vector<32x8xf32>
    %c5_241 = arith.constant 5 : index
    %c0_242 = arith.constant 0 : index
    %c0_243 = arith.constant 0 : index
    %295 = vector.load %arg9[%c5_241, %c0_242, %c0_243] : memref<25x98x8xbf16, #tpu.memory_space<vmem>>, vector<1x98x8xbf16>
    %296 = vector.shape_cast %295 : vector<1x98x8xbf16> to vector<98x8xbf16>
    %cst_244 = arith.constant dense<0.000000e+00> : vector<32x8xf32>
    %297 = tpu.matmul %253, %296, %cst_244 {dimension_numbers = #tpu.dot_dimension_numbers<[1], [0], [0], [1], [0, 0, 1, 1], [], []>} : vector<32x98xbf16>, vector<98x8xbf16>, vector<32x8xf32> -> vector<32x8xf32>
    %c5_245 = arith.constant 5 : index
    %c0_246 = arith.constant 0 : index
    %c0_247 = arith.constant 0 : index
    %298 = vector.load %arg10[%c5_245, %c0_246, %c0_247] : memref<25x32x32xbf16, #tpu.memory_space<vmem>>, vector<1x32x32xbf16>
    %299 = vector.shape_cast %298 : vector<1x32x32xbf16> to vector<32x32xbf16>
    %300 = arith.truncf %297 : vector<32x8xf32> to vector<32x8xbf16>
    %cst_248 = arith.constant dense<0.000000e+00> : vector<32x8xf32>
    %301 = tpu.matmul %299, %300, %cst_248 {dimension_numbers = #tpu.dot_dimension_numbers<[1], [0], [0], [1], [0, 0, 1, 1], [], []>} : vector<32x32xbf16>, vector<32x8xbf16>, vector<32x8xf32> -> vector<32x8xf32>
    %302 = arith.addf %294, %301 : vector<32x8xf32>
    %c6_249 = arith.constant 6 : index
    %c0_250 = arith.constant 0 : index
    %c0_251 = arith.constant 0 : index
    %303 = vector.load %arg9[%c6_249, %c0_250, %c0_251] : memref<25x98x8xbf16, #tpu.memory_space<vmem>>, vector<1x98x8xbf16>
    %304 = vector.shape_cast %303 : vector<1x98x8xbf16> to vector<98x8xbf16>
    %cst_252 = arith.constant dense<0.000000e+00> : vector<32x8xf32>
    %305 = tpu.matmul %253, %304, %cst_252 {dimension_numbers = #tpu.dot_dimension_numbers<[1], [0], [0], [1], [0, 0, 1, 1], [], []>} : vector<32x98xbf16>, vector<98x8xbf16>, vector<32x8xf32> -> vector<32x8xf32>
    %c6_253 = arith.constant 6 : index
    %c0_254 = arith.constant 0 : index
    %c0_255 = arith.constant 0 : index
    %306 = vector.load %arg10[%c6_253, %c0_254, %c0_255] : memref<25x32x32xbf16, #tpu.memory_space<vmem>>, vector<1x32x32xbf16>
    %307 = vector.shape_cast %306 : vector<1x32x32xbf16> to vector<32x32xbf16>
    %308 = arith.truncf %305 : vector<32x8xf32> to vector<32x8xbf16>
    %cst_256 = arith.constant dense<0.000000e+00> : vector<32x8xf32>
    %309 = tpu.matmul %307, %308, %cst_256 {dimension_numbers = #tpu.dot_dimension_numbers<[1], [0], [0], [1], [0, 0, 1, 1], [], []>} : vector<32x32xbf16>, vector<32x8xbf16>, vector<32x8xf32> -> vector<32x8xf32>
    %310 = arith.addf %302, %309 : vector<32x8xf32>
    %c7_257 = arith.constant 7 : index
    %c0_258 = arith.constant 0 : index
    %c0_259 = arith.constant 0 : index
    %311 = vector.load %arg9[%c7_257, %c0_258, %c0_259] : memref<25x98x8xbf16, #tpu.memory_space<vmem>>, vector<1x98x8xbf16>
    %312 = vector.shape_cast %311 : vector<1x98x8xbf16> to vector<98x8xbf16>
    %cst_260 = arith.constant dense<0.000000e+00> : vector<32x8xf32>
    %313 = tpu.matmul %253, %312, %cst_260 {dimension_numbers = #tpu.dot_dimension_numbers<[1], [0], [0], [1], [0, 0, 1, 1], [], []>} : vector<32x98xbf16>, vector<98x8xbf16>, vector<32x8xf32> -> vector<32x8xf32>
    %c7_261 = arith.constant 7 : index
    %c0_262 = arith.constant 0 : index
    %c0_263 = arith.constant 0 : index
    %314 = vector.load %arg10[%c7_261, %c0_262, %c0_263] : memref<25x32x32xbf16, #tpu.memory_space<vmem>>, vector<1x32x32xbf16>
    %315 = vector.shape_cast %314 : vector<1x32x32xbf16> to vector<32x32xbf16>
    %316 = arith.truncf %313 : vector<32x8xf32> to vector<32x8xbf16>
    %cst_264 = arith.constant dense<0.000000e+00> : vector<32x8xf32>
    %317 = tpu.matmul %315, %316, %cst_264 {dimension_numbers = #tpu.dot_dimension_numbers<[1], [0], [0], [1], [0, 0, 1, 1], [], []>} : vector<32x32xbf16>, vector<32x8xbf16>, vector<32x8xf32> -> vector<32x8xf32>
    %318 = arith.addf %310, %317 : vector<32x8xf32>
    %c8_265 = arith.constant 8 : index
    %c0_266 = arith.constant 0 : index
    %c0_267 = arith.constant 0 : index
    %319 = vector.load %arg9[%c8_265, %c0_266, %c0_267] : memref<25x98x8xbf16, #tpu.memory_space<vmem>>, vector<1x98x8xbf16>
    %320 = vector.shape_cast %319 : vector<1x98x8xbf16> to vector<98x8xbf16>
    %cst_268 = arith.constant dense<0.000000e+00> : vector<32x8xf32>
    %321 = tpu.matmul %253, %320, %cst_268 {dimension_numbers = #tpu.dot_dimension_numbers<[1], [0], [0], [1], [0, 0, 1, 1], [], []>} : vector<32x98xbf16>, vector<98x8xbf16>, vector<32x8xf32> -> vector<32x8xf32>
    %c8_269 = arith.constant 8 : index
    %c0_270 = arith.constant 0 : index
    %c0_271 = arith.constant 0 : index
    %322 = vector.load %arg10[%c8_269, %c0_270, %c0_271] : memref<25x32x32xbf16, #tpu.memory_space<vmem>>, vector<1x32x32xbf16>
    %323 = vector.shape_cast %322 : vector<1x32x32xbf16> to vector<32x32xbf16>
    %324 = arith.truncf %321 : vector<32x8xf32> to vector<32x8xbf16>
    %cst_272 = arith.constant dense<0.000000e+00> : vector<32x8xf32>
    %325 = tpu.matmul %323, %324, %cst_272 {dimension_numbers = #tpu.dot_dimension_numbers<[1], [0], [0], [1], [0, 0, 1, 1], [], []>} : vector<32x32xbf16>, vector<32x8xbf16>, vector<32x8xf32> -> vector<32x8xf32>
    %326 = arith.addf %318, %325 : vector<32x8xf32>
    %c9_273 = arith.constant 9 : index
    %c0_274 = arith.constant 0 : index
    %c0_275 = arith.constant 0 : index
    %327 = vector.load %arg9[%c9_273, %c0_274, %c0_275] : memref<25x98x8xbf16, #tpu.memory_space<vmem>>, vector<1x98x8xbf16>
    %328 = vector.shape_cast %327 : vector<1x98x8xbf16> to vector<98x8xbf16>
    %cst_276 = arith.constant dense<0.000000e+00> : vector<32x8xf32>
    %329 = tpu.matmul %253, %328, %cst_276 {dimension_numbers = #tpu.dot_dimension_numbers<[1], [0], [0], [1], [0, 0, 1, 1], [], []>} : vector<32x98xbf16>, vector<98x8xbf16>, vector<32x8xf32> -> vector<32x8xf32>
    %c9_277 = arith.constant 9 : index
    %c0_278 = arith.constant 0 : index
    %c0_279 = arith.constant 0 : index
    %330 = vector.load %arg10[%c9_277, %c0_278, %c0_279] : memref<25x32x32xbf16, #tpu.memory_space<vmem>>, vector<1x32x32xbf16>
    %331 = vector.shape_cast %330 : vector<1x32x32xbf16> to vector<32x32xbf16>
    %332 = arith.truncf %329 : vector<32x8xf32> to vector<32x8xbf16>
    %cst_280 = arith.constant dense<0.000000e+00> : vector<32x8xf32>
    %333 = tpu.matmul %331, %332, %cst_280 {dimension_numbers = #tpu.dot_dimension_numbers<[1], [0], [0], [1], [0, 0, 1, 1], [], []>} : vector<32x32xbf16>, vector<32x8xbf16>, vector<32x8xf32> -> vector<32x8xf32>
    %334 = arith.addf %326, %333 : vector<32x8xf32>
    %c10_281 = arith.constant 10 : index
    %c0_282 = arith.constant 0 : index
    %c0_283 = arith.constant 0 : index
    %335 = vector.load %arg9[%c10_281, %c0_282, %c0_283] : memref<25x98x8xbf16, #tpu.memory_space<vmem>>, vector<1x98x8xbf16>
    %336 = vector.shape_cast %335 : vector<1x98x8xbf16> to vector<98x8xbf16>
    %cst_284 = arith.constant dense<0.000000e+00> : vector<32x8xf32>
    %337 = tpu.matmul %253, %336, %cst_284 {dimension_numbers = #tpu.dot_dimension_numbers<[1], [0], [0], [1], [0, 0, 1, 1], [], []>} : vector<32x98xbf16>, vector<98x8xbf16>, vector<32x8xf32> -> vector<32x8xf32>
    %c10_285 = arith.constant 10 : index
    %c0_286 = arith.constant 0 : index
    %c0_287 = arith.constant 0 : index
    %338 = vector.load %arg10[%c10_285, %c0_286, %c0_287] : memref<25x32x32xbf16, #tpu.memory_space<vmem>>, vector<1x32x32xbf16>
    %339 = vector.shape_cast %338 : vector<1x32x32xbf16> to vector<32x32xbf16>
    %340 = arith.truncf %337 : vector<32x8xf32> to vector<32x8xbf16>
    %cst_288 = arith.constant dense<0.000000e+00> : vector<32x8xf32>
    %341 = tpu.matmul %339, %340, %cst_288 {dimension_numbers = #tpu.dot_dimension_numbers<[1], [0], [0], [1], [0, 0, 1, 1], [], []>} : vector<32x32xbf16>, vector<32x8xbf16>, vector<32x8xf32> -> vector<32x8xf32>
    %342 = arith.addf %334, %341 : vector<32x8xf32>
    %c11_289 = arith.constant 11 : index
    %c0_290 = arith.constant 0 : index
    %c0_291 = arith.constant 0 : index
    %343 = vector.load %arg9[%c11_289, %c0_290, %c0_291] : memref<25x98x8xbf16, #tpu.memory_space<vmem>>, vector<1x98x8xbf16>
    %344 = vector.shape_cast %343 : vector<1x98x8xbf16> to vector<98x8xbf16>
    %cst_292 = arith.constant dense<0.000000e+00> : vector<32x8xf32>
    %345 = tpu.matmul %253, %344, %cst_292 {dimension_numbers = #tpu.dot_dimension_numbers<[1], [0], [0], [1], [0, 0, 1, 1], [], []>} : vector<32x98xbf16>, vector<98x8xbf16>, vector<32x8xf32> -> vector<32x8xf32>
    %c11_293 = arith.constant 11 : index
    %c0_294 = arith.constant 0 : index
    %c0_295 = arith.constant 0 : index
    %346 = vector.load %arg10[%c11_293, %c0_294, %c0_295] : memref<25x32x32xbf16, #tpu.memory_space<vmem>>, vector<1x32x32xbf16>
    %347 = vector.shape_cast %346 : vector<1x32x32xbf16> to vector<32x32xbf16>
    %348 = arith.truncf %345 : vector<32x8xf32> to vector<32x8xbf16>
    %cst_296 = arith.constant dense<0.000000e+00> : vector<32x8xf32>
    %349 = tpu.matmul %347, %348, %cst_296 {dimension_numbers = #tpu.dot_dimension_numbers<[1], [0], [0], [1], [0, 0, 1, 1], [], []>} : vector<32x32xbf16>, vector<32x8xbf16>, vector<32x8xf32> -> vector<32x8xf32>
    %350 = arith.addf %342, %349 : vector<32x8xf32>
    %c12_297 = arith.constant 12 : index
    %c0_298 = arith.constant 0 : index
    %c0_299 = arith.constant 0 : index
    %351 = vector.load %arg9[%c12_297, %c0_298, %c0_299] : memref<25x98x8xbf16, #tpu.memory_space<vmem>>, vector<1x98x8xbf16>
    %352 = vector.shape_cast %351 : vector<1x98x8xbf16> to vector<98x8xbf16>
    %cst_300 = arith.constant dense<0.000000e+00> : vector<32x8xf32>
    %353 = tpu.matmul %253, %352, %cst_300 {dimension_numbers = #tpu.dot_dimension_numbers<[1], [0], [0], [1], [0, 0, 1, 1], [], []>} : vector<32x98xbf16>, vector<98x8xbf16>, vector<32x8xf32> -> vector<32x8xf32>
    %c12_301 = arith.constant 12 : index
    %c0_302 = arith.constant 0 : index
    %c0_303 = arith.constant 0 : index
    %354 = vector.load %arg10[%c12_301, %c0_302, %c0_303] : memref<25x32x32xbf16, #tpu.memory_space<vmem>>, vector<1x32x32xbf16>
    %355 = vector.shape_cast %354 : vector<1x32x32xbf16> to vector<32x32xbf16>
    %356 = arith.truncf %353 : vector<32x8xf32> to vector<32x8xbf16>
    %cst_304 = arith.constant dense<0.000000e+00> : vector<32x8xf32>
    %357 = tpu.matmul %355, %356, %cst_304 {dimension_numbers = #tpu.dot_dimension_numbers<[1], [0], [0], [1], [0, 0, 1, 1], [], []>} : vector<32x32xbf16>, vector<32x8xbf16>, vector<32x8xf32> -> vector<32x8xf32>
    %358 = arith.addf %350, %357 : vector<32x8xf32>
    %c13_305 = arith.constant 13 : index
    %c0_306 = arith.constant 0 : index
    %c0_307 = arith.constant 0 : index
    %359 = vector.load %arg9[%c13_305, %c0_306, %c0_307] : memref<25x98x8xbf16, #tpu.memory_space<vmem>>, vector<1x98x8xbf16>
    %360 = vector.shape_cast %359 : vector<1x98x8xbf16> to vector<98x8xbf16>
    %cst_308 = arith.constant dense<0.000000e+00> : vector<32x8xf32>
    %361 = tpu.matmul %253, %360, %cst_308 {dimension_numbers = #tpu.dot_dimension_numbers<[1], [0], [0], [1], [0, 0, 1, 1], [], []>} : vector<32x98xbf16>, vector<98x8xbf16>, vector<32x8xf32> -> vector<32x8xf32>
    %c13_309 = arith.constant 13 : index
    %c0_310 = arith.constant 0 : index
    %c0_311 = arith.constant 0 : index
    %362 = vector.load %arg10[%c13_309, %c0_310, %c0_311] : memref<25x32x32xbf16, #tpu.memory_space<vmem>>, vector<1x32x32xbf16>
    %363 = vector.shape_cast %362 : vector<1x32x32xbf16> to vector<32x32xbf16>
    %364 = arith.truncf %361 : vector<32x8xf32> to vector<32x8xbf16>
    %cst_312 = arith.constant dense<0.000000e+00> : vector<32x8xf32>
    %365 = tpu.matmul %363, %364, %cst_312 {dimension_numbers = #tpu.dot_dimension_numbers<[1], [0], [0], [1], [0, 0, 1, 1], [], []>} : vector<32x32xbf16>, vector<32x8xbf16>, vector<32x8xf32> -> vector<32x8xf32>
    %366 = arith.addf %358, %365 : vector<32x8xf32>
    %c14_313 = arith.constant 14 : index
    %c0_314 = arith.constant 0 : index
    %c0_315 = arith.constant 0 : index
    %367 = vector.load %arg9[%c14_313, %c0_314, %c0_315] : memref<25x98x8xbf16, #tpu.memory_space<vmem>>, vector<1x98x8xbf16>
    %368 = vector.shape_cast %367 : vector<1x98x8xbf16> to vector<98x8xbf16>
    %cst_316 = arith.constant dense<0.000000e+00> : vector<32x8xf32>
    %369 = tpu.matmul %253, %368, %cst_316 {dimension_numbers = #tpu.dot_dimension_numbers<[1], [0], [0], [1], [0, 0, 1, 1], [], []>} : vector<32x98xbf16>, vector<98x8xbf16>, vector<32x8xf32> -> vector<32x8xf32>
    %c14_317 = arith.constant 14 : index
    %c0_318 = arith.constant 0 : index
    %c0_319 = arith.constant 0 : index
    %370 = vector.load %arg10[%c14_317, %c0_318, %c0_319] : memref<25x32x32xbf16, #tpu.memory_space<vmem>>, vector<1x32x32xbf16>
    %371 = vector.shape_cast %370 : vector<1x32x32xbf16> to vector<32x32xbf16>
    %372 = arith.truncf %369 : vector<32x8xf32> to vector<32x8xbf16>
    %cst_320 = arith.constant dense<0.000000e+00> : vector<32x8xf32>
    %373 = tpu.matmul %371, %372, %cst_320 {dimension_numbers = #tpu.dot_dimension_numbers<[1], [0], [0], [1], [0, 0, 1, 1], [], []>} : vector<32x32xbf16>, vector<32x8xbf16>, vector<32x8xf32> -> vector<32x8xf32>
    %374 = arith.addf %366, %373 : vector<32x8xf32>
    %c15_321 = arith.constant 15 : index
    %c0_322 = arith.constant 0 : index
    %c0_323 = arith.constant 0 : index
    %375 = vector.load %arg9[%c15_321, %c0_322, %c0_323] : memref<25x98x8xbf16, #tpu.memory_space<vmem>>, vector<1x98x8xbf16>
    %376 = vector.shape_cast %375 : vector<1x98x8xbf16> to vector<98x8xbf16>
    %cst_324 = arith.constant dense<0.000000e+00> : vector<32x8xf32>
    %377 = tpu.matmul %253, %376, %cst_324 {dimension_numbers = #tpu.dot_dimension_numbers<[1], [0], [0], [1], [0, 0, 1, 1], [], []>} : vector<32x98xbf16>, vector<98x8xbf16>, vector<32x8xf32> -> vector<32x8xf32>
    %c15_325 = arith.constant 15 : index
    %c0_326 = arith.constant 0 : index
    %c0_327 = arith.constant 0 : index
    %378 = vector.load %arg10[%c15_325, %c0_326, %c0_327] : memref<25x32x32xbf16, #tpu.memory_space<vmem>>, vector<1x32x32xbf16>
    %379 = vector.shape_cast %378 : vector<1x32x32xbf16> to vector<32x32xbf16>
    %380 = arith.truncf %377 : vector<32x8xf32> to vector<32x8xbf16>
    %cst_328 = arith.constant dense<0.000000e+00> : vector<32x8xf32>
    %381 = tpu.matmul %379, %380, %cst_328 {dimension_numbers = #tpu.dot_dimension_numbers<[1], [0], [0], [1], [0, 0, 1, 1], [], []>} : vector<32x32xbf16>, vector<32x8xbf16>, vector<32x8xf32> -> vector<32x8xf32>
    %382 = arith.addf %374, %381 : vector<32x8xf32>
    %c16_329 = arith.constant 16 : index
    %c0_330 = arith.constant 0 : index
    %c0_331 = arith.constant 0 : index
    %383 = vector.load %arg9[%c16_329, %c0_330, %c0_331] : memref<25x98x8xbf16, #tpu.memory_space<vmem>>, vector<1x98x8xbf16>
    %384 = vector.shape_cast %383 : vector<1x98x8xbf16> to vector<98x8xbf16>
    %cst_332 = arith.constant dense<0.000000e+00> : vector<32x8xf32>
    %385 = tpu.matmul %253, %384, %cst_332 {dimension_numbers = #tpu.dot_dimension_numbers<[1], [0], [0], [1], [0, 0, 1, 1], [], []>} : vector<32x98xbf16>, vector<98x8xbf16>, vector<32x8xf32> -> vector<32x8xf32>
    %c16_333 = arith.constant 16 : index
    %c0_334 = arith.constant 0 : index
    %c0_335 = arith.constant 0 : index
    %386 = vector.load %arg10[%c16_333, %c0_334, %c0_335] : memref<25x32x32xbf16, #tpu.memory_space<vmem>>, vector<1x32x32xbf16>
    %387 = vector.shape_cast %386 : vector<1x32x32xbf16> to vector<32x32xbf16>
    %388 = arith.truncf %385 : vector<32x8xf32> to vector<32x8xbf16>
    %cst_336 = arith.constant dense<0.000000e+00> : vector<32x8xf32>
    %389 = tpu.matmul %387, %388, %cst_336 {dimension_numbers = #tpu.dot_dimension_numbers<[1], [0], [0], [1], [0, 0, 1, 1], [], []>} : vector<32x32xbf16>, vector<32x8xbf16>, vector<32x8xf32> -> vector<32x8xf32>
    %390 = arith.addf %382, %389 : vector<32x8xf32>
    %c17_337 = arith.constant 17 : index
    %c0_338 = arith.constant 0 : index
    %c0_339 = arith.constant 0 : index
    %391 = vector.load %arg9[%c17_337, %c0_338, %c0_339] : memref<25x98x8xbf16, #tpu.memory_space<vmem>>, vector<1x98x8xbf16>
    %392 = vector.shape_cast %391 : vector<1x98x8xbf16> to vector<98x8xbf16>
    %cst_340 = arith.constant dense<0.000000e+00> : vector<32x8xf32>
    %393 = tpu.matmul %253, %392, %cst_340 {dimension_numbers = #tpu.dot_dimension_numbers<[1], [0], [0], [1], [0, 0, 1, 1], [], []>} : vector<32x98xbf16>, vector<98x8xbf16>, vector<32x8xf32> -> vector<32x8xf32>
    %c17_341 = arith.constant 17 : index
    %c0_342 = arith.constant 0 : index
    %c0_343 = arith.constant 0 : index
    %394 = vector.load %arg10[%c17_341, %c0_342, %c0_343] : memref<25x32x32xbf16, #tpu.memory_space<vmem>>, vector<1x32x32xbf16>
    %395 = vector.shape_cast %394 : vector<1x32x32xbf16> to vector<32x32xbf16>
    %396 = arith.truncf %393 : vector<32x8xf32> to vector<32x8xbf16>
    %cst_344 = arith.constant dense<0.000000e+00> : vector<32x8xf32>
    %397 = tpu.matmul %395, %396, %cst_344 {dimension_numbers = #tpu.dot_dimension_numbers<[1], [0], [0], [1], [0, 0, 1, 1], [], []>} : vector<32x32xbf16>, vector<32x8xbf16>, vector<32x8xf32> -> vector<32x8xf32>
    %398 = arith.addf %390, %397 : vector<32x8xf32>
    %c18_345 = arith.constant 18 : index
    %c0_346 = arith.constant 0 : index
    %c0_347 = arith.constant 0 : index
    %399 = vector.load %arg9[%c18_345, %c0_346, %c0_347] : memref<25x98x8xbf16, #tpu.memory_space<vmem>>, vector<1x98x8xbf16>
    %400 = vector.shape_cast %399 : vector<1x98x8xbf16> to vector<98x8xbf16>
    %cst_348 = arith.constant dense<0.000000e+00> : vector<32x8xf32>
    %401 = tpu.matmul %253, %400, %cst_348 {dimension_numbers = #tpu.dot_dimension_numbers<[1], [0], [0], [1], [0, 0, 1, 1], [], []>} : vector<32x98xbf16>, vector<98x8xbf16>, vector<32x8xf32> -> vector<32x8xf32>
    %c18_349 = arith.constant 18 : index
    %c0_350 = arith.constant 0 : index
    %c0_351 = arith.constant 0 : index
    %402 = vector.load %arg10[%c18_349, %c0_350, %c0_351] : memref<25x32x32xbf16, #tpu.memory_space<vmem>>, vector<1x32x32xbf16>
    %403 = vector.shape_cast %402 : vector<1x32x32xbf16> to vector<32x32xbf16>
    %404 = arith.truncf %401 : vector<32x8xf32> to vector<32x8xbf16>
    %cst_352 = arith.constant dense<0.000000e+00> : vector<32x8xf32>
    %405 = tpu.matmul %403, %404, %cst_352 {dimension_numbers = #tpu.dot_dimension_numbers<[1], [0], [0], [1], [0, 0, 1, 1], [], []>} : vector<32x32xbf16>, vector<32x8xbf16>, vector<32x8xf32> -> vector<32x8xf32>
    %406 = arith.addf %398, %405 : vector<32x8xf32>
    %c19_353 = arith.constant 19 : index
    %c0_354 = arith.constant 0 : index
    %c0_355 = arith.constant 0 : index
    %407 = vector.load %arg9[%c19_353, %c0_354, %c0_355] : memref<25x98x8xbf16, #tpu.memory_space<vmem>>, vector<1x98x8xbf16>
    %408 = vector.shape_cast %407 : vector<1x98x8xbf16> to vector<98x8xbf16>
    %cst_356 = arith.constant dense<0.000000e+00> : vector<32x8xf32>
    %409 = tpu.matmul %253, %408, %cst_356 {dimension_numbers = #tpu.dot_dimension_numbers<[1], [0], [0], [1], [0, 0, 1, 1], [], []>} : vector<32x98xbf16>, vector<98x8xbf16>, vector<32x8xf32> -> vector<32x8xf32>
    %c19_357 = arith.constant 19 : index
    %c0_358 = arith.constant 0 : index
    %c0_359 = arith.constant 0 : index
    %410 = vector.load %arg10[%c19_357, %c0_358, %c0_359] : memref<25x32x32xbf16, #tpu.memory_space<vmem>>, vector<1x32x32xbf16>
    %411 = vector.shape_cast %410 : vector<1x32x32xbf16> to vector<32x32xbf16>
    %412 = arith.truncf %409 : vector<32x8xf32> to vector<32x8xbf16>
    %cst_360 = arith.constant dense<0.000000e+00> : vector<32x8xf32>
    %413 = tpu.matmul %411, %412, %cst_360 {dimension_numbers = #tpu.dot_dimension_numbers<[1], [0], [0], [1], [0, 0, 1, 1], [], []>} : vector<32x32xbf16>, vector<32x8xbf16>, vector<32x8xf32> -> vector<32x8xf32>
    %414 = arith.addf %406, %413 : vector<32x8xf32>
    %c20_361 = arith.constant 20 : index
    %c0_362 = arith.constant 0 : index
    %c0_363 = arith.constant 0 : index
    %415 = vector.load %arg9[%c20_361, %c0_362, %c0_363] : memref<25x98x8xbf16, #tpu.memory_space<vmem>>, vector<1x98x8xbf16>
    %416 = vector.shape_cast %415 : vector<1x98x8xbf16> to vector<98x8xbf16>
    %cst_364 = arith.constant dense<0.000000e+00> : vector<32x8xf32>
    %417 = tpu.matmul %253, %416, %cst_364 {dimension_numbers = #tpu.dot_dimension_numbers<[1], [0], [0], [1], [0, 0, 1, 1], [], []>} : vector<32x98xbf16>, vector<98x8xbf16>, vector<32x8xf32> -> vector<32x8xf32>
    %c20_365 = arith.constant 20 : index
    %c0_366 = arith.constant 0 : index
    %c0_367 = arith.constant 0 : index
    %418 = vector.load %arg10[%c20_365, %c0_366, %c0_367] : memref<25x32x32xbf16, #tpu.memory_space<vmem>>, vector<1x32x32xbf16>
    %419 = vector.shape_cast %418 : vector<1x32x32xbf16> to vector<32x32xbf16>
    %420 = arith.truncf %417 : vector<32x8xf32> to vector<32x8xbf16>
    %cst_368 = arith.constant dense<0.000000e+00> : vector<32x8xf32>
    %421 = tpu.matmul %419, %420, %cst_368 {dimension_numbers = #tpu.dot_dimension_numbers<[1], [0], [0], [1], [0, 0, 1, 1], [], []>} : vector<32x32xbf16>, vector<32x8xbf16>, vector<32x8xf32> -> vector<32x8xf32>
    %422 = arith.addf %414, %421 : vector<32x8xf32>
    %c21_369 = arith.constant 21 : index
    %c0_370 = arith.constant 0 : index
    %c0_371 = arith.constant 0 : index
    %423 = vector.load %arg9[%c21_369, %c0_370, %c0_371] : memref<25x98x8xbf16, #tpu.memory_space<vmem>>, vector<1x98x8xbf16>
    %424 = vector.shape_cast %423 : vector<1x98x8xbf16> to vector<98x8xbf16>
    %cst_372 = arith.constant dense<0.000000e+00> : vector<32x8xf32>
    %425 = tpu.matmul %253, %424, %cst_372 {dimension_numbers = #tpu.dot_dimension_numbers<[1], [0], [0], [1], [0, 0, 1, 1], [], []>} : vector<32x98xbf16>, vector<98x8xbf16>, vector<32x8xf32> -> vector<32x8xf32>
    %c21_373 = arith.constant 21 : index
    %c0_374 = arith.constant 0 : index
    %c0_375 = arith.constant 0 : index
    %426 = vector.load %arg10[%c21_373, %c0_374, %c0_375] : memref<25x32x32xbf16, #tpu.memory_space<vmem>>, vector<1x32x32xbf16>
    %427 = vector.shape_cast %426 : vector<1x32x32xbf16> to vector<32x32xbf16>
    %428 = arith.truncf %425 : vector<32x8xf32> to vector<32x8xbf16>
    %cst_376 = arith.constant dense<0.000000e+00> : vector<32x8xf32>
    %429 = tpu.matmul %427, %428, %cst_376 {dimension_numbers = #tpu.dot_dimension_numbers<[1], [0], [0], [1], [0, 0, 1, 1], [], []>} : vector<32x32xbf16>, vector<32x8xbf16>, vector<32x8xf32> -> vector<32x8xf32>
    %430 = arith.addf %422, %429 : vector<32x8xf32>
    %c22_377 = arith.constant 22 : index
    %c0_378 = arith.constant 0 : index
    %c0_379 = arith.constant 0 : index
    %431 = vector.load %arg9[%c22_377, %c0_378, %c0_379] : memref<25x98x8xbf16, #tpu.memory_space<vmem>>, vector<1x98x8xbf16>
    %432 = vector.shape_cast %431 : vector<1x98x8xbf16> to vector<98x8xbf16>
    %cst_380 = arith.constant dense<0.000000e+00> : vector<32x8xf32>
    %433 = tpu.matmul %253, %432, %cst_380 {dimension_numbers = #tpu.dot_dimension_numbers<[1], [0], [0], [1], [0, 0, 1, 1], [], []>} : vector<32x98xbf16>, vector<98x8xbf16>, vector<32x8xf32> -> vector<32x8xf32>
    %c22_381 = arith.constant 22 : index
    %c0_382 = arith.constant 0 : index
    %c0_383 = arith.constant 0 : index
    %434 = vector.load %arg10[%c22_381, %c0_382, %c0_383] : memref<25x32x32xbf16, #tpu.memory_space<vmem>>, vector<1x32x32xbf16>
    %435 = vector.shape_cast %434 : vector<1x32x32xbf16> to vector<32x32xbf16>
    %436 = arith.truncf %433 : vector<32x8xf32> to vector<32x8xbf16>
    %cst_384 = arith.constant dense<0.000000e+00> : vector<32x8xf32>
    %437 = tpu.matmul %435, %436, %cst_384 {dimension_numbers = #tpu.dot_dimension_numbers<[1], [0], [0], [1], [0, 0, 1, 1], [], []>} : vector<32x32xbf16>, vector<32x8xbf16>, vector<32x8xf32> -> vector<32x8xf32>
    %438 = arith.addf %430, %437 : vector<32x8xf32>
    %c23_385 = arith.constant 23 : index
    %c0_386 = arith.constant 0 : index
    %c0_387 = arith.constant 0 : index
    %439 = vector.load %arg9[%c23_385, %c0_386, %c0_387] : memref<25x98x8xbf16, #tpu.memory_space<vmem>>, vector<1x98x8xbf16>
    %440 = vector.shape_cast %439 : vector<1x98x8xbf16> to vector<98x8xbf16>
    %cst_388 = arith.constant dense<0.000000e+00> : vector<32x8xf32>
    %441 = tpu.matmul %253, %440, %cst_388 {dimension_numbers = #tpu.dot_dimension_numbers<[1], [0], [0], [1], [0, 0, 1, 1], [], []>} : vector<32x98xbf16>, vector<98x8xbf16>, vector<32x8xf32> -> vector<32x8xf32>
    %c23_389 = arith.constant 23 : index
    %c0_390 = arith.constant 0 : index
    %c0_391 = arith.constant 0 : index
    %442 = vector.load %arg10[%c23_389, %c0_390, %c0_391] : memref<25x32x32xbf16, #tpu.memory_space<vmem>>, vector<1x32x32xbf16>
    %443 = vector.shape_cast %442 : vector<1x32x32xbf16> to vector<32x32xbf16>
    %444 = arith.truncf %441 : vector<32x8xf32> to vector<32x8xbf16>
    %cst_392 = arith.constant dense<0.000000e+00> : vector<32x8xf32>
    %445 = tpu.matmul %443, %444, %cst_392 {dimension_numbers = #tpu.dot_dimension_numbers<[1], [0], [0], [1], [0, 0, 1, 1], [], []>} : vector<32x32xbf16>, vector<32x8xbf16>, vector<32x8xf32> -> vector<32x8xf32>
    %446 = arith.addf %438, %445 : vector<32x8xf32>
    %c24_393 = arith.constant 24 : index
    %c0_394 = arith.constant 0 : index
    %c0_395 = arith.constant 0 : index
    %447 = vector.load %arg9[%c24_393, %c0_394, %c0_395] : memref<25x98x8xbf16, #tpu.memory_space<vmem>>, vector<1x98x8xbf16>
    %448 = vector.shape_cast %447 : vector<1x98x8xbf16> to vector<98x8xbf16>
    %cst_396 = arith.constant dense<0.000000e+00> : vector<32x8xf32>
    %449 = tpu.matmul %253, %448, %cst_396 {dimension_numbers = #tpu.dot_dimension_numbers<[1], [0], [0], [1], [0, 0, 1, 1], [], []>} : vector<32x98xbf16>, vector<98x8xbf16>, vector<32x8xf32> -> vector<32x8xf32>
    %c24_397 = arith.constant 24 : index
    %c0_398 = arith.constant 0 : index
    %c0_399 = arith.constant 0 : index
    %450 = vector.load %arg10[%c24_397, %c0_398, %c0_399] : memref<25x32x32xbf16, #tpu.memory_space<vmem>>, vector<1x32x32xbf16>
    %451 = vector.shape_cast %450 : vector<1x32x32xbf16> to vector<32x32xbf16>
    %452 = arith.truncf %449 : vector<32x8xf32> to vector<32x8xbf16>
    %cst_400 = arith.constant dense<0.000000e+00> : vector<32x8xf32>
    %453 = tpu.matmul %451, %452, %cst_400 {dimension_numbers = #tpu.dot_dimension_numbers<[1], [0], [0], [1], [0, 0, 1, 1], [], []>} : vector<32x32xbf16>, vector<32x8xbf16>, vector<32x8xf32> -> vector<32x8xf32>
    %454 = arith.addf %446, %453 : vector<32x8xf32>
    %c0_401 = arith.constant 0 : index
    %c0_402 = arith.constant 0 : index
    %455 = vector.load %arg11[%c0_401, %c0_402] : memref<32x1xf32, #tpu.memory_space<vmem>>, vector<32x1xf32>
    %c0_403 = arith.constant 0 : index
    %c0_404 = arith.constant 0 : index
    %456 = vector.load %arg12[%c0_403, %c0_404] : memref<32x1xf32, #tpu.memory_space<vmem>>, vector<32x1xf32>
    %cst_405 = arith.constant dense<0.000000e+00> : vector<32xf32>
    %457 = vector.multi_reduction <add>, %454, %cst_405 [1] : vector<32x8xf32> to vector<32xf32>
    %458 = vector.shape_cast %457 : vector<32xf32> to vector<32x1xf32>
    %cst_406 = arith.constant 8.000000e+00 : f32
    %459 = vector.broadcast %cst_406 : f32 to vector<32x1xf32>
    %460 = arith.divf %458, %459 : vector<32x1xf32>
    %461 = vector.broadcast %460 : vector<32x1xf32> to vector<32x8xf32>
    %462 = arith.subf %454, %461 : vector<32x8xf32>
    %463 = arith.mulf %462, %462 : vector<32x8xf32>
    %cst_407 = arith.constant dense<0.000000e+00> : vector<32xf32>
    %464 = vector.multi_reduction <add>, %463, %cst_407 [1] : vector<32x8xf32> to vector<32xf32>
    %465 = vector.shape_cast %464 : vector<32xf32> to vector<32x1xf32>
    %cst_408 = arith.constant 8.000000e+00 : f32
    %466 = vector.broadcast %cst_408 : f32 to vector<32x1xf32>
    %467 = arith.divf %465, %466 : vector<32x1xf32>
    %cst_409 = arith.constant 9.99999974E-6 : f32
    %468 = vector.broadcast %cst_409 : f32 to vector<32x1xf32>
    %469 = arith.addf %467, %468 : vector<32x1xf32>
    %470 = math.rsqrt %469 : vector<32x1xf32>
    %471 = vector.broadcast %470 : vector<32x1xf32> to vector<32x8xf32>
    %472 = arith.mulf %462, %471 : vector<32x8xf32>
    %473 = vector.broadcast %455 : vector<32x1xf32> to vector<32x8xf32>
    %474 = arith.mulf %473, %472 : vector<32x8xf32>
    %475 = vector.broadcast %456 : vector<32x1xf32> to vector<32x8xf32>
    %476 = arith.addf %474, %475 : vector<32x8xf32>
    %cst_410 = arith.constant 0.000000e+00 : f32
    %477 = vector.broadcast %cst_410 : f32 to vector<32x8xf32>
    %478 = arith.maximumf %476, %477 : vector<32x8xf32>
    %c0_411 = arith.constant 0 : index
    %c0_412 = arith.constant 0 : index
    %c0_413 = arith.constant 0 : index
    %479 = vector.load %arg13[%c0_411, %c0_412, %c0_413] : memref<2x32x8xf32, #tpu.memory_space<vmem>>, vector<2x32x8xf32>
    %480 = vector.shape_cast %478 : vector<32x8xf32> to vector<1x32x8xf32>
    %481 = vector.broadcast %480 : vector<1x32x8xf32> to vector<2x32x8xf32>
    %482 = arith.mulf %479, %481 : vector<2x32x8xf32>
    %cst_414 = arith.constant dense<0.000000e+00> : vector<2x8xf32>
    %483 = vector.multi_reduction <add>, %482, %cst_414 [1] : vector<2x32x8xf32> to vector<2x8xf32>
    %c0_415 = arith.constant 0 : index
    %c0_416 = arith.constant 0 : index
    %484 = vector.load %arg14[%c0_415, %c0_416] : memref<8x2xf32, #tpu.memory_space<vmem>>, vector<8x2xf32>
    %cst_417 = arith.constant dense<0.000000e+00> : vector<2x2xf32>
    %485 = tpu.matmul %483, %484, %cst_417 {dimension_numbers = #tpu.dot_dimension_numbers<[1], [0], [0], [1], [0, 0, 1, 1], [], []>} : vector<2x8xf32>, vector<8x2xf32>, vector<2x2xf32> -> vector<2x2xf32>
    %c0_418 = arith.constant 0 : index
    %c0_419 = arith.constant 0 : index
    %486 = vector.load %arg15[%c0_418, %c0_419] : memref<2x1xf32, #tpu.memory_space<vmem>>, vector<2x1xf32>
    %487 = vector.broadcast %486 : vector<2x1xf32> to vector<2x2xf32>
    %488 = arith.addf %485, %487 : vector<2x2xf32>
    %c0_420 = arith.constant 0 : index
    %c0_421 = arith.constant 0 : index
    %489 = vector.load %arg16[%c0_420, %c0_421] : memref<2x2xf32, #tpu.memory_space<vmem>>, vector<2x2xf32>
    tpu.vector_store %arg16[%c0_420, %c0_421], %488 {strides = array<i32>} : memref<2x2xf32, #tpu.memory_space<vmem>>, vector<2x2xf32>,
    return
  }
  func.func @transform_0(%arg0: i32) -> (i32, i32) {
    %c0_i32 = arith.constant 0 : i32
    %c0_i32_0 = arith.constant 0 : i32
    %c0_i32_1 = arith.constant 0 : i32
    return %c0_i32, %c0_i32_0 : i32, i32
  }
  func.func @transform_1(%arg0: i32) -> (i32, i32) {
    %c0_i32 = arith.constant 0 : i32
    %c0_i32_0 = arith.constant 0 : i32
    %c0_i32_1 = arith.constant 0 : i32
    return %c0_i32, %c0_i32_0 : i32, i32
  }
  func.func @transform_2(%arg0: i32) -> (i32, i32) {
    %c0_i32 = arith.constant 0 : i32
    %c0_i32_0 = arith.constant 0 : i32
    %c0_i32_1 = arith.constant 0 : i32
    return %c0_i32, %c0_i32_0 : i32, i32
  }
  func.func @transform_3(%arg0: i32) -> (i32, i32) {
    %c0_i32 = arith.constant 0 : i32
    %c0_i32_0 = arith.constant 0 : i32
    %c0_i32_1 = arith.constant 0 : i32
    return %c0_i32, %c0_i32_0 : i32, i32
  }
  func.func @transform_4(%arg0: i32) -> (i32, i32, i32) {
    %c0_i32 = arith.constant 0 : i32
    %c0_i32_0 = arith.constant 0 : i32
    %c0_i32_1 = arith.constant 0 : i32
    %c0_i32_2 = arith.constant 0 : i32
    return %c0_i32, %c0_i32_0, %c0_i32_1 : i32, i32, i32
  }
  func.func @transform_5(%arg0: i32) -> (i32, i32, i32) {
    %c0_i32 = arith.constant 0 : i32
    %c0_i32_0 = arith.constant 0 : i32
    %c0_i32_1 = arith.constant 0 : i32
    %c0_i32_2 = arith.constant 0 : i32
    return %c0_i32, %c0_i32_0, %c0_i32_1 : i32, i32, i32
  }
  func.func @transform_6(%arg0: i32) -> (i32, i32) {
    %c0_i32 = arith.constant 0 : i32
    %c0_i32_0 = arith.constant 0 : i32
    %c0_i32_1 = arith.constant 0 : i32
    return %c0_i32, %c0_i32_0 : i32, i32
  }
  func.func @transform_7(%arg0: i32) -> (i32, i32) {
    %c0_i32 = arith.constant 0 : i32
    %c0_i32_0 = arith.constant 0 : i32
    %c0_i32_1 = arith.constant 0 : i32
    return %c0_i32, %c0_i32_0 : i32, i32
  }
  func.func @transform_8(%arg0: i32) -> (i32, i32, i32) {
    %c0_i32 = arith.constant 0 : i32
    %c0_i32_0 = arith.constant 0 : i32
    %c0_i32_1 = arith.constant 0 : i32
    %c0_i32_2 = arith.constant 0 : i32
    return %c0_i32, %c0_i32_0, %c0_i32_1 : i32, i32, i32
  }
  func.func @transform_9(%arg0: i32) -> (i32, i32, i32) {
    %c0_i32 = arith.constant 0 : i32
    %c0_i32_0 = arith.constant 0 : i32
    %c0_i32_1 = arith.constant 0 : i32
    %c0_i32_2 = arith.constant 0 : i32
    return %c0_i32, %c0_i32_0, %c0_i32_1 : i32, i32, i32
  }
  func.func @transform_10(%arg0: i32) -> (i32, i32) {
    %c0_i32 = arith.constant 0 : i32
    %c0_i32_0 = arith.constant 0 : i32
    %c0_i32_1 = arith.constant 0 : i32
    return %c0_i32, %c0_i32_0 : i32, i32
  }
  func.func @transform_11(%arg0: i32) -> (i32, i32) {
    %c0_i32 = arith.constant 0 : i32
    %c0_i32_0 = arith.constant 0 : i32
    %c0_i32_1 = arith.constant 0 : i32
    return %c0_i32, %c0_i32_0 : i32, i32
  }
  func.func @transform_12(%arg0: i32) -> (i32, i32, i32) {
    %c0_i32 = arith.constant 0 : i32
    %c0_i32_0 = arith.constant 0 : i32
    %c0_i32_1 = arith.constant 0 : i32
    %c0_i32_2 = arith.constant 0 : i32
    return %c0_i32, %c0_i32_0, %c0_i32_1 : i32, i32, i32
  }
  func.func @transform_13(%arg0: i32) -> (i32, i32) {
    %c0_i32 = arith.constant 0 : i32
    %c0_i32_0 = arith.constant 0 : i32
    %c0_i32_1 = arith.constant 0 : i32
    return %c0_i32, %c0_i32_0 : i32, i32
  }
  func.func @transform_14(%arg0: i32) -> (i32, i32) {
    %c0_i32 = arith.constant 0 : i32
    %c0_i32_0 = arith.constant 0 : i32
    %c0_i32_1 = arith.constant 0 : i32
    return %c0_i32, %c0_i32_0 : i32, i32
  }
  func.func @transform_15(%arg0: i32) -> (i32, i32) {
    %c0_i32 = arith.constant 0 : i32
    %c0_i32_0 = arith.constant 0 : i32
    %c0_i32_1 = arith.constant 0 : i32
    return %c0_i32, %c0_i32_0 : i32, i32
  }
}

</mosaic_0001>

<bundles_post_ra>
// kernel: forward.1
= control target key start
LH: loop header
LB: loop body
LE: loop exit
PB: predicated region body
PF: predicated region fallthrough
CT: control target
= control target key end

     0   :  { %v31735_v1 = vmov 0   ;;  %vm236_vm0 = vcmask 1044480   ;;  %vm237_vm1 = vcmask 1045504   ;;  %v26414_v12 = vmov 65535   ;;  %s31719_s0 = inlined_call_operand.vmem [shape: bf16[75,648], index: 0, kind: input, shape index: {}]   ;;  %s31720_s1 = inlined_call_operand.vmem [shape: bf16[16,75], index: 1, kind: input, shape index: {}]   ;;  %s31721_s2 = inlined_call_operand.vmem [shape: f32[16,1], index: 2, kind: input, shape index: {}]   ;;  %s31722_s3 = inlined_call_operand.vmem [shape: f32[16,1], index: 3, kind: input, shape index: {}]   ;;  %s31723_s4 = inlined_call_operand.vmem [shape: bf16[25,648,98], index: 4, kind: input, shape index: {}]   ;;  %s31724_s5 = inlined_call_operand.vmem [shape: bf16[25,32,16], index: 5, kind: input, shape index: {}]   ;;  %s31725_s6 = inlined_call_operand.vmem [shape: f32[32,1], index: 6, kind: input, shape index: {}]   ;;  %s31726_s7 = inlined_call_operand.vmem [shape: f32[32,1], index: 7, kind: input, shape index: {}]   ;;  %s31727_s8 = inlined_call_operand.vmem [shape: bf16[25,98,8], index: 8, kind: input, shape index: {}]   ;;  %s31728_s9 = inlined_call_operand.vmem [shape: bf16[25,32,32], index: 9, kind: input, shape index: {}]   ;;  %s31729_s10 = inlined_call_operand.vmem [shape: f32[32,1], index: 10, kind: input, shape index: {}]   ;;  %s31730_s11 = inlined_call_operand.vmem [shape: f32[32,1], index: 11, kind: input, shape index: {}]   ;;  %s31731_s14 = inlined_call_operand.vmem [shape: f32[2,1], index: 14, kind: input, shape index: {}]   ;;  %s31732_s13 = inlined_call_operand.vmem [shape: f32[8,2], index: 13, kind: input, shape index: {}]   ;;  %s31733_s12 = inlined_call_operand.vmem [shape: f32[2,32,8], index: 12, kind: input, shape index: {}]   ;;  %s31734_s15 = inlined_call_operand.vmem [shape: f32[2,2], index: 15, kind: output, shape index: {}]  }
   0x1   :  { %v25047_v0 = vld [vmem:[%s31719_s0 + $0x4] ss:$24 sps:$4 sm:$0xff]   ;;  %290 = vmatprep.mubr.bf16.mxu0 %v31735_v1  ;;  %333 = vmatprep.mubr.bf16.mxu1 %v31735_v1  ;;  %v25049_v2 = vld [vmem:[%s31719_s0] ss:$24 sps:$4 sm:$0xff]   ;;  %v25052_v4 = vld [vmem:[%s31719_s0 + $0x34] ss:$24 sps:$4 sm:$0xff]  }
   0x2   :  { %25046 = vset.pattern.permute.xlu1 %v31735_v1  ;;  %25045 = vset.pattern.permute.xlu0 %v31735_v1  ;;  %v25050_v3 = vld [vmem:[%s31719_s0 + $0xc] ss:$24 sps:$4 sm:$0xff]   ;;  %v25054_v5 = vld [vmem:[%s31719_s0 + $0x8] ss:$24 sps:$4 sm:$0xff]   ;;  %v25056_v7 = vld [vmem:[%s31719_s0 + $0x3c] ss:$24 sps:$4 sm:$0xff]  }
   0x3   :  { %258 = vmatprep.subr.bf16.mxu0 %v25047_v0  ;;  %v25055_v6 = vld [vmem:[%s31719_s0 + $0x30] ss:$24 sps:$4 sm:$0xff]   ;;  %301 = vmatprep.subr.bf16.mxu1 %v25050_v3  ;;  %v25058_v8 = vld [vmem:[%s31719_s0 + $0x64] ss:$24 sps:$4 sm:$0xff]   ;;  %v25061_v10 = vld [vmem:[%s31719_s0 + $0x60] ss:$24 sps:$4 sm:$0xff]  }
   0x4   :  { %259 = vmatpush1.bf16.msra.mxu0 %v25049_v2  ;;  %302 = vmatpush1.bf16.msra.mxu1 %v25054_v5  ;;  %v25060_v9 = vld [vmem:[%s31719_s0 + $0x38] ss:$24 sps:$4 sm:$0xff]   ;;  %v25062_v11 = vld [vmem:[%s31719_s0 + $0x6c] ss:$24 sps:$4 sm:$0xff]   ;;  %v238_v13 = vsel %vm236_vm0, 4294967295, %v26414_v12  ;;  %vm232_vm2 = vcmask 613376  }
   0x5   :  { %260 = vmatprep.subr.bf16.mxu0 %v25052_v4  ;;  %303 = vmatprep.subr.bf16.mxu1 %v25056_v7  ;;  %v25064_v14 = vld [vmem:[%s31719_s0 + $0x94] ss:$24 sps:$4 sm:$0xff]   ;;  %v25066_v15 = vld [vmem:[%s31719_s0 + $0x68] ss:$24 sps:$4 sm:$0xff]   ;;  %v239_v18 = vsel %vm237_vm1, %v238_v13, 0  ;;  %vm395_vm3 = vcmask 64512  }
   0x6   :  { %v25067_v16 = vld [vmem:[%s31719_s0 + $0x90] ss:$24 sps:$4 sm:$0xff]   ;;  %v25068_v17 = vld [vmem:[%s31719_s0 + $0x9c] ss:$24 sps:$4 sm:$0xff]   ;;  %v25076_v29 = vld [vmem:[%s31720_s1] sm:$0xff]   ;;  %vm858_vm4 = vcmask 1043456  }
   0x7   :  { %v25070_v19 = vld [vmem:[%s31719_s0 + $0xc4] ss:$24 sps:$4 sm:$0x3f]   ;;  %v25072_v20 = vld [vmem:[%s31719_s0 + $0x98] ss:$24 sps:$4 sm:$0xff]   ;;  %v388_v41 = vld [vmem:[%s31721_s2 + $0x8] sm:$0xff] }
   0x8   :  { %261 = vmatpush1.bf16.msra.mxu0 %v25055_v6  ;;  %304 = vmatpush1.bf16.msra.mxu1 %v25060_v9  ;;  %v25073_v21 = vld [vmem:[%s31719_s0 + $0xc0] ss:$24 sps:$4 sm:$0x3f]   ;;  %v244_v22 = vand.u32 %v25070_v19, %v239_v18  ;;  %v25074_v23 = vld [vmem:[%s31719_s0 + $0xcc] ss:$24 sps:$4 sm:$0x3f]  }
   0x9   :  { %262 = vmatprep.subr.bf16.mxu0 %v25058_v8  ;;  %305 = vmatprep.subr.bf16.mxu1 %v25062_v11  ;;  %v25077_v24 = vld [vmem:[%s31719_s0 + $0xc8] ss:$24 sps:$4 sm:$0x3f]   ;;  %v241_v25 = vand.u32 %v25073_v21, %v239_v18  ;;  %v250_v26 = vand.u32 %v25074_v23, %v239_v18  ;;  %v25080_v27 = vld [vmem:[%s31719_s0 + $0x14] ss:$24 sps:$4 sm:$0xff]   ;;  %vm1457_vm5 = vcmask 130048  }
   0xa   :  { %v247_v28 = vand.u32 %v25077_v24, %v239_v18  ;;  %v25078_v30 = vld [vmem:[%s31719_s0 + $0x10] ss:$24 sps:$4 sm:$0xff]   ;;  %v25083_v31 = vld [vmem:[%s31719_s0 + $0x44] ss:$24 sps:$4 sm:$0xff]   ;;  %v25081_v32 = vld [vmem:[%s31719_s0 + $0x40] ss:$24 sps:$4 sm:$0xff]   ;;  %476 = vperm.xlu1 %25046, %v388_v41  }
   0xb   :  { %v25086_v33 = vld [vmem:[%s31719_s0 + $0x74] ss:$24 sps:$4 sm:$0xff]   ;;  %v25084_v34 = vld [vmem:[%s31719_s0 + $0x70] ss:$24 sps:$4 sm:$0xff]   ;;  %v25089_v35 = vld [vmem:[%s31719_s0 + $0xa4] ss:$24 sps:$4 sm:$0xff]  }
   0xc   :  { %263 = vmatpush1.bf16.msra.mxu0 %v25061_v10  ;;  %306 = vmatpush1.bf16.msra.mxu1 %v25066_v15  ;;  %v25092_v36 = vld [vmem:[%s31719_s0 + $0xd4] ss:$24 sps:$4 sm:$0x3f]   ;;  %v25087_v37 = vld [vmem:[%s31719_s0 + $0xa0] ss:$24 sps:$4 sm:$0xff]   ;;  %vm13684_vm6 = vcmask 801792  }
   0xd   :  { %264 = vmatprep.subr.bf16.mxu0 %v25064_v14  ;;  %307 = vmatprep.subr.bf16.mxu1 %v25068_v17  ;;  %v25090_v38 = vld [vmem:[%s31719_s0 + $0xd0] ss:$24 sps:$4 sm:$0x3f]   ;;  %v256_v39 = vand.u32 %v25092_v36, %v239_v18  ;;  %v389_v42 = vld [vmem:[%s31722_s3] sm:$0xff]  ;;  %vm13850_vm7 = vcmask 1040384   ;;  %vm14031_vm8 = vcmask 261120  }
   0xe   :  { %v253_v40 = vand.u32 %v25090_v38, %v239_v18  ;;  %493 = vperm.xlu1 %25046, %v389_v42   ;;  %v387_v4 = vld [vmem:[%s31721_s2] sm:$0xff]  ;;  %vm26416_vm9 = vmmov 0   ;;  %vm18479_vm10 = vcmask 1041409   ;;  %vm18553_vm11 = vcmask 9216  }
   0xf   :  { %v25093_v5 = vld [vmem:[%s31723_s4 + $0x40] sm:$0xff]  }
  0x10   :  { %265 = vmatpush1.bf16.msra.mxu0 %v25067_v16  ;;  %308 = vmatpush1.bf16.msra.mxu1 %v25072_v20  ;;  %v25094_v6 = vld [vmem:[%s31723_s4 + $0xc0] sm:$0xff]  }
  0x11   :  { %266 = vmatprep.subr.bf16.mxu0 %v244_v22  ;;  %309 = vmatprep.subr.bf16.mxu1 %v250_v26  ;;  %v25095_v7 = vld [vmem:[%s31723_s4] sm:$0xff]  }
  0x12   :  { %v25096_v8 = vld [vmem:[%s31723_s4 + $0x80] sm:$0xff]  }
  0x14   :  { %267 = vmatpush1.bf16.msra.mxu0 %v241_v25  ;;  %310 = vmatpush1.bf16.msra.mxu1 %v247_v28 }
  0x15   :  { %344 = vmatprep.subr.bf16.mxu0 %v25080_v27  ;;  %22517 = vmatprep.subr.bf16.mxu1 %v25093_v5  ;;  %v25115_v5 = vld [vmem:[%s31723_s4 + $0x28] sm:$0xff]  }
  0x17   :  { %18590 = vmatmul.mubr.msk.bf16.vlgmr.msra.gmra.mrb[0].mxu0 %vm232_vm2, %v25076_v29  ;;  %18591 = vmatmul.mubr.msk.bf16.vlgmr.msra.gmra.mrb[0].mxu1 %vm232_vm2, %v25076_v29 }
  0x18   :  { %345 = vmatpush1.bf16.msra.mxu0 %v25078_v30  ;;  %376 = vmatprep.mubr.bf16.mxu0 %v31735_v1 }
  0x19   :  { %346 = vmatprep.subr.bf16.mxu0 %v25083_v31  ;;  %22518 = vmatpush3.bf16.msra.mxu1 %v25095_v7  ;;  %v25117_v7 = vld [vmem:[%s31723_s4 + $0x70] sm:$0xff]  }
  0x1c   :  { %347 = vmatpush1.bf16.msra.mxu0 %v25081_v32 }
  0x1d   :  { %348 = vmatprep.subr.bf16.mxu0 %v25086_v33 }
  0x20   :  { %349 = vmatpush1.bf16.msra.mxu0 %v25084_v34 }
  0x21   :  { %350 = vmatprep.subr.bf16.mxu0 %v25089_v35 }
  0x24   :  { %351 = vmatpush1.bf16.msra.mxu0 %v25087_v37 }
  0x25   :  { %352 = vmatprep.subr.bf16.mxu0 %v256_v39 }
  0x28   :  { %353 = vmatpush1.bf16.msra.mxu0 %v253_v40 }
  0x29   :  { %22539 = vmatprep.subr.bf16.mxu0 %v25094_v6  ;;  %v25116_v6 = vld [vmem:[%s31723_s4 + $0xa8] sm:$0xff]  }
  0x2b   :  { %18592 = vmatmul.mubr.msk.bf16.vlgmr.msra.gmra.mrb[4].mxu0 %vm232_vm2, %v25076_v29 }
  0x2c   :  { %22540 = vmatpush3.bf16.msra.mxu0 %v25096_v8  ;;  %v25118_v8 = vld [vmem:[%s31723_s4 + $0xf0] sm:$0xff]  }
  0xea   :  { %v292_v43 = vpop.f32.mrb[0].mxu0  ;;  %v335_v47 = vpop.f32.mrb[0].mxu1 }
  0xeb   :  { %v294_v44 = vpop.f32.mrb[1].mxu0  ;;  %v337_v49 = vpop.f32.mrb[1].mxu1 }
  0xec   :  { %v391_v45 = vadd.f32 %v294_v44, %v292_v43  ;;  %v296_v46 = vpop.f32.mrb[2].mxu0  ;;  %v339_v52 = vpop.f32.mrb[2].mxu1 }
  0xed   :  { %v298_v48 = vpop.f32.mrb[3].mxu0  ;;  %v341_v53 = vpop.f32.mrb[3].mxu1 }
  0xee   :  { %v400_v50 = vadd.f32 %v298_v48, %v296_v46  ;;  %v392_v51 = vadd.f32 %v391_v45, %v335_v47 }
  0xf0   :  { %v393_v54 = vadd.f32 %v392_v51, %v337_v49  ;;  %v401_v55 = vadd.f32 %v400_v50, %v339_v52  ;;  %v25098_v50 = vld [vmem:[%s31723_s4 + $0xc8] sm:$0xff]  }
  0xf1   :  { %v25099_v51 = vld [vmem:[%s31723_s4 + $0x8] sm:$0xff]   ;;  %22541 = vmatprep.subr.bf16.mxu0 %v25098_v50 }
  0xf2   :  { %v402_v56 = vadd.f32 %v401_v55, %v341_v53  ;;  %v25102_v55 = vld [vmem:[%s31723_s4 + $0xd0] sm:$0xff]  }
  0xfe   :  { %v378_v57 = vpop.f32.mrb[4].mxu0 }
  0xff   :  { %v394_v58 = vadd.f32 %v393_v54, %v378_v57  ;;  %v380_v59 = vpop.f32.mrb[5].mxu0  ;;  %v25101_v54 = vld [vmem:[%s31723_s4 + $0x50] sm:$0xff]  }
 0x100   :  { %v382_v60 = vpop.f32.mrb[6].mxu0  ;;  %v396_v61 = vsel %vm395_vm3, %v380_v59, 0.0 }
 0x101   :  { %v403_v62 = vadd.f32 %v402_v56, %v382_v60  ;;  %v384_v63 = vpop.f32.mrb[7].mxu0  ;;  %v397_v0 = vadd.f32 %v396_v61, %v394_v58  ;;  %v25103_v56 = vld [vmem:[%s31723_s4 + $0x10] sm:$0xff]   ;;  %v25105_v58 = vld [vmem:[%s31723_s4 + $0x58] sm:$0xff]  }
 0x102   :  { %v404_v2 = vsel %vm395_vm3, %v384_v63, 0.0  ;;  %v25108_v61 = vld [vmem:[%s31723_s4 + $0x98] sm:$0xff]  }
 0x103   :  { %398 = vadd.xlane.f32.xlu0 %v397_v0  ;;  %v405_v3 = vadd.f32 %v404_v2, %v403_v62  ;;  %v25109_v62 = vld [vmem:[%s31723_s4 + $0x60] sm:$0xff]  }
 0x104   :  { %v25111_v0 = vld [vmem:[%s31723_s4 + $0x20] sm:$0xff]  }
 0x105   :  { %v25112_v2 = vld [vmem:[%s31723_s4 + $0xa0] sm:$0xff]  }
 0x107   :  { %406 = vadd.xlane.f32.xlu0 %v405_v3  ;;  %v25113_v3 = vld [vmem:[%s31723_s4 + $0x68] sm:$0xff]  }
 0x11d   :  { %471 = vperm.xlu0 %25045, %v387_v4   ;;  %v25114_v4 = vld [vmem:[%s31723_s4 + $0xe8] sm:$0xff]  }
 0x190   :  { %v399_v9 = vpop.xlane.xlu0 %398 }
 0x191   :  { %v409_v10 = vmul.f32 0.0015432099, %v399_v9  ;;  %v25119_v9 = vld [vmem:[%s31723_s4 + $0x30] sm:$0xff]  }
 0x193   :  { %v26621_v11 = vsub.f32 %v292_v43, %v409_v10  ;;  %v26623_v12 = vsub.f32 %v294_v44, %v409_v10  ;;  %v26625_v13 = vsub.f32 %v335_v47, %v409_v10  ;;  %v26627_v15 = vsub.f32 %v337_v49, %v409_v10  ;;  %v25097_v49 = vld [vmem:[%s31723_s4 + $0x48] sm:$0xff]  }
 0x194   :  { %v407_v14 = vpop.xlane.xlu0 %406  ;;  %v26629_v16 = vsub.f32 %v380_v59, %v409_v10  ;;  %v26635_v20 = vsub.f32 %v378_v57, %v409_v10  ;;  %22519 = vmatprep.subr.bf16.mxu1 %v25097_v49  ;;  %v25104_v57 = vld [vmem:[%s31723_s4 + $0x90] sm:$0xff]   ;;  %v25106_v59 = vld [vmem:[%s31723_s4 + $0xd8] sm:$0xff]  }
 0x195   :  { %v410_v17 = vmul.f32 0.0015432099, %v407_v14  ;;  %v423_v18 = vmul.f32 %v26621_v11, %v26621_v11  ;;  %v424_v19 = vmul.f32 %v26623_v12, %v26623_v12  ;;  %v425_v21 = vmul.f32 %v26625_v13, %v26625_v13  ;;  %22520 = vmatpush3.bf16.msra.mxu1 %v25099_v51  ;;  %v25120_v10 = vld [vmem:[%s31723_s4 + $0xb0] sm:$0xff]   ;;  %v25121_v14 = vld [vmem:[%s31723_s4 + $0x78] sm:$0xff]  }
 0x196   :  { %v426_v26 = vmul.f32 %v26627_v15, %v26627_v15  ;;  %v428_v27 = vmul.f32 %v26629_v16, %v26629_v16  ;;  %v427_v33 = vmul.f32 %v26635_v20, %v26635_v20  ;;  %22521 = vmatprep.subr.bf16.mxu1 %v25101_v54 }
 0x197   :  { %v435_v22 = vadd.f32 %v424_v19, %v423_v18  ;;  %v26639_v23 = vsub.f32 %v296_v46, %v410_v17  ;;  %v26641_v24 = vsub.f32 %v298_v48, %v410_v17  ;;  %v26643_v25 = vsub.f32 %v339_v52, %v410_v17  ;;  %v25100_v52 = vld [vmem:[%s31723_s4 + $0x88] sm:$0xff]   ;;  %v25123_v18 = vld [vmem:[%s31723_s4 + $0x38] sm:$0xff]  }
 0x198   :  { %v26649_v28 = vsub.f32 %v384_v63, %v410_v17  ;;  %v26651_v30 = vsub.f32 %v341_v53, %v410_v17  ;;  %v26661_v36 = vsub.f32 %v382_v60, %v410_v17  ;;  %v439_v39 = vsel %vm395_vm3, %v428_v27, 0.0  ;;  %v390_v53 = vld [vmem:[%s31722_s3 + $0x8] sm:$0xff]  ;;  %22542 = vmatpush3.bf16.msra.mxu0 %v25100_v52  ;;  %v25107_v60 = vld [vmem:[%s31723_s4 + $0x18] sm:$0xff]   ;;  %v25110_v63 = vld [vmem:[%s31723_s4 + $0xe0] sm:$0xff]  }
 0x199   :  { %v436_v29 = vadd.f32 %v435_v22, %v425_v21  ;;  %v429_v31 = vmul.f32 %v26639_v23, %v26639_v23  ;;  %v430_v32 = vmul.f32 %v26641_v24, %v26641_v24  ;;  %v431_v37 = vmul.f32 %v26643_v25, %v26643_v25  ;;  %22543 = vmatprep.subr.bf16.mxu0 %v25102_v55  ;;  %v25122_v17 = vld [vmem:[%s31723_s4 + $0xf8] sm:$0xff]   ;;  %v25125_v21 = vld [vmem:[%s31723_s4 + $0x184] sm:$0xff]   ;;  %v477_v22 = vpop.permute.xlu1 %476 }
 0x19a   :  { %v434_v34 = vmul.f32 %v26649_v28, %v26649_v28  ;;  %v432_v42 = vmul.f32 %v26651_v30, %v26651_v30  ;;  %v433_v45 = vmul.f32 %v26661_v36, %v26661_v36  ;;  %22522 = vmatpush3.bf16.msra.mxu1 %v25103_v56  ;;  %v25124_v19 = vld [vmem:[%s31723_s4 + $0xb8] sm:$0xff]  }
 0x19b   :  { %v437_v35 = vadd.f32 %v436_v29, %v426_v26  ;;  %v443_v38 = vadd.f32 %v430_v32, %v429_v31  ;;  %22523 = vmatprep.subr.bf16.mxu1 %v25105_v58 }
 0x19c   :  { %v447_v40 = vsel %vm395_vm3, %v434_v34, 0.0  ;;  %22544 = vmatpush3.bf16.msra.mxu0 %v25104_v57 }
 0x19d   :  { %v438_v41 = vadd.f32 %v437_v35, %v427_v33  ;;  %v444_v43 = vadd.f32 %v443_v38, %v431_v37  ;;  %22545 = vmatprep.subr.bf16.mxu0 %v25106_v59  ;;  %v494_v26 = vpop.permute.xlu1 %493  ;;  %v472_v37 = vpop.permute.xlu0 %471 }
 0x19e   :  { %22524 = vmatpush3.bf16.msra.mxu1 %v25107_v60 }
 0x19f   :  { %v440_v44 = vadd.f32 %v439_v39, %v438_v41  ;;  %v445_v46 = vadd.f32 %v444_v43, %v432_v42  ;;  %22525 = vmatprep.subr.bf16.mxu1 %v25109_v62 }
 0x1a0   :  { %22546 = vmatpush3.bf16.msra.mxu0 %v25108_v61 }
 0x1a1   :  { %441 = vadd.xlane.f32.xlu1 %v440_v44  ;;  %v446_v47 = vadd.f32 %v445_v46, %v433_v45  ;;  %22547 = vmatprep.subr.bf16.mxu0 %v25110_v63 }
 0x1a2   :  { %22526 = vmatpush3.bf16.msra.mxu1 %v25111_v0 }
 0x1a3   :  { %v448_v48 = vadd.f32 %v447_v40, %v446_v47  ;;  %22527 = vmatprep.subr.bf16.mxu1 %v25113_v3 }
 0x1a4   :  { %22548 = vmatpush3.bf16.msra.mxu0 %v25112_v2 }
 0x1a5   :  { %449 = vadd.xlane.f32.xlu1 %v448_v48  ;;  %22549 = vmatprep.subr.bf16.mxu0 %v25114_v4 }
 0x1a6   :  { %22528 = vmatpush3.bf16.msra.mxu1 %v25115_v5 }
 0x1a7   :  { %22529 = vmatprep.subr.bf16.mxu1 %v25117_v7 }
 0x1a8   :  { %22550 = vmatpush3.bf16.msra.mxu0 %v25116_v6 }
 0x1a9   :  { %22551 = vmatprep.subr.bf16.mxu0 %v25118_v8  ;;  %v25126_v8 = vld [vmem:[%s31723_s4 + $0x100] sm:$0xff]  }
 0x1aa   :  { %22530 = vmatpush3.bf16.msra.mxu1 %v25119_v9 }
 0x1ab   :  { %22531 = vmatprep.subr.bf16.mxu1 %v25121_v14 }
 0x1ac   :  { %22552 = vmatpush3.bf16.msra.mxu0 %v25120_v10 }
 0x1ad   :  { %22553 = vmatprep.subr.bf16.mxu0 %v25122_v17 }
 0x1ae   :  { %22532 = vmatpush3.bf16.msra.mxu1 %v25123_v18  ;;  %v25127_v18 = vld [vmem:[%s31723_s4 + $0x144] sm:$0xff]  }
 0x1af   :  { %944 = vmatprep.subr.bf16.mxu1 %v31735_v1 }
 0x1b0   :  { %22554 = vmatpush3.bf16.msra.mxu0 %v25124_v19 }
 0x1b1   :  { %22561 = vmatprep.subr.bf16.mxu0 %v25125_v21 }
 0x1b6   :  { %498 = vperm.xlu1 %25046, %v390_v53  }
 0x22e   :  { %v442_v27 = vpop.xlane.xlu1 %441 }
 0x22f   :  { %v451_v29 = vmul.f32 0.0015432099, %v442_v27 }
 0x231   :  { %v453_v31 = vadd.f32 1e-05, %v451_v29 }
 0x232   :  { %v450_v32 = vpop.xlane.xlu1 %449 }
 0x233   :  { %26393 = vrsqrt.f32 %v453_v31  ;;  %v452_v33 = vmul.f32 0.0015432099, %v450_v32  ;;  %v25128_v31 = vld [vmem:[%s31723_s4 + $0x18c] sm:$0xff]  }
 0x234   :  { %v25129_v32 = vld [vmem:[%s31723_s4 + $0x108] sm:$0xff]  }
 0x235   :  { %v454_v34 = vadd.f32 1e-05, %v452_v33 }
 0x236   :  { %v499_v59 = vpop.permute.xlu1 %498 }
 0x237   :  { %26395 = vrsqrt.f32 %v454_v34  ;;  %v25130_v34 = vld [vmem:[%s31723_s4 + $0x14c] sm:$0xff]  }
 0x23d   :  { %v26394_v35 = vpop.eup %26393 }
 0x23e   :  { %v457_v38 = vmul.f32 %v26394_v35, %v26621_v11  ;;  %v458_v39 = vmul.f32 %v26394_v35, %v26623_v12  ;;  %v459_v40 = vmul.f32 %v26394_v35, %v26625_v13  ;;  %v460_v41 = vmul.f32 %v26394_v35, %v26627_v15 }
 0x23f   :  { %v461_v42 = vmul.f32 %v26394_v35, %v26635_v20  ;;  %v462_v43 = vmul.f32 %v26394_v35, %v26629_v16  ;;  %v25131_v35 = vld [vmem:[%s31723_s4 + $0x194] sm:$0xff]  }
 0x240   :  { %v479_v44 = vmul.f32 %v472_v37, %v457_v38  ;;  %v480_v45 = vmul.f32 %v472_v37, %v458_v39  ;;  %v481_v47 = vmul.f32 %v472_v37, %v459_v40  ;;  %v482_v48 = vmul.f32 %v472_v37, %v460_v41  ;;  %v25133_v38 = vld [vmem:[%s31723_s4 + $0x154] sm:$0xff]   ;;  %v25134_v39 = vld [vmem:[%s31723_s4 + $0x19c] sm:$0xff]  }
 0x241   :  { %v26396_v46 = vpop.eup %26395  ;;  %v483_v49 = vmul.f32 %v472_v37, %v461_v42  ;;  %v484_v50 = vmul.f32 %v472_v37, %v462_v43  ;;  %v25132_v37 = vld [vmem:[%s31723_s4 + $0x110] sm:$0xff]   ;;  %v25135_v40 = vld [vmem:[%s31723_s4 + $0x118] sm:$0xff]   ;;  %v25137_v42 = vld [vmem:[%s31723_s4 + $0x1a4] sm:$0xff]  }
 0x242   :  { %v463_v51 = vmul.f32 %v26396_v46, %v26639_v23  ;;  %v464_v11 = vmul.f32 %v26396_v46, %v26641_v24  ;;  %v465_v12 = vmul.f32 %v26396_v46, %v26643_v25  ;;  %v466_v13 = vmul.f32 %v26396_v46, %v26651_v30  ;;  %v25136_v41 = vld [vmem:[%s31723_s4 + $0x15c] sm:$0xff]  }
 0x243   :  { %v467_v15 = vmul.f32 %v26396_v46, %v26661_v36  ;;  %v468_v20 = vmul.f32 %v26396_v46, %v26649_v28  ;;  %v501_v16 = vadd.f32 %v494_v26, %v479_v44  ;;  %v502_v52 = vadd.f32 %v494_v26, %v480_v45  ;;  %v25138_v43 = vld [vmem:[%s31723_s4 + $0x120] sm:$0xff]   ;;  %v25140_v45 = vld [vmem:[%s31723_s4 + $0x1ac] sm:$0xff]  }
 0x244   :  { %v485_v53 = vmul.f32 %v477_v22, %v463_v51  ;;  %v486_v54 = vmul.f32 %v477_v22, %v464_v11  ;;  %v487_v55 = vmul.f32 %v477_v22, %v465_v12  ;;  %v488_v56 = vmul.f32 %v477_v22, %v466_v13  ;;  %v25139_v44 = vld [vmem:[%s31723_s4 + $0x164] sm:$0xff]   ;;  %v25146_v51 = vld [vmem:[%s31723_s4 + $0x1bc] sm:$0xff]  }
 0x245   :  { %v489_v57 = vmul.f32 %v477_v22, %v467_v15  ;;  %v490_v58 = vmul.f32 %v477_v22, %v468_v20  ;;  %v503_v23 = vadd.f32 %v494_v26, %v481_v47  ;;  %v504_v60 = vadd.f32 %v494_v26, %v482_v48  ;;  %v25141_v46 = vld [vmem:[%s31723_s4 + $0x128] sm:$0xff]   ;;  %v25143_v48 = vld [vmem:[%s31723_s4 + $0x1b4] sm:$0xff]   ;;  %v25148_v12 = vld [vmem:[%s31723_s4 + $0x17c] sm:$0xff]  }
 0x246   :  { %v507_v24 = vadd.f32 %v499_v59, %v485_v53  ;;  %v508_v61 = vadd.f32 %v499_v59, %v486_v54  ;;  %v509_v25 = vadd.f32 %v499_v59, %v487_v55  ;;  %v510_v62 = vadd.f32 %v499_v59, %v488_v56  ;;  %v25142_v47 = vld [vmem:[%s31723_s4 + $0x16c] sm:$0xff]   ;;  %v25147_v11 = vld [vmem:[%s31723_s4 + $0x138] sm:$0xff]   ;;  %v25149_v13 = vld [vmem:[%s31723_s4 + $0x140] ss:$0 sps:$4 sm:$0xff]  }
 0x247   :  { %v511_v30 = vadd.f32 %v499_v59, %v489_v57  ;;  %v512_v63 = vadd.f32 %v499_v59, %v490_v58  ;;  %v505_v36 = vadd.f32 %v494_v26, %v483_v49  ;;  %v506_v0 = vadd.f32 %v494_v26, %v484_v50  ;;  %v25144_v49 = vld [vmem:[%s31723_s4 + $0x130] sm:$0xff]   ;;  %v25150_v15 = vld [vmem:[%s31723_s4 + $0x244] sm:$0xff]   ;;  %v25159_v59 = vld [vmem:[%s31723_s4 + $0x25c] sm:$0xff]  }
 0x248   :  { %v519_v28 = vmax.f32 %v507_v24, 0.0  ;;  %v520_v2 = vmax.f32 %v508_v61, 0.0  ;;  %v521_v3 = vmax.f32 %v509_v25, 0.0  ;;  %v522_v4 = vmax.f32 %v510_v62, 0.0  ;;  %v25145_v50 = vld [vmem:[%s31723_s4 + $0x174] sm:$0xff]   ;;  %v25153_v53 = vld [vmem:[%s31723_s4 + $0x24c] sm:$0xff]  }
 0x249   :  { %v523_v5 = vmax.f32 %v511_v30, 0.0  ;;  %v513_v6 = vmax.f32 %v501_v16, 0.0  ;;  %v514_v7 = vmax.f32 %v502_v52, 0.0  ;;  %v524_v9 = vmax.f32 %v512_v63, 0.0  ;;  %v25151_v16 = vld [vmem:[%s31723_s4 + $0x204] sm:$0xff]   ;;  %v25154_v54 = vld [vmem:[%s31723_s4 + $0x20c] sm:$0xff]  }
 0x24a   :  { %v515_v10 = vmax.f32 %v503_v23, 0.0  ;;  %v516_v14 = vmax.f32 %v504_v60, 0.0  ;;  %v517_v17 = vmax.f32 %v505_v36, 0.0  ;;  %v518_v22 = vmax.f32 %v506_v0, 0.0  ;;  %v25152_v52 = vld [vmem:[%s31723_s4 + $0x1c4] sm:$0xff]   ;;  %v25155_v55 = vld [vmem:[%s31723_s4 + $0x1cc] sm:$0xff]  }
 0x24b   :  { %v26780_v19 = vpack.c.bf16 %v519_v28, %v513_v6  ;;  %v26782_v21 = vpack.c.bf16 %v520_v2, %v514_v7  ;;  %v860_v20 = vsel %vm858_vm4, %v25149_v13, 0  ;;  %v25156_v56 = vld [vmem:[%s31723_s4 + $0x254] sm:$0xff]   ;;  %v25160_v23 = vld [vmem:[%s31723_s4 + $0x21c] sm:$0xff]   ;;  %v25162_v24 = vld [vmem:[%s31723_s4 + $0x264] sm:$0xff]  }
 0x24c   :  { %v26784_v26 = vpack.c.bf16 %v521_v3, %v515_v10  ;;  %v26786_v27 = vpack.c.bf16 %v522_v4, %v516_v14  ;;  %v26788_v29 = vpack.c.bf16 %v523_v5, %v517_v17  ;;  %v26797_v33 = vpack.c.bf16 %v524_v9, %v518_v22  ;;  %v25157_v57 = vld [vmem:[%s31723_s4 + $0x214] sm:$0xff]   ;;  %v25161_v60 = vld [vmem:[%s31723_s4 + $0x1dc] sm:$0xff]   ;;  %v25163_v61 = vld [vmem:[%s31723_s4 + $0x224] sm:$0xff]  }
 0x24d   :  { %894 = vmatprep.mubr.bf16.mxu1 %v26782_v21  ;;  %v25158_v58 = vld [vmem:[%s31723_s4 + $0x1d4] sm:$0xff]   ;;  %v25164_v25 = vld [vmem:[%s31723_s4 + $0x1e4] sm:$0xff]   ;;  %v25165_v62 = vld [vmem:[%s31723_s4 + $0x26c] sm:$0xff]  }
 0x24e   :  { %935 = vmatprep.mubr.bf16.mxu0 %v26786_v27  ;;  %895 = vmatmul.mubr.bf16.vlgmr.msra.gmra.mrb[4].mxu1 %v26780_v19  ;;  %v25166_v30 = vld [vmem:[%s31723_s4 + $0x22c] sm:$0xff]   ;;  %v25168_v36 = vld [vmem:[%s31723_s4 + $0x274] sm:$0xff]   ;;  %v25171_v2 = vld [vmem:[%s31723_s4 + $0x27c] sm:$0xff]  }
 0x24f   :  { %936 = vmatmul.mubr.bf16.vlgmr.msra.gmra.mrb[8].mxu0 %v26784_v26  ;;  %945 = vmatpush1.bf16.msra.mxu1 %v25126_v8  ;;  %v25167_v63 = vld [vmem:[%s31723_s4 + $0x1ec] sm:$0xff]   ;;  %v25169_v0 = vld [vmem:[%s31723_s4 + $0x234] sm:$0xff]   ;;  %v25172_v3 = vld [vmem:[%s31723_s4 + $0x23c] sm:$0xff]  }
 0x250   :  { %22562 = vmatpush3.bf16.msra.mxu0 %v25127_v18  ;;  %18634 = vmatprep.mubr.msk.bf16.mxu1 %vm395_vm3, %v26797_v33  ;;  %v25170_v28 = vld [vmem:[%s31723_s4 + $0x1f4] sm:$0xff]   ;;  %v25173_v4 = vld [vmem:[%s31723_s4 + $0x1fc] sm:$0xff]   ;;  %v25174_v5 = vld [vmem:[%s31723_s4 + $0x284] ss:$0 sps:$4 sm:$0xff]  }
 0x251   :  { %1350 = vmatprep.mubr.bf16.mxu0 %v26782_v21  ;;  %946 = vmatprep.subr.bf16.mxu1 %v31735_v1  ;;  %v1316_v6 = vsel %vm858_vm4, %v25174_v5, 0  ;;  %v25175_v7 = vld [vmem:[%s31723_s4 + $0x348] sm:$0xff]   ;;  %v25177_v9 = vld [vmem:[%s31723_s4 + $0x350] sm:$0xff]   ;;  %v25179_v14 = vld [vmem:[%s31723_s4 + $0x358] sm:$0xff]  }
 0x252   :  { %22563 = vmatprep.subr.bf16.mxu0 %v25128_v31  ;;  %v25176_v8 = vld [vmem:[%s31723_s4 + $0x308] sm:$0xff]   ;;  %v25178_v10 = vld [vmem:[%s31723_s4 + $0x310] sm:$0xff]   ;;  %v25180_v17 = vld [vmem:[%s31723_s4 + $0x318] sm:$0xff]  }
 0x253   :  { %947 = vmatpush1.bf16.msra.mxu1 %v25129_v32  ;;  %v25181_v18 = vld [vmem:[%s31723_s4 + $0x360] sm:$0xff]   ;;  %v25183_v31 = vld [vmem:[%s31723_s4 + $0x368] sm:$0xff]  }
 0x254   :  { %22564 = vmatpush3.bf16.msra.mxu0 %v25130_v34  ;;  %948 = vmatprep.subr.bf16.mxu1 %v31735_v1  ;;  %v25182_v22 = vld [vmem:[%s31723_s4 + $0x320] sm:$0xff]   ;;  %v25184_v32 = vld [vmem:[%s31723_s4 + $0x328] sm:$0xff]   ;;  %v25185_v34 = vld [vmem:[%s31723_s4 + $0x370] sm:$0xff]  }
 0x255   :  { %22565 = vmatprep.subr.bf16.mxu0 %v25131_v35  ;;  %v25186_v35 = vld [vmem:[%s31723_s4 + $0x330] sm:$0xff]   ;;  %v25204_v13 = vld [vmem:[%s31723_s4 + $0x3fc] sm:$0xff]   ;;  %v25229_v5 = vld [vmem:[%s31723_s4 + $0x568] sm:$0xff]  }
 0x257   :  { %949 = vmatpush1.bf16.msra.mxu1 %v25132_v37  ;;  %v25187_v37 = vld [vmem:[%s31723_s4 + $0x378] sm:$0xff]  }
 0x258   :  { %22566 = vmatpush3.bf16.msra.mxu0 %v25133_v38  ;;  %950 = vmatprep.subr.bf16.mxu1 %v31735_v1  ;;  %v25188_v38 = vld [vmem:[%s31723_s4 + $0x338] sm:$0xff]  }
 0x259   :  { %22567 = vmatprep.subr.bf16.mxu0 %v25134_v39  ;;  %v25189_v39 = vld [vmem:[%s31723_s4 + $0x380] sm:$0xff]  }
 0x25b   :  { %951 = vmatpush1.bf16.msra.mxu1 %v25135_v40  ;;  %v25190_v40 = vld [vmem:[%s31723_s4 + $0x340] sm:$0xff]  }
 0x25c   :  { %22568 = vmatpush3.bf16.msra.mxu0 %v25136_v41  ;;  %952 = vmatprep.subr.bf16.mxu1 %v31735_v1  ;;  %v25191_v41 = vld [vmem:[%s31723_s4 + $0x40c] sm:$0xff]  }
 0x25d   :  { %22569 = vmatprep.subr.bf16.mxu0 %v25137_v42  ;;  %v25192_v42 = vld [vmem:[%s31723_s4 + $0x3cc] sm:$0xff]  }
 0x25f   :  { %953 = vmatpush1.bf16.msra.mxu1 %v25138_v43  ;;  %v25193_v43 = vld [vmem:[%s31723_s4 + $0x414] sm:$0xff]  }
 0x260   :  { %22570 = vmatpush3.bf16.msra.mxu0 %v25139_v44  ;;  %954 = vmatprep.subr.bf16.mxu1 %v31735_v1  ;;  %v25194_v44 = vld [vmem:[%s31723_s4 + $0x3d4] sm:$0xff]  }
 0x261   :  { %22571 = vmatprep.subr.bf16.mxu0 %v25140_v45  ;;  %v25195_v45 = vld [vmem:[%s31723_s4 + $0x41c] sm:$0xff]  }
 0x263   :  { %955 = vmatpush1.bf16.msra.mxu1 %v25141_v46  ;;  %v25196_v46 = vld [vmem:[%s31723_s4 + $0x3dc] sm:$0xff]  }
 0x264   :  { %22572 = vmatpush3.bf16.msra.mxu0 %v25142_v47  ;;  %956 = vmatprep.subr.bf16.mxu1 %v31735_v1  ;;  %v25197_v47 = vld [vmem:[%s31723_s4 + $0x424] sm:$0xff]  }
 0x265   :  { %22573 = vmatprep.subr.bf16.mxu0 %v25143_v48  ;;  %v25198_v48 = vld [vmem:[%s31723_s4 + $0x3e4] sm:$0xff]  }
 0x267   :  { %957 = vmatpush1.bf16.msra.mxu1 %v25144_v49  ;;  %v25199_v49 = vld [vmem:[%s31723_s4 + $0x42c] sm:$0xff]  }
 0x268   :  { %22574 = vmatpush3.bf16.msra.mxu0 %v25145_v50  ;;  %958 = vmatprep.subr.bf16.mxu1 %v31735_v1  ;;  %v25200_v50 = vld [vmem:[%s31723_s4 + $0x3ec] sm:$0xff]  }
 0x269   :  { %22575 = vmatprep.subr.bf16.mxu0 %v25146_v51  ;;  %v25201_v51 = vld [vmem:[%s31723_s4 + $0x434] sm:$0xff]  }
 0x26b   :  { %959 = vmatpush1.bf16.msra.mxu1 %v25147_v11  ;;  %v25202_v11 = vld [vmem:[%s31723_s4 + $0x3f4] sm:$0xff]  }
 0x26c   :  { %22576 = vmatpush3.bf16.msra.mxu0 %v25148_v12  ;;  %960 = vmatprep.subr.bf16.mxu1 %v31735_v1  ;;  %v25203_v12 = vld [vmem:[%s31723_s4 + $0x43c] sm:$0xff]  }
 0x26d   :  { %1400 = vmatprep.subr.bf16.mxu0 %v31735_v1 }
 0x26f   :  { %1351 = vmatmul.mubr.bf16.vlgmr.msra.gmra.mrb[12].mxu0 %v26780_v19  ;;  %961 = vmatpush1.bf16.msra.mxu1 %v860_v20  ;;  %v25206_v20 = vld [vmem:[%s31723_s4 + $0x404] sm:$0xff]  }
 0x270   :  { %1401 = vmatpush1.bf16.msra.mxu0 %v25150_v15  ;;  %18757 = vmatprep.mubr.msk.bf16.mxu0 %vm395_vm3, %v26797_v33  ;;  %v25205_v15 = vld [vmem:[%s31723_s4 + $0x444] sm:$0xff]  }
 0x271   :  { %22583 = vmatprep.subr.bf16.mxu1 %v25151_v16  ;;  %1402 = vmatprep.subr.bf16.mxu0 %v31735_v1  ;;  %v25207_v16 = vld [vmem:[%s31723_s4 + $0x48c] sm:$0xff]  }
 0x272   :  { %977 = vmatmul.mubr.bf16.vlgmr.msra.gmra.mrb[8].mxu1 %v26788_v29 }
 0x273   :  { %22584 = vmatpush3.bf16.msra.mxu1 %v25152_v52  ;;  %1391 = vmatprep.mubr.bf16.mxu1 %v26786_v27  ;;  %v25208_v52 = vld [vmem:[%s31723_s4 + $0x44c] sm:$0xff]  }
 0x274   :  { %1403 = vmatpush1.bf16.msra.mxu0 %v25153_v53  ;;  %22585 = vmatprep.subr.bf16.mxu1 %v25154_v54  ;;  %v25209_v53 = vld [vmem:[%s31723_s4 + $0x494] sm:$0xff]  }
 0x275   :  { %1404 = vmatprep.subr.bf16.mxu0 %v31735_v1  ;;  %v25210_v54 = vld [vmem:[%s31723_s4 + $0x454] sm:$0xff]  }
 0x277   :  { %22586 = vmatpush3.bf16.msra.mxu1 %v25155_v55  ;;  %v25211_v55 = vld [vmem:[%s31723_s4 + $0x49c] sm:$0xff]  }
 0x278   :  { %1405 = vmatpush1.bf16.msra.mxu0 %v25156_v56  ;;  %22587 = vmatprep.subr.bf16.mxu1 %v25157_v57  ;;  %v25212_v56 = vld [vmem:[%s31723_s4 + $0x45c] sm:$0xff]   ;;  %v25213_v57 = vld [vmem:[%s31723_s4 + $0x4a4] sm:$0xff]  }
 0x279   :  { %1406 = vmatprep.subr.bf16.mxu0 %v31735_v1 }
 0x27b   :  { %22588 = vmatpush3.bf16.msra.mxu1 %v25158_v58  ;;  %v25214_v58 = vld [vmem:[%s31723_s4 + $0x464] sm:$0xff]  }
 0x27c   :  { %1407 = vmatpush1.bf16.msra.mxu0 %v25159_v59  ;;  %22589 = vmatprep.subr.bf16.mxu1 %v25160_v23  ;;  %v25215_v59 = vld [vmem:[%s31723_s4 + $0x4ac] sm:$0xff]  }
 0x27d   :  { %1408 = vmatprep.subr.bf16.mxu0 %v31735_v1  ;;  %v25216_v23 = vld [vmem:[%s31723_s4 + $0x46c] sm:$0xff]  }
 0x27f   :  { %22590 = vmatpush3.bf16.msra.mxu1 %v25161_v60  ;;  %v25217_v60 = vld [vmem:[%s31723_s4 + $0x4b4] sm:$0xff]  }
 0x280   :  { %1409 = vmatpush1.bf16.msra.mxu0 %v25162_v24  ;;  %22591 = vmatprep.subr.bf16.mxu1 %v25163_v61  ;;  %v25218_v24 = vld [vmem:[%s31723_s4 + $0x474] sm:$0xff]   ;;  %v25219_v61 = vld [vmem:[%s31723_s4 + $0x4bc] sm:$0xff]  }
 0x281   :  { %1410 = vmatprep.subr.bf16.mxu0 %v31735_v1 }
 0x283   :  { %22592 = vmatpush3.bf16.msra.mxu1 %v25164_v25  ;;  %v25220_v25 = vld [vmem:[%s31723_s4 + $0x47c] sm:$0xff]  }
 0x284   :  { %1411 = vmatpush1.bf16.msra.mxu0 %v25165_v62  ;;  %22593 = vmatprep.subr.bf16.mxu1 %v25166_v30  ;;  %v25221_v62 = vld [vmem:[%s31723_s4 + $0x4c4] sm:$0xff]  }
 0x285   :  { %1412 = vmatprep.subr.bf16.mxu0 %v31735_v1  ;;  %v25222_v30 = vld [vmem:[%s31723_s4 + $0x484] sm:$0xff]  }
 0x287   :  { %22594 = vmatpush3.bf16.msra.mxu1 %v25167_v63  ;;  %v25223_v63 = vld [vmem:[%s31723_s4 + $0x550] sm:$0xff]  }
 0x288   :  { %1413 = vmatpush1.bf16.msra.mxu0 %v25168_v36  ;;  %22595 = vmatprep.subr.bf16.mxu1 %v25169_v0  ;;  %v25224_v36 = vld [vmem:[%s31723_s4 + $0x510] sm:$0xff]   ;;  %v25225_v0 = vld [vmem:[%s31723_s4 + $0x558] sm:$0xff]  }
 0x289   :  { %1414 = vmatprep.subr.bf16.mxu0 %v31735_v1 }
 0x28b   :  { %22596 = vmatpush3.bf16.msra.mxu1 %v25170_v28  ;;  %v25226_v28 = vld [vmem:[%s31723_s4 + $0x518] sm:$0xff]  }
 0x28c   :  { %1415 = vmatpush1.bf16.msra.mxu0 %v25171_v2  ;;  %22597 = vmatprep.subr.bf16.mxu1 %v25172_v3  ;;  %v25227_v2 = vld [vmem:[%s31723_s4 + $0x560] sm:$0xff]   ;;  %v25280_v3 = vld [vmem:[%s31724_s5 + $0x10] sm:$0xff]  }
 0x28d   :  { %1416 = vmatprep.subr.bf16.mxu0 %v31735_v1 }
 0x28f   :  { %22598 = vmatpush3.bf16.msra.mxu1 %v25173_v4  ;;  %v25228_v4 = vld [vmem:[%s31723_s4 + $0x520] sm:$0xff]  }
 0x290   :  { %1417 = vmatpush1.bf16.msra.mxu0 %v1316_v6  ;;  %v25230_v6 = vld [vmem:[%s31723_s4 + $0x528] sm:$0xff]  }
 0x291   :  { %22633 = vmatprep.subr.bf16.mxu0 %v25175_v7  ;;  %v25231_v7 = vld [vmem:[%s31723_s4 + $0x570] sm:$0xff]  }
 0x292   :  { %1392 = vmatmul.mubr.bf16.vlgmr.msra.gmra.mrb[12].mxu1 %v26784_v26 }
 0x293   :  { %1433 = vmatmul.mubr.bf16.vlgmr.msra.gmra.mrb[16].mxu0 %v26788_v29  ;;  %24021 = vmatprep.mubr.msk.bf16.mxu1 %vm1457_vm5, %v25280_v3  ;;  %v25259_v3 = vld [vmem:[%s31723_s4 + $0x6fc] sm:$0xff]  }
 0x294   :  { %22634 = vmatpush3.bf16.msra.mxu0 %v25176_v8  ;;  %1979 = vmatprep.mubr.bf16.mxu0 %v26786_v27  ;;  %v25232_v8 = vld [vmem:[%s31723_s4 + $0x530] sm:$0xff]  }
 0x295   :  { %22635 = vmatprep.subr.bf16.mxu0 %v25177_v9  ;;  %v25233_v9 = vld [vmem:[%s31723_s4 + $0x578] sm:$0xff]  }
 0x298   :  { %22636 = vmatpush3.bf16.msra.mxu0 %v25178_v10  ;;  %v25234_v10 = vld [vmem:[%s31723_s4 + $0x538] sm:$0xff]  }
 0x299   :  { %22637 = vmatprep.subr.bf16.mxu0 %v25179_v14  ;;  %v25235_v14 = vld [vmem:[%s31723_s4 + $0x580] sm:$0xff]  }
 0x29c   :  { %22638 = vmatpush3.bf16.msra.mxu0 %v25180_v17  ;;  %v25236_v17 = vld [vmem:[%s31723_s4 + $0x540] sm:$0xff]  }
 0x29d   :  { %22639 = vmatprep.subr.bf16.mxu0 %v25181_v18  ;;  %v25237_v18 = vld [vmem:[%s31723_s4 + $0x588] sm:$0xff]  }
 0x2a0   :  { %22640 = vmatpush3.bf16.msra.mxu0 %v25182_v22  ;;  %v25238_v22 = vld [vmem:[%s31723_s4 + $0x548] sm:$0xff]  }
 0x2a1   :  { %22641 = vmatprep.subr.bf16.mxu0 %v25183_v31  ;;  %v25239_v31 = vld [vmem:[%s31723_s4 + $0x610] sm:$0xff]  }
 0x2a4   :  { %22642 = vmatpush3.bf16.msra.mxu0 %v25184_v32  ;;  %v25240_v32 = vld [vmem:[%s31723_s4 + $0x618] sm:$0xff]  }
 0x2a5   :  { %22643 = vmatprep.subr.bf16.mxu0 %v25185_v34  ;;  %v25241_v34 = vld [vmem:[%s31723_s4 + $0x620] sm:$0xff]  }
 0x2a8   :  { %22644 = vmatpush3.bf16.msra.mxu0 %v25186_v35  ;;  %v25242_v35 = vld [vmem:[%s31723_s4 + $0x628] sm:$0xff]  }
 0x2a9   :  { %22645 = vmatprep.subr.bf16.mxu0 %v25187_v37  ;;  %v25243_v37 = vld [vmem:[%s31723_s4 + $0x630] sm:$0xff]  }
 0x2ac   :  { %22646 = vmatpush3.bf16.msra.mxu0 %v25188_v38 }
 0x2ad   :  { %22647 = vmatprep.subr.bf16.mxu0 %v25189_v39 }
 0x2b0   :  { %22648 = vmatpush3.bf16.msra.mxu0 %v25190_v40 }
 0x2b1   :  { %22658 = vmatprep.subr.bf16.mxu0 %v25191_v41 }
 0x2b3   :  { %1980 = vmatmul.mubr.bf16.vlgmr.msra.gmra.mrb[20].mxu0 %v26784_v26 }
 0x2b4   :  { %22659 = vmatpush3.bf16.msra.mxu0 %v25192_v42  ;;  %2464 = vmatprep.mubr.bf16.mxu0 %v26782_v21 }
 0x2b5   :  { %22660 = vmatprep.subr.bf16.mxu0 %v25193_v43 }
 0x2b8   :  { %22661 = vmatpush3.bf16.msra.mxu0 %v25194_v44 }
 0x2b9   :  { %22662 = vmatprep.subr.bf16.mxu0 %v25195_v45 }
 0x2bc   :  { %22663 = vmatpush3.bf16.msra.mxu0 %v25196_v46 }
 0x2bd   :  { %22664 = vmatprep.subr.bf16.mxu0 %v25197_v47  ;;  %v25244_v47 = vld [vmem:[%s31723_s4 + $0x638] sm:$0xff]  }
 0x2c0   :  { %22665 = vmatpush3.bf16.msra.mxu0 %v25198_v48 }
 0x2c1   :  { %22666 = vmatprep.subr.bf16.mxu0 %v25199_v49 }
 0x2c4   :  { %22667 = vmatpush3.bf16.msra.mxu0 %v25200_v50 }
 0x2c5   :  { %22668 = vmatprep.subr.bf16.mxu0 %v25201_v51 }
 0x2c8   :  { %22669 = vmatpush3.bf16.msra.mxu0 %v25202_v11  ;;  %v25245_v11 = vld [vmem:[%s31723_s4 + $0x640] sm:$0xff]  }
 0x2c9   :  { %22670 = vmatprep.subr.bf16.mxu0 %v25203_v12 }
 0x2cc   :  { %22671 = vmatpush3.bf16.msra.mxu0 %v25204_v13  ;;  %v25246_v13 = vld [vmem:[%s31723_s4 + $0x648] sm:$0xff]  }
 0x2cd   :  { %22672 = vmatprep.subr.bf16.mxu0 %v25205_v15  ;;  %v25247_v15 = vld [vmem:[%s31723_s4 + $0x650] ss:$0 sps:$4 sm:$0xff]  }
 0x2d0   :  { %22673 = vmatpush3.bf16.msra.mxu0 %v25206_v20  ;;  %v2956_v20 = vsel %vm858_vm4, %v25247_v15, 0  ;;  %v25277_v15 = vld [vmem:[%s31723_s4 + $0x7c8] sm:$0xff]  }
 0x2d1   :  { %22680 = vmatprep.subr.bf16.mxu0 %v25207_v16  ;;  %v25248_v16 = vld [vmem:[%s31723_s4 + $0x714] sm:$0xff]  }
 0x2d3   :  { %2465 = vmatmul.mubr.bf16.vlgmr.msra.gmra.mrb[24].mxu0 %v26780_v19 }
 0x2d4   :  { %22681 = vmatpush3.bf16.msra.mxu0 %v25208_v52  ;;  %2505 = vmatprep.mubr.bf16.mxu0 %v26786_v27  ;;  %v25249_v52 = vld [vmem:[%s31723_s4 + $0x6d4] sm:$0xff]  }
 0x2d5   :  { %22682 = vmatprep.subr.bf16.mxu0 %v25209_v53  ;;  %v25250_v53 = vld [vmem:[%s31723_s4 + $0x71c] sm:$0xff]  }
 0x2d8   :  { %22683 = vmatpush3.bf16.msra.mxu0 %v25210_v54  ;;  %v25251_v54 = vld [vmem:[%s31723_s4 + $0x6dc] sm:$0xff]  }
 0x2d9   :  { %22684 = vmatprep.subr.bf16.mxu0 %v25211_v55  ;;  %v25252_v55 = vld [vmem:[%s31723_s4 + $0x724] sm:$0xff]  }
 0x2dc   :  { %22685 = vmatpush3.bf16.msra.mxu0 %v25212_v56  ;;  %v25253_v56 = vld [vmem:[%s31723_s4 + $0x6e4] sm:$0xff]  }
 0x2dd   :  { %22686 = vmatprep.subr.bf16.mxu0 %v25213_v57  ;;  %v25254_v57 = vld [vmem:[%s31723_s4 + $0x72c] sm:$0xff]  }
 0x2e0   :  { %22687 = vmatpush3.bf16.msra.mxu0 %v25214_v58  ;;  %v25255_v58 = vld [vmem:[%s31723_s4 + $0x6ec] sm:$0xff]  }
 0x2e1   :  { %22688 = vmatprep.subr.bf16.mxu0 %v25215_v59  ;;  %v25256_v59 = vld [vmem:[%s31723_s4 + $0x734] sm:$0xff]  }
 0x2e4   :  { %22689 = vmatpush3.bf16.msra.mxu0 %v25216_v23 }
 0x2e5   :  { %22690 = vmatprep.subr.bf16.mxu0 %v25217_v60 }
 0x2e8   :  { %22691 = vmatpush3.bf16.msra.mxu0 %v25218_v24  ;;  %v25257_v24 = vld [vmem:[%s31723_s4 + $0x6f4] sm:$0xff]  }
 0x2e9   :  { %22692 = vmatprep.subr.bf16.mxu0 %v25219_v61 }
 0x2ec   :  { %22693 = vmatpush3.bf16.msra.mxu0 %v25220_v25 }
 0x2ed   :  { %22694 = vmatprep.subr.bf16.mxu0 %v25221_v62  ;;  %v25258_v62 = vld [vmem:[%s31723_s4 + $0x73c] sm:$0xff]  }
 0x2f0   :  { %22695 = vmatpush3.bf16.msra.mxu0 %v25222_v30 }
 0x2f1   :  { %22705 = vmatprep.subr.bf16.mxu0 %v25223_v63 }
 0x2f3   :  { %2506 = vmatmul.mubr.bf16.vlgmr.msra.gmra.mrb[28].mxu0 %v26784_v26 }
 0x2f4   :  { %22706 = vmatpush3.bf16.msra.mxu0 %v25224_v36  ;;  %2990 = vmatprep.mubr.bf16.mxu0 %v26782_v21 }
 0x2f5   :  { %22707 = vmatprep.subr.bf16.mxu0 %v25225_v0 }
 0x2f8   :  { %22708 = vmatpush3.bf16.msra.mxu0 %v25226_v28 }
 0x2f9   :  { %22709 = vmatprep.subr.bf16.mxu0 %v25227_v2 }
 0x2fc   :  { %22710 = vmatpush3.bf16.msra.mxu0 %v25228_v4 }
 0x2fd   :  { %22711 = vmatprep.subr.bf16.mxu0 %v25229_v5 }
 0x300   :  { %22712 = vmatpush3.bf16.msra.mxu0 %v25230_v6  ;;  %v25260_v6 = vld [vmem:[%s31723_s4 + $0x744] sm:$0xff]  }
 0x301   :  { %22713 = vmatprep.subr.bf16.mxu0 %v25231_v7 }
 0x304   :  { %22714 = vmatpush3.bf16.msra.mxu0 %v25232_v8  ;;  %v25261_v8 = vld [vmem:[%s31723_s4 + $0x704] sm:$0xff]  }
 0x305   :  { %22715 = vmatprep.subr.bf16.mxu0 %v25233_v9  ;;  %v25262_v9 = vld [vmem:[%s31723_s4 + $0x74c] sm:$0xff]  }
 0x308   :  { %22716 = vmatpush3.bf16.msra.mxu0 %v25234_v10  ;;  %v25263_v10 = vld [vmem:[%s31723_s4 + $0x70c] sm:$0xff]  }
 0x309   :  { %22717 = vmatprep.subr.bf16.mxu0 %v25235_v14  ;;  %v25264_v14 = vld [vmem:[%s31723_s4 + $0x7d8] sm:$0xff]  }
 0x30c   :  { %22718 = vmatpush3.bf16.msra.mxu0 %v25236_v17  ;;  %v25265_v17 = vld [vmem:[%s31723_s4 + $0x798] sm:$0xff]  }
 0x30d   :  { %22719 = vmatprep.subr.bf16.mxu0 %v25237_v18  ;;  %v25266_v18 = vld [vmem:[%s31723_s4 + $0x7e0] sm:$0xff]  }
 0x310   :  { %22720 = vmatpush3.bf16.msra.mxu0 %v25238_v22  ;;  %v25267_v22 = vld [vmem:[%s31723_s4 + $0x7a0] sm:$0xff]  }
 0x311   :  { %3040 = vmatprep.subr.bf16.mxu0 %v31735_v1 }
 0x313   :  { %2991 = vmatmul.mubr.bf16.vlgmr.msra.gmra.mrb[32].mxu0 %v26780_v19 }
 0x314   :  { %3041 = vmatpush1.bf16.msra.mxu0 %v25239_v31  ;;  %19154 = vmatprep.mubr.msk.bf16.mxu0 %vm395_vm3, %v26797_v33  ;;  %v25268_v31 = vld [vmem:[%s31723_s4 + $0x7e8] sm:$0xff]  }
 0x315   :  { %3042 = vmatprep.subr.bf16.mxu0 %v31735_v1 }
 0x318   :  { %3043 = vmatpush1.bf16.msra.mxu0 %v25240_v32  ;;  %v25269_v32 = vld [vmem:[%s31723_s4 + $0x7a8] sm:$0xff]  }
 0x319   :  { %3044 = vmatprep.subr.bf16.mxu0 %v31735_v1 }
 0x31c   :  { %3045 = vmatpush1.bf16.msra.mxu0 %v25241_v34  ;;  %v25270_v34 = vld [vmem:[%s31723_s4 + $0x7f0] sm:$0xff]  }
 0x31d   :  { %3046 = vmatprep.subr.bf16.mxu0 %v31735_v1 }
 0x320   :  { %3047 = vmatpush1.bf16.msra.mxu0 %v25242_v35  ;;  %v25271_v35 = vld [vmem:[%s31723_s4 + $0x7b0] sm:$0xff]  }
 0x321   :  { %v22533_v38 = vpop.f32.mrb[4].mxu1  ;;  %3048 = vmatprep.subr.bf16.mxu0 %v31735_v1 }
 0x322   :  { %v22555_v39 = vpop.f32.mrb[8].mxu0  ;;  %v22534_v40 = vpop.f32.mrb[5].mxu1 }
 0x323   :  { %v22535_v41 = vadd.f32 %v22534_v40, %v22533_v38  ;;  %v22556_v42 = vpop.f32.mrb[9].mxu0  ;;  %v22536_v43 = vpop.f32.mrb[6].mxu1  ;;  %v25273_v38 = vld [vmem:[%s31723_s4 + $0x7b8] sm:$0xff]   ;;  %v25274_v40 = vld [vmem:[%s31723_s4 + $0x800] sm:$0xff]  }
 0x324   :  { %v22557_v44 = vadd.f32 %v22556_v42, %v22555_v39  ;;  %3049 = vmatpush1.bf16.msra.mxu0 %v25243_v37  ;;  %v22558_v45 = vpop.f32.mrb[10].mxu0  ;;  %v22537_v46 = vpop.f32.mrb[7].mxu1  ;;  %v25272_v37 = vld [vmem:[%s31723_s4 + $0x7f8] sm:$0xff]  }
 0x325   :  { %v22538_v48 = vadd.f32 %v22537_v46, %v22536_v43  ;;  %v22559_v49 = vpop.f32.mrb[11].mxu0  ;;  %3050 = vmatprep.subr.bf16.mxu0 %v31735_v1 }
 0x326   :  { %v22560_v50 = vadd.f32 %v22559_v49, %v22558_v45  ;;  %v938_v51 = vadd.f32 %v22557_v44, %v22535_v41 }
 0x328   :  { %3051 = vmatpush1.bf16.msra.mxu0 %v25244_v47  ;;  %v941_v12 = vadd.f32 %v22560_v50, %v22538_v48  ;;  %v25275_v48 = vld [vmem:[%s31723_s4 + $0x7c0] sm:$0xff]  }
 0x329   :  { %3052 = vmatprep.subr.bf16.mxu0 %v31735_v1 }
 0x32c   :  { %3053 = vmatpush1.bf16.msra.mxu0 %v25245_v11  ;;  %v25276_v11 = vld [vmem:[%s31723_s4 + $0x808] sm:$0xff]  }
 0x32d   :  { %3054 = vmatprep.subr.bf16.mxu0 %v31735_v1 }
 0x330   :  { %3055 = vmatpush1.bf16.msra.mxu0 %v25246_v13 }
 0x331   :  { %3056 = vmatprep.subr.bf16.mxu0 %v31735_v1 }
 0x334   :  { %3057 = vmatpush1.bf16.msra.mxu0 %v2956_v20 }
 0x335   :  { %22774 = vmatprep.subr.bf16.mxu0 %v25248_v16  ;;  %v25278_v16 = vld [vmem:[%s31723_s4 + $0x810] sm:$0xff]  }
 0x337   :  { %3073 = vmatmul.mubr.bf16.vlgmr.msra.gmra.mrb[36].mxu0 %v26788_v29 }
 0x338   :  { %22775 = vmatpush3.bf16.msra.mxu0 %v25249_v52  ;;  %3557 = vmatprep.mubr.bf16.mxu0 %v26786_v27  ;;  %v25279_v52 = vld [vmem:[%s31723_s4 + $0x7d0] sm:$0xff]  }
 0x339   :  { %22776 = vmatprep.subr.bf16.mxu0 %v25250_v53 }
 0x33c   :  { %22777 = vmatpush3.bf16.msra.mxu0 %v25251_v54  ;;  %v25281_v54 = vld [vmem:[%s31724_s5 + $0x18] sm:$0xff]  }
 0x33d   :  { %22778 = vmatprep.subr.bf16.mxu0 %v25252_v55  ;;  %v25282_v55 = vld [vmem:[%s31723_s4 + $0x858] sm:$0xff]  }
 0x340   :  { %22779 = vmatpush3.bf16.msra.mxu0 %v25253_v56  ;;  %v25288_v56 = vld [vmem:[%s31724_s5] sm:$0xff]  }
 0x341   :  { %22780 = vmatprep.subr.bf16.mxu0 %v25254_v57  ;;  %v25289_v57 = vld [vmem:[%s31723_s4 + $0x2c8] sm:$0xff]  }
 0x342   :  { %v22577_v23 = vpop.f32.mrb[12].mxu0 }
 0x343   :  { %v22578_v60 = vpop.f32.mrb[13].mxu0 }
 0x344   :  { %v22579_v61 = vadd.f32 %v22578_v60, %v22577_v23  ;;  %v22580_v25 = vpop.f32.mrb[14].mxu0  ;;  %22781 = vmatpush3.bf16.msra.mxu0 %v25255_v58  ;;  %v25283_v58 = vld [vmem:[%s31723_s4 + $0x818] sm:$0xff]   ;;  %v25285_v23 = vld [vmem:[%s31723_s4 + $0x820] sm:$0xff]   ;;  %v25286_v60 = vld [vmem:[%s31723_s4 + $0x868] sm:$0xff]  }
 0x345   :  { %v22581_v30 = vpop.f32.mrb[15].mxu0  ;;  %v978_v63 = vpop.f32.mrb[8].mxu1  ;;  %22782 = vmatprep.subr.bf16.mxu0 %v25256_v59  ;;  %v25284_v59 = vld [vmem:[%s31723_s4 + $0x860] sm:$0xff]  }
 0x346   :  { %v22582_v36 = vadd.f32 %v22581_v30, %v22580_v25  ;;  %v979_v0 = vadd.f32 %v978_v63, %v938_v51  ;;  %v980_v28 = vpop.f32.mrb[9].mxu1  ;;  %v25291_v25 = vld [vmem:[%s31723_s4 + $0x288] sm:$0xff]   ;;  %v25294_v30 = vld [vmem:[%s31723_s4 + $0x2d0] sm:$0xff]  }
 0x347   :  { %v981_v2 = vpop.f32.mrb[10].mxu1  ;;  %v25293_v63 = vld [vmem:[%s31723_s4 + $0x830] sm:$0xff]   ;;  %v25298_v28 = vld [vmem:[%s31723_s4 + $0x2d8] sm:$0xff]  }
 0x348   :  { %v982_v4 = vadd.f32 %v981_v2, %v941_v12  ;;  %22783 = vmatpush3.bf16.msra.mxu0 %v25257_v24  ;;  %v983_v5 = vpop.f32.mrb[11].mxu1  ;;  %v25287_v24 = vld [vmem:[%s31723_s4 + $0x828] sm:$0xff]   ;;  %v25297_v2 = vld [vmem:[%s31723_s4 + $0x838] sm:$0xff]  }
 0x349   :  { %22784 = vmatprep.subr.bf16.mxu0 %v25258_v62  ;;  %v25292_v62 = vld [vmem:[%s31723_s4 + $0x870] sm:$0xff]  }
 0x34a   :  { %v27250_v7 = vpack.c.bf16 %v982_v4, %v979_v0  ;;  %v25296_v0 = vld [vmem:[%s31723_s4 + $0x878] sm:$0xff]   ;;  %v25300_v4 = vld [vmem:[%s31723_s4 + $0x880] sm:$0xff]  }
 0x34c   :  { %22785 = vmatpush3.bf16.msra.mxu0 %v25259_v3  ;;  %v25299_v3 = vld [vmem:[%s31723_s4 + $0x298] sm:$0xff]  }
 0x34d   :  { %22786 = vmatprep.subr.bf16.mxu0 %v25260_v6  ;;  %v25301_v6 = vld [vmem:[%s31723_s4 + $0x840] sm:$0xff]  }
 0x350   :  { %22787 = vmatpush3.bf16.msra.mxu0 %v25261_v8  ;;  %v25302_v8 = vld [vmem:[%s31723_s4 + $0x2e0] sm:$0xff]  }
 0x351   :  { %22788 = vmatprep.subr.bf16.mxu0 %v25262_v9 }
 0x354   :  { %22789 = vmatpush3.bf16.msra.mxu0 %v25263_v10 }
 0x355   :  { %22799 = vmatprep.subr.bf16.mxu0 %v25264_v14  ;;  %v25303_v14 = vld [vmem:[%s31723_s4 + $0x2a0] sm:$0xff]  }
 0x357   :  { %3558 = vmatmul.mubr.bf16.vlgmr.msra.gmra.mrb[40].mxu0 %v26784_v26 }
 0x358   :  { %22800 = vmatpush3.bf16.msra.mxu0 %v25265_v17  ;;  %4042 = vmatprep.mubr.bf16.mxu0 %v26782_v21 }
 0x359   :  { %22801 = vmatprep.subr.bf16.mxu0 %v25266_v18  ;;  %v25304_v18 = vld [vmem:[%s31723_s4 + $0x888] sm:$0xff]  }
 0x35c   :  { %22802 = vmatpush3.bf16.msra.mxu0 %v25267_v22 }
 0x35d   :  { %22803 = vmatprep.subr.bf16.mxu0 %v25268_v31  ;;  %v25305_v31 = vld [vmem:[%s31723_s4 + $0x848] sm:$0xff]  }
 0x360   :  { %22804 = vmatpush3.bf16.msra.mxu0 %v25269_v32  ;;  %v25306_v32 = vld [vmem:[%s31723_s4 + $0x2e8] sm:$0xff]  }
 0x361   :  { %22805 = vmatprep.subr.bf16.mxu0 %v25270_v34  ;;  %v25307_v34 = vld [vmem:[%s31723_s4 + $0x2a8] sm:$0xff]  }
 0x364   :  { %22806 = vmatpush3.bf16.msra.mxu0 %v25271_v35  ;;  %v25308_v35 = vld [vmem:[%s31723_s4 + $0x890] sm:$0xff]  }
 0x365   :  { %v22599_v39 = vpop.f32.mrb[12].mxu1  ;;  %22807 = vmatprep.subr.bf16.mxu0 %v25272_v37  ;;  %v25310_v37 = vld [vmem:[%s31723_s4 + $0x2f0] sm:$0xff]  }
 0x366   :  { %v1434_v41 = vpop.f32.mrb[16].mxu0  ;;  %v22600_v42 = vpop.f32.mrb[13].mxu1 }
 0x367   :  { %v22601_v43 = vadd.f32 %v22600_v42, %v22599_v39  ;;  %v1436_v44 = vpop.f32.mrb[17].mxu0  ;;  %v22602_v45 = vpop.f32.mrb[14].mxu1  ;;  %v25311_v39 = vld [vmem:[%s31723_s4 + $0x2b0] sm:$0xff]   ;;  %v25313_v42 = vld [vmem:[%s31723_s4 + $0x8dc] sm:$0xff]  }
 0x368   :  { %v1437_v46 = vpop.f32.mrb[18].mxu0  ;;  %22808 = vmatpush3.bf16.msra.mxu0 %v25273_v38  ;;  %v22603_v47 = vpop.f32.mrb[15].mxu1  ;;  %v25309_v38 = vld [vmem:[%s31723_s4 + $0x850] sm:$0xff]   ;;  %v25316_v44 = vld [vmem:[%s31723_s4 + $0x924] sm:$0xff]  }
 0x369   :  { %v1394_v49 = vadd.f32 %v22601_v43, %v22579_v61  ;;  %v22604_v50 = vadd.f32 %v22603_v47, %v22602_v45  ;;  %v1439_v51 = vpop.f32.mrb[19].mxu0  ;;  %22809 = vmatprep.subr.bf16.mxu0 %v25274_v40  ;;  %v25290_v61 = vld [vmem:[%s31724_s5 + $0x8] sm:$0xff]   ;;  %v25312_v40 = vld [vmem:[%s31723_s4 + $0x91c] sm:$0xff]  }
 0x36a   :  { %v25315_v43 = vld [vmem:[%s31723_s4 + $0x2b8] sm:$0xff]   ;;  %v25318_v45 = vld [vmem:[%s31723_s4 + $0x300] sm:$0xff]   ;;  %v25320_v47 = vld [vmem:[%s31723_s4 + $0x92c] sm:$0xff]  }
 0x36b   :  { %v1435_v12 = vadd.f32 %v1434_v41, %v1394_v49  ;;  %v1397_v13 = vadd.f32 %v22604_v50, %v22582_v36  ;;  %v25295_v36 = vld [vmem:[%s31723_s4 + $0x290] sm:$0xff]   ;;  %v25314_v41 = vld [vmem:[%s31723_s4 + $0x2f8] sm:$0xff]   ;;  %v25322_v50 = vld [vmem:[%s31723_s4 + $0x388] sm:$0xff]  }
 0x36c   :  { %22810 = vmatpush3.bf16.msra.mxu0 %v25275_v48  ;;  %v25319_v48 = vld [vmem:[%s31723_s4 + $0x2c0] sm:$0xff]   ;;  %v25321_v49 = vld [vmem:[%s31723_s4 + $0x8ec] sm:$0xff]   ;;  %v25323_v51 = vld [vmem:[%s31723_s4 + $0x934] sm:$0xff]  }
 0x36d   :  { %v1438_v20 = vadd.f32 %v1437_v46, %v1397_v13  ;;  %22811 = vmatprep.subr.bf16.mxu0 %v25276_v11  ;;  %v25317_v46 = vld [vmem:[%s31723_s4 + $0x8e4] sm:$0xff]   ;;  %v25324_v11 = vld [vmem:[%s31723_s4 + $0x8f4] sm:$0xff]   ;;  %v25326_v13 = vld [vmem:[%s31723_s4 + $0x93c] sm:$0xff]  }
 0x36f   :  { %v1446_v53 = vpack.c.bf16 %v1438_v20, %v1435_v12  ;;  %v25325_v12 = vld [vmem:[%s31723_s4 + $0x390] sm:$0xff]   ;;  %v25329_v20 = vld [vmem:[%s31723_s4 + $0x944] sm:$0xff]  }
 0x370   :  { %22812 = vmatpush3.bf16.msra.mxu0 %v25277_v15  ;;  %v25327_v15 = vld [vmem:[%s31723_s4 + $0x8fc] sm:$0xff]  }
 0x371   :  { %24019 = vmatprep.subr.bf16.mxu1 %v1446_v53  ;;  %22813 = vmatprep.subr.bf16.mxu0 %v25278_v16 }
 0x372   :  { %24020 = vmatpush3.bf16.msra.mxu1 %v1446_v53 }
 0x373   :  { %24025 = vmatprep.subr.bf16.mxu1 %v27250_v7 }
 0x374   :  { %22814 = vmatpush3.bf16.msra.mxu0 %v25279_v52  ;;  %v25328_v52 = vld [vmem:[%s31723_s4 + $0x398] sm:$0xff]  }
 0x375   :  { %24022 = vmatmul.mubr.msk.bf16.vlgmr.msra.gmra.mrb[16].mxu1 %vm1457_vm5, %v25281_v54  ;;  %22821 = vmatprep.subr.bf16.mxu0 %v25282_v55  ;;  %v25330_v54 = vld [vmem:[%s31723_s4 + $0x904] sm:$0xff]  }
 0x376   :  { %24026 = vmatpush3.bf16.msra.mxu1 %v27250_v7  ;;  %24027 = vmatprep.mubr.msk.bf16.mxu1 %vm1457_vm5, %v25288_v56 }
 0x377   :  { %4043 = vmatmul.mubr.bf16.vlgmr.msra.gmra.mrb[44].mxu0 %v26780_v19  ;;  %22611 = vmatprep.subr.bf16.mxu1 %v25289_v57  ;;  %v25331_v57 = vld [vmem:[%s31723_s4 + $0x3a0] sm:$0xff]  }
 0x378   :  { %22822 = vmatpush3.bf16.msra.mxu0 %v25283_v58  ;;  %4083 = vmatprep.mubr.bf16.mxu0 %v26786_v27 }
 0x379   :  { %22823 = vmatprep.subr.bf16.mxu0 %v25284_v59  ;;  %v25332_v59 = vld [vmem:[%s31723_s4 + $0x94c] sm:$0xff]  }
 0x37c   :  { %22824 = vmatpush3.bf16.msra.mxu0 %v25285_v23 }
 0x37d   :  { %22825 = vmatprep.subr.bf16.mxu0 %v25286_v60  ;;  %v25333_v60 = vld [vmem:[%s31723_s4 + $0x90c] sm:$0xff]  }
 0x380   :  { %22826 = vmatpush3.bf16.msra.mxu0 %v25287_v24  ;;  %v25335_v24 = vld [vmem:[%s31723_s4 + $0x954] sm:$0xff]  }
 0x381   :  { %24028 = vmatmul.mubr.msk.bf16.vlgmr.msra.gmra.mrb[16].mxu1 %vm1457_vm5, %v25290_v61  ;;  %22827 = vmatprep.subr.bf16.mxu0 %v25292_v62  ;;  %v25334_v61 = vld [vmem:[%s31723_s4 + $0x3a8] sm:$0xff]   ;;  %v25337_v62 = vld [vmem:[%s31723_s4 + $0x3b0] sm:$0xff]  }
 0x382   :  { %22612 = vmatpush3.bf16.msra.mxu1 %v25291_v25  ;;  %1938 = vmatprep.mubr.bf16.mxu1 %v26782_v21  ;;  %v25336_v25 = vld [vmem:[%s31723_s4 + $0x914] sm:$0xff]  }
 0x383   :  { %22613 = vmatprep.subr.bf16.mxu1 %v25294_v30  ;;  %v25338_v30 = vld [vmem:[%s31723_s4 + $0x9dc] sm:$0xff]  }
 0x384   :  { %22828 = vmatpush3.bf16.msra.mxu0 %v25293_v63  ;;  %v25339_v63 = vld [vmem:[%s31723_s4 + $0x3b8] sm:$0xff]  }
 0x385   :  { %22829 = vmatprep.subr.bf16.mxu0 %v25296_v0  ;;  %v25343_v0 = vld [vmem:[%s31723_s4 + $0x3c8] ss:$0 sps:$4 sm:$0xff]  }
 0x386   :  { %22614 = vmatpush3.bf16.msra.mxu1 %v25295_v36  ;;  %v22649_v5 = vpop.f32.mrb[20].mxu0  ;;  %v25340_v36 = vld [vmem:[%s31723_s4 + $0x9e4] sm:$0xff]  }
 0x387   :  { %v22650_v7 = vpop.f32.mrb[21].mxu0  ;;  %22615 = vmatprep.subr.bf16.mxu1 %v25298_v28  ;;  %v25341_v28 = vld [vmem:[%s31723_s4 + $0x3c0] sm:$0xff]  }
 0x388   :  { %v27385_v9 = vadd.f32 %v22650_v7, %v22649_v5  ;;  %v22652_v10 = vpop.f32.mrb[22].mxu0  ;;  %22830 = vmatpush3.bf16.msra.mxu0 %v25297_v2  ;;  %v25342_v2 = vld [vmem:[%s31723_s4 + $0x9ec] sm:$0xff]   ;;  %v25345_v5 = vld [vmem:[%s31723_s4 + $0x9fc] sm:$0xff]  }
 0x389   :  { %v22653_v17 = vpop.f32.mrb[23].mxu0  ;;  %22831 = vmatprep.subr.bf16.mxu0 %v25300_v4  ;;  %v25344_v4 = vld [vmem:[%s31723_s4 + $0x9f4] sm:$0xff]  }
 0x38a   :  { %v27393_v22 = vadd.f32 %v22653_v17, %v22652_v10  ;;  %22616 = vmatpush3.bf16.msra.mxu1 %v25299_v3  ;;  %v1904_v3 = vsel %vm858_vm4, %v25343_v0, 0  ;;  %v25377_v0 = vld [vmem:[%s31723_s4 + $0xb8c] sm:$0xff]  }
 0x38b   :  { %22617 = vmatprep.subr.bf16.mxu1 %v25302_v8 }
 0x38c   :  { %22832 = vmatpush3.bf16.msra.mxu0 %v25301_v6 }
 0x38d   :  { %22833 = vmatprep.subr.bf16.mxu0 %v25304_v18 }
 0x38e   :  { %22618 = vmatpush3.bf16.msra.mxu1 %v25303_v14  ;;  %v25346_v14 = vld [vmem:[%s31723_s4 + $0xa04] sm:$0xff]  }
 0x38f   :  { %22619 = vmatprep.subr.bf16.mxu1 %v25306_v32  ;;  %v25347_v32 = vld [vmem:[%s31723_s4 + $0xa0c] sm:$0xff]  }
 0x390   :  { %22834 = vmatpush3.bf16.msra.mxu0 %v25305_v31 }
 0x391   :  { %22835 = vmatprep.subr.bf16.mxu0 %v25308_v35  ;;  %v25348_v35 = vld [vmem:[%s31723_s4 + $0xa14] sm:$0xff]  }
 0x392   :  { %22620 = vmatpush3.bf16.msra.mxu1 %v25307_v34 }
 0x393   :  { %22621 = vmatprep.subr.bf16.mxu1 %v25310_v37  ;;  %v25349_v37 = vld [vmem:[%s31723_s4 + $0xa1c] ss:$0 sps:$4 sm:$0xff]  }
 0x394   :  { %22836 = vmatpush3.bf16.msra.mxu0 %v25309_v38  ;;  %v4534_v38 = vsel %vm858_vm4, %v25349_v37, 0  ;;  %v25390_v37 = vld [vmem:[%s31723_s4 + $0xc44] sm:$0xff]  }
 0x395   :  { %22846 = vmatprep.subr.bf16.mxu0 %v25312_v40  ;;  %v25351_v40 = vld [vmem:[%s31723_s4 + $0xaa0] sm:$0xff]  }
 0x396   :  { %22622 = vmatpush3.bf16.msra.mxu1 %v25311_v39  ;;  %v25350_v39 = vld [vmem:[%s31723_s4 + $0xae0] sm:$0xff]  }
 0x397   :  { %4084 = vmatmul.mubr.bf16.vlgmr.msra.gmra.mrb[48].mxu0 %v26784_v26  ;;  %22623 = vmatprep.subr.bf16.mxu1 %v25314_v41  ;;  %v25352_v41 = vld [vmem:[%s31723_s4 + $0xae8] sm:$0xff]  }
 0x398   :  { %22847 = vmatpush3.bf16.msra.mxu0 %v25313_v42  ;;  %4568 = vmatprep.mubr.bf16.mxu0 %v26782_v21  ;;  %v25353_v42 = vld [vmem:[%s31723_s4 + $0xaa8] sm:$0xff]  }
 0x399   :  { %22848 = vmatprep.subr.bf16.mxu0 %v25316_v44  ;;  %v25355_v44 = vld [vmem:[%s31723_s4 + $0xab0] sm:$0xff]  }
 0x39a   :  { %22624 = vmatpush3.bf16.msra.mxu1 %v25315_v43  ;;  %v25354_v43 = vld [vmem:[%s31723_s4 + $0xaf0] sm:$0xff]  }
 0x39b   :  { %22625 = vmatprep.subr.bf16.mxu1 %v25318_v45  ;;  %v25356_v45 = vld [vmem:[%s31723_s4 + $0xaf8] sm:$0xff]  }
 0x39c   :  { %22849 = vmatpush3.bf16.msra.mxu0 %v25317_v46  ;;  %v25357_v46 = vld [vmem:[%s31723_s4 + $0xab8] sm:$0xff]  }
 0x39d   :  { %22850 = vmatprep.subr.bf16.mxu0 %v25320_v47  ;;  %v25358_v47 = vld [vmem:[%s31723_s4 + $0xb00] sm:$0xff]  }
 0x39e   :  { %22626 = vmatpush3.bf16.msra.mxu1 %v25319_v48 }
 0x39f   :  { %1988 = vmatprep.subr.bf16.mxu1 %v31735_v1 }
 0x3a0   :  { %22851 = vmatpush3.bf16.msra.mxu0 %v25321_v49 }
 0x3a1   :  { %1939 = vmatmul.mubr.bf16.vlgmr.msra.gmra.mrb[20].mxu1 %v26780_v19  ;;  %22852 = vmatprep.subr.bf16.mxu0 %v25323_v51 }
 0x3a2   :  { %1989 = vmatpush1.bf16.msra.mxu1 %v25322_v50  ;;  %18892 = vmatprep.mubr.msk.bf16.mxu1 %vm395_vm3, %v26797_v33 }
 0x3a3   :  { %1990 = vmatprep.subr.bf16.mxu1 %v31735_v1 }
 0x3a4   :  { %22853 = vmatpush3.bf16.msra.mxu0 %v25324_v11  ;;  %v25359_v11 = vld [vmem:[%s31723_s4 + $0xac0] sm:$0xff]  }
 0x3a5   :  { %22854 = vmatprep.subr.bf16.mxu0 %v25326_v13  ;;  %v25360_v13 = vld [vmem:[%s31723_s4 + $0xb08] sm:$0xff]  }
 0x3a6   :  { %1991 = vmatpush1.bf16.msra.mxu1 %v25325_v12  ;;  %v22674_v16 = vpop.f32.mrb[24].mxu0 }
 0x3a7   :  { %v22675_v53 = vpop.f32.mrb[25].mxu0  ;;  %1992 = vmatprep.subr.bf16.mxu1 %v31735_v1 }
 0x3a8   :  { %v22676_v55 = vadd.f32 %v22675_v53, %v22674_v16  ;;  %v22677_v56 = vpop.f32.mrb[26].mxu0  ;;  %22855 = vmatpush3.bf16.msra.mxu0 %v25327_v15  ;;  %v25362_v16 = vld [vmem:[%s31723_s4 + $0xb10] sm:$0xff]   ;;  %v25364_v53 = vld [vmem:[%s31723_s4 + $0xb18] sm:$0xff]  }
 0x3a9   :  { %v22678_v58 = vpop.f32.mrb[27].mxu0  ;;  %22856 = vmatprep.subr.bf16.mxu0 %v25329_v20  ;;  %v25361_v20 = vld [vmem:[%s31723_s4 + $0xac8] sm:$0xff]  }
 0x3aa   :  { %v22679_v23 = vadd.f32 %v22678_v58, %v22677_v56  ;;  %1993 = vmatpush1.bf16.msra.mxu1 %v25328_v52  ;;  %v25363_v52 = vld [vmem:[%s31723_s4 + $0xad0] sm:$0xff]   ;;  %v25367_v56 = vld [vmem:[%s31723_s4 + $0xb64] sm:$0xff]  }
 0x3ab   :  { %1994 = vmatprep.subr.bf16.mxu1 %v31735_v1  ;;  %v25369_v58 = vld [vmem:[%s31723_s4 + $0xb6c] sm:$0xff]  }
 0x3ac   :  { %22857 = vmatpush3.bf16.msra.mxu0 %v25330_v54  ;;  %v25365_v54 = vld [vmem:[%s31723_s4 + $0xad8] sm:$0xff]  }
 0x3ad   :  { %22858 = vmatprep.subr.bf16.mxu0 %v25332_v59  ;;  %v25370_v59 = vld [vmem:[%s31723_s4 + $0xbb4] sm:$0xff]  }
 0x3ae   :  { %1995 = vmatpush1.bf16.msra.mxu1 %v25331_v57  ;;  %v25368_v57 = vld [vmem:[%s31723_s4 + $0xbac] sm:$0xff]  }
 0x3af   :  { %1996 = vmatprep.subr.bf16.mxu1 %v31735_v1 }
 0x3b0   :  { %22859 = vmatpush3.bf16.msra.mxu0 %v25333_v60  ;;  %v25372_v60 = vld [vmem:[%s31723_s4 + $0xbbc] sm:$0xff]  }
 0x3b1   :  { %22860 = vmatprep.subr.bf16.mxu0 %v25335_v24  ;;  %v25373_v24 = vld [vmem:[%s31723_s4 + $0xb7c] sm:$0xff]  }
 0x3b2   :  { %1997 = vmatpush1.bf16.msra.mxu1 %v25334_v61  ;;  %v25374_v61 = vld [vmem:[%s31723_s4 + $0xbc4] sm:$0xff]  }
 0x3b3   :  { %1998 = vmatprep.subr.bf16.mxu1 %v31735_v1 }
 0x3b4   :  { %22861 = vmatpush3.bf16.msra.mxu0 %v25336_v25  ;;  %v25375_v25 = vld [vmem:[%s31723_s4 + $0xb84] sm:$0xff]  }
 0x3b5   :  { %4618 = vmatprep.subr.bf16.mxu0 %v31735_v1 }
 0x3b6   :  { %1999 = vmatpush1.bf16.msra.mxu1 %v25337_v62  ;;  %v25376_v62 = vld [vmem:[%s31723_s4 + $0xbcc] sm:$0xff]  }
 0x3b7   :  { %4569 = vmatmul.mubr.bf16.vlgmr.msra.gmra.mrb[52].mxu0 %v26780_v19  ;;  %2000 = vmatprep.subr.bf16.mxu1 %v31735_v1 }
 0x3b8   :  { %4619 = vmatpush1.bf16.msra.mxu0 %v25338_v30  ;;  %19547 = vmatprep.mubr.msk.bf16.mxu0 %vm395_vm3, %v26797_v33 }
 0x3b9   :  { %4620 = vmatprep.subr.bf16.mxu0 %v31735_v1 }
 0x3ba   :  { %2001 = vmatpush1.bf16.msra.mxu1 %v25339_v63 }
 0x3bb   :  { %2002 = vmatprep.subr.bf16.mxu1 %v31735_v1 }
 0x3bc   :  { %4621 = vmatpush1.bf16.msra.mxu0 %v25340_v36 }
 0x3bd   :  { %4622 = vmatprep.subr.bf16.mxu0 %v31735_v1 }
 0x3be   :  { %2003 = vmatpush1.bf16.msra.mxu1 %v25341_v28 }
 0x3bf   :  { %2004 = vmatprep.subr.bf16.mxu1 %v31735_v1 }
 0x3c0   :  { %4623 = vmatpush1.bf16.msra.mxu0 %v25342_v2  ;;  %v25378_v2 = vld [vmem:[%s31723_s4 + $0xbd4] sm:$0xff]  }
 0x3c1   :  { %4624 = vmatprep.subr.bf16.mxu0 %v31735_v1 }
 0x3c2   :  { %2005 = vmatpush1.bf16.msra.mxu1 %v1904_v3  ;;  %v25379_v3 = vld [vmem:[%s31723_s4 + $0xb94] sm:$0xff]  }
 0x3c4   :  { %4625 = vmatpush1.bf16.msra.mxu0 %v25344_v4  ;;  %v25380_v4 = vld [vmem:[%s31723_s4 + $0xbdc] sm:$0xff]  }
 0x3c5   :  { %2021 = vmatmul.mubr.bf16.vlgmr.msra.gmra.mrb[24].mxu1 %v26788_v29  ;;  %4626 = vmatprep.subr.bf16.mxu0 %v31735_v1 }
 0x3c6   :  { %v22696_v6 = vpop.f32.mrb[28].mxu0 }
 0x3c7   :  { %v22697_v7 = vpop.f32.mrb[29].mxu0 }
 0x3c8   :  { %v22698_v8 = vadd.f32 %v22697_v7, %v22696_v6  ;;  %v22699_v10 = vpop.f32.mrb[30].mxu0  ;;  %4627 = vmatpush1.bf16.msra.mxu0 %v25345_v5  ;;  %v25381_v5 = vld [vmem:[%s31723_s4 + $0xb9c] sm:$0xff]   ;;  %v25382_v6 = vld [vmem:[%s31723_s4 + $0xc24] sm:$0xff]  }
 0x3c9   :  { %v22700_v17 = vpop.f32.mrb[31].mxu0  ;;  %4628 = vmatprep.subr.bf16.mxu0 %v31735_v1  ;;  %v25383_v7 = vld [vmem:[%s31723_s4 + $0xbe4] sm:$0xff]  }
 0x3ca   :  { %v22701_v18 = vadd.f32 %v22700_v17, %v22699_v10  ;;  %v27546_v31 = vadd.f32 %v22698_v8, %v22676_v55  ;;  %v25366_v55 = vld [vmem:[%s31723_s4 + $0xba4] sm:$0xff]   ;;  %v25384_v8 = vld [vmem:[%s31723_s4 + $0xc2c] sm:$0xff]   ;;  %v25387_v17 = vld [vmem:[%s31723_s4 + $0xbf4] sm:$0xff]  }
 0x3cb   :  { %v25385_v10 = vld [vmem:[%s31723_s4 + $0xbec] sm:$0xff]  }
 0x3cc   :  { %4629 = vmatpush1.bf16.msra.mxu0 %v25346_v14  ;;  %v27551_v34 = vadd.f32 %v22701_v18, %v22679_v23  ;;  %v25371_v23 = vld [vmem:[%s31723_s4 + $0xb74] sm:$0xff]   ;;  %v25388_v18 = vld [vmem:[%s31723_s4 + $0xc3c] sm:$0xff]  }
 0x3cd   :  { %4630 = vmatprep.subr.bf16.mxu0 %v31735_v1  ;;  %v25386_v14 = vld [vmem:[%s31723_s4 + $0xc34] sm:$0xff]  }
 0x3d0   :  { %4631 = vmatpush1.bf16.msra.mxu0 %v25347_v32  ;;  %v25441_v32 = vld [vmem:[%s31724_s5 + $0x20] sm:$0xff]  }
 0x3d1   :  { %4632 = vmatprep.subr.bf16.mxu0 %v31735_v1  ;;  %24033 = vmatprep.mubr.msk.bf16.mxu1 %vm1457_vm5, %v25441_v32 }
 0x3d4   :  { %4633 = vmatpush1.bf16.msra.mxu0 %v25348_v35  ;;  %v25389_v35 = vld [vmem:[%s31723_s4 + $0xbfc] sm:$0xff]  }
 0x3d5   :  { %4634 = vmatprep.subr.bf16.mxu0 %v31735_v1 }
 0x3d8   :  { %4635 = vmatpush1.bf16.msra.mxu0 %v4534_v38  ;;  %v25391_v38 = vld [vmem:[%s31723_s4 + $0xc04] sm:$0xff]  }
 0x3d9   :  { %22915 = vmatprep.subr.bf16.mxu0 %v25350_v39  ;;  %v25392_v39 = vld [vmem:[%s31723_s4 + $0xc4c] sm:$0xff]  }
 0x3db   :  { %4651 = vmatmul.mubr.bf16.vlgmr.msra.gmra.mrb[56].mxu0 %v26788_v29 }
 0x3dc   :  { %22916 = vmatpush3.bf16.msra.mxu0 %v25351_v40  ;;  %5135 = vmatprep.mubr.bf16.mxu0 %v26786_v27 }
 0x3dd   :  { %22917 = vmatprep.subr.bf16.mxu0 %v25352_v41 }
 0x3e0   :  { %22918 = vmatpush3.bf16.msra.mxu0 %v25353_v42 }
 0x3e1   :  { %22919 = vmatprep.subr.bf16.mxu0 %v25354_v43 }
 0x3e4   :  { %22920 = vmatpush3.bf16.msra.mxu0 %v25355_v44  ;;  %v25393_v44 = vld [vmem:[%s31723_s4 + $0xc0c] sm:$0xff]  }
 0x3e5   :  { %22921 = vmatprep.subr.bf16.mxu0 %v25356_v45 }
 0x3e6   :  { %v22721_v48 = vpop.f32.mrb[32].mxu0 }
 0x3e7   :  { %v22722_v49 = vpop.f32.mrb[33].mxu0 }
 0x3e8   :  { %v27592_v50 = vadd.f32 %v22722_v49, %v22721_v48  ;;  %v22724_v51 = vpop.f32.mrb[34].mxu0  ;;  %22922 = vmatpush3.bf16.msra.mxu0 %v25357_v46  ;;  %v25394_v46 = vld [vmem:[%s31723_s4 + $0xc54] sm:$0xff]   ;;  %v25396_v49 = vld [vmem:[%s31723_s4 + $0xc5c] sm:$0xff]  }
 0x3e9   :  { %v22725_v12 = vpop.f32.mrb[35].mxu0  ;;  %22923 = vmatprep.subr.bf16.mxu0 %v25358_v47  ;;  %v25395_v48 = vld [vmem:[%s31723_s4 + $0xc14] sm:$0xff]  }
 0x3ea   :  { %v27600_v15 = vadd.f32 %v22725_v12, %v22724_v51  ;;  %v25397_v51 = vld [vmem:[%s31723_s4 + $0xc1c] sm:$0xff]   ;;  %v25399_v12 = vld [vmem:[%s31723_s4 + $0xca8] sm:$0xff]  }
 0x3ec   :  { %22924 = vmatpush3.bf16.msra.mxu0 %v25359_v11  ;;  %v25398_v11 = vld [vmem:[%s31723_s4 + $0xce8] sm:$0xff]  }
 0x3ed   :  { %22925 = vmatprep.subr.bf16.mxu0 %v25360_v13  ;;  %v25400_v13 = vld [vmem:[%s31723_s4 + $0xcf0] sm:$0xff]  }
 0x3f0   :  { %22926 = vmatpush3.bf16.msra.mxu0 %v25361_v20  ;;  %v25401_v20 = vld [vmem:[%s31723_s4 + $0xcb0] sm:$0xff]  }
 0x3f1   :  { %22927 = vmatprep.subr.bf16.mxu0 %v25362_v16  ;;  %v25402_v16 = vld [vmem:[%s31723_s4 + $0xcf8] sm:$0xff]  }
 0x3f4   :  { %22928 = vmatpush3.bf16.msra.mxu0 %v25363_v52  ;;  %v25403_v52 = vld [vmem:[%s31723_s4 + $0xcb8] sm:$0xff]  }
 0x3f5   :  { %22929 = vmatprep.subr.bf16.mxu0 %v25364_v53  ;;  %v25404_v53 = vld [vmem:[%s31723_s4 + $0xd00] sm:$0xff]  }
 0x3f8   :  { %22930 = vmatpush3.bf16.msra.mxu0 %v25365_v54  ;;  %v25405_v54 = vld [vmem:[%s31723_s4 + $0xcc0] sm:$0xff]  }
 0x3f9   :  { %22940 = vmatprep.subr.bf16.mxu0 %v25366_v55  ;;  %v25406_v55 = vld [vmem:[%s31723_s4 + $0xd08] sm:$0xff]  }
 0x3fb   :  { %5136 = vmatmul.mubr.bf16.vlgmr.msra.gmra.mrb[60].mxu0 %v26784_v26 }
 0x3fc   :  { %22941 = vmatpush3.bf16.msra.mxu0 %v25367_v56  ;;  %5620 = vmatprep.mubr.bf16.mxu0 %v26782_v21  ;;  %v25407_v56 = vld [vmem:[%s31723_s4 + $0xcc8] sm:$0xff]  }
 0x3fd   :  { %22942 = vmatprep.subr.bf16.mxu0 %v25368_v57  ;;  %v25408_v57 = vld [vmem:[%s31723_s4 + $0xd10] sm:$0xff]  }
 0x400   :  { %22943 = vmatpush3.bf16.msra.mxu0 %v25369_v58 }
 0x401   :  { %22944 = vmatprep.subr.bf16.mxu0 %v25370_v59 }
 0x404   :  { %22945 = vmatpush3.bf16.msra.mxu0 %v25371_v23 }
 0x405   :  { %22946 = vmatprep.subr.bf16.mxu0 %v25372_v60 }
 0x408   :  { %22947 = vmatpush3.bf16.msra.mxu0 %v25373_v24  ;;  %v25409_v24 = vld [vmem:[%s31723_s4 + $0xcd0] sm:$0xff]  }
 0x409   :  { %22948 = vmatprep.subr.bf16.mxu0 %v25374_v61 }
 0x40a   :  { %v27652_v30 = vpop.f32.mrb[36].mxu0 }
 0x40b   :  { %v3076_v63 = vpop.f32.mrb[37].mxu0 }
 0x40c   :  { %v27654_v36 = vpop.f32.mrb[38].mxu0  ;;  %22949 = vmatpush3.bf16.msra.mxu0 %v25375_v25  ;;  %v25410_v25 = vld [vmem:[%s31723_s4 + $0xd18] sm:$0xff]  }
 0x40d   :  { %v3079_v28 = vpop.f32.mrb[39].mxu0  ;;  %22950 = vmatprep.subr.bf16.mxu0 %v25376_v62  ;;  %v25411_v63 = vld [vmem:[%s31723_s4 + $0xcd8] sm:$0xff]  }
 0x40e   :  { %v25413_v28 = vld [vmem:[%s31723_s4 + $0xce0] sm:$0xff]  }
 0x410   :  { %22951 = vmatpush3.bf16.msra.mxu0 %v25377_v0  ;;  %v25412_v0 = vld [vmem:[%s31723_s4 + $0xd20] sm:$0xff]  }
 0x411   :  { %22952 = vmatprep.subr.bf16.mxu0 %v25378_v2  ;;  %v25414_v2 = vld [vmem:[%s31723_s4 + $0xda8] sm:$0xff]  }
 0x414   :  { %22953 = vmatpush3.bf16.msra.mxu0 %v25379_v3  ;;  %v25415_v3 = vld [vmem:[%s31723_s4 + $0xdb0] sm:$0xff]  }
 0x415   :  { %22954 = vmatprep.subr.bf16.mxu0 %v25380_v4  ;;  %v25416_v4 = vld [vmem:[%s31723_s4 + $0xdb8] sm:$0xff]  }
 0x418   :  { %22955 = vmatpush3.bf16.msra.mxu0 %v25381_v5  ;;  %v25417_v5 = vld [vmem:[%s31723_s4 + $0xdc0] sm:$0xff]  }
 0x419   :  { %22962 = vmatprep.subr.bf16.mxu0 %v25382_v6  ;;  %v25418_v6 = vld [vmem:[%s31723_s4 + $0xdc8] sm:$0xff]  }
 0x41b   :  { %5621 = vmatmul.mubr.bf16.vlgmr.msra.gmra.mrb[64].mxu0 %v26780_v19 }
 0x41c   :  { %22963 = vmatpush3.bf16.msra.mxu0 %v25383_v7  ;;  %5661 = vmatprep.mubr.bf16.mxu0 %v26786_v27 }
 0x41d   :  { %22964 = vmatprep.subr.bf16.mxu0 %v25384_v8 }
 0x420   :  { %22965 = vmatpush3.bf16.msra.mxu0 %v25385_v10 }
 0x421   :  { %22966 = vmatprep.subr.bf16.mxu0 %v25386_v14 }
 0x424   :  { %22967 = vmatpush3.bf16.msra.mxu0 %v25387_v17  ;;  %v25419_v17 = vld [vmem:[%s31723_s4 + $0xdd0] sm:$0xff]  }
 0x425   :  { %22968 = vmatprep.subr.bf16.mxu0 %v25388_v18 }
 0x428   :  { %22969 = vmatpush3.bf16.msra.mxu0 %v25389_v35 }
 0x429   :  { %22970 = vmatprep.subr.bf16.mxu0 %v25390_v37  ;;  %v25420_v37 = vld [vmem:[%s31723_s4 + $0xdd8] sm:$0xff]  }
 0x42a   :  { %v22790_v40 = vpop.f32.mrb[40].mxu0 }
 0x42b   :  { %v22791_v41 = vpop.f32.mrb[41].mxu0 }
 0x42c   :  { %v27710_v42 = vadd.f32 %v22791_v41, %v22790_v40  ;;  %v22793_v43 = vpop.f32.mrb[42].mxu0  ;;  %22971 = vmatpush3.bf16.msra.mxu0 %v25391_v38  ;;  %v25421_v41 = vld [vmem:[%s31723_s4 + $0xde0] sm:$0xff]  }
 0x42d   :  { %v22794_v45 = vpop.f32.mrb[43].mxu0  ;;  %22972 = vmatprep.subr.bf16.mxu0 %v25392_v39  ;;  %v25422_v39 = vld [vmem:[%s31723_s4 + $0xde8] ss:$0 sps:$4 sm:$0xff]  }
 0x42e   :  { %v27718_v47 = vadd.f32 %v22794_v45, %v22793_v43 }
 0x430   :  { %22973 = vmatpush3.bf16.msra.mxu0 %v25393_v44 }
 0x431   :  { %22974 = vmatprep.subr.bf16.mxu0 %v25394_v46 }
 0x434   :  { %22975 = vmatpush3.bf16.msra.mxu0 %v25395_v48 }
 0x435   :  { %22976 = vmatprep.subr.bf16.mxu0 %v25396_v49 }
 0x438   :  { %22977 = vmatpush3.bf16.msra.mxu0 %v25397_v51  ;;  %v6112_v51 = vsel %vm858_vm4, %v25422_v39, 0  ;;  %v25447_v39 = vld [vmem:[%s31723_s4 + $0x4d4] sm:$0xff]  }
 0x439   :  { %22987 = vmatprep.subr.bf16.mxu0 %v25398_v11  ;;  %v25423_v11 = vld [vmem:[%s31723_s4 + $0xeac] sm:$0xff]  }
 0x43b   :  { %5662 = vmatmul.mubr.bf16.vlgmr.msra.gmra.mrb[68].mxu0 %v26784_v26 }
 0x43c   :  { %22988 = vmatpush3.bf16.msra.mxu0 %v25399_v12  ;;  %6146 = vmatprep.mubr.bf16.mxu0 %v26782_v21  ;;  %v25424_v12 = vld [vmem:[%s31723_s4 + $0xe6c] sm:$0xff]  }
 0x43d   :  { %22989 = vmatprep.subr.bf16.mxu0 %v25400_v13 }
 0x440   :  { %22990 = vmatpush3.bf16.msra.mxu0 %v25401_v20  ;;  %v25426_v20 = vld [vmem:[%s31723_s4 + $0xe74] sm:$0xff]  }
 0x441   :  { %22991 = vmatprep.subr.bf16.mxu0 %v25402_v16  ;;  %v25427_v16 = vld [vmem:[%s31723_s4 + $0xebc] sm:$0xff]  }
 0x444   :  { %22992 = vmatpush3.bf16.msra.mxu0 %v25403_v52  ;;  %v25429_v52 = vld [vmem:[%s31723_s4 + $0xec4] sm:$0xff]  }
 0x445   :  { %22993 = vmatprep.subr.bf16.mxu0 %v25404_v53  ;;  %v25430_v53 = vld [vmem:[%s31723_s4 + $0xe84] sm:$0xff]  }
 0x448   :  { %22994 = vmatpush3.bf16.msra.mxu0 %v25405_v54  ;;  %v25431_v54 = vld [vmem:[%s31723_s4 + $0xecc] sm:$0xff]  }
 0x449   :  { %22995 = vmatprep.subr.bf16.mxu0 %v25406_v55 }
 0x44a   :  { %v22815_v58 = vpop.f32.mrb[44].mxu0 }
 0x44b   :  { %v22816_v59 = vpop.f32.mrb[45].mxu0 }
 0x44c   :  { %v22817_v23 = vadd.f32 %v22816_v59, %v22815_v58  ;;  %v22818_v60 = vpop.f32.mrb[46].mxu0  ;;  %22996 = vmatpush3.bf16.msra.mxu0 %v25407_v56  ;;  %v25432_v59 = vld [vmem:[%s31723_s4 + $0xe8c] sm:$0xff]  }
 0x44d   :  { %v22819_v61 = vpop.f32.mrb[47].mxu0  ;;  %22997 = vmatprep.subr.bf16.mxu0 %v25408_v57 }
 0x44e   :  { %v22820_v62 = vadd.f32 %v22819_v61, %v22818_v60  ;;  %v25433_v60 = vld [vmem:[%s31723_s4 + $0xed4] sm:$0xff]  }
 0x44f   :  { %v25434_v61 = vld [vmem:[%s31723_s4 + $0xe94] sm:$0xff]  }
 0x450   :  { %22998 = vmatpush3.bf16.msra.mxu0 %v25409_v24 }
 0x451   :  { %22999 = vmatprep.subr.bf16.mxu0 %v25410_v25  ;;  %v25435_v25 = vld [vmem:[%s31723_s4 + $0xedc] sm:$0xff]  }
 0x454   :  { %23000 = vmatpush3.bf16.msra.mxu0 %v25411_v63  ;;  %v25437_v63 = vld [vmem:[%s31723_s4 + $0xee4] sm:$0xff]  }
 0x455   :  { %23001 = vmatprep.subr.bf16.mxu0 %v25412_v0 }
 0x458   :  { %23002 = vmatpush3.bf16.msra.mxu0 %v25413_v28  ;;  %v25438_v28 = vld [vmem:[%s31723_s4 + $0xea4] sm:$0xff]  }
 0x459   :  { %6196 = vmatprep.subr.bf16.mxu0 %v31735_v1 }
 0x45b   :  { %6147 = vmatmul.mubr.bf16.vlgmr.msra.gmra.mrb[72].mxu0 %v26780_v19 }
 0x45c   :  { %6197 = vmatpush1.bf16.msra.mxu0 %v25414_v2  ;;  %19940 = vmatprep.mubr.msk.bf16.mxu0 %vm395_vm3, %v26797_v33 }
 0x45d   :  { %6198 = vmatprep.subr.bf16.mxu0 %v31735_v1 }
 0x460   :  { %6199 = vmatpush1.bf16.msra.mxu0 %v25415_v3 }
 0x461   :  { %6200 = vmatprep.subr.bf16.mxu0 %v31735_v1 }
 0x464   :  { %6201 = vmatpush1.bf16.msra.mxu0 %v25416_v4  ;;  %v25439_v4 = vld [vmem:[%s31723_s4 + $0xf70] sm:$0xff]  }
 0x465   :  { %6202 = vmatprep.subr.bf16.mxu0 %v31735_v1 }
 0x468   :  { %6203 = vmatpush1.bf16.msra.mxu0 %v25417_v5 }
 0x469   :  { %6204 = vmatprep.subr.bf16.mxu0 %v31735_v1 }
 0x46a   :  { %v22837_v7 = vpop.f32.mrb[48].mxu0 }
 0x46b   :  { %v22838_v8 = vpop.f32.mrb[49].mxu0 }
 0x46c   :  { %v22839_v10 = vadd.f32 %v22838_v8, %v22837_v7  ;;  %v22840_v14 = vpop.f32.mrb[50].mxu0  ;;  %6205 = vmatpush1.bf16.msra.mxu0 %v25418_v6  ;;  %v25440_v8 = vld [vmem:[%s31723_s4 + $0xf30] sm:$0xff]  }
 0x46d   :  { %v22841_v18 = vpop.f32.mrb[51].mxu0  ;;  %6206 = vmatprep.subr.bf16.mxu0 %v31735_v1 }
 0x46e   :  { %v22842_v32 = vadd.f32 %v22841_v18, %v22840_v14  ;;  %v27806_v35 = vadd.f32 %v22839_v10, %v22817_v23  ;;  %v25443_v14 = vld [vmem:[%s31723_s4 + $0xf78] sm:$0xff]   ;;  %v25444_v18 = vld [vmem:[%s31723_s4 + $0x4cc] sm:$0xff]  }
 0x470   :  { %6207 = vmatpush1.bf16.msra.mxu0 %v25419_v17  ;;  %v27811_v38 = vadd.f32 %v22842_v32, %v22820_v62  ;;  %v25436_v62 = vld [vmem:[%s31723_s4 + $0xe9c] sm:$0xff]   ;;  %v25442_v17 = vld [vmem:[%s31724_s5 + $0x28] sm:$0xff]  }
 0x471   :  { %6208 = vmatprep.subr.bf16.mxu0 %v31735_v1  ;;  %v25445_v32 = vld [vmem:[%s31723_s4 + $0xf38] sm:$0xff]  }
 0x474   :  { %v22627_v40 = vpop.f32.mrb[20].mxu1  ;;  %6209 = vmatpush1.bf16.msra.mxu0 %v25420_v37  ;;  %v25446_v37 = vld [vmem:[%s31723_s4 + $0xf80] sm:$0xff]  }
 0x475   :  { %v22628_v43 = vpop.f32.mrb[21].mxu1  ;;  %6210 = vmatprep.subr.bf16.mxu0 %v31735_v1 }
 0x476   :  { %v22629_v44 = vadd.f32 %v22628_v43, %v22627_v40  ;;  %v22630_v45 = vpop.f32.mrb[22].mxu1  ;;  %v25448_v40 = vld [vmem:[%s31723_s4 + $0xf40] sm:$0xff]  }
 0x477   :  { %v22631_v46 = vpop.f32.mrb[23].mxu1  ;;  %v25450_v43 = vld [vmem:[%s31723_s4 + $0x4dc] sm:$0xff]  }
 0x478   :  { %v22632_v48 = vadd.f32 %v22631_v46, %v22630_v45  ;;  %6211 = vmatpush1.bf16.msra.mxu0 %v25421_v41  ;;  %v1982_v49 = vadd.f32 %v27385_v9, %v22629_v44  ;;  %v25425_v9 = vld [vmem:[%s31723_s4 + $0xeb4] sm:$0xff]   ;;  %v25449_v41 = vld [vmem:[%s31723_s4 + $0xf88] sm:$0xff]  }
 0x479   :  { %6212 = vmatprep.subr.bf16.mxu0 %v31735_v1  ;;  %v25451_v44 = vld [vmem:[%s31723_s4 + $0xf48] sm:$0xff]   ;;  %v25452_v45 = vld [vmem:[%s31723_s4 + $0xf90] sm:$0xff]  }
 0x47a   :  { %v1985_v13 = vadd.f32 %v27393_v22, %v22632_v48  ;;  %v25428_v22 = vld [vmem:[%s31723_s4 + $0xe7c] sm:$0xff]   ;;  %v25453_v46 = vld [vmem:[%s31723_s4 + $0x4e4] sm:$0xff]   ;;  %v25454_v48 = vld [vmem:[%s31723_s4 + $0xf50] sm:$0xff]  }
 0x47c   :  { %6213 = vmatpush1.bf16.msra.mxu0 %v6112_v51  ;;  %v25455_v51 = vld [vmem:[%s31723_s4 + $0xf98] sm:$0xff]  }
 0x47d   :  { %23056 = vmatprep.subr.bf16.mxu0 %v25423_v11 }
 0x47f   :  { %6229 = vmatmul.mubr.bf16.vlgmr.msra.gmra.mrb[76].mxu0 %v26788_v29 }
 0x480   :  { %23057 = vmatpush3.bf16.msra.mxu0 %v25424_v12  ;;  %6713 = vmatprep.mubr.bf16.mxu0 %v26786_v27 }
 0x481   :  { %23058 = vmatprep.subr.bf16.mxu0 %v25425_v9 }
 0x484   :  { %23059 = vmatpush3.bf16.msra.mxu0 %v25426_v20  ;;  %v25457_v20 = vld [vmem:[%s31723_s4 + $0xf58] sm:$0xff]  }
 0x485   :  { %23060 = vmatprep.subr.bf16.mxu0 %v25427_v16  ;;  %v25458_v16 = vld [vmem:[%s31723_s4 + $0xfa0] sm:$0xff]  }
 0x488   :  { %23061 = vmatpush3.bf16.msra.mxu0 %v25428_v22  ;;  %v25459_v22 = vld [vmem:[%s31723_s4 + $0x4f4] sm:$0xff]  }
 0x489   :  { %23062 = vmatprep.subr.bf16.mxu0 %v25429_v52  ;;  %v25460_v52 = vld [vmem:[%s31723_s4 + $0xf60] sm:$0xff]  }
 0x48a   :  { %v22862_v55 = vpop.f32.mrb[52].mxu0 }
 0x48b   :  { %v22863_v56 = vpop.f32.mrb[53].mxu0 }
 0x48c   :  { %v27854_v57 = vadd.f32 %v22863_v56, %v22862_v55  ;;  %v22865_v58 = vpop.f32.mrb[54].mxu0  ;;  %23063 = vmatpush3.bf16.msra.mxu0 %v25430_v53  ;;  %v25461_v53 = vld [vmem:[%s31723_s4 + $0xfa8] sm:$0xff]  }
 0x48d   :  { %v22866_v23 = vpop.f32.mrb[55].mxu0  ;;  %23064 = vmatprep.subr.bf16.mxu0 %v25431_v54  ;;  %v25462_v54 = vld [vmem:[%s31723_s4 + $0x4fc] sm:$0xff]   ;;  %v25463_v55 = vld [vmem:[%s31723_s4 + $0xf68] sm:$0xff]  }
 0x48e   :  { %v27862_v24 = vadd.f32 %v22866_v23, %v22865_v58  ;;  %v25464_v56 = vld [vmem:[%s31723_s4 + $0x504] sm:$0xff]   ;;  %v25465_v58 = vld [vmem:[%s31723_s4 + $0x1030] sm:$0xff]  }
 0x490   :  { %23065 = vmatpush3.bf16.msra.mxu0 %v25432_v59  ;;  %v25466_v59 = vld [vmem:[%s31723_s4 + $0x50c] ss:$0 sps:$4 sm:$0xff]  }
 0x491   :  { %23066 = vmatprep.subr.bf16.mxu0 %v25433_v60  ;;  %v2430_v23 = vsel %vm858_vm4, %v25466_v59, 0  ;;  %v25467_v60 = vld [vmem:[%s31723_s4 + $0x1038] sm:$0xff]  }
 0x494   :  { %23067 = vmatpush3.bf16.msra.mxu0 %v25434_v61  ;;  %v25468_v61 = vld [vmem:[%s31723_s4 + $0x1040] sm:$0xff]  }
 0x495   :  { %23068 = vmatprep.subr.bf16.mxu0 %v25435_v25  ;;  %v25469_v25 = vld [vmem:[%s31723_s4 + $0x1048] sm:$0xff]  }
 0x498   :  { %v2022_v0 = vpop.f32.mrb[24].mxu1  ;;  %23069 = vmatpush3.bf16.msra.mxu0 %v25436_v62  ;;  %v25470_v62 = vld [vmem:[%s31723_s4 + $0x1050] sm:$0xff]  }
 0x499   :  { %v2023_v2 = vadd.f32 %v2022_v0, %v1982_v49  ;;  %v2024_v3 = vpop.f32.mrb[25].mxu1  ;;  %23070 = vmatprep.subr.bf16.mxu0 %v25437_v63 }
 0x49a   :  { %v2025_v5 = vpop.f32.mrb[26].mxu1 }
 0x49b   :  { %v2026_v6 = vadd.f32 %v2025_v5, %v1985_v13  ;;  %v2027_v7 = vpop.f32.mrb[27].mxu1  ;;  %v25456_v13 = vld [vmem:[%s31723_s4 + $0x4ec] sm:$0xff]  }
 0x49c   :  { %23071 = vmatpush3.bf16.msra.mxu0 %v25438_v28  ;;  %v25473_v7 = vld [vmem:[%s31723_s4 + $0x1068] sm:$0xff]  }
 0x49d   :  { %v2034_v10 = vpack.c.bf16 %v2026_v6, %v2023_v2  ;;  %23081 = vmatprep.subr.bf16.mxu0 %v25439_v4  ;;  %v25471_v4 = vld [vmem:[%s31723_s4 + $0x1058] sm:$0xff]   ;;  %v25472_v6 = vld [vmem:[%s31723_s4 + $0x1060] sm:$0xff]  }
 0x49f   :  { %24031 = vmatprep.subr.bf16.mxu1 %v2034_v10  ;;  %6714 = vmatmul.mubr.bf16.vlgmr.msra.gmra.mrb[80].mxu0 %v26784_v26 }
 0x4a0   :  { %24032 = vmatpush3.bf16.msra.mxu1 %v2034_v10  ;;  %23082 = vmatpush3.bf16.msra.mxu0 %v25440_v8  ;;  %v25474_v8 = vld [vmem:[%s31723_s4 + $0x1070] ss:$0 sps:$4 sm:$0xff]  }
 0x4a1   :  { %7198 = vmatprep.mubr.bf16.mxu0 %v26782_v21  ;;  %2514 = vmatprep.subr.bf16.mxu1 %v31735_v1  ;;  %v7164_v10 = vsel %vm858_vm4, %v25474_v8, 0 }
 0x4a2   :  { %23083 = vmatprep.subr.bf16.mxu0 %v25443_v14  ;;  %v25475_v14 = vld [vmem:[%s31723_s4 + $0x10b4] sm:$0xff]  }
 0x4a3   :  { %24034 = vmatmul.mubr.msk.bf16.vlgmr.msra.gmra.mrb[16].mxu1 %vm1457_vm5, %v25442_v17  ;;  %v25476_v17 = vld [vmem:[%s31723_s4 + $0x1074] sm:$0xff]  }
 0x4a4   :  { %2515 = vmatpush1.bf16.msra.mxu1 %v25444_v18  ;;  %19023 = vmatprep.mubr.msk.bf16.mxu1 %vm395_vm3, %v26797_v33  ;;  %v25477_v18 = vld [vmem:[%s31723_s4 + $0x10bc] sm:$0xff]  }
 0x4a5   :  { %23084 = vmatpush3.bf16.msra.mxu0 %v25445_v32  ;;  %2516 = vmatprep.subr.bf16.mxu1 %v31735_v1  ;;  %v25478_v32 = vld [vmem:[%s31723_s4 + $0x107c] sm:$0xff]  }
 0x4a6   :  { %23085 = vmatprep.subr.bf16.mxu0 %v25446_v37  ;;  %v25479_v37 = vld [vmem:[%s31723_s4 + $0x10c4] sm:$0xff]  }
 0x4a8   :  { %2517 = vmatpush1.bf16.msra.mxu1 %v25447_v39  ;;  %v25480_v39 = vld [vmem:[%s31723_s4 + $0x1084] sm:$0xff]  }
 0x4a9   :  { %23086 = vmatpush3.bf16.msra.mxu0 %v25448_v40  ;;  %2518 = vmatprep.subr.bf16.mxu1 %v31735_v1  ;;  %v25481_v40 = vld [vmem:[%s31723_s4 + $0x10cc] sm:$0xff]  }
 0x4aa   :  { %23087 = vmatprep.subr.bf16.mxu0 %v25449_v41  ;;  %v25482_v41 = vld [vmem:[%s31723_s4 + $0x108c] sm:$0xff]  }
 0x4ac   :  { %2519 = vmatpush1.bf16.msra.mxu1 %v25450_v43 }
 0x4ad   :  { %23088 = vmatpush3.bf16.msra.mxu0 %v25451_v44  ;;  %2520 = vmatprep.subr.bf16.mxu1 %v31735_v1  ;;  %v25483_v44 = vld [vmem:[%s31723_s4 + $0x10d4] sm:$0xff]  }
 0x4ae   :  { %v27933_v49 = vpop.f32.mrb[56].mxu0  ;;  %23089 = vmatprep.subr.bf16.mxu0 %v25452_v45 }
 0x4af   :  { %v4654_v11 = vpop.f32.mrb[57].mxu0 }
 0x4b0   :  { %2521 = vmatpush1.bf16.msra.mxu1 %v25453_v46  ;;  %v27938_v12 = vpop.f32.mrb[58].mxu0  ;;  %v25484_v11 = vld [vmem:[%s31723_s4 + $0x1094] sm:$0xff]  }
 0x4b1   :  { %23090 = vmatpush3.bf16.msra.mxu0 %v25454_v48  ;;  %v4657_v9 = vpop.f32.mrb[59].mxu0  ;;  %2522 = vmatprep.subr.bf16.mxu1 %v31735_v1 }
 0x4b2   :  { %23091 = vmatprep.subr.bf16.mxu0 %v25455_v51  ;;  %v25485_v9 = vld [vmem:[%s31723_s4 + $0x10dc] sm:$0xff]  }
 0x4b4   :  { %2523 = vmatpush1.bf16.msra.mxu1 %v25456_v13 }
 0x4b5   :  { %23092 = vmatpush3.bf16.msra.mxu0 %v25457_v20  ;;  %2524 = vmatprep.subr.bf16.mxu1 %v31735_v1  ;;  %v25486_v20 = vld [vmem:[%s31723_s4 + $0x109c] sm:$0xff]  }
 0x4b6   :  { %23093 = vmatprep.subr.bf16.mxu0 %v25458_v16  ;;  %v25487_v16 = vld [vmem:[%s31723_s4 + $0x10e4] sm:$0xff]  }
 0x4b8   :  { %2525 = vmatpush1.bf16.msra.mxu1 %v25459_v22  ;;  %v25488_v22 = vld [vmem:[%s31723_s4 + $0x10a4] sm:$0xff]  }
 0x4b9   :  { %23094 = vmatpush3.bf16.msra.mxu0 %v25460_v52  ;;  %2526 = vmatprep.subr.bf16.mxu1 %v31735_v1  ;;  %v25489_v52 = vld [vmem:[%s31723_s4 + $0x10ec] sm:$0xff]  }
 0x4ba   :  { %23095 = vmatprep.subr.bf16.mxu0 %v25461_v53  ;;  %v25490_v53 = vld [vmem:[%s31723_s4 + $0x10ac] sm:$0xff]  }
 0x4bc   :  { %2527 = vmatpush1.bf16.msra.mxu1 %v25462_v54  ;;  %v25491_v54 = vld [vmem:[%s31723_s4 + $0x1174] sm:$0xff]  }
 0x4bd   :  { %23096 = vmatpush3.bf16.msra.mxu0 %v25463_v55  ;;  %2528 = vmatprep.subr.bf16.mxu1 %v31735_v1  ;;  %v25492_v55 = vld [vmem:[%s31723_s4 + $0x117c] sm:$0xff]  }
 0x4be   :  { %7248 = vmatprep.subr.bf16.mxu0 %v31735_v1 }
 0x4c0   :  { %7199 = vmatmul.mubr.bf16.vlgmr.msra.gmra.mrb[84].mxu0 %v26780_v19  ;;  %2529 = vmatpush1.bf16.msra.mxu1 %v25464_v56  ;;  %v25493_v56 = vld [vmem:[%s31723_s4 + $0x1184] sm:$0xff]  }
 0x4c1   :  { %7249 = vmatpush1.bf16.msra.mxu0 %v25465_v58  ;;  %20202 = vmatprep.mubr.msk.bf16.mxu0 %vm395_vm3, %v26797_v33  ;;  %v25494_v58 = vld [vmem:[%s31723_s4 + $0x118c] sm:$0xff]  }
 0x4c2   :  { %2530 = vmatprep.subr.bf16.mxu1 %v31735_v1  ;;  %7250 = vmatprep.subr.bf16.mxu0 %v31735_v1 }
 0x4c4   :  { %2531 = vmatpush1.bf16.msra.mxu1 %v2430_v23 }
 0x4c5   :  { %7251 = vmatpush1.bf16.msra.mxu0 %v25467_v60 }
 0x4c6   :  { %7252 = vmatprep.subr.bf16.mxu0 %v31735_v1 }
 0x4c7   :  { %2547 = vmatmul.mubr.bf16.vlgmr.msra.gmra.mrb[28].mxu1 %v26788_v29 }
 0x4c9   :  { %7253 = vmatpush1.bf16.msra.mxu0 %v25468_v61 }
 0x4ca   :  { %7254 = vmatprep.subr.bf16.mxu0 %v31735_v1 }
 0x4cd   :  { %7255 = vmatpush1.bf16.msra.mxu0 %v25469_v25 }
 0x4ce   :  { %v22931_v63 = vpop.f32.mrb[60].mxu0  ;;  %7256 = vmatprep.subr.bf16.mxu0 %v31735_v1 }
 0x4cf   :  { %v22932_v0 = vpop.f32.mrb[61].mxu0 }
 0x4d0   :  { %v28000_v28 = vadd.f32 %v22932_v0, %v22931_v63  ;;  %v22934_v2 = vpop.f32.mrb[62].mxu0 }
 0x4d1   :  { %7257 = vmatpush1.bf16.msra.mxu0 %v25470_v62  ;;  %v22935_v3 = vpop.f32.mrb[63].mxu0  ;;  %v25495_v62 = vld [vmem:[%s31723_s4 + $0x1194] sm:$0xff]  }
 0x4d2   :  { %v28005_v5 = vadd.f32 %v22935_v3, %v22934_v2  ;;  %7258 = vmatprep.subr.bf16.mxu0 %v31735_v1  ;;  %v25496_v3 = vld [vmem:[%s31723_s4 + $0x119c] sm:$0xff]  }
 0x4d5   :  { %7259 = vmatpush1.bf16.msra.mxu0 %v25471_v4  ;;  %v25497_v4 = vld [vmem:[%s31723_s4 + $0x11a4] sm:$0xff]  }
 0x4d6   :  { %7260 = vmatprep.subr.bf16.mxu0 %v31735_v1 }
 0x4d9   :  { %7261 = vmatpush1.bf16.msra.mxu0 %v25472_v6  ;;  %v25498_v6 = vld [vmem:[%s31723_s4 + $0x11ac] sm:$0xff]  }
 0x4da   :  { %7262 = vmatprep.subr.bf16.mxu0 %v31735_v1 }
 0x4dd   :  { %7263 = vmatpush1.bf16.msra.mxu0 %v25473_v7  ;;  %v25499_v7 = vld [vmem:[%s31723_s4 + $0x11b4] ss:$0 sps:$4 sm:$0xff]  }
 0x4de   :  { %7264 = vmatprep.subr.bf16.mxu0 %v31735_v1  ;;  %v7690_v8 = vsel %vm858_vm4, %v25499_v7, 0  ;;  %v25526_v7 = vld [vmem:[%s31723_s4 + $0x1364] sm:$0xff]  }
 0x4e1   :  { %7265 = vmatpush1.bf16.msra.mxu0 %v7164_v10  ;;  %v25500_v10 = vld [vmem:[%s31723_s4 + $0x1278] sm:$0xff]  }
 0x4e2   :  { %23128 = vmatprep.subr.bf16.mxu0 %v25475_v14  ;;  %v25554_v14 = vld [vmem:[%s31724_s5 + $0x30] sm:$0xff]  }
 0x4e3   :  { %24039 = vmatprep.mubr.msk.bf16.mxu1 %vm1457_vm5, %v25554_v14  ;;  %v25529_v14 = vld [vmem:[%s31723_s4 + $0x132c] sm:$0xff]  }
 0x4e4   :  { %7281 = vmatmul.mubr.bf16.vlgmr.msra.gmra.mrb[88].mxu0 %v26788_v29 }
 0x4e5   :  { %23129 = vmatpush3.bf16.msra.mxu0 %v25476_v17  ;;  %7724 = vmatprep.mubr.bf16.mxu0 %v26782_v21  ;;  %v25501_v17 = vld [vmem:[%s31723_s4 + $0x1238] sm:$0xff]  }
 0x4e6   :  { %23130 = vmatprep.subr.bf16.mxu0 %v25477_v18  ;;  %v25502_v18 = vld [vmem:[%s31723_s4 + $0x1280] sm:$0xff]  }
 0x4e9   :  { %23131 = vmatpush3.bf16.msra.mxu0 %v25478_v32  ;;  %v25503_v32 = vld [vmem:[%s31723_s4 + $0x1240] sm:$0xff]  }
 0x4ea   :  { %23132 = vmatprep.subr.bf16.mxu0 %v25479_v37  ;;  %v25504_v37 = vld [vmem:[%s31723_s4 + $0x1288] sm:$0xff]  }
 0x4ed   :  { %23133 = vmatpush3.bf16.msra.mxu0 %v25480_v39  ;;  %v25505_v39 = vld [vmem:[%s31723_s4 + $0x1248] sm:$0xff]  }
 0x4ee   :  { %v22956_v43 = vpop.f32.mrb[64].mxu0  ;;  %23134 = vmatprep.subr.bf16.mxu0 %v25481_v40 }
 0x4ef   :  { %v22957_v45 = vpop.f32.mrb[65].mxu0 }
 0x4f0   :  { %v22958_v46 = vadd.f32 %v22957_v45, %v22956_v43  ;;  %v22959_v48 = vpop.f32.mrb[66].mxu0 }
 0x4f1   :  { %23135 = vmatpush3.bf16.msra.mxu0 %v25482_v41  ;;  %v22960_v51 = vpop.f32.mrb[67].mxu0  ;;  %v25506_v41 = vld [vmem:[%s31723_s4 + $0x1290] sm:$0xff]  }
 0x4f2   :  { %v22961_v13 = vadd.f32 %v22960_v51, %v22959_v48  ;;  %23136 = vmatprep.subr.bf16.mxu0 %v25483_v44  ;;  %v25507_v48 = vld [vmem:[%s31723_s4 + $0x1250] sm:$0xff]  }
 0x4f5   :  { %23137 = vmatpush3.bf16.msra.mxu0 %v25484_v11  ;;  %v25508_v11 = vld [vmem:[%s31723_s4 + $0x1298] sm:$0xff]  }
 0x4f6   :  { %23138 = vmatprep.subr.bf16.mxu0 %v25485_v9  ;;  %v25510_v9 = vld [vmem:[%s31723_s4 + $0x12a0] sm:$0xff]  }
 0x4f9   :  { %23139 = vmatpush3.bf16.msra.mxu0 %v25486_v20  ;;  %v25511_v20 = vld [vmem:[%s31723_s4 + $0x1260] sm:$0xff]  }
 0x4fa   :  { %23140 = vmatprep.subr.bf16.mxu0 %v25487_v16  ;;  %v25512_v16 = vld [vmem:[%s31723_s4 + $0x12a8] sm:$0xff]  }
 0x4fd   :  { %23141 = vmatpush3.bf16.msra.mxu0 %v25488_v22  ;;  %v25513_v22 = vld [vmem:[%s31723_s4 + $0x1268] sm:$0xff]  }
 0x4fe   :  { %23142 = vmatprep.subr.bf16.mxu0 %v25489_v52  ;;  %v25514_v52 = vld [vmem:[%s31723_s4 + $0x12b0] sm:$0xff]  }
 0x501   :  { %23143 = vmatpush3.bf16.msra.mxu0 %v25490_v53  ;;  %v25515_v53 = vld [vmem:[%s31723_s4 + $0x1270] sm:$0xff]  }
 0x502   :  { %7774 = vmatprep.subr.bf16.mxu0 %v31735_v1 }
 0x504   :  { %7725 = vmatmul.mubr.bf16.vlgmr.msra.gmra.mrb[92].mxu0 %v26780_v19 }
 0x505   :  { %7775 = vmatpush1.bf16.msra.mxu0 %v25491_v54  ;;  %20333 = vmatprep.mubr.msk.bf16.mxu0 %vm395_vm3, %v26797_v33  ;;  %v25516_v54 = vld [vmem:[%s31723_s4 + $0x133c] sm:$0xff]  }
 0x506   :  { %7776 = vmatprep.subr.bf16.mxu0 %v31735_v1 }
 0x509   :  { %7777 = vmatpush1.bf16.msra.mxu0 %v25492_v55  ;;  %v25517_v55 = vld [vmem:[%s31723_s4 + $0x12fc] sm:$0xff]  }
 0x50a   :  { %7778 = vmatprep.subr.bf16.mxu0 %v31735_v1 }
 0x50d   :  { %7779 = vmatpush1.bf16.msra.mxu0 %v25493_v56  ;;  %v25518_v56 = vld [vmem:[%s31723_s4 + $0x1344] sm:$0xff]  }
 0x50e   :  { %v22978_v59 = vpop.f32.mrb[68].mxu0  ;;  %7780 = vmatprep.subr.bf16.mxu0 %v31735_v1 }
 0x50f   :  { %v22979_v23 = vpop.f32.mrb[69].mxu0 }
 0x510   :  { %v22980_v60 = vadd.f32 %v22979_v23, %v22978_v59  ;;  %v22981_v61 = vpop.f32.mrb[70].mxu0  ;;  %v25520_v59 = vld [vmem:[%s31723_s4 + $0x134c] sm:$0xff]  }
 0x511   :  { %7781 = vmatpush1.bf16.msra.mxu0 %v25494_v58  ;;  %v22982_v25 = vpop.f32.mrb[71].mxu0  ;;  %v25519_v58 = vld [vmem:[%s31723_s4 + $0x1304] sm:$0xff]   ;;  %v25521_v23 = vld [vmem:[%s31723_s4 + $0x130c] sm:$0xff]  }
 0x512   :  { %v22983_v63 = vadd.f32 %v22982_v25, %v22981_v61  ;;  %7782 = vmatprep.subr.bf16.mxu0 %v31735_v1  ;;  %v28094_v0 = vadd.f32 %v22980_v60, %v22958_v46  ;;  %v25522_v60 = vld [vmem:[%s31723_s4 + $0x1354] sm:$0xff]  }
 0x513   :  { %v25523_v61 = vld [vmem:[%s31723_s4 + $0x1314] sm:$0xff]  }
 0x514   :  { %v28096_v2 = vadd.f32 %v22983_v63, %v22961_v13  ;;  %v25509_v13 = vld [vmem:[%s31723_s4 + $0x1258] sm:$0xff]  }
 0x515   :  { %7783 = vmatpush1.bf16.msra.mxu0 %v25495_v62  ;;  %v25524_v62 = vld [vmem:[%s31723_s4 + $0x135c] sm:$0xff]  }
 0x516   :  { %7784 = vmatprep.subr.bf16.mxu0 %v31735_v1 }
 0x519   :  { %7785 = vmatpush1.bf16.msra.mxu0 %v25496_v3 }
 0x51a   :  { %7786 = vmatprep.subr.bf16.mxu0 %v31735_v1 }
 0x51d   :  { %7787 = vmatpush1.bf16.msra.mxu0 %v25497_v4 }
 0x51e   :  { %7788 = vmatprep.subr.bf16.mxu0 %v31735_v1 }
 0x521   :  { %7789 = vmatpush1.bf16.msra.mxu0 %v25498_v6  ;;  %v25525_v6 = vld [vmem:[%s31723_s4 + $0x131c] sm:$0xff]  }
 0x522   :  { %7790 = vmatprep.subr.bf16.mxu0 %v31735_v1 }
 0x525   :  { %7791 = vmatpush1.bf16.msra.mxu0 %v7690_v8  ;;  %v25527_v8 = vld [vmem:[%s31723_s4 + $0x1324] sm:$0xff]  }
 0x526   :  { %23197 = vmatprep.subr.bf16.mxu0 %v25500_v10  ;;  %v25528_v10 = vld [vmem:[%s31723_s4 + $0x136c] sm:$0xff]  }
 0x528   :  { %7807 = vmatmul.mubr.bf16.vlgmr.msra.gmra.mrb[96].mxu0 %v26788_v29 }
 0x529   :  { %23198 = vmatpush3.bf16.msra.mxu0 %v25501_v17  ;;  %8291 = vmatprep.mubr.bf16.mxu0 %v26786_v27  ;;  %v25530_v17 = vld [vmem:[%s31723_s4 + $0x1374] sm:$0xff]  }
 0x52a   :  { %23199 = vmatprep.subr.bf16.mxu0 %v25502_v18  ;;  %v25531_v18 = vld [vmem:[%s31723_s4 + $0x1334] sm:$0xff]  }
 0x52d   :  { %23200 = vmatpush3.bf16.msra.mxu0 %v25503_v32  ;;  %v25532_v32 = vld [vmem:[%s31723_s4 + $0x13fc] sm:$0xff]  }
 0x52e   :  { %v23003_v40 = vpop.f32.mrb[72].mxu0  ;;  %23201 = vmatprep.subr.bf16.mxu0 %v25504_v37  ;;  %v25533_v37 = vld [vmem:[%s31723_s4 + $0x1404] sm:$0xff]  }
 0x52f   :  { %v23004_v43 = vpop.f32.mrb[73].mxu0 }
 0x530   :  { %v28142_v44 = vadd.f32 %v23004_v43, %v23003_v40  ;;  %v23006_v45 = vpop.f32.mrb[74].mxu0  ;;  %v25535_v40 = vld [vmem:[%s31723_s4 + $0x1414] sm:$0xff]  }
 0x531   :  { %23202 = vmatpush3.bf16.msra.mxu0 %v25505_v39  ;;  %v23007_v46 = vpop.f32.mrb[75].mxu0  ;;  %v25534_v39 = vld [vmem:[%s31723_s4 + $0x140c] sm:$0xff]  }
 0x532   :  { %v28147_v51 = vadd.f32 %v23007_v46, %v23006_v45  ;;  %23203 = vmatprep.subr.bf16.mxu0 %v25506_v41 }
 0x535   :  { %23204 = vmatpush3.bf16.msra.mxu0 %v25507_v48 }
 0x536   :  { %23205 = vmatprep.subr.bf16.mxu0 %v25508_v11  ;;  %v25536_v11 = vld [vmem:[%s31723_s4 + $0x141c] sm:$0xff]  }
 0x539   :  { %23206 = vmatpush3.bf16.msra.mxu0 %v25509_v13 }
 0x53a   :  { %23207 = vmatprep.subr.bf16.mxu0 %v25510_v9  ;;  %v25537_v9 = vld [vmem:[%s31723_s4 + $0x1424] sm:$0xff]  }
 0x53d   :  { %23208 = vmatpush3.bf16.msra.mxu0 %v25511_v20  ;;  %v25538_v20 = vld [vmem:[%s31723_s4 + $0x142c] sm:$0xff]  }
 0x53e   :  { %23209 = vmatprep.subr.bf16.mxu0 %v25512_v16  ;;  %v25539_v16 = vld [vmem:[%s31723_s4 + $0x1434] sm:$0xff]  }
 0x541   :  { %23210 = vmatpush3.bf16.msra.mxu0 %v25513_v22  ;;  %v25540_v22 = vld [vmem:[%s31723_s4 + $0x143c] ss:$0 sps:$4 sm:$0xff]  }
 0x542   :  { %23211 = vmatprep.subr.bf16.mxu0 %v25514_v52  ;;  %v8742_v52 = vsel %vm858_vm4, %v25540_v22, 0  ;;  %v25562_v22 = vld [vmem:[%s31723_s4 + $0x598] sm:$0xff]  }
 0x545   :  { %23212 = vmatpush3.bf16.msra.mxu0 %v25515_v53  ;;  %v25541_v53 = vld [vmem:[%s31723_s4 + $0x1500] sm:$0xff]  }
 0x546   :  { %23222 = vmatprep.subr.bf16.mxu0 %v25516_v54  ;;  %v25542_v54 = vld [vmem:[%s31723_s4 + $0x14c0] sm:$0xff]  }
 0x548   :  { %8292 = vmatmul.mubr.bf16.vlgmr.msra.gmra.mrb[100].mxu0 %v26784_v26 }
 0x549   :  { %23223 = vmatpush3.bf16.msra.mxu0 %v25517_v55  ;;  %8776 = vmatprep.mubr.bf16.mxu0 %v26782_v21  ;;  %v25543_v55 = vld [vmem:[%s31723_s4 + $0x1508] sm:$0xff]  }
 0x54a   :  { %23224 = vmatprep.subr.bf16.mxu0 %v25518_v56  ;;  %v25544_v56 = vld [vmem:[%s31723_s4 + $0x14c8] sm:$0xff]  }
 0x54d   :  { %23225 = vmatpush3.bf16.msra.mxu0 %v25519_v58  ;;  %v25545_v58 = vld [vmem:[%s31723_s4 + $0x1510] sm:$0xff]  }
 0x54e   :  { %23226 = vmatprep.subr.bf16.mxu0 %v25520_v59  ;;  %v25546_v59 = vld [vmem:[%s31723_s4 + $0x14d0] sm:$0xff]  }
 0x551   :  { %23227 = vmatpush3.bf16.msra.mxu0 %v25521_v23  ;;  %v25547_v23 = vld [vmem:[%s31723_s4 + $0x1518] sm:$0xff]  }
 0x552   :  { %v28199_v25 = vpop.f32.mrb[76].mxu0  ;;  %23228 = vmatprep.subr.bf16.mxu0 %v25522_v60 }
 0x553   :  { %v6232_v63 = vpop.f32.mrb[77].mxu0 }
 0x554   :  { %v28204_v3 = vpop.f32.mrb[78].mxu0 }
 0x555   :  { %23229 = vmatpush3.bf16.msra.mxu0 %v25523_v61  ;;  %v6235_v4 = vpop.f32.mrb[79].mxu0 }
 0x556   :  { %23230 = vmatprep.subr.bf16.mxu0 %v25524_v62  ;;  %v25548_v4 = vld [vmem:[%s31723_s4 + $0x14d8] sm:$0xff]  }
 0x559   :  { %23231 = vmatpush3.bf16.msra.mxu0 %v25525_v6 }
 0x55a   :  { %23232 = vmatprep.subr.bf16.mxu0 %v25526_v7  ;;  %v25549_v7 = vld [vmem:[%s31723_s4 + $0x1520] sm:$0xff]  }
 0x55d   :  { %23233 = vmatpush3.bf16.msra.mxu0 %v25527_v8 }
 0x55e   :  { %23234 = vmatprep.subr.bf16.mxu0 %v25528_v10  ;;  %v25550_v10 = vld [vmem:[%s31723_s4 + $0x14e0] sm:$0xff]  }
 0x561   :  { %23235 = vmatpush3.bf16.msra.mxu0 %v25529_v14 }
 0x562   :  { %23236 = vmatprep.subr.bf16.mxu0 %v25530_v17  ;;  %v25551_v17 = vld [vmem:[%s31723_s4 + $0x1528] sm:$0xff]  }
 0x565   :  { %23237 = vmatpush3.bf16.msra.mxu0 %v25531_v18 }
 0x566   :  { %8826 = vmatprep.subr.bf16.mxu0 %v31735_v1 }
 0x568   :  { %8777 = vmatmul.mubr.bf16.vlgmr.msra.gmra.mrb[104].mxu0 %v26780_v19 }
 0x569   :  { %8827 = vmatpush1.bf16.msra.mxu0 %v25532_v32  ;;  %20595 = vmatprep.mubr.msk.bf16.mxu0 %vm395_vm3, %v26797_v33 }
 0x56a   :  { %8828 = vmatprep.subr.bf16.mxu0 %v31735_v1 }
 0x56d   :  { %8829 = vmatpush1.bf16.msra.mxu0 %v25533_v37 }
 0x56e   :  { %8830 = vmatprep.subr.bf16.mxu0 %v31735_v1 }
 0x571   :  { %8831 = vmatpush1.bf16.msra.mxu0 %v25534_v39 }
 0x572   :  { %v23072_v41 = vpop.f32.mrb[80].mxu0  ;;  %8832 = vmatprep.subr.bf16.mxu0 %v31735_v1 }
 0x573   :  { %v23073_v43 = vpop.f32.mrb[81].mxu0 }
 0x574   :  { %v28246_v45 = vadd.f32 %v23073_v43, %v23072_v41  ;;  %v23075_v46 = vpop.f32.mrb[82].mxu0  ;;  %v25552_v41 = vld [vmem:[%s31723_s4 + $0x14e8] sm:$0xff]   ;;  %v25553_v43 = vld [vmem:[%s31723_s4 + $0x1530] sm:$0xff]  }
 0x575   :  { %8833 = vmatpush1.bf16.msra.mxu0 %v25535_v40  ;;  %v23076_v48 = vpop.f32.mrb[83].mxu0 }
 0x576   :  { %v28251_v13 = vadd.f32 %v23076_v48, %v23075_v46  ;;  %8834 = vmatprep.subr.bf16.mxu0 %v31735_v1  ;;  %v25556_v48 = vld [vmem:[%s31724_s5 + $0x38] sm:$0xff]  }
 0x579   :  { %8835 = vmatpush1.bf16.msra.mxu0 %v25536_v11  ;;  %v25558_v11 = vld [vmem:[%s31723_s4 + $0x590] sm:$0xff]  }
 0x57a   :  { %8836 = vmatprep.subr.bf16.mxu0 %v31735_v1 }
 0x57d   :  { %8837 = vmatpush1.bf16.msra.mxu0 %v25537_v9  ;;  %v25559_v9 = vld [vmem:[%s31723_s4 + $0x1538] sm:$0xff]  }
 0x57e   :  { %8838 = vmatprep.subr.bf16.mxu0 %v31735_v1 }
 0x581   :  { %8839 = vmatpush1.bf16.msra.mxu0 %v25538_v20  ;;  %v25561_v20 = vld [vmem:[%s31723_s4 + $0x5d8] sm:$0xff]  }
 0x582   :  { %8840 = vmatprep.subr.bf16.mxu0 %v31735_v1 }
 0x585   :  { %8841 = vmatpush1.bf16.msra.mxu0 %v25539_v16  ;;  %v25560_v16 = vld [vmem:[%s31723_s4 + $0x14f8] sm:$0xff]  }
 0x586   :  { %8842 = vmatprep.subr.bf16.mxu0 %v31735_v1 }
 0x589   :  { %8843 = vmatpush1.bf16.msra.mxu0 %v8742_v52  ;;  %v25563_v52 = vld [vmem:[%s31723_s4 + $0x15c4] sm:$0xff]  }
 0x58a   :  { %23291 = vmatprep.subr.bf16.mxu0 %v25541_v53  ;;  %v25565_v53 = vld [vmem:[%s31723_s4 + $0x5e0] sm:$0xff]  }
 0x58c   :  { %8859 = vmatmul.mubr.bf16.vlgmr.msra.gmra.mrb[108].mxu0 %v26788_v29 }
 0x58d   :  { %23292 = vmatpush3.bf16.msra.mxu0 %v25542_v54  ;;  %9343 = vmatprep.mubr.bf16.mxu0 %v26786_v27  ;;  %v25564_v54 = vld [vmem:[%s31723_s4 + $0x1584] sm:$0xff]  }
 0x58e   :  { %23293 = vmatprep.subr.bf16.mxu0 %v25543_v55  ;;  %v25566_v55 = vld [vmem:[%s31723_s4 + $0x5a0] sm:$0xff]  }
 0x591   :  { %23294 = vmatpush3.bf16.msra.mxu0 %v25544_v56  ;;  %v25567_v56 = vld [vmem:[%s31723_s4 + $0x15cc] sm:$0xff]  }
 0x592   :  { %23295 = vmatprep.subr.bf16.mxu0 %v25545_v58  ;;  %v25569_v58 = vld [vmem:[%s31723_s4 + $0x5e8] sm:$0xff]  }
 0x593   :  { %v23097_v60 = vpop.f32.mrb[84].mxu0 }
 0x594   :  { %v23098_v61 = vpop.f32.mrb[85].mxu0 }
 0x595   :  { %v28294_v62 = vadd.f32 %v23098_v61, %v23097_v60  ;;  %v23100_v63 = vpop.f32.mrb[86].mxu0  ;;  %23296 = vmatpush3.bf16.msra.mxu0 %v25546_v59  ;;  %v25568_v59 = vld [vmem:[%s31723_s4 + $0x158c] sm:$0xff]   ;;  %v25571_v60 = vld [vmem:[%s31723_s4 + $0x15d4] sm:$0xff]  }
 0x596   :  { %v23101_v6 = vpop.f32.mrb[87].mxu0  ;;  %23297 = vmatprep.subr.bf16.mxu0 %v25547_v23  ;;  %v25570_v23 = vld [vmem:[%s31723_s4 + $0x5a8] sm:$0xff]   ;;  %v25573_v61 = vld [vmem:[%s31723_s4 + $0x5f0] sm:$0xff]  }
 0x597   :  { %v28302_v8 = vadd.f32 %v23101_v6, %v23100_v63  ;;  %v25572_v63 = vld [vmem:[%s31723_s4 + $0x1594] sm:$0xff]   ;;  %v25575_v6 = vld [vmem:[%s31723_s4 + $0x15dc] sm:$0xff]  }
 0x599   :  { %23298 = vmatpush3.bf16.msra.mxu0 %v25548_v4  ;;  %v25574_v4 = vld [vmem:[%s31723_s4 + $0x5b0] sm:$0xff]  }
 0x59a   :  { %v2548_v14 = vpop.f32.mrb[28].mxu1  ;;  %23299 = vmatprep.subr.bf16.mxu0 %v25549_v7  ;;  %v25577_v7 = vld [vmem:[%s31723_s4 + $0x5f8] sm:$0xff]  }
 0x59b   :  { %v2549_v18 = vadd.f32 %v2548_v14, %v27546_v31  ;;  %v2550_v32 = vpop.f32.mrb[29].mxu1  ;;  %v25557_v31 = vld [vmem:[%s31723_s4 + $0x5d0] sm:$0xff]   ;;  %v25578_v14 = vld [vmem:[%s31723_s4 + $0x5b8] sm:$0xff]  }
 0x59c   :  { %v2551_v37 = vpop.f32.mrb[30].mxu1  ;;  %v25581_v32 = vld [vmem:[%s31723_s4 + $0x600] sm:$0xff]  }
 0x59d   :  { %v2552_v39 = vadd.f32 %v2551_v37, %v27551_v34  ;;  %23300 = vmatpush3.bf16.msra.mxu0 %v25550_v10  ;;  %v2553_v40 = vpop.f32.mrb[31].mxu1  ;;  %v25555_v34 = vld [vmem:[%s31723_s4 + $0x14f0] sm:$0xff]   ;;  %v25576_v10 = vld [vmem:[%s31723_s4 + $0x159c] sm:$0xff]  }
 0x59e   :  { %23301 = vmatprep.subr.bf16.mxu0 %v25551_v17  ;;  %v25579_v17 = vld [vmem:[%s31723_s4 + $0x15e4] sm:$0xff]  }
 0x59f   :  { %v2560_v46 = vpack.c.bf16 %v2552_v39, %v2549_v18  ;;  %v25580_v40 = vld [vmem:[%s31723_s4 + $0x15a4] sm:$0xff]  }
 0x5a1   :  { %23302 = vmatpush3.bf16.msra.mxu0 %v25552_v41  ;;  %24037 = vmatprep.subr.bf16.mxu1 %v2560_v46 }
 0x5a2   :  { %24038 = vmatpush3.bf16.msra.mxu1 %v2560_v46  ;;  %23303 = vmatprep.subr.bf16.mxu0 %v25553_v43  ;;  %v25582_v43 = vld [vmem:[%s31723_s4 + $0x5c0] sm:$0xff]   ;;  %v25583_v46 = vld [vmem:[%s31723_s4 + $0x15ec] sm:$0xff]  }
 0x5a3   :  { %22727 = vmatprep.subr.bf16.mxu1 %v25557_v31  ;;  %v25585_v31 = vld [vmem:[%s31723_s4 + $0x608] sm:$0xff]  }
 0x5a5   :  { %23304 = vmatpush3.bf16.msra.mxu0 %v25555_v34  ;;  %24040 = vmatmul.mubr.msk.bf16.vlgmr.msra.gmra.mrb[16].mxu1 %vm1457_vm5, %v25556_v48  ;;  %v25584_v34 = vld [vmem:[%s31723_s4 + $0x15ac] sm:$0xff]  }
 0x5a6   :  { %22728 = vmatpush3.bf16.msra.mxu1 %v25558_v11  ;;  %3031 = vmatprep.mubr.bf16.mxu1 %v26786_v27  ;;  %v25586_v48 = vld [vmem:[%s31723_s4 + $0x5c8] sm:$0xff]   ;;  %v25587_v11 = vld [vmem:[%s31723_s4 + $0x15f4] sm:$0xff]  }
 0x5a7   :  { %23305 = vmatprep.subr.bf16.mxu0 %v25559_v9  ;;  %22729 = vmatprep.subr.bf16.mxu1 %v25561_v20  ;;  %v25588_v9 = vld [vmem:[%s31723_s4 + $0x15b4] sm:$0xff]   ;;  %v25589_v20 = vld [vmem:[%s31723_s4 + $0x15fc] sm:$0xff]  }
 0x5a9   :  { %23306 = vmatpush3.bf16.msra.mxu0 %v25560_v16  ;;  %v25590_v16 = vld [vmem:[%s31723_s4 + $0x15bc] sm:$0xff]  }
 0x5aa   :  { %22730 = vmatpush3.bf16.msra.mxu1 %v25562_v22  ;;  %23316 = vmatprep.subr.bf16.mxu0 %v25563_v52  ;;  %v25591_v22 = vld [vmem:[%s31723_s4 + $0x1644] sm:$0xff]  }
 0x5ab   :  { %22731 = vmatprep.subr.bf16.mxu1 %v25565_v53  ;;  %v25592_v52 = vld [vmem:[%s31723_s4 + $0x1604] sm:$0xff]   ;;  %v25593_v53 = vld [vmem:[%s31723_s4 + $0x164c] sm:$0xff]  }
 0x5ac   :  { %9344 = vmatmul.mubr.bf16.vlgmr.msra.gmra.mrb[112].mxu0 %v26784_v26 }
 0x5ad   :  { %23317 = vmatpush3.bf16.msra.mxu0 %v25564_v54  ;;  %9828 = vmatprep.mubr.bf16.mxu0 %v26782_v21  ;;  %v25594_v54 = vld [vmem:[%s31723_s4 + $0x160c] sm:$0xff]  }
 0x5ae   :  { %22732 = vmatpush3.bf16.msra.mxu1 %v25566_v55  ;;  %23318 = vmatprep.subr.bf16.mxu0 %v25567_v56  ;;  %v25595_v55 = vld [vmem:[%s31723_s4 + $0x1654] sm:$0xff]  }
 0x5af   :  { %22733 = vmatprep.subr.bf16.mxu1 %v25569_v58  ;;  %v25596_v56 = vld [vmem:[%s31723_s4 + $0x1614] sm:$0xff]   ;;  %v25597_v58 = vld [vmem:[%s31723_s4 + $0x165c] sm:$0xff]  }
 0x5b1   :  { %23319 = vmatpush3.bf16.msra.mxu0 %v25568_v59  ;;  %v25598_v59 = vld [vmem:[%s31723_s4 + $0x161c] sm:$0xff]  }
 0x5b2   :  { %22734 = vmatpush3.bf16.msra.mxu1 %v25570_v23  ;;  %23320 = vmatprep.subr.bf16.mxu0 %v25571_v60  ;;  %v25599_v23 = vld [vmem:[%s31723_s4 + $0x1664] sm:$0xff]  }
 0x5b3   :  { %22735 = vmatprep.subr.bf16.mxu1 %v25573_v61 }
 0x5b5   :  { %23321 = vmatpush3.bf16.msra.mxu0 %v25572_v63 }
 0x5b6   :  { %22736 = vmatpush3.bf16.msra.mxu1 %v25574_v4  ;;  %23322 = vmatprep.subr.bf16.mxu0 %v25575_v6  ;;  %v25600_v6 = vld [vmem:[%s31723_s4 + $0x1624] sm:$0xff]  }
 0x5b7   :  { %v28397_v18 = vpop.f32.mrb[88].mxu0  ;;  %22737 = vmatprep.subr.bf16.mxu1 %v25577_v7 }
 0x5b8   :  { %v7284_v37 = vpop.f32.mrb[89].mxu0 }
 0x5b9   :  { %v28402_v39 = vpop.f32.mrb[90].mxu0  ;;  %23323 = vmatpush3.bf16.msra.mxu0 %v25576_v10  ;;  %v25601_v10 = vld [vmem:[%s31723_s4 + $0x166c] sm:$0xff]   ;;  %v25604_v37 = vld [vmem:[%s31723_s4 + $0x1634] sm:$0xff]  }
 0x5ba   :  { %v7287_v41 = vpop.f32.mrb[91].mxu0  ;;  %22738 = vmatpush3.bf16.msra.mxu1 %v25578_v14  ;;  %23324 = vmatprep.subr.bf16.mxu0 %v25579_v17  ;;  %v25602_v17 = vld [vmem:[%s31723_s4 + $0x162c] sm:$0xff]  }
 0x5bb   :  { %22739 = vmatprep.subr.bf16.mxu1 %v25581_v32  ;;  %v25603_v32 = vld [vmem:[%s31723_s4 + $0x1674] sm:$0xff]   ;;  %v25606_v41 = vld [vmem:[%s31723_s4 + $0x163c] sm:$0xff]  }
 0x5bd   :  { %23325 = vmatpush3.bf16.msra.mxu0 %v25580_v40  ;;  %v25605_v40 = vld [vmem:[%s31723_s4 + $0x167c] sm:$0xff]  }
 0x5be   :  { %22740 = vmatpush3.bf16.msra.mxu1 %v25582_v43  ;;  %23326 = vmatprep.subr.bf16.mxu0 %v25583_v46  ;;  %v25607_v43 = vld [vmem:[%s31723_s4 + $0x1708] sm:$0xff]  }
 0x5bf   :  { %22741 = vmatprep.subr.bf16.mxu1 %v25585_v31  ;;  %v25608_v46 = vld [vmem:[%s31723_s4 + $0x16c8] sm:$0xff]   ;;  %v25609_v31 = vld [vmem:[%s31723_s4 + $0x1710] sm:$0xff]  }
 0x5c1   :  { %23327 = vmatpush3.bf16.msra.mxu0 %v25584_v34  ;;  %v25610_v34 = vld [vmem:[%s31723_s4 + $0x16d0] sm:$0xff]  }
 0x5c2   :  { %22742 = vmatpush3.bf16.msra.mxu1 %v25586_v48  ;;  %23328 = vmatprep.subr.bf16.mxu0 %v25587_v11  ;;  %v25611_v48 = vld [vmem:[%s31723_s4 + $0x1718] sm:$0xff]  }
 0x5c3   :  { %v25612_v11 = vld [vmem:[%s31723_s4 + $0x16d8] sm:$0xff]  }
 0x5c5   :  { %23329 = vmatpush3.bf16.msra.mxu0 %v25588_v9  ;;  %3032 = vmatmul.mubr.bf16.vlgmr.msra.gmra.mrb[32].mxu1 %v26784_v26  ;;  %v25613_v9 = vld [vmem:[%s31723_s4 + $0x1720] sm:$0xff]  }
 0x5c6   :  { %23330 = vmatprep.subr.bf16.mxu0 %v25589_v20  ;;  %v25614_v20 = vld [vmem:[%s31723_s4 + $0x16e0] sm:$0xff]  }
 0x5c9   :  { %23331 = vmatpush3.bf16.msra.mxu0 %v25590_v16  ;;  %v25615_v16 = vld [vmem:[%s31723_s4 + $0x1728] sm:$0xff]  }
 0x5ca   :  { %23338 = vmatprep.subr.bf16.mxu0 %v25591_v22  ;;  %v25616_v22 = vld [vmem:[%s31723_s4 + $0x16e8] sm:$0xff]  }
 0x5cc   :  { %9829 = vmatmul.mubr.bf16.vlgmr.msra.gmra.mrb[116].mxu0 %v26780_v19 }
 0x5cd   :  { %23339 = vmatpush3.bf16.msra.mxu0 %v25592_v52  ;;  %9869 = vmatprep.mubr.bf16.mxu0 %v26786_v27  ;;  %v25617_v52 = vld [vmem:[%s31723_s4 + $0x1730] sm:$0xff]  }
 0x5ce   :  { %23340 = vmatprep.subr.bf16.mxu0 %v25593_v53 }
 0x5d1   :  { %23341 = vmatpush3.bf16.msra.mxu0 %v25594_v54 }
 0x5d2   :  { %23342 = vmatprep.subr.bf16.mxu0 %v25595_v55 }
 0x5d5   :  { %23343 = vmatpush3.bf16.msra.mxu0 %v25596_v56  ;;  %v25618_v56 = vld [vmem:[%s31723_s4 + $0x16f0] sm:$0xff]  }
 0x5d6   :  { %23344 = vmatprep.subr.bf16.mxu0 %v25597_v58 }
 0x5d7   :  { %v23144_v60 = vpop.f32.mrb[92].mxu0 }
 0x5d8   :  { %v23145_v61 = vpop.f32.mrb[93].mxu0 }
 0x5d9   :  { %v28464_v63 = vadd.f32 %v23145_v61, %v23144_v60  ;;  %v23147_v4 = vpop.f32.mrb[94].mxu0  ;;  %23345 = vmatpush3.bf16.msra.mxu0 %v25598_v59  ;;  %v25619_v59 = vld [vmem:[%s31723_s4 + $0x1738] sm:$0xff]   ;;  %v25621_v60 = vld [vmem:[%s31723_s4 + $0x1740] sm:$0xff]  }
 0x5da   :  { %v23148_v7 = vpop.f32.mrb[95].mxu0  ;;  %23346 = vmatprep.subr.bf16.mxu0 %v25599_v23  ;;  %v25620_v23 = vld [vmem:[%s31723_s4 + $0x16f8] sm:$0xff]   ;;  %v25622_v61 = vld [vmem:[%s31723_s4 + $0x1700] sm:$0xff]  }
 0x5db   :  { %v28472_v14 = vadd.f32 %v23148_v7, %v23147_v4  ;;  %v25623_v4 = vld [vmem:[%s31723_s4 + $0x17c8] sm:$0xff]   ;;  %v25625_v7 = vld [vmem:[%s31723_s4 + $0x17d8] sm:$0xff]  }
 0x5dd   :  { %23347 = vmatpush3.bf16.msra.mxu0 %v25600_v6  ;;  %v25624_v6 = vld [vmem:[%s31723_s4 + $0x17d0] sm:$0xff]  }
 0x5de   :  { %23348 = vmatprep.subr.bf16.mxu0 %v25601_v10  ;;  %v25626_v10 = vld [vmem:[%s31723_s4 + $0x17e0] sm:$0xff]  }
 0x5e1   :  { %23349 = vmatpush3.bf16.msra.mxu0 %v25602_v17  ;;  %v25627_v17 = vld [vmem:[%s31723_s4 + $0x17e8] sm:$0xff]  }
 0x5e2   :  { %23350 = vmatprep.subr.bf16.mxu0 %v25603_v32 }
 0x5e5   :  { %23351 = vmatpush3.bf16.msra.mxu0 %v25604_v37 }
 0x5e6   :  { %23352 = vmatprep.subr.bf16.mxu0 %v25605_v40 }
 0x5e9   :  { %23353 = vmatpush3.bf16.msra.mxu0 %v25606_v41 }
 0x5ea   :  { %23363 = vmatprep.subr.bf16.mxu0 %v25607_v43  ;;  %v25628_v43 = vld [vmem:[%s31723_s4 + $0x17f0] sm:$0xff]  }
 0x5ec   :  { %9870 = vmatmul.mubr.bf16.vlgmr.msra.gmra.mrb[120].mxu0 %v26784_v26 }
 0x5ed   :  { %23364 = vmatpush3.bf16.msra.mxu0 %v25608_v46  ;;  %10354 = vmatprep.mubr.bf16.mxu0 %v26782_v21 }
 0x5ee   :  { %23365 = vmatprep.subr.bf16.mxu0 %v25609_v31 }
 0x5f1   :  { %23366 = vmatpush3.bf16.msra.mxu0 %v25610_v34  ;;  %v25629_v34 = vld [vmem:[%s31723_s4 + $0x17f8] sm:$0xff]  }
 0x5f2   :  { %23367 = vmatprep.subr.bf16.mxu0 %v25611_v48  ;;  %v25630_v48 = vld [vmem:[%s31723_s4 + $0x1800] sm:$0xff]  }
 0x5f5   :  { %23368 = vmatpush3.bf16.msra.mxu0 %v25612_v11  ;;  %v25683_v11 = vld [vmem:[%s31724_s5 + $0x40] sm:$0xff]  }
 0x5f6   :  { %23369 = vmatprep.subr.bf16.mxu0 %v25613_v9  ;;  %v25631_v9 = vld [vmem:[%s31723_s4 + $0x1808] ss:$0 sps:$4 sm:$0xff]   ;;  %24045 = vmatprep.mubr.msk.bf16.mxu1 %vm1457_vm5, %v25683_v11  ;;  %v25648_v11 = vld [vmem:[%s31723_s4 + $0x1990] sm:$0xff]  }
 0x5f9   :  { %23370 = vmatpush3.bf16.msra.mxu0 %v25614_v20  ;;  %v10320_v20 = vsel %vm858_vm4, %v25631_v9, 0  ;;  %v25649_v9 = vld [vmem:[%s31723_s4 + $0x1950] sm:$0xff]  }
 0x5fa   :  { %23371 = vmatprep.subr.bf16.mxu0 %v25615_v16  ;;  %v25632_v16 = vld [vmem:[%s31723_s4 + $0x18cc] sm:$0xff]  }
 0x5fb   :  { %v28524_v53 = vpop.f32.mrb[96].mxu0 }
 0x5fc   :  { %v7810_v54 = vpop.f32.mrb[97].mxu0 }
 0x5fd   :  { %v28526_v55 = vpop.f32.mrb[98].mxu0  ;;  %23372 = vmatpush3.bf16.msra.mxu0 %v25616_v22  ;;  %v25633_v22 = vld [vmem:[%s31723_s4 + $0x188c] sm:$0xff]   ;;  %v25635_v54 = vld [vmem:[%s31723_s4 + $0x1894] sm:$0xff]  }
 0x5fe   :  { %v7813_v58 = vpop.f32.mrb[99].mxu0  ;;  %23373 = vmatprep.subr.bf16.mxu0 %v25617_v52  ;;  %v25634_v52 = vld [vmem:[%s31723_s4 + $0x18d4] sm:$0xff]  }
 0x5ff   :  { %v25637_v58 = vld [vmem:[%s31723_s4 + $0x189c] sm:$0xff]  }
 0x601   :  { %23374 = vmatpush3.bf16.msra.mxu0 %v25618_v56  ;;  %v25636_v56 = vld [vmem:[%s31723_s4 + $0x18dc] sm:$0xff]  }
 0x602   :  { %23375 = vmatprep.subr.bf16.mxu0 %v25619_v59  ;;  %v25638_v59 = vld [vmem:[%s31723_s4 + $0x18e4] sm:$0xff]  }
 0x605   :  { %23376 = vmatpush3.bf16.msra.mxu0 %v25620_v23  ;;  %v25639_v23 = vld [vmem:[%s31723_s4 + $0x18a4] sm:$0xff]  }
 0x606   :  { %23377 = vmatprep.subr.bf16.mxu0 %v25621_v60  ;;  %v25640_v60 = vld [vmem:[%s31723_s4 + $0x18ec] sm:$0xff]  }
 0x609   :  { %23378 = vmatpush3.bf16.msra.mxu0 %v25622_v61 }
 0x60a   :  { %10404 = vmatprep.subr.bf16.mxu0 %v31735_v1 }
 0x60c   :  { %10355 = vmatmul.mubr.bf16.vlgmr.msra.gmra.mrb[124].mxu0 %v26780_v19 }
 0x60d   :  { %10405 = vmatpush1.bf16.msra.mxu0 %v25623_v4  ;;  %20988 = vmatprep.mubr.msk.bf16.mxu0 %vm395_vm3, %v26797_v33 }
 0x60e   :  { %10406 = vmatprep.subr.bf16.mxu0 %v31735_v1 }
 0x611   :  { %10407 = vmatpush1.bf16.msra.mxu0 %v25624_v6 }
 0x612   :  { %10408 = vmatprep.subr.bf16.mxu0 %v31735_v1 }
 0x615   :  { %10409 = vmatpush1.bf16.msra.mxu0 %v25625_v7 }
 0x616   :  { %10410 = vmatprep.subr.bf16.mxu0 %v31735_v1 }
 0x619   :  { %10411 = vmatpush1.bf16.msra.mxu0 %v25626_v10  ;;  %v25641_v10 = vld [vmem:[%s31723_s4 + $0x18ac] sm:$0xff]  }
 0x61a   :  { %10412 = vmatprep.subr.bf16.mxu0 %v31735_v1 }
 0x61b   :  { %v23213_v32 = vpop.f32.mrb[100].mxu0 }
 0x61c   :  { %v23214_v37 = vpop.f32.mrb[101].mxu0 }
 0x61d   :  { %v28566_v40 = vadd.f32 %v23214_v37, %v23213_v32  ;;  %v23216_v41 = vpop.f32.mrb[102].mxu0  ;;  %10413 = vmatpush1.bf16.msra.mxu0 %v25627_v17  ;;  %v25642_v32 = vld [vmem:[%s31723_s4 + $0x18f4] sm:$0xff]  }
 0x61e   :  { %v23217_v46 = vpop.f32.mrb[103].mxu0  ;;  %10414 = vmatprep.subr.bf16.mxu0 %v31735_v1 }
 0x61f   :  { %v28572_v31 = vadd.f32 %v23217_v46, %v23216_v41  ;;  %v25643_v41 = vld [vmem:[%s31723_s4 + $0x18b4] sm:$0xff]   ;;  %v25645_v46 = vld [vmem:[%s31723_s4 + $0x18bc] sm:$0xff]  }
 0x621   :  { %10415 = vmatpush1.bf16.msra.mxu0 %v25628_v43  ;;  %v25644_v43 = vld [vmem:[%s31723_s4 + $0x18fc] sm:$0xff]  }
 0x622   :  { %10416 = vmatprep.subr.bf16.mxu0 %v31735_v1 }
 0x625   :  { %10417 = vmatpush1.bf16.msra.mxu0 %v25629_v34  ;;  %v25646_v34 = vld [vmem:[%s31723_s4 + $0x1904] sm:$0xff]  }
 0x626   :  { %10418 = vmatprep.subr.bf16.mxu0 %v31735_v1 }
 0x629   :  { %10419 = vmatpush1.bf16.msra.mxu0 %v25630_v48  ;;  %v25647_v48 = vld [vmem:[%s31723_s4 + $0x18c4] sm:$0xff]  }
 0x62a   :  { %10420 = vmatprep.subr.bf16.mxu0 %v31735_v1 }
 0x62d   :  { %10421 = vmatpush1.bf16.msra.mxu0 %v10320_v20  ;;  %v25650_v20 = vld [vmem:[%s31723_s4 + $0x1998] sm:$0xff]  }
 0x62e   :  { %23432 = vmatprep.subr.bf16.mxu0 %v25632_v16  ;;  %v25651_v16 = vld [vmem:[%s31723_s4 + $0x1958] sm:$0xff]  }
 0x630   :  { %10437 = vmatmul.mubr.bf16.vlgmr.msra.gmra.mrb[128].mxu0 %v26788_v29 }
 0x631   :  { %23433 = vmatpush3.bf16.msra.mxu0 %v25633_v22  ;;  %10921 = vmatprep.mubr.bf16.mxu0 %v26786_v27  ;;  %v25652_v22 = vld [vmem:[%s31723_s4 + $0x19a0] sm:$0xff]  }
 0x632   :  { %23434 = vmatprep.subr.bf16.mxu0 %v25634_v52  ;;  %v25653_v52 = vld [vmem:[%s31723_s4 + $0x1960] sm:$0xff]  }
 0x635   :  { %23435 = vmatpush3.bf16.msra.mxu0 %v25635_v54  ;;  %v25654_v54 = vld [vmem:[%s31723_s4 + $0x19a8] sm:$0xff]  }
 0x636   :  { %23436 = vmatprep.subr.bf16.mxu0 %v25636_v56  ;;  %v25655_v56 = vld [vmem:[%s31723_s4 + $0x1968] sm:$0xff]  }
 0x639   :  { %23437 = vmatpush3.bf16.msra.mxu0 %v25637_v58  ;;  %v25656_v58 = vld [vmem:[%s31723_s4 + $0x19b0] sm:$0xff]  }
 0x63a   :  { %23438 = vmatprep.subr.bf16.mxu0 %v25638_v59  ;;  %v25657_v59 = vld [vmem:[%s31723_s4 + $0x1970] sm:$0xff]  }
 0x63b   :  { %v23238_v61 = vpop.f32.mrb[104].mxu0 }
 0x63c   :  { %v23239_v4 = vpop.f32.mrb[105].mxu0 }
 0x63d   :  { %v28620_v6 = vadd.f32 %v23239_v4, %v23238_v61  ;;  %v23241_v7 = vpop.f32.mrb[106].mxu0  ;;  %23439 = vmatpush3.bf16.msra.mxu0 %v25639_v23  ;;  %v25658_v23 = vld [vmem:[%s31723_s4 + $0x19b8] sm:$0xff]  }
 0x63e   :  { %v23242_v17 = vpop.f32.mrb[107].mxu0  ;;  %23440 = vmatprep.subr.bf16.mxu0 %v25640_v60 }
 0x63f   :  { %v28628_v37 = vadd.f32 %v23242_v17, %v23241_v7  ;;  %v25659_v7 = vld [vmem:[%s31723_s4 + $0x1978] sm:$0xff]   ;;  %v25660_v17 = vld [vmem:[%s31723_s4 + $0x19c0] sm:$0xff]  }
 0x641   :  { %23441 = vmatpush3.bf16.msra.mxu0 %v25641_v10 }
 0x642   :  { %23442 = vmatprep.subr.bf16.mxu0 %v25642_v32  ;;  %v25661_v32 = vld [vmem:[%s31723_s4 + $0x1980] sm:$0xff]  }
 0x645   :  { %23443 = vmatpush3.bf16.msra.mxu0 %v25643_v41  ;;  %v25662_v41 = vld [vmem:[%s31723_s4 + $0x19c8] sm:$0xff]  }
 0x646   :  { %23444 = vmatprep.subr.bf16.mxu0 %v25644_v43  ;;  %v25663_v43 = vld [vmem:[%s31723_s4 + $0x1988] sm:$0xff]  }
 0x649   :  { %23445 = vmatpush3.bf16.msra.mxu0 %v25645_v46  ;;  %v25664_v46 = vld [vmem:[%s31723_s4 + $0x1a50] sm:$0xff]  }
 0x64a   :  { %23446 = vmatprep.subr.bf16.mxu0 %v25646_v34  ;;  %v25665_v34 = vld [vmem:[%s31723_s4 + $0x1a58] sm:$0xff]  }
 0x64d   :  { %23447 = vmatpush3.bf16.msra.mxu0 %v25647_v48  ;;  %v25666_v48 = vld [vmem:[%s31723_s4 + $0x1a60] sm:$0xff]  }
 0x64e   :  { %23457 = vmatprep.subr.bf16.mxu0 %v25648_v11  ;;  %v25667_v11 = vld [vmem:[%s31723_s4 + $0x1a68] sm:$0xff]  }
 0x650   :  { %10922 = vmatmul.mubr.bf16.vlgmr.msra.gmra.mrb[132].mxu0 %v26784_v26 }
 0x651   :  { %23458 = vmatpush3.bf16.msra.mxu0 %v25649_v9  ;;  %11406 = vmatprep.mubr.bf16.mxu0 %v26782_v21  ;;  %v25668_v9 = vld [vmem:[%s31723_s4 + $0x1a70] sm:$0xff]  }
 0x652   :  { %23459 = vmatprep.subr.bf16.mxu0 %v25650_v20 }
 0x655   :  { %23460 = vmatpush3.bf16.msra.mxu0 %v25651_v16 }
 0x656   :  { %23461 = vmatprep.subr.bf16.mxu0 %v25652_v22 }
 0x659   :  { %23462 = vmatpush3.bf16.msra.mxu0 %v25653_v52 }
 0x65a   :  { %23463 = vmatprep.subr.bf16.mxu0 %v25654_v54  ;;  %v25669_v54 = vld [vmem:[%s31723_s4 + $0x1a78] sm:$0xff]  }
 0x65d   :  { %23464 = vmatpush3.bf16.msra.mxu0 %v25655_v56 }
 0x65e   :  { %23465 = vmatprep.subr.bf16.mxu0 %v25656_v58 }
 0x65f   :  { %v28680_v60 = vpop.f32.mrb[108].mxu0 }
 0x660   :  { %v8862_v61 = vpop.f32.mrb[109].mxu0 }
 0x661   :  { %v28682_v4 = vpop.f32.mrb[110].mxu0  ;;  %23466 = vmatpush3.bf16.msra.mxu0 %v25657_v59  ;;  %v25670_v59 = vld [vmem:[%s31723_s4 + $0x1a80] sm:$0xff]   ;;  %v25672_v61 = vld [vmem:[%s31723_s4 + $0x1a90] ss:$0 sps:$4 sm:$0xff]  }
 0x662   :  { %v8865_v10 = vpop.f32.mrb[111].mxu0  ;;  %23467 = vmatprep.subr.bf16.mxu0 %v25658_v23  ;;  %v25671_v23 = vld [vmem:[%s31723_s4 + $0x1a88] sm:$0xff]  }
 0x663   :  { %v25673_v10 = vld [vmem:[%s31723_s4 + $0x1ad4] sm:$0xff]  }
 0x665   :  { %23468 = vmatpush3.bf16.msra.mxu0 %v25659_v7  ;;  %v11372_v7 = vsel %vm858_vm4, %v25672_v61, 0  ;;  %v25681_v61 = vld [vmem:[%s31723_s4 + $0x1af4] sm:$0xff]  }
 0x666   :  { %23469 = vmatprep.subr.bf16.mxu0 %v25660_v17  ;;  %v25674_v17 = vld [vmem:[%s31723_s4 + $0x1a94] sm:$0xff]  }
 0x669   :  { %23470 = vmatpush3.bf16.msra.mxu0 %v25661_v32  ;;  %v25675_v32 = vld [vmem:[%s31723_s4 + $0x1adc] sm:$0xff]  }
 0x66a   :  { %23471 = vmatprep.subr.bf16.mxu0 %v25662_v41  ;;  %v25676_v41 = vld [vmem:[%s31723_s4 + $0x1a9c] sm:$0xff]  }
 0x66d   :  { %23472 = vmatpush3.bf16.msra.mxu0 %v25663_v43  ;;  %v25677_v43 = vld [vmem:[%s31723_s4 + $0x1ae4] sm:$0xff]  }
 0x66e   :  { %11456 = vmatprep.subr.bf16.mxu0 %v31735_v1 }
 0x670   :  { %11407 = vmatmul.mubr.bf16.vlgmr.msra.gmra.mrb[136].mxu0 %v26780_v19 }
 0x671   :  { %11457 = vmatpush1.bf16.msra.mxu0 %v25664_v46  ;;  %21250 = vmatprep.mubr.msk.bf16.mxu0 %vm395_vm3, %v26797_v33 }
 0x672   :  { %11458 = vmatprep.subr.bf16.mxu0 %v31735_v1 }
 0x675   :  { %11459 = vmatpush1.bf16.msra.mxu0 %v25665_v34 }
 0x676   :  { %11460 = vmatprep.subr.bf16.mxu0 %v31735_v1 }
 0x679   :  { %11461 = vmatpush1.bf16.msra.mxu0 %v25666_v48  ;;  %v25678_v48 = vld [vmem:[%s31723_s4 + $0x1aa4] sm:$0xff]  }
 0x67a   :  { %11462 = vmatprep.subr.bf16.mxu0 %v31735_v1 }
 0x67d   :  { %11463 = vmatpush1.bf16.msra.mxu0 %v25667_v11 }
 0x67e   :  { %11464 = vmatprep.subr.bf16.mxu0 %v31735_v1 }
 0x67f   :  { %v23307_v20 = vpop.f32.mrb[112].mxu0 }
 0x680   :  { %v23308_v16 = vpop.f32.mrb[113].mxu0 }
 0x681   :  { %v28722_v22 = vadd.f32 %v23308_v16, %v23307_v20  ;;  %v23310_v52 = vpop.f32.mrb[114].mxu0  ;;  %11465 = vmatpush1.bf16.msra.mxu0 %v25668_v9  ;;  %v25679_v20 = vld [vmem:[%s31723_s4 + $0x1aec] sm:$0xff]  }
 0x682   :  { %v23311_v56 = vpop.f32.mrb[115].mxu0  ;;  %11466 = vmatprep.subr.bf16.mxu0 %v31735_v1 }
 0x683   :  { %v28728_v58 = vadd.f32 %v23311_v56, %v23310_v52  ;;  %v25680_v56 = vld [vmem:[%s31723_s4 + $0x1aac] sm:$0xff]  }
 0x685   :  { %11467 = vmatpush1.bf16.msra.mxu0 %v25669_v54 }
 0x686   :  { %11468 = vmatprep.subr.bf16.mxu0 %v31735_v1 }
 0x689   :  { %11469 = vmatpush1.bf16.msra.mxu0 %v25670_v59 }
 0x68a   :  { %11470 = vmatprep.subr.bf16.mxu0 %v31735_v1 }
 0x68d   :  { %11471 = vmatpush1.bf16.msra.mxu0 %v25671_v23 }
 0x68e   :  { %11472 = vmatprep.subr.bf16.mxu0 %v31735_v1 }
 0x691   :  { %11473 = vmatpush1.bf16.msra.mxu0 %v11372_v7 }
 0x692   :  { %23504 = vmatprep.subr.bf16.mxu0 %v25673_v10 }
 0x694   :  { %11489 = vmatmul.mubr.bf16.vlgmr.msra.gmra.mrb[140].mxu0 %v26788_v29 }
 0x695   :  { %23505 = vmatpush3.bf16.msra.mxu0 %v25674_v17  ;;  %11932 = vmatprep.mubr.bf16.mxu0 %v26782_v21 }
 0x696   :  { %23506 = vmatprep.subr.bf16.mxu0 %v25675_v32 }
 0x698   :  { %v22743_v46 = vpop.f32.mrb[32].mxu1 }
 0x699   :  { %23507 = vmatpush3.bf16.msra.mxu0 %v25676_v41  ;;  %v22744_v34 = vpop.f32.mrb[33].mxu1  ;;  %v25682_v41 = vld [vmem:[%s31723_s4 + $0x1ab4] sm:$0xff]  }
 0x69a   :  { %v22745_v11 = vadd.f32 %v22744_v34, %v22743_v46  ;;  %v22746_v9 = vpop.f32.mrb[34].mxu1  ;;  %23508 = vmatprep.subr.bf16.mxu0 %v25677_v43  ;;  %v25684_v43 = vld [vmem:[%s31723_s4 + $0x1afc] sm:$0xff]   ;;  %v25685_v34 = vld [vmem:[%s31724_s5 + $0x48] sm:$0xff]  }
 0x69b   :  { %v22747_v16 = vpop.f32.mrb[35].mxu1 }
 0x69c   :  { %v3034_v52 = vadd.f32 %v22745_v11, %v27592_v50  ;;  %v22748_v54 = vadd.f32 %v22747_v16, %v22746_v9  ;;  %v25688_v11 = vld [vmem:[%s31723_s4 + $0x654] sm:$0xff]   ;;  %v25689_v9 = vld [vmem:[%s31723_s4 + $0x1b04] sm:$0xff]  }
 0x69d   :  { %23509 = vmatpush3.bf16.msra.mxu0 %v25678_v48  ;;  %v25687_v48 = vld [vmem:[%s31723_s4 + $0x1abc] sm:$0xff]   ;;  %v25691_v16 = vld [vmem:[%s31723_s4 + $0x1ac4] sm:$0xff]  }
 0x69e   :  { %v3075_v59 = vadd.f32 %v27652_v30, %v3034_v52  ;;  %v3037_v23 = vadd.f32 %v22748_v54, %v27600_v15  ;;  %23510 = vmatprep.subr.bf16.mxu0 %v25679_v20  ;;  %v25690_v20 = vld [vmem:[%s31723_s4 + $0x69c] sm:$0xff]   ;;  %v25693_v54 = vld [vmem:[%s31723_s4 + $0x1b0c] sm:$0xff]  }
 0x69f   :  { %v23332_v7 = vpop.f32.mrb[116].mxu0  ;;  %v25692_v52 = vld [vmem:[%s31723_s4 + $0x65c] sm:$0xff]  }
 0x6a0   :  { %v3078_v10 = vadd.f32 %v27654_v36, %v3037_v23  ;;  %v23333_v17 = vpop.f32.mrb[117].mxu0  ;;  %v25686_v36 = vld [vmem:[%s31723_s4 + $0x694] sm:$0xff]   ;;  %v25696_v23 = vld [vmem:[%s31723_s4 + $0x664] sm:$0xff]  }
 0x6a1   :  { %v28776_v50 = vadd.f32 %v23333_v17, %v23332_v7  ;;  %v23335_v32 = vpop.f32.mrb[118].mxu0  ;;  %23511 = vmatpush3.bf16.msra.mxu0 %v25680_v56  ;;  %v25694_v56 = vld [vmem:[%s31723_s4 + $0x6a4] sm:$0xff]   ;;  %v25698_v7 = vld [vmem:[%s31723_s4 + $0x1b94] sm:$0xff]  }
 0x6a2   :  { %v23336_v30 = vpop.f32.mrb[119].mxu0  ;;  %23512 = vmatprep.subr.bf16.mxu0 %v25681_v61  ;;  %v3086_v15 = vpack.c.bf16 %v3078_v10, %v3075_v59  ;;  %v25695_v59 = vld [vmem:[%s31723_s4 + $0x1acc] sm:$0xff]   ;;  %v25700_v17 = vld [vmem:[%s31723_s4 + $0x6b4] sm:$0xff]  }
 0x6a3   :  { %v28787_v46 = vadd.f32 %v23336_v30, %v23335_v32  ;;  %v25697_v61 = vld [vmem:[%s31723_s4 + $0x6ac] sm:$0xff]   ;;  %v25701_v32 = vld [vmem:[%s31723_s4 + $0x1b9c] sm:$0xff]  }
 0x6a4   :  { %24043 = vmatprep.subr.bf16.mxu1 %v3086_v15  ;;  %v25699_v10 = vld [vmem:[%s31723_s4 + $0x66c] sm:$0xff]   ;;  %v25703_v30 = vld [vmem:[%s31723_s4 + $0x6bc] sm:$0xff]  }
 0x6a5   :  { %23513 = vmatpush3.bf16.msra.mxu0 %v25682_v41  ;;  %24044 = vmatpush3.bf16.msra.mxu1 %v3086_v15  ;;  %v25702_v41 = vld [vmem:[%s31723_s4 + $0x674] sm:$0xff]   ;;  %v25704_v15 = vld [vmem:[%s31723_s4 + $0x1ba4] sm:$0xff]  }
 0x6a6   :  { %23514 = vmatprep.subr.bf16.mxu0 %v25684_v43  ;;  %22752 = vmatprep.subr.bf16.mxu1 %v25686_v36  ;;  %v25705_v43 = vld [vmem:[%s31723_s4 + $0x67c] sm:$0xff]   ;;  %v25706_v36 = vld [vmem:[%s31723_s4 + $0x6c4] sm:$0xff]  }
 0x6a8   :  { %24046 = vmatmul.mubr.msk.bf16.vlgmr.msra.gmra.mrb[16].mxu1 %vm1457_vm5, %v25685_v34  ;;  %v25707_v34 = vld [vmem:[%s31723_s4 + $0x1bac] sm:$0xff]  }
 0x6a9   :  { %23515 = vmatpush3.bf16.msra.mxu0 %v25687_v48  ;;  %22753 = vmatpush3.bf16.msra.mxu1 %v25688_v11  ;;  %v25708_v48 = vld [vmem:[%s31723_s4 + $0x684] sm:$0xff]  }
 0x6aa   :  { %3516 = vmatprep.mubr.bf16.mxu1 %v26782_v21  ;;  %23516 = vmatprep.subr.bf16.mxu0 %v25689_v9  ;;  %v25709_v9 = vld [vmem:[%s31723_s4 + $0x6cc] sm:$0xff]  }
 0x6ab   :  { %22754 = vmatprep.subr.bf16.mxu1 %v25690_v20 }
 0x6ad   :  { %23517 = vmatpush3.bf16.msra.mxu0 %v25691_v16  ;;  %22755 = vmatpush3.bf16.msra.mxu1 %v25692_v52 }
 0x6ae   :  { %23518 = vmatprep.subr.bf16.mxu0 %v25693_v54  ;;  %22756 = vmatprep.subr.bf16.mxu1 %v25694_v56  ;;  %v25710_v54 = vld [vmem:[%s31723_s4 + $0x1bb4] sm:$0xff]  }
 0x6b1   :  { %23519 = vmatpush3.bf16.msra.mxu0 %v25695_v59  ;;  %22757 = vmatpush3.bf16.msra.mxu1 %v25696_v23  ;;  %v25711_v59 = vld [vmem:[%s31723_s4 + $0x68c] sm:$0xff]  }
 0x6b2   :  { %11982 = vmatprep.subr.bf16.mxu0 %v31735_v1  ;;  %22758 = vmatprep.subr.bf16.mxu1 %v25697_v61 }
 0x6b4   :  { %11933 = vmatmul.mubr.bf16.vlgmr.msra.gmra.mrb[144].mxu0 %v26780_v19 }
 0x6b5   :  { %11983 = vmatpush1.bf16.msra.mxu0 %v25698_v7  ;;  %21381 = vmatprep.mubr.msk.bf16.mxu0 %vm395_vm3, %v26797_v33  ;;  %v25712_v7 = vld [vmem:[%s31723_s4 + $0x1bbc] sm:$0xff]  }
 0x6b6   :  { %22759 = vmatpush3.bf16.msra.mxu1 %v25699_v10  ;;  %11984 = vmatprep.subr.bf16.mxu0 %v31735_v1 }
 0x6b7   :  { %22760 = vmatprep.subr.bf16.mxu1 %v25700_v17  ;;  %v25713_v17 = vld [vmem:[%s31723_s4 + $0x754] sm:$0xff]  }
 0x6b9   :  { %11985 = vmatpush1.bf16.msra.mxu0 %v25701_v32  ;;  %v25716_v32 = vld [vmem:[%s31723_s4 + $0x1bcc] sm:$0xff]  }
 0x6ba   :  { %22761 = vmatpush3.bf16.msra.mxu1 %v25702_v41  ;;  %11986 = vmatprep.subr.bf16.mxu0 %v31735_v1  ;;  %v25717_v41 = vld [vmem:[%s31723_s4 + $0x764] sm:$0xff]  }
 0x6bb   :  { %22762 = vmatprep.subr.bf16.mxu1 %v25703_v30  ;;  %v25718_v30 = vld [vmem:[%s31723_s4 + $0x1bd4] ss:$0 sps:$4 sm:$0xff]  }
 0x6bd   :  { %11987 = vmatpush1.bf16.msra.mxu0 %v25704_v15  ;;  %v11898_v15 = vsel %vm858_vm4, %v25718_v30, 0 }
 0x6be   :  { %22763 = vmatpush3.bf16.msra.mxu1 %v25705_v43  ;;  %11988 = vmatprep.subr.bf16.mxu0 %v31735_v1  ;;  %v25719_v43 = vld [vmem:[%s31723_s4 + $0x76c] sm:$0xff]  }
 0x6bf   :  { %v23354_v11 = vpop.f32.mrb[120].mxu0  ;;  %22764 = vmatprep.subr.bf16.mxu1 %v25706_v36  ;;  %v25720_v36 = vld [vmem:[%s31723_s4 + $0x1c98] sm:$0xff]  }
 0x6c0   :  { %v23355_v20 = vpop.f32.mrb[121].mxu0 }
 0x6c1   :  { %v23356_v16 = vadd.f32 %v23355_v20, %v23354_v11  ;;  %v23357_v52 = vpop.f32.mrb[122].mxu0  ;;  %11989 = vmatpush1.bf16.msra.mxu0 %v25707_v34  ;;  %v25721_v34 = vld [vmem:[%s31723_s4 + $0x1c58] sm:$0xff]   ;;  %v25723_v11 = vld [vmem:[%s31723_s4 + $0x1ca0] sm:$0xff]  }
 0x6c2   :  { %22765 = vmatpush3.bf16.msra.mxu1 %v25708_v48  ;;  %v23358_v56 = vpop.f32.mrb[123].mxu0  ;;  %11990 = vmatprep.subr.bf16.mxu0 %v31735_v1  ;;  %v25722_v48 = vld [vmem:[%s31723_s4 + $0x774] sm:$0xff]   ;;  %v25725_v20 = vld [vmem:[%s31723_s4 + $0x77c] sm:$0xff]  }
 0x6c3   :  { %v23359_v23 = vadd.f32 %v23358_v56, %v23357_v52  ;;  %22766 = vmatprep.subr.bf16.mxu1 %v25709_v9  ;;  %v28878_v61 = vadd.f32 %v23356_v16, %v28776_v50  ;;  %v25714_v50 = vld [vmem:[%s31723_s4 + $0x1bc4] sm:$0xff]   ;;  %v25729_v56 = vld [vmem:[%s31723_s4 + $0x1cb0] sm:$0xff]  }
 0x6c4   :  { %v25724_v9 = vld [vmem:[%s31723_s4 + $0x1c60] sm:$0xff]   ;;  %v25726_v16 = vld [vmem:[%s31723_s4 + $0x1ca8] sm:$0xff]  }
 0x6c5   :  { %11991 = vmatpush1.bf16.msra.mxu0 %v25710_v54  ;;  %v28884_v10 = vadd.f32 %v23359_v23, %v28787_v46  ;;  %v25715_v46 = vld [vmem:[%s31723_s4 + $0x75c] sm:$0xff]   ;;  %v25727_v52 = vld [vmem:[%s31723_s4 + $0x1c68] sm:$0xff]  }
 0x6c6   :  { %22767 = vmatpush3.bf16.msra.mxu1 %v25711_v59  ;;  %11992 = vmatprep.subr.bf16.mxu0 %v31735_v1  ;;  %v25728_v54 = vld [vmem:[%s31723_s4 + $0x784] sm:$0xff]  }
 0x6c7   :  { %3566 = vmatprep.subr.bf16.mxu1 %v31735_v1 }
 0x6c9   :  { %3517 = vmatmul.mubr.bf16.vlgmr.msra.gmra.mrb[36].mxu1 %v26780_v19  ;;  %11993 = vmatpush1.bf16.msra.mxu0 %v25712_v7 }
 0x6ca   :  { %3567 = vmatpush1.bf16.msra.mxu1 %v25713_v17  ;;  %19285 = vmatprep.mubr.msk.bf16.mxu1 %vm395_vm3, %v26797_v33 }
 0x6cb   :  { %11994 = vmatprep.subr.bf16.mxu0 %v31735_v1  ;;  %3568 = vmatprep.subr.bf16.mxu1 %v31735_v1 }
 0x6cd   :  { %11995 = vmatpush1.bf16.msra.mxu0 %v25714_v50  ;;  %v25730_v50 = vld [vmem:[%s31723_s4 + $0x1c70] sm:$0xff]  }
 0x6ce   :  { %3569 = vmatpush1.bf16.msra.mxu1 %v25715_v46  ;;  %11996 = vmatprep.subr.bf16.mxu0 %v31735_v1 }
 0x6cf   :  { %3570 = vmatprep.subr.bf16.mxu1 %v31735_v1 }
 0x6d1   :  { %11997 = vmatpush1.bf16.msra.mxu0 %v25716_v32  ;;  %v25731_v32 = vld [vmem:[%s31723_s4 + $0x78c] sm:$0xff]  }
 0x6d2   :  { %3571 = vmatpush1.bf16.msra.mxu1 %v25717_v41  ;;  %11998 = vmatprep.subr.bf16.mxu0 %v31735_v1  ;;  %v25732_v41 = vld [vmem:[%s31723_s4 + $0x1cb8] sm:$0xff]  }
 0x6d3   :  { %3572 = vmatprep.subr.bf16.mxu1 %v31735_v1 }
 0x6d5   :  { %11999 = vmatpush1.bf16.msra.mxu0 %v11898_v15  ;;  %v25734_v15 = vld [vmem:[%s31723_s4 + $0x794] ss:$0 sps:$4 sm:$0xff]  }
 0x6d6   :  { %3573 = vmatpush1.bf16.msra.mxu1 %v25719_v43  ;;  %23573 = vmatprep.subr.bf16.mxu0 %v25720_v36  ;;  %v25733_v43 = vld [vmem:[%s31723_s4 + $0x1c78] sm:$0xff]   ;;  %v25735_v36 = vld [vmem:[%s31723_s4 + $0x1cc0] sm:$0xff]  }
 0x6d7   :  { %3574 = vmatprep.subr.bf16.mxu1 %v31735_v1 }
 0x6d8   :  { %12015 = vmatmul.mubr.bf16.vlgmr.msra.gmra.mrb[148].mxu0 %v26788_v29 }
 0x6d9   :  { %23574 = vmatpush3.bf16.msra.mxu0 %v25721_v34  ;;  %12499 = vmatprep.mubr.bf16.mxu0 %v26786_v27  ;;  %v3482_v34 = vsel %vm858_vm4, %v25734_v15, 0 }
 0x6da   :  { %3575 = vmatpush1.bf16.msra.mxu1 %v25722_v48  ;;  %23575 = vmatprep.subr.bf16.mxu0 %v25723_v11  ;;  %v25736_v48 = vld [vmem:[%s31723_s4 + $0x1c80] sm:$0xff]   ;;  %v25737_v11 = vld [vmem:[%s31723_s4 + $0x1cc8] sm:$0xff]  }
 0x6db   :  { %3576 = vmatprep.subr.bf16.mxu1 %v31735_v1 }
 0x6dd   :  { %23576 = vmatpush3.bf16.msra.mxu0 %v25724_v9  ;;  %v25738_v9 = vld [vmem:[%s31723_s4 + $0x1c88] sm:$0xff]  }
 0x6de   :  { %3577 = vmatpush1.bf16.msra.mxu1 %v25725_v20  ;;  %23577 = vmatprep.subr.bf16.mxu0 %v25726_v16  ;;  %v25739_v20 = vld [vmem:[%s31723_s4 + $0x1cd0] sm:$0xff]  }
 0x6df   :  { %v23379_v59 = vpop.f32.mrb[124].mxu0  ;;  %3578 = vmatprep.subr.bf16.mxu1 %v31735_v1  ;;  %v25740_v16 = vld [vmem:[%s31723_s4 + $0x1c90] sm:$0xff]  }
 0x6e0   :  { %v23380_v23 = vpop.f32.mrb[125].mxu0 }
 0x6e1   :  { %v28954_v7 = vadd.f32 %v23380_v23, %v23379_v59  ;;  %v23382_v17 = vpop.f32.mrb[126].mxu0  ;;  %23578 = vmatpush3.bf16.msra.mxu0 %v25727_v52  ;;  %v25741_v52 = vld [vmem:[%s31723_s4 + $0x1d5c] sm:$0xff]   ;;  %v25744_v59 = vld [vmem:[%s31723_s4 + $0x1d24] sm:$0xff]   ;;  %v25745_v23 = vld [vmem:[%s31723_s4 + $0x1d6c] sm:$0xff]  }
 0x6e2   :  { %3579 = vmatpush1.bf16.msra.mxu1 %v25728_v54  ;;  %v23383_v46 = vpop.f32.mrb[127].mxu0  ;;  %23579 = vmatprep.subr.bf16.mxu0 %v25729_v56  ;;  %v25742_v54 = vld [vmem:[%s31723_s4 + $0x1d1c] sm:$0xff]   ;;  %v25743_v56 = vld [vmem:[%s31723_s4 + $0x1d64] sm:$0xff]  }
 0x6e3   :  { %v28965_v30 = vadd.f32 %v23383_v46, %v23382_v17  ;;  %3580 = vmatprep.subr.bf16.mxu1 %v31735_v1  ;;  %v25746_v17 = vld [vmem:[%s31723_s4 + $0x1d2c] sm:$0xff]   ;;  %v25748_v46 = vld [vmem:[%s31723_s4 + $0x1d34] sm:$0xff]  }
 0x6e5   :  { %23580 = vmatpush3.bf16.msra.mxu0 %v25730_v50  ;;  %v25747_v50 = vld [vmem:[%s31723_s4 + $0x1d74] sm:$0xff]  }
 0x6e6   :  { %3581 = vmatpush1.bf16.msra.mxu1 %v25731_v32  ;;  %23581 = vmatprep.subr.bf16.mxu0 %v25732_v41  ;;  %v25749_v32 = vld [vmem:[%s31723_s4 + $0x1d7c] sm:$0xff]  }
 0x6e7   :  { %3582 = vmatprep.subr.bf16.mxu1 %v31735_v1 }
 0x6e9   :  { %23582 = vmatpush3.bf16.msra.mxu0 %v25733_v43 }
 0x6ea   :  { %3583 = vmatpush1.bf16.msra.mxu1 %v3482_v34  ;;  %23583 = vmatprep.subr.bf16.mxu0 %v25735_v36  ;;  %v25750_v36 = vld [vmem:[%s31723_s4 + $0x1d3c] sm:$0xff]  }
 0x6ed   :  { %3599 = vmatmul.mubr.bf16.vlgmr.msra.gmra.mrb[40].mxu1 %v26788_v29  ;;  %23584 = vmatpush3.bf16.msra.mxu0 %v25736_v48  ;;  %v25751_v48 = vld [vmem:[%s31723_s4 + $0x1d84] sm:$0xff]  }
 0x6ee   :  { %23585 = vmatprep.subr.bf16.mxu0 %v25737_v11  ;;  %v25752_v11 = vld [vmem:[%s31723_s4 + $0x1d44] sm:$0xff]  }
 0x6f1   :  { %23586 = vmatpush3.bf16.msra.mxu0 %v25738_v9  ;;  %v25753_v9 = vld [vmem:[%s31723_s4 + $0x1d8c] sm:$0xff]  }
 0x6f2   :  { %23587 = vmatprep.subr.bf16.mxu0 %v25739_v20  ;;  %v25754_v20 = vld [vmem:[%s31723_s4 + $0x1d4c] sm:$0xff]  }
 0x6f5   :  { %23588 = vmatpush3.bf16.msra.mxu0 %v25740_v16  ;;  %v25755_v16 = vld [vmem:[%s31723_s4 + $0x1d94] sm:$0xff]  }
 0x6f6   :  { %23598 = vmatprep.subr.bf16.mxu0 %v25741_v52  ;;  %v25756_v52 = vld [vmem:[%s31723_s4 + $0x1d54] sm:$0xff]  }
 0x6f8   :  { %12500 = vmatmul.mubr.bf16.vlgmr.msra.gmra.mrb[152].mxu0 %v26784_v26 }
 0x6f9   :  { %23599 = vmatpush3.bf16.msra.mxu0 %v25742_v54  ;;  %12984 = vmatprep.mubr.bf16.mxu0 %v26782_v21  ;;  %v25757_v54 = vld [vmem:[%s31723_s4 + $0x1e1c] sm:$0xff]  }
 0x6fa   :  { %23600 = vmatprep.subr.bf16.mxu0 %v25743_v56  ;;  %v25758_v56 = vld [vmem:[%s31723_s4 + $0x1e24] sm:$0xff]  }
 0x6fd   :  { %23601 = vmatpush3.bf16.msra.mxu0 %v25744_v59  ;;  %v25759_v59 = vld [vmem:[%s31723_s4 + $0x1e2c] sm:$0xff]  }
 0x6fe   :  { %23602 = vmatprep.subr.bf16.mxu0 %v25745_v23  ;;  %v25760_v23 = vld [vmem:[%s31723_s4 + $0x1e34] sm:$0xff]  }
 0x701   :  { %23603 = vmatpush3.bf16.msra.mxu0 %v25746_v17 }
 0x702   :  { %23604 = vmatprep.subr.bf16.mxu0 %v25747_v50 }
 0x703   :  { %v29024_v41 = vpop.f32.mrb[128].mxu0 }
 0x704   :  { %v10440_v15 = vpop.f32.mrb[129].mxu0 }
 0x705   :  { %v29026_v43 = vpop.f32.mrb[130].mxu0  ;;  %23605 = vmatpush3.bf16.msra.mxu0 %v25748_v46  ;;  %v25761_v15 = vld [vmem:[%s31723_s4 + $0x1e3c] sm:$0xff]  }
 0x706   :  { %v10443_v34 = vpop.f32.mrb[131].mxu0  ;;  %23606 = vmatprep.subr.bf16.mxu0 %v25749_v32 }
 0x709   :  { %23607 = vmatpush3.bf16.msra.mxu0 %v25750_v36 }
 0x70a   :  { %23608 = vmatprep.subr.bf16.mxu0 %v25751_v48  ;;  %v25762_v48 = vld [vmem:[%s31723_s4 + $0x1e44] sm:$0xff]  }
 0x70d   :  { %23609 = vmatpush3.bf16.msra.mxu0 %v25752_v11  ;;  %v25763_v11 = vld [vmem:[%s31723_s4 + $0x1e4c] sm:$0xff]  }
 0x70e   :  { %23610 = vmatprep.subr.bf16.mxu0 %v25753_v9  ;;  %v25764_v9 = vld [vmem:[%s31723_s4 + $0x1e54] sm:$0xff]  }
 0x711   :  { %23611 = vmatpush3.bf16.msra.mxu0 %v25754_v20  ;;  %v25765_v20 = vld [vmem:[%s31723_s4 + $0x1e5c] ss:$0 sps:$4 sm:$0xff]  }
 0x712   :  { %23612 = vmatprep.subr.bf16.mxu0 %v25755_v16  ;;  %v12950_v16 = vsel %vm858_vm4, %v25765_v20, 0  ;;  %v25774_v20 = vld [vmem:[%s31723_s4 + $0x1f40] sm:$0xff]  }
 0x715   :  { %23613 = vmatpush3.bf16.msra.mxu0 %v25756_v52  ;;  %v25766_v52 = vld [vmem:[%s31723_s4 + $0x1f20] sm:$0xff]  }
 0x716   :  { %13034 = vmatprep.subr.bf16.mxu0 %v31735_v1 }
 0x718   :  { %12985 = vmatmul.mubr.bf16.vlgmr.msra.gmra.mrb[156].mxu0 %v26780_v19 }
 0x719   :  { %13035 = vmatpush1.bf16.msra.mxu0 %v25757_v54  ;;  %21643 = vmatprep.mubr.msk.bf16.mxu0 %vm395_vm3, %v26797_v33  ;;  %v25767_v54 = vld [vmem:[%s31723_s4 + $0x1ee0] sm:$0xff]  }
 0x71a   :  { %13036 = vmatprep.subr.bf16.mxu0 %v31735_v1 }
 0x71d   :  { %13037 = vmatpush1.bf16.msra.mxu0 %v25758_v56  ;;  %v25768_v56 = vld [vmem:[%s31723_s4 + $0x1f28] sm:$0xff]  }
 0x71e   :  { %13038 = vmatprep.subr.bf16.mxu0 %v31735_v1 }
 0x721   :  { %13039 = vmatpush1.bf16.msra.mxu0 %v25759_v59  ;;  %v25769_v59 = vld [vmem:[%s31723_s4 + $0x1ee8] sm:$0xff]  }
 0x722   :  { %13040 = vmatprep.subr.bf16.mxu0 %v31735_v1 }
 0x723   :  { %v23448_v17 = vpop.f32.mrb[132].mxu0 }
 0x724   :  { %v23449_v50 = vpop.f32.mrb[133].mxu0 }
 0x725   :  { %v29068_v46 = vadd.f32 %v23449_v50, %v23448_v17  ;;  %v23451_v32 = vpop.f32.mrb[134].mxu0  ;;  %13041 = vmatpush1.bf16.msra.mxu0 %v25760_v23  ;;  %v25770_v23 = vld [vmem:[%s31723_s4 + $0x1f30] sm:$0xff]   ;;  %v25772_v50 = vld [vmem:[%s31723_s4 + $0x1f38] sm:$0xff]  }
 0x726   :  { %v23452_v36 = vpop.f32.mrb[135].mxu0  ;;  %13042 = vmatprep.subr.bf16.mxu0 %v31735_v1  ;;  %v25771_v17 = vld [vmem:[%s31723_s4 + $0x1ef0] sm:$0xff]  }
 0x727   :  { %31737 = vst [vmem:[#allocation2_spill] sm:$0xff] %v29068_v46  ;;  %v29074_v34 = vadd.f32 %v23452_v36, %v23451_v32 }
 0x729   :  { %31738 = vst [vmem:[#allocation3_spill] sm:$0xff] %v29074_v34  ;;  %13043 = vmatpush1.bf16.msra.mxu0 %v25761_v15 }
 0x72a   :  { %13044 = vmatprep.subr.bf16.mxu0 %v31735_v1 }
 0x72d   :  { %13045 = vmatpush1.bf16.msra.mxu0 %v25762_v48 }
 0x72e   :  { %13046 = vmatprep.subr.bf16.mxu0 %v31735_v1 }
 0x731   :  { %13047 = vmatpush1.bf16.msra.mxu0 %v25763_v11  ;;  %v25773_v11 = vld [vmem:[%s31723_s4 + $0x1ef8] sm:$0xff]  }
 0x732   :  { %13048 = vmatprep.subr.bf16.mxu0 %v31735_v1 }
 0x735   :  { %13049 = vmatpush1.bf16.msra.mxu0 %v25764_v9 }
 0x736   :  { %13050 = vmatprep.subr.bf16.mxu0 %v31735_v1 }
 0x739   :  { %13051 = vmatpush1.bf16.msra.mxu0 %v12950_v16 }
 0x73a   :  { %23667 = vmatprep.subr.bf16.mxu0 %v25766_v52  ;;  %v25782_v52 = vld [vmem:[%s31724_s5 + $0x50] sm:$0xff]  }
 0x73b   :  { %24051 = vmatprep.mubr.msk.bf16.mxu1 %vm1457_vm5, %v25782_v52 }
 0x73c   :  { %13067 = vmatmul.mubr.bf16.vlgmr.msra.gmra.mrb[160].mxu0 %v26788_v29 }
 0x73d   :  { %23668 = vmatpush3.bf16.msra.mxu0 %v25767_v54  ;;  %13551 = vmatprep.mubr.bf16.mxu0 %v26786_v27  ;;  %v25775_v54 = vld [vmem:[%s31723_s4 + $0x1f00] sm:$0xff]  }
 0x73e   :  { %23669 = vmatprep.subr.bf16.mxu0 %v25768_v56  ;;  %v25776_v56 = vld [vmem:[%s31723_s4 + $0x1f48] sm:$0xff]  }
 0x741   :  { %23670 = vmatpush3.bf16.msra.mxu0 %v25769_v59  ;;  %v25777_v59 = vld [vmem:[%s31723_s4 + $0x1f08] sm:$0xff]  }
 0x742   :  { %23671 = vmatprep.subr.bf16.mxu0 %v25770_v23  ;;  %v25778_v23 = vld [vmem:[%s31723_s4 + $0x1f50] sm:$0xff]  }
 0x743   :  { %v23473_v32 = vpop.f32.mrb[136].mxu0 }
 0x744   :  { %v23474_v15 = vpop.f32.mrb[137].mxu0 }
 0x745   :  { %v29116_v36 = vadd.f32 %v23474_v15, %v23473_v32  ;;  %v23476_v48 = vpop.f32.mrb[138].mxu0  ;;  %23672 = vmatpush3.bf16.msra.mxu0 %v25771_v17  ;;  %v25779_v17 = vld [vmem:[%s31723_s4 + $0x1f10] sm:$0xff]   ;;  %v25781_v32 = vld [vmem:[%s31723_s4 + $0x1f18] sm:$0xff]  }
 0x746   :  { %v23477_v9 = vpop.f32.mrb[139].mxu0  ;;  %23673 = vmatprep.subr.bf16.mxu0 %v25772_v50  ;;  %v25780_v50 = vld [vmem:[%s31723_s4 + $0x1f58] sm:$0xff]  }
 0x747   :  { %31739 = vst [vmem:[#allocation4_spill] sm:$0xff] %v29116_v36  ;;  %v29124_v16 = vadd.f32 %v23477_v9, %v23476_v48 }
 0x749   :  { %31740 = vst [vmem:[#allocation5_spill] sm:$0xff] %v29124_v16  ;;  %23674 = vmatpush3.bf16.msra.mxu0 %v25773_v11 }
 0x74a   :  { %23675 = vmatprep.subr.bf16.mxu0 %v25774_v20 }
 0x74d   :  { %23676 = vmatpush3.bf16.msra.mxu0 %v25775_v54 }
 0x74e   :  { %23677 = vmatprep.subr.bf16.mxu0 %v25776_v56 }
 0x751   :  { %23678 = vmatpush3.bf16.msra.mxu0 %v25777_v59 }
 0x752   :  { %23679 = vmatprep.subr.bf16.mxu0 %v25778_v23 }
 0x755   :  { %23680 = vmatpush3.bf16.msra.mxu0 %v25779_v17 }
 0x756   :  { %23681 = vmatprep.subr.bf16.mxu0 %v25780_v50 }
 0x759   :  { %23682 = vmatpush3.bf16.msra.mxu0 %v25781_v32 }
 0x75c   :  { %13552 = vmatmul.mubr.bf16.vlgmr.msra.gmra.mrb[164].mxu0 %v26784_v26 }
 0x767   :  { %v29152_v15 = vpop.f32.mrb[140].mxu0 }
 0x768   :  { %31741 = vst [vmem:[#allocation6_spill] sm:$0xff] %v29152_v15  ;;  %v11492_v48 = vpop.f32.mrb[141].mxu0 }
 0x769   :  { %v29154_v11 = vpop.f32.mrb[142].mxu0 }
 0x76a   :  { %31742 = vst [vmem:[#allocation7_spill] sm:$0xff] %v29154_v11  ;;  %v11495_v9 = vpop.f32.mrb[143].mxu0 }
 0x787   :  { %v23520_v20 = vpop.f32.mrb[144].mxu0 }
 0x788   :  { %v23521_v52 = vpop.f32.mrb[145].mxu0 }
 0x789   :  { %v29156_v54 = vadd.f32 %v23521_v52, %v23520_v20  ;;  %v23523_v56 = vpop.f32.mrb[146].mxu0 }
 0x78a   :  { %v23524_v59 = vpop.f32.mrb[147].mxu0 }
 0x78b   :  { %31743 = vst [vmem:[#allocation8_spill] sm:$0xff] %v29156_v54  ;;  %v29158_v23 = vadd.f32 %v23524_v59, %v23523_v56 }
 0x78d   :  { %31744 = vst [vmem:[#allocation9_spill] sm:$0xff] %v29158_v23 }
 0x79c   :  { %v22768_v17 = vpop.f32.mrb[36].mxu1 }
 0x79d   :  { %v22769_v1 = vpop.f32.mrb[37].mxu1 }
 0x79e   :  { %v22770_v50 = vadd.f32 %v22769_v1, %v22768_v17  ;;  %v22771_v32 = vpop.f32.mrb[38].mxu1 }
 0x79f   :  { %v22772_v16 = vpop.f32.mrb[39].mxu1 }
 0x7a0   :  { %v22773_v36 = vadd.f32 %v22772_v16, %v22771_v32  ;;  %v3560_v15 = vadd.f32 %v27710_v42, %v22770_v50  ;;  %v25783_v42 = vld [vmem:[%s31724_s5 + $0x58] sm:$0xff]   ;;  %v25786_v32 = vld [vmem:[%s31723_s4 + $0x8a8] sm:$0xff]  }
 0x7a2   :  { %v3563_v48 = vadd.f32 %v27718_v47, %v22773_v36  ;;  %v25784_v47 = vld [vmem:[%s31723_s4 + $0x898] sm:$0xff]   ;;  %v31745_v36 = vmov 0  }
 0x7ab   :  { %v29162_v11 = vpop.f32.mrb[148].mxu0 }
 0x7ac   :  { %v12018_v9 = vpop.f32.mrb[149].mxu0 }
 0x7ad   :  { %v29164_v34 = vpop.f32.mrb[150].mxu0  ;;  %v25788_v9 = vld [vmem:[%s31723_s4 + $0x8b8] sm:$0xff]  }
 0x7ae   :  { %v12021_v20 = vpop.f32.mrb[151].mxu0 }
 0x7af   :  { %v25789_v20 = vld [vmem:[%s31723_s4 + $0x8c0] sm:$0xff]  }
 0x7c0   :  { %v3600_v52 = vpop.f32.mrb[40].mxu1 }
 0x7c1   :  { %v3601_v54 = vadd.f32 %v3600_v52, %v3560_v15  ;;  %v3602_v56 = vpop.f32.mrb[41].mxu1  ;;  %v25785_v15 = vld [vmem:[%s31723_s4 + $0x8a0] sm:$0xff]   ;;  %v25790_v52 = vld [vmem:[%s31723_s4 + $0x8c8] sm:$0xff]  }
 0x7c2   :  { %v3603_v59 = vpop.f32.mrb[42].mxu1  ;;  %v25791_v56 = vld [vmem:[%s31723_s4 + $0x8d0] sm:$0xff]  }
 0x7c3   :  { %v3604_v23 = vadd.f32 %v3603_v59, %v3563_v48  ;;  %v3605_v46 = vpop.f32.mrb[43].mxu1  ;;  %v25787_v48 = vld [vmem:[%s31723_s4 + $0x8b0] sm:$0xff]   ;;  %v25792_v59 = vld [vmem:[%s31723_s4 + $0x8d8] ss:$0 sps:$4 sm:$0xff]  }
 0x7c5   :  { %v3612_v1 = vpack.c.bf16 %v3604_v23, %v3601_v54 }
 0x7c7   :  { %24049 = vmatprep.subr.bf16.mxu1 %v3612_v1 }
 0x7c8   :  { %24050 = vmatpush3.bf16.msra.mxu1 %v3612_v1  ;;  %v4008_v1 = vsel %vm858_vm4, %v25792_v59, 0 }
 0x7c9   :  { %4092 = vmatprep.subr.bf16.mxu1 %v31745_v36 }
 0x7cb   :  { %24052 = vmatmul.mubr.msk.bf16.vlgmr.msra.gmra.mrb[16].mxu1 %vm1457_vm5, %v25783_v42  ;;  %v23589_v16 = vpop.f32.mrb[152].mxu0 }
 0x7cc   :  { %4093 = vmatpush1.bf16.msra.mxu1 %v25784_v47  ;;  %19416 = vmatprep.mubr.msk.bf16.mxu1 %vm395_vm3, %v26797_v33  ;;  %v23590_v46 = vpop.f32.mrb[153].mxu0 }
 0x7cd   :  { %v29179_v54 = vadd.f32 %v23590_v46, %v23589_v16  ;;  %v23592_v23 = vpop.f32.mrb[154].mxu0  ;;  %4094 = vmatprep.subr.bf16.mxu1 %v31745_v36 }
 0x7ce   :  { %v23593_v17 = vpop.f32.mrb[155].mxu0 }
 0x7cf   :  { %v29182_v50 = vadd.f32 %v23593_v17, %v23592_v23 }
 0x7d0   :  { %4095 = vmatpush1.bf16.msra.mxu1 %v25785_v15 }
 0x7d1   :  { %4096 = vmatprep.subr.bf16.mxu1 %v31745_v36 }
 0x7d4   :  { %4097 = vmatpush1.bf16.msra.mxu1 %v25786_v32 }
 0x7d5   :  { %4098 = vmatprep.subr.bf16.mxu1 %v31745_v36 }
 0x7d8   :  { %4099 = vmatpush1.bf16.msra.mxu1 %v25787_v48 }
 0x7d9   :  { %4100 = vmatprep.subr.bf16.mxu1 %v31745_v36 }
 0x7dc   :  { %4101 = vmatpush1.bf16.msra.mxu1 %v25788_v9 }
 0x7dd   :  { %4102 = vmatprep.subr.bf16.mxu1 %v31745_v36 }
 0x7e0   :  { %4103 = vmatpush1.bf16.msra.mxu1 %v25789_v20 }
 0x7e1   :  { %4104 = vmatprep.subr.bf16.mxu1 %v31745_v36 }
 0x7e4   :  { %4105 = vmatpush1.bf16.msra.mxu1 %v25790_v52 }
 0x7e5   :  { %4106 = vmatprep.subr.bf16.mxu1 %v31745_v36 }
 0x7e8   :  { %4107 = vmatpush1.bf16.msra.mxu1 %v25791_v56 }
 0x7e9   :  { %4108 = vmatprep.subr.bf16.mxu1 %v31745_v36 }
 0x7eb   :  { %v23614_v42 = vpop.f32.mrb[156].mxu0 }
 0x7ec   :  { %4109 = vmatpush1.bf16.msra.mxu1 %v4008_v1  ;;  %v23615_v47 = vpop.f32.mrb[157].mxu0 }
 0x7ed   :  { %v29213_v16 = vadd.f32 %v23615_v47, %v23614_v42  ;;  %v23617_v46 = vpop.f32.mrb[158].mxu0  ;;  %v25793_v47 = vld [vmem:[%s31724_s5 + $0x60] sm:$0xff]  }
 0x7ee   :  { %v23618_v15 = vpop.f32.mrb[159].mxu0 }
 0x7ef   :  { %v29215_v23 = vadd.f32 %v23618_v15, %v23617_v46  ;;  %4125 = vmatmul.mubr.bf16.vlgmr.msra.gmra.mrb[44].mxu1 %v26788_v29 }
 0x7f0   :  { %24057 = vmatprep.mubr.msk.bf16.mxu1 %vm1457_vm5, %v25793_v47  ;;  %v25801_v47 = vld [vmem:[%s31723_s4 + $0x9b4] sm:$0xff]  }
 0x7f1   :  { %31746 = vst [vmem:[#allocation10_spill] sm:$0xff] %v29215_v23 }
 0x80f   :  { %v29218_v17 = vpop.f32.mrb[160].mxu0 }
 0x810   :  { %v13070_v32 = vpop.f32.mrb[161].mxu0 }
 0x811   :  { %v29220_v48 = vpop.f32.mrb[162].mxu0 }
 0x812   :  { %31747 = vst [vmem:[#allocation11_spill] sm:$0xff] %v29220_v48  ;;  %v13073_v9 = vpop.f32.mrb[163].mxu0 }
 0x82f   :  { %v23683_v20 = vpop.f32.mrb[164].mxu0 }
 0x830   :  { %v23684_v52 = vpop.f32.mrb[165].mxu0 }
 0x831   :  { %v29222_v56 = vadd.f32 %v23684_v52, %v23683_v20  ;;  %v23686_v59 = vpop.f32.mrb[166].mxu0  ;;  %v25795_v52 = vld [vmem:[%s31723_s4 + $0x99c] sm:$0xff]  }
 0x832   :  { %v23687_v1 = vpop.f32.mrb[167].mxu0 }
 0x833   :  { %v29224_v42 = vadd.f32 %v23687_v1, %v23686_v59  ;;  %v25794_v59 = vld [vmem:[%s31724_s5 + $0x68] sm:$0xff]  }
 0x834   :  { %v25800_v1 = vld [vmem:[%s31723_s4 + $0x96c] sm:$0xff]  }
 0x8c2   :  { %v4126_v46 = vpop.f32.mrb[44].mxu1 }
 0x8c3   :  { %v4127_v15 = vadd.f32 %v4126_v46, %v27806_v35  ;;  %v4128_v32 = vpop.f32.mrb[45].mxu1  ;;  %v25796_v35 = vld [vmem:[%s31723_s4 + $0x95c] sm:$0xff]   ;;  %v25802_v46 = vld [vmem:[%s31723_s4 + $0x974] sm:$0xff]  }
 0x8c4   :  { %v4129_v48 = vpop.f32.mrb[46].mxu1  ;;  %v25804_v32 = vld [vmem:[%s31723_s4 + $0x97c] sm:$0xff]  }
 0x8c5   :  { %v4130_v9 = vadd.f32 %v4129_v48, %v27811_v38  ;;  %v4131_v23 = vpop.f32.mrb[47].mxu1  ;;  %v25797_v38 = vld [vmem:[%s31723_s4 + $0x9a4] sm:$0xff]   ;;  %v25799_v48 = vld [vmem:[%s31723_s4 + $0x9ac] sm:$0xff]  }
 0x8c6   :  { %v25798_v23 = vld [vmem:[%s31723_s4 + $0x964] sm:$0xff]  }
 0x8c7   :  { %v4138_v20 = vpack.c.bf16 %v4130_v9, %v4127_v15  ;;  %v25803_v15 = vld [vmem:[%s31723_s4 + $0x9bc] sm:$0xff]   ;;  %v25805_v9 = vld [vmem:[%s31723_s4 + $0x9c4] sm:$0xff]  }
 0x8c9   :  { %24055 = vmatprep.subr.bf16.mxu1 %v4138_v20 }
 0x8ca   :  { %24056 = vmatpush3.bf16.msra.mxu1 %v4138_v20  ;;  %v25806_v20 = vld [vmem:[%s31723_s4 + $0x984] sm:$0xff]  }
 0x8cb   :  { %22868 = vmatprep.subr.bf16.mxu1 %v25795_v52  ;;  %v25807_v52 = vld [vmem:[%s31723_s4 + $0x9cc] sm:$0xff]  }
 0x8cd   :  { %24058 = vmatmul.mubr.msk.bf16.vlgmr.msra.gmra.mrb[16].mxu1 %vm1457_vm5, %v25794_v59  ;;  %v25808_v59 = vld [vmem:[%s31723_s4 + $0x98c] sm:$0xff]  }
 0x8ce   :  { %22869 = vmatpush3.bf16.msra.mxu1 %v25796_v35  ;;  %4609 = vmatprep.mubr.bf16.mxu1 %v26786_v27  ;;  %v25809_v35 = vld [vmem:[%s31723_s4 + $0x9d4] sm:$0xff]  }
 0x8cf   :  { %22870 = vmatprep.subr.bf16.mxu1 %v25797_v38  ;;  %v25810_v38 = vld [vmem:[%s31723_s4 + $0x994] sm:$0xff]  }
 0x8d2   :  { %22871 = vmatpush3.bf16.msra.mxu1 %v25798_v23  ;;  %v25811_v23 = vld [vmem:[%s31724_s5 + $0x70] sm:$0xff]  }
 0x8d3   :  { %22872 = vmatprep.subr.bf16.mxu1 %v25799_v48 }
 0x8d6   :  { %22873 = vmatpush3.bf16.msra.mxu1 %v25800_v1 }
 0x8d7   :  { %22874 = vmatprep.subr.bf16.mxu1 %v25801_v47 }
 0x8da   :  { %22875 = vmatpush3.bf16.msra.mxu1 %v25802_v46 }
 0x8db   :  { %22876 = vmatprep.subr.bf16.mxu1 %v25803_v15 }
 0x8de   :  { %22877 = vmatpush3.bf16.msra.mxu1 %v25804_v32 }
 0x8df   :  { %22878 = vmatprep.subr.bf16.mxu1 %v25805_v9 }
 0x8e2   :  { %22879 = vmatpush3.bf16.msra.mxu1 %v25806_v20 }
 0x8e3   :  { %22880 = vmatprep.subr.bf16.mxu1 %v25807_v52 }
 0x8e6   :  { %22881 = vmatpush3.bf16.msra.mxu1 %v25808_v59 }
 0x8e7   :  { %22882 = vmatprep.subr.bf16.mxu1 %v25809_v35 }
 0x8ea   :  { %22883 = vmatpush3.bf16.msra.mxu1 %v25810_v38  ;;  %v25813_v38 = vld [vmem:[%s31723_s4 + $0xa60] sm:$0xff]  }
 0x8ed   :  { %4610 = vmatmul.mubr.bf16.vlgmr.msra.gmra.mrb[48].mxu1 %v26784_v26 }
 0x8ee   :  { %24063 = vmatprep.mubr.msk.bf16.mxu1 %vm1457_vm5, %v25811_v23  ;;  %v25812_v23 = vld [vmem:[%s31724_s5 + $0x78] sm:$0xff]  }
 0x9c0   :  { %v22884_v48 = vpop.f32.mrb[48].mxu1 }
 0x9c1   :  { %v22885_v1 = vpop.f32.mrb[49].mxu1 }
 0x9c2   :  { %v22886_v47 = vadd.f32 %v22885_v1, %v22884_v48  ;;  %v22887_v46 = vpop.f32.mrb[50].mxu1  ;;  %v25818_v48 = vld [vmem:[%s31723_s4 + $0xa30] sm:$0xff]   ;;  %v25819_v1 = vld [vmem:[%s31723_s4 + $0xa78] sm:$0xff]  }
 0x9c3   :  { %v22888_v15 = vpop.f32.mrb[51].mxu1 }
 0x9c4   :  { %v4612_v32 = vadd.f32 %v22886_v47, %v27854_v57  ;;  %v22889_v9 = vadd.f32 %v22888_v15, %v22887_v46  ;;  %v25814_v57 = vld [vmem:[%s31723_s4 + $0xa20] sm:$0xff]   ;;  %v25820_v47 = vld [vmem:[%s31723_s4 + $0xa38] sm:$0xff]  }
 0x9c5   :  { %v25821_v46 = vld [vmem:[%s31723_s4 + $0xa80] sm:$0xff]  }
 0x9c6   :  { %v4653_v20 = vadd.f32 %v27933_v49, %v4612_v32  ;;  %v4615_v52 = vadd.f32 %v22889_v9, %v27862_v24  ;;  %v25815_v24 = vld [vmem:[%s31723_s4 + $0xa68] sm:$0xff]   ;;  %v25822_v15 = vld [vmem:[%s31723_s4 + $0xa40] sm:$0xff]  }
 0x9c7   :  { %v25816_v49 = vld [vmem:[%s31723_s4 + $0xa28] sm:$0xff]  }
 0x9c8   :  { %v4656_v59 = vadd.f32 %v27938_v12, %v4615_v52  ;;  %v25817_v12 = vld [vmem:[%s31723_s4 + $0xa70] sm:$0xff]   ;;  %v25823_v32 = vld [vmem:[%s31723_s4 + $0xa88] sm:$0xff]  }
 0x9c9   :  { %v25824_v9 = vld [vmem:[%s31723_s4 + $0xa48] sm:$0xff]   ;;  %v25826_v52 = vld [vmem:[%s31723_s4 + $0xa50] sm:$0xff]  }
 0x9ca   :  { %v4664_v35 = vpack.c.bf16 %v4656_v59, %v4653_v20  ;;  %v25825_v20 = vld [vmem:[%s31723_s4 + $0xa90] sm:$0xff]   ;;  %v25827_v59 = vld [vmem:[%s31723_s4 + $0xa98] sm:$0xff]  }
 0x9cc   :  { %24061 = vmatprep.subr.bf16.mxu1 %v4664_v35 }
 0x9cd   :  { %24062 = vmatpush3.bf16.msra.mxu1 %v4664_v35  ;;  %v25828_v35 = vld [vmem:[%s31723_s4 + $0xa58] sm:$0xff]  }
 0x9ce   :  { %22893 = vmatprep.subr.bf16.mxu1 %v25813_v38  ;;  %v25829_v38 = vld [vmem:[%s31723_s4 + $0xb20] sm:$0xff]  }
 0x9d0   :  { %24064 = vmatmul.mubr.msk.bf16.vlgmr.msra.gmra.mrb[16].mxu1 %vm1457_vm5, %v25812_v23  ;;  %v25830_v23 = vld [vmem:[%s31723_s4 + $0xb28] sm:$0xff]  }
 0x9d1   :  { %22894 = vmatpush3.bf16.msra.mxu1 %v25814_v57  ;;  %5094 = vmatprep.mubr.bf16.mxu1 %v26782_v21  ;;  %v25831_v57 = vld [vmem:[%s31723_s4 + $0xb30] sm:$0xff]  }
 0x9d2   :  { %22895 = vmatprep.subr.bf16.mxu1 %v25815_v24  ;;  %v25832_v24 = vld [vmem:[%s31723_s4 + $0xb38] sm:$0xff]  }
 0x9d5   :  { %22896 = vmatpush3.bf16.msra.mxu1 %v25816_v49  ;;  %v25833_v49 = vld [vmem:[%s31723_s4 + $0xb40] sm:$0xff]  }
 0x9d6   :  { %22897 = vmatprep.subr.bf16.mxu1 %v25817_v12  ;;  %v25834_v12 = vld [vmem:[%s31723_s4 + $0xb48] sm:$0xff]  }
 0x9d9   :  { %22898 = vmatpush3.bf16.msra.mxu1 %v25818_v48  ;;  %v25835_v48 = vld [vmem:[%s31723_s4 + $0xb50] sm:$0xff]  }
 0x9da   :  { %22899 = vmatprep.subr.bf16.mxu1 %v25819_v1  ;;  %v25836_v1 = vld [vmem:[%s31723_s4 + $0xb58] sm:$0xff]  }
 0x9dd   :  { %22900 = vmatpush3.bf16.msra.mxu1 %v25820_v47  ;;  %v25837_v47 = vld [vmem:[%s31723_s4 + $0xb60] ss:$0 sps:$4 sm:$0xff]  }
 0x9de   :  { %22901 = vmatprep.subr.bf16.mxu1 %v25821_v46  ;;  %v5060_v46 = vsel %vm858_vm4, %v25837_v47, 0 }
 0x9e1   :  { %22902 = vmatpush3.bf16.msra.mxu1 %v25822_v15  ;;  %v25838_v15 = vld [vmem:[%s31724_s5 + $0x80] sm:$0xff]  }
 0x9e2   :  { %22903 = vmatprep.subr.bf16.mxu1 %v25823_v32 }
 0x9e5   :  { %22904 = vmatpush3.bf16.msra.mxu1 %v25824_v9 }
 0x9e6   :  { %22905 = vmatprep.subr.bf16.mxu1 %v25825_v20 }
 0x9e9   :  { %22906 = vmatpush3.bf16.msra.mxu1 %v25826_v52 }
 0x9ea   :  { %22907 = vmatprep.subr.bf16.mxu1 %v25827_v59 }
 0x9ed   :  { %22908 = vmatpush3.bf16.msra.mxu1 %v25828_v35 }
 0x9ee   :  { %5144 = vmatprep.subr.bf16.mxu1 %v31745_v36 }
 0x9f0   :  { %5095 = vmatmul.mubr.bf16.vlgmr.msra.gmra.mrb[52].mxu1 %v26780_v19 }
 0x9f1   :  { %5145 = vmatpush1.bf16.msra.mxu1 %v25829_v38  ;;  %19678 = vmatprep.mubr.msk.bf16.mxu1 %vm395_vm3, %v26797_v33 }
 0x9f2   :  { %5146 = vmatprep.subr.bf16.mxu1 %v31745_v36 }
 0x9f5   :  { %5147 = vmatpush1.bf16.msra.mxu1 %v25830_v23 }
 0x9f6   :  { %5148 = vmatprep.subr.bf16.mxu1 %v31745_v36 }
 0x9f9   :  { %5149 = vmatpush1.bf16.msra.mxu1 %v25831_v57 }
 0x9fa   :  { %5150 = vmatprep.subr.bf16.mxu1 %v31745_v36 }
 0x9fd   :  { %5151 = vmatpush1.bf16.msra.mxu1 %v25832_v24 }
 0x9fe   :  { %5152 = vmatprep.subr.bf16.mxu1 %v31745_v36 }
 0xa01   :  { %5153 = vmatpush1.bf16.msra.mxu1 %v25833_v49 }
 0xa02   :  { %5154 = vmatprep.subr.bf16.mxu1 %v31745_v36 }
 0xa05   :  { %5155 = vmatpush1.bf16.msra.mxu1 %v25834_v12 }
 0xa06   :  { %5156 = vmatprep.subr.bf16.mxu1 %v31745_v36 }
 0xa09   :  { %5157 = vmatpush1.bf16.msra.mxu1 %v25835_v48 }
 0xa0a   :  { %5158 = vmatprep.subr.bf16.mxu1 %v31745_v36 }
 0xa0d   :  { %5159 = vmatpush1.bf16.msra.mxu1 %v25836_v1 }
 0xa0e   :  { %5160 = vmatprep.subr.bf16.mxu1 %v31745_v36 }
 0xa11   :  { %5161 = vmatpush1.bf16.msra.mxu1 %v5060_v46  ;;  %v25839_v46 = vld [vmem:[%s31724_s5 + $0x88] sm:$0xff]  }
 0xa14   :  { %5177 = vmatmul.mubr.bf16.vlgmr.msra.gmra.mrb[56].mxu1 %v26788_v29 }
 0xa15   :  { %24069 = vmatprep.mubr.msk.bf16.mxu1 %vm1457_vm5, %v25838_v15  ;;  %v25840_v15 = vld [vmem:[%s31723_s4 + $0xc64] sm:$0xff]  }
 0xac3   :  { %v22909_v32 = vpop.f32.mrb[52].mxu1 }
 0xac4   :  { %v22910_v9 = vpop.f32.mrb[53].mxu1 }
 0xac5   :  { %v22911_v20 = vadd.f32 %v22910_v9, %v22909_v32  ;;  %v22912_v52 = vpop.f32.mrb[54].mxu1  ;;  %v25843_v32 = vld [vmem:[%s31723_s4 + $0xc7c] sm:$0xff]   ;;  %v25844_v9 = vld [vmem:[%s31723_s4 + $0xc84] sm:$0xff]  }
 0xac6   :  { %v22913_v59 = vpop.f32.mrb[55].mxu1 }
 0xac7   :  { %v22914_v35 = vadd.f32 %v22913_v59, %v22912_v52  ;;  %v5138_v38 = vadd.f32 %v28000_v28, %v22911_v20  ;;  %v25841_v28 = vld [vmem:[%s31723_s4 + $0xc6c] sm:$0xff]   ;;  %v25846_v52 = vld [vmem:[%s31723_s4 + $0xc94] sm:$0xff]   ;;  %v25847_v59 = vld [vmem:[%s31723_s4 + $0xc9c] sm:$0xff]  }
 0xac8   :  { %v25845_v20 = vld [vmem:[%s31723_s4 + $0xc8c] sm:$0xff]  }
 0xac9   :  { %v5141_v23 = vadd.f32 %v28005_v5, %v22914_v35  ;;  %v25842_v5 = vld [vmem:[%s31723_s4 + $0xc74] sm:$0xff]   ;;  %v25848_v35 = vld [vmem:[%s31723_s4 + $0xca4] ss:$0 sps:$4 sm:$0xff]  }
 0xae7   :  { %v5178_v57 = vpop.f32.mrb[56].mxu1 }
 0xae8   :  { %v5179_v24 = vadd.f32 %v5178_v57, %v5138_v38  ;;  %v5180_v49 = vpop.f32.mrb[57].mxu1  ;;  %v5586_v38 = vsel %vm858_vm4, %v25848_v35, 0  ;;  %v25861_v35 = vld [vmem:[%s31723_s4 + $0xd90] sm:$0xff]  }
 0xae9   :  { %v5181_v12 = vpop.f32.mrb[58].mxu1 }
 0xaea   :  { %v5182_v48 = vadd.f32 %v5181_v12, %v5141_v23  ;;  %v5183_v1 = vpop.f32.mrb[59].mxu1  ;;  %v25849_v23 = vld [vmem:[%s31724_s5 + $0x90] sm:$0xff]  }
 0xaec   :  { %v5190_v47 = vpack.c.bf16 %v5182_v48, %v5179_v24 }
 0xaee   :  { %24067 = vmatprep.subr.bf16.mxu1 %v5190_v47 }
 0xaef   :  { %24068 = vmatpush3.bf16.msra.mxu1 %v5190_v47 }
 0xaf0   :  { %5670 = vmatprep.subr.bf16.mxu1 %v31745_v36 }
 0xaf2   :  { %24070 = vmatmul.mubr.msk.bf16.vlgmr.msra.gmra.mrb[16].mxu1 %vm1457_vm5, %v25839_v46  ;;  %v25851_v46 = vld [vmem:[%s31723_s4 + $0xd68] sm:$0xff]  }
 0xaf3   :  { %5671 = vmatpush1.bf16.msra.mxu1 %v25840_v15  ;;  %19809 = vmatprep.mubr.msk.bf16.mxu1 %vm395_vm3, %v26797_v33  ;;  %v25850_v15 = vld [vmem:[%s31724_s5 + $0x98] sm:$0xff]  }
 0xaf4   :  { %5672 = vmatprep.subr.bf16.mxu1 %v31745_v36 }
 0xaf7   :  { %5673 = vmatpush1.bf16.msra.mxu1 %v25841_v28  ;;  %v25854_v28 = vld [vmem:[%s31723_s4 + $0xd30] sm:$0xff]  }
 0xaf8   :  { %5674 = vmatprep.subr.bf16.mxu1 %v31745_v36 }
 0xafb   :  { %5675 = vmatpush1.bf16.msra.mxu1 %v25842_v5  ;;  %v25855_v5 = vld [vmem:[%s31723_s4 + $0xd78] sm:$0xff]  }
 0xafc   :  { %5676 = vmatprep.subr.bf16.mxu1 %v31745_v36 }
 0xaff   :  { %5677 = vmatpush1.bf16.msra.mxu1 %v25843_v32  ;;  %v25856_v32 = vld [vmem:[%s31723_s4 + $0xd38] sm:$0xff]  }
 0xb00   :  { %5678 = vmatprep.subr.bf16.mxu1 %v31745_v36 }
 0xb03   :  { %5679 = vmatpush1.bf16.msra.mxu1 %v25844_v9  ;;  %v25857_v9 = vld [vmem:[%s31723_s4 + $0xd80] sm:$0xff]  }
 0xb04   :  { %5680 = vmatprep.subr.bf16.mxu1 %v31745_v36 }
 0xb07   :  { %5681 = vmatpush1.bf16.msra.mxu1 %v25845_v20  ;;  %v25858_v20 = vld [vmem:[%s31723_s4 + $0xd40] sm:$0xff]  }
 0xb08   :  { %5682 = vmatprep.subr.bf16.mxu1 %v31745_v36 }
 0xb0b   :  { %5683 = vmatpush1.bf16.msra.mxu1 %v25846_v52  ;;  %v25859_v52 = vld [vmem:[%s31723_s4 + $0xd88] sm:$0xff]  }
 0xb0c   :  { %5684 = vmatprep.subr.bf16.mxu1 %v31745_v36 }
 0xb0f   :  { %5685 = vmatpush1.bf16.msra.mxu1 %v25847_v59  ;;  %v25860_v59 = vld [vmem:[%s31723_s4 + $0xd48] sm:$0xff]  }
 0xb10   :  { %5686 = vmatprep.subr.bf16.mxu1 %v31745_v36 }
 0xb13   :  { %5687 = vmatpush1.bf16.msra.mxu1 %v5586_v38  ;;  %v25862_v38 = vld [vmem:[%s31723_s4 + $0xd50] sm:$0xff]  }
 0xb16   :  { %5703 = vmatmul.mubr.bf16.vlgmr.msra.gmra.mrb[60].mxu1 %v26788_v29 }
 0xb17   :  { %24075 = vmatprep.mubr.msk.bf16.mxu1 %vm1457_vm5, %v25849_v23  ;;  %v25863_v23 = vld [vmem:[%s31723_s4 + $0xd98] sm:$0xff]  }
 0xbe9   :  { %v5704_v57 = vpop.f32.mrb[60].mxu1 }
 0xbea   :  { %v5705_v24 = vadd.f32 %v5704_v57, %v28094_v0  ;;  %v5706_v49 = vpop.f32.mrb[61].mxu1  ;;  %v25852_v0 = vld [vmem:[%s31723_s4 + $0xd28] sm:$0xff]   ;;  %v25864_v57 = vld [vmem:[%s31723_s4 + $0xd58] sm:$0xff]  }
 0xbeb   :  { %v5707_v12 = vpop.f32.mrb[62].mxu1  ;;  %v25866_v49 = vld [vmem:[%s31723_s4 + $0xd60] sm:$0xff]  }
 0xbec   :  { %v5708_v48 = vadd.f32 %v5707_v12, %v28096_v2  ;;  %v5709_v1 = vpop.f32.mrb[63].mxu1  ;;  %v25853_v2 = vld [vmem:[%s31723_s4 + $0xd70] sm:$0xff]   ;;  %v25867_v12 = vld [vmem:[%s31724_s5 + $0xa0] sm:$0xff]  }
 0xbee   :  { %v5716_v47 = vpack.c.bf16 %v5708_v48, %v5705_v24  ;;  %v25865_v24 = vld [vmem:[%s31723_s4 + $0xda0] sm:$0xff]  }
 0xbf0   :  { %24073 = vmatprep.subr.bf16.mxu1 %v5716_v47 }
 0xbf1   :  { %24074 = vmatpush3.bf16.msra.mxu1 %v5716_v47 }
 0xbf2   :  { %23009 = vmatprep.subr.bf16.mxu1 %v25851_v46 }
 0xbf4   :  { %24076 = vmatmul.mubr.msk.bf16.vlgmr.msra.gmra.mrb[16].mxu1 %vm1457_vm5, %v25850_v15 }
 0xbf5   :  { %23010 = vmatpush3.bf16.msra.mxu1 %v25852_v0  ;;  %6187 = vmatprep.mubr.bf16.mxu1 %v26786_v27 }
 0xbf6   :  { %23011 = vmatprep.subr.bf16.mxu1 %v25853_v2 }
 0xbf9   :  { %23012 = vmatpush3.bf16.msra.mxu1 %v25854_v28 }
 0xbfa   :  { %23013 = vmatprep.subr.bf16.mxu1 %v25855_v5 }
 0xbfd   :  { %23014 = vmatpush3.bf16.msra.mxu1 %v25856_v32 }
 0xbfe   :  { %23015 = vmatprep.subr.bf16.mxu1 %v25857_v9 }
 0xc01   :  { %23016 = vmatpush3.bf16.msra.mxu1 %v25858_v20  ;;  %v25869_v20 = vld [vmem:[%s31723_s4 + $0xe2c] sm:$0xff]  }
 0xc02   :  { %23017 = vmatprep.subr.bf16.mxu1 %v25859_v52  ;;  %v25868_v52 = vld [vmem:[%s31724_s5 + $0xa8] sm:$0xff]  }
 0xc05   :  { %23018 = vmatpush3.bf16.msra.mxu1 %v25860_v59  ;;  %v25874_v59 = vld [vmem:[%s31723_s4 + $0xdfc] sm:$0xff]  }
 0xc06   :  { %23019 = vmatprep.subr.bf16.mxu1 %v25861_v35  ;;  %v25875_v35 = vld [vmem:[%s31723_s4 + $0xe44] sm:$0xff]  }
 0xc09   :  { %23020 = vmatpush3.bf16.msra.mxu1 %v25862_v38  ;;  %v25876_v38 = vld [vmem:[%s31723_s4 + $0xe04] sm:$0xff]  }
 0xc0a   :  { %23021 = vmatprep.subr.bf16.mxu1 %v25863_v23  ;;  %v25877_v23 = vld [vmem:[%s31723_s4 + $0xe4c] sm:$0xff]  }
 0xc0d   :  { %23022 = vmatpush3.bf16.msra.mxu1 %v25864_v57  ;;  %v25878_v57 = vld [vmem:[%s31723_s4 + $0xe0c] sm:$0xff]  }
 0xc0e   :  { %23023 = vmatprep.subr.bf16.mxu1 %v25865_v24  ;;  %v25879_v24 = vld [vmem:[%s31723_s4 + $0xe54] sm:$0xff]  }
 0xc11   :  { %23024 = vmatpush3.bf16.msra.mxu1 %v25866_v49  ;;  %v25880_v49 = vld [vmem:[%s31723_s4 + $0xe14] sm:$0xff]  }
 0xc14   :  { %6188 = vmatmul.mubr.bf16.vlgmr.msra.gmra.mrb[64].mxu1 %v26784_v26 }
 0xc15   :  { %24081 = vmatprep.mubr.msk.bf16.mxu1 %vm1457_vm5, %v25867_v12  ;;  %v25881_v12 = vld [vmem:[%s31723_s4 + $0xe5c] sm:$0xff]  }
 0xce7   :  { %v23025_v48 = vpop.f32.mrb[64].mxu1 }
 0xce8   :  { %v23026_v1 = vpop.f32.mrb[65].mxu1 }
 0xce9   :  { %v23027_v47 = vadd.f32 %v23026_v1, %v23025_v48  ;;  %v23028_v46 = vpop.f32.mrb[66].mxu1  ;;  %v25882_v48 = vld [vmem:[%s31723_s4 + $0xe1c] sm:$0xff]   ;;  %v25883_v1 = vld [vmem:[%s31723_s4 + $0xe64] sm:$0xff]  }
 0xcea   :  { %v23029_v15 = vpop.f32.mrb[67].mxu1 }
 0xceb   :  { %v6190_v0 = vadd.f32 %v23027_v47, %v28142_v44  ;;  %v23030_v2 = vadd.f32 %v23029_v15, %v23028_v46  ;;  %v25870_v44 = vld [vmem:[%s31723_s4 + $0xdec] sm:$0xff]   ;;  %v25884_v47 = vld [vmem:[%s31723_s4 + $0xe24] sm:$0xff]   ;;  %v25886_v15 = vld [vmem:[%s31723_s4 + $0xef4] sm:$0xff]  }
 0xcec   :  { %v25885_v46 = vld [vmem:[%s31723_s4 + $0xeec] sm:$0xff]  }
 0xced   :  { %v6231_v28 = vadd.f32 %v28199_v25, %v6190_v0  ;;  %v6193_v5 = vadd.f32 %v23030_v2, %v28147_v51  ;;  %v25871_v51 = vld [vmem:[%s31723_s4 + $0xe34] sm:$0xff]   ;;  %v25887_v0 = vld [vmem:[%s31723_s4 + $0xefc] sm:$0xff]   ;;  %v25888_v2 = vld [vmem:[%s31723_s4 + $0xf04] sm:$0xff]  }
 0xcee   :  { %v25872_v25 = vld [vmem:[%s31723_s4 + $0xdf4] sm:$0xff]  }
 0xcef   :  { %v6234_v32 = vadd.f32 %v28204_v3, %v6193_v5  ;;  %v25873_v3 = vld [vmem:[%s31723_s4 + $0xe3c] sm:$0xff]   ;;  %v25890_v5 = vld [vmem:[%s31723_s4 + $0xf14] sm:$0xff]  }
 0xcf1   :  { %v6242_v9 = vpack.c.bf16 %v6234_v32, %v6231_v28  ;;  %v25889_v28 = vld [vmem:[%s31723_s4 + $0xf0c] sm:$0xff]   ;;  %v25891_v32 = vld [vmem:[%s31723_s4 + $0xf1c] sm:$0xff]  }
 0xcf3   :  { %24079 = vmatprep.subr.bf16.mxu1 %v6242_v9 }
 0xcf4   :  { %24080 = vmatpush3.bf16.msra.mxu1 %v6242_v9  ;;  %v25892_v9 = vld [vmem:[%s31723_s4 + $0xf24] sm:$0xff]  }
 0xcf5   :  { %23034 = vmatprep.subr.bf16.mxu1 %v25869_v20  ;;  %v25893_v20 = vld [vmem:[%s31723_s4 + $0xf2c] ss:$0 sps:$4 sm:$0xff]  }
 0xcf7   :  { %24082 = vmatmul.mubr.msk.bf16.vlgmr.msra.gmra.mrb[16].mxu1 %vm1457_vm5, %v25868_v52  ;;  %v6638_v52 = vsel %vm858_vm4, %v25893_v20, 0  ;;  %v25904_v20 = vld [vmem:[%s31723_s4 + $0x1010] sm:$0xff]  }
 0xcf8   :  { %23035 = vmatpush3.bf16.msra.mxu1 %v25870_v44  ;;  %6672 = vmatprep.mubr.bf16.mxu1 %v26782_v21  ;;  %v25894_v44 = vld [vmem:[%s31724_s5 + $0xb0] sm:$0xff]  }
 0xcf9   :  { %23036 = vmatprep.subr.bf16.mxu1 %v25871_v51 }
 0xcfc   :  { %23037 = vmatpush3.bf16.msra.mxu1 %v25872_v25 }
 0xcfd   :  { %23038 = vmatprep.subr.bf16.mxu1 %v25873_v3 }
 0xd00   :  { %23039 = vmatpush3.bf16.msra.mxu1 %v25874_v59 }
 0xd01   :  { %23040 = vmatprep.subr.bf16.mxu1 %v25875_v35 }
 0xd04   :  { %23041 = vmatpush3.bf16.msra.mxu1 %v25876_v38 }
 0xd05   :  { %23042 = vmatprep.subr.bf16.mxu1 %v25877_v23 }
 0xd08   :  { %23043 = vmatpush3.bf16.msra.mxu1 %v25878_v57 }
 0xd09   :  { %23044 = vmatprep.subr.bf16.mxu1 %v25879_v24 }
 0xd0c   :  { %23045 = vmatpush3.bf16.msra.mxu1 %v25880_v49 }
 0xd0d   :  { %23046 = vmatprep.subr.bf16.mxu1 %v25881_v12 }
 0xd10   :  { %23047 = vmatpush3.bf16.msra.mxu1 %v25882_v48 }
 0xd11   :  { %23048 = vmatprep.subr.bf16.mxu1 %v25883_v1 }
 0xd14   :  { %23049 = vmatpush3.bf16.msra.mxu1 %v25884_v47 }
 0xd15   :  { %6722 = vmatprep.subr.bf16.mxu1 %v31745_v36 }
 0xd17   :  { %6673 = vmatmul.mubr.bf16.vlgmr.msra.gmra.mrb[68].mxu1 %v26780_v19 }
 0xd18   :  { %6723 = vmatpush1.bf16.msra.mxu1 %v25885_v46  ;;  %20071 = vmatprep.mubr.msk.bf16.mxu1 %vm395_vm3, %v26797_v33 }
 0xd19   :  { %6724 = vmatprep.subr.bf16.mxu1 %v31745_v36 }
 0xd1c   :  { %6725 = vmatpush1.bf16.msra.mxu1 %v25886_v15  ;;  %v25896_v15 = vld [vmem:[%s31723_s4 + $0xff0] sm:$0xff]  }
 0xd1d   :  { %6726 = vmatprep.subr.bf16.mxu1 %v31745_v36 }
 0xd20   :  { %6727 = vmatpush1.bf16.msra.mxu1 %v25887_v0  ;;  %v25895_v0 = vld [vmem:[%s31724_s5 + $0xb8] sm:$0xff]  }
 0xd21   :  { %6728 = vmatprep.subr.bf16.mxu1 %v31745_v36 }
 0xd24   :  { %6729 = vmatpush1.bf16.msra.mxu1 %v25888_v2  ;;  %v25899_v2 = vld [vmem:[%s31723_s4 + $0xfb8] sm:$0xff]  }
 0xd25   :  { %6730 = vmatprep.subr.bf16.mxu1 %v31745_v36 }
 0xd28   :  { %6731 = vmatpush1.bf16.msra.mxu1 %v25889_v28  ;;  %v25900_v28 = vld [vmem:[%s31723_s4 + $0x1000] sm:$0xff]  }
 0xd29   :  { %6732 = vmatprep.subr.bf16.mxu1 %v31745_v36 }
 0xd2c   :  { %6733 = vmatpush1.bf16.msra.mxu1 %v25890_v5  ;;  %v25901_v5 = vld [vmem:[%s31723_s4 + $0xfc0] sm:$0xff]  }
 0xd2d   :  { %6734 = vmatprep.subr.bf16.mxu1 %v31745_v36 }
 0xd30   :  { %6735 = vmatpush1.bf16.msra.mxu1 %v25891_v32  ;;  %v25902_v32 = vld [vmem:[%s31723_s4 + $0x1008] sm:$0xff]  }
 0xd31   :  { %6736 = vmatprep.subr.bf16.mxu1 %v31745_v36 }
 0xd34   :  { %6737 = vmatpush1.bf16.msra.mxu1 %v25892_v9  ;;  %v25903_v9 = vld [vmem:[%s31723_s4 + $0xfc8] sm:$0xff]  }
 0xd35   :  { %6738 = vmatprep.subr.bf16.mxu1 %v31745_v36 }
 0xd38   :  { %6739 = vmatpush1.bf16.msra.mxu1 %v6638_v52  ;;  %v25905_v52 = vld [vmem:[%s31723_s4 + $0xfd0] sm:$0xff]  }
 0xd3b   :  { %6755 = vmatmul.mubr.bf16.vlgmr.msra.gmra.mrb[72].mxu1 %v26788_v29 }
 0xd3c   :  { %24087 = vmatprep.mubr.msk.bf16.mxu1 %vm1457_vm5, %v25894_v44  ;;  %v25906_v44 = vld [vmem:[%s31723_s4 + $0x1018] sm:$0xff]  }
 0xdea   :  { %v23050_v51 = vpop.f32.mrb[68].mxu1 }
 0xdeb   :  { %v23051_v25 = vpop.f32.mrb[69].mxu1 }
 0xdec   :  { %v23052_v3 = vadd.f32 %v23051_v25, %v23050_v51  ;;  %v23053_v59 = vpop.f32.mrb[70].mxu1  ;;  %v25907_v51 = vld [vmem:[%s31723_s4 + $0xfd8] sm:$0xff]   ;;  %v25908_v25 = vld [vmem:[%s31723_s4 + $0x1020] sm:$0xff]  }
 0xded   :  { %v23054_v35 = vpop.f32.mrb[71].mxu1 }
 0xdee   :  { %v23055_v38 = vadd.f32 %v23054_v35, %v23053_v59  ;;  %v6716_v23 = vadd.f32 %v28246_v45, %v23052_v3  ;;  %v25897_v45 = vld [vmem:[%s31723_s4 + $0xfb0] sm:$0xff]   ;;  %v25909_v3 = vld [vmem:[%s31723_s4 + $0xfe0] sm:$0xff]   ;;  %v25910_v59 = vld [vmem:[%s31723_s4 + $0x1028] sm:$0xff]  }
 0xdef   :  { %v25911_v35 = vld [vmem:[%s31723_s4 + $0xfe8] sm:$0xff]  }
 0xdf0   :  { %v6719_v57 = vadd.f32 %v28251_v13, %v23055_v38  ;;  %v25898_v13 = vld [vmem:[%s31723_s4 + $0xff8] sm:$0xff]   ;;  %v25912_v38 = vld [vmem:[%s31724_s5 + $0xc0] sm:$0xff]  }
 0xe0e   :  { %v6756_v24 = vpop.f32.mrb[72].mxu1 }
 0xe0f   :  { %v6757_v49 = vadd.f32 %v6756_v24, %v6716_v23  ;;  %v6758_v12 = vpop.f32.mrb[73].mxu1 }
 0xe10   :  { %v6759_v48 = vpop.f32.mrb[74].mxu1 }
 0xe11   :  { %v6760_v1 = vadd.f32 %v6759_v48, %v6719_v57  ;;  %v6761_v47 = vpop.f32.mrb[75].mxu1 }
 0xe13   :  { %v6768_v46 = vpack.c.bf16 %v6760_v1, %v6757_v49 }
 0xe15   :  { %24085 = vmatprep.subr.bf16.mxu1 %v6768_v46 }
 0xe16   :  { %24086 = vmatpush3.bf16.msra.mxu1 %v6768_v46 }
 0xe17   :  { %23103 = vmatprep.subr.bf16.mxu1 %v25896_v15 }
 0xe19   :  { %24088 = vmatmul.mubr.msk.bf16.vlgmr.msra.gmra.mrb[16].mxu1 %vm1457_vm5, %v25895_v0 }
 0xe1a   :  { %23104 = vmatpush3.bf16.msra.mxu1 %v25897_v45  ;;  %7239 = vmatprep.mubr.bf16.mxu1 %v26786_v27  ;;  %v25914_v45 = vld [vmem:[%s31723_s4 + $0x1134] sm:$0xff]  }
 0xe1b   :  { %23105 = vmatprep.subr.bf16.mxu1 %v25898_v13  ;;  %v25913_v13 = vld [vmem:[%s31724_s5 + $0xc8] sm:$0xff]  }
 0xe1e   :  { %23106 = vmatpush3.bf16.msra.mxu1 %v25899_v2  ;;  %v25919_v2 = vld [vmem:[%s31723_s4 + $0x1104] sm:$0xff]  }
 0xe1f   :  { %23107 = vmatprep.subr.bf16.mxu1 %v25900_v28  ;;  %v25920_v28 = vld [vmem:[%s31723_s4 + $0x114c] sm:$0xff]  }
 0xe22   :  { %23108 = vmatpush3.bf16.msra.mxu1 %v25901_v5  ;;  %v25921_v5 = vld [vmem:[%s31723_s4 + $0x110c] sm:$0xff]  }
 0xe23   :  { %23109 = vmatprep.subr.bf16.mxu1 %v25902_v32  ;;  %v25922_v32 = vld [vmem:[%s31723_s4 + $0x1154] sm:$0xff]  }
 0xe26   :  { %23110 = vmatpush3.bf16.msra.mxu1 %v25903_v9  ;;  %v25923_v9 = vld [vmem:[%s31723_s4 + $0x1114] sm:$0xff]  }
 0xe27   :  { %23111 = vmatprep.subr.bf16.mxu1 %v25904_v20  ;;  %v25924_v20 = vld [vmem:[%s31723_s4 + $0x115c] sm:$0xff]  }
 0xe2a   :  { %23112 = vmatpush3.bf16.msra.mxu1 %v25905_v52  ;;  %v25925_v52 = vld [vmem:[%s31723_s4 + $0x111c] sm:$0xff]  }
 0xe2b   :  { %23113 = vmatprep.subr.bf16.mxu1 %v25906_v44  ;;  %v25926_v44 = vld [vmem:[%s31723_s4 + $0x1164] sm:$0xff]  }
 0xe2e   :  { %23114 = vmatpush3.bf16.msra.mxu1 %v25907_v51  ;;  %v25927_v51 = vld [vmem:[%s31723_s4 + $0x1124] sm:$0xff]  }
 0xe2f   :  { %23115 = vmatprep.subr.bf16.mxu1 %v25908_v25  ;;  %v25928_v25 = vld [vmem:[%s31723_s4 + $0x116c] sm:$0xff]  }
 0xe32   :  { %23116 = vmatpush3.bf16.msra.mxu1 %v25909_v3  ;;  %v25929_v3 = vld [vmem:[%s31723_s4 + $0x112c] sm:$0xff]  }
 0xe33   :  { %23117 = vmatprep.subr.bf16.mxu1 %v25910_v59  ;;  %v25930_v59 = vld [vmem:[%s31724_s5 + $0xd0] sm:$0xff]  }
 0xe36   :  { %23118 = vmatpush3.bf16.msra.mxu1 %v25911_v35 }
 0xe39   :  { %7240 = vmatmul.mubr.bf16.vlgmr.msra.gmra.mrb[76].mxu1 %v26784_v26 }
 0xe3a   :  { %24093 = vmatprep.mubr.msk.bf16.mxu1 %vm1457_vm5, %v25912_v38 }
 0xf0c   :  { %v23119_v23 = vpop.f32.mrb[76].mxu1 }
 0xf0d   :  { %v23120_v57 = vpop.f32.mrb[77].mxu1 }
 0xf0e   :  { %v23121_v24 = vadd.f32 %v23120_v57, %v23119_v23  ;;  %v23122_v49 = vpop.f32.mrb[78].mxu1 }
 0xf0f   :  { %v23123_v12 = vpop.f32.mrb[79].mxu1 }
 0xf10   :  { %v7242_v48 = vadd.f32 %v23121_v24, %v28294_v62  ;;  %v23124_v1 = vadd.f32 %v23123_v12, %v23122_v49  ;;  %v25915_v62 = vld [vmem:[%s31723_s4 + $0x10f4] sm:$0xff]  }
 0xf12   :  { %v7283_v47 = vadd.f32 %v28397_v18, %v7242_v48  ;;  %v7245_v46 = vadd.f32 %v23124_v1, %v28302_v8  ;;  %v25916_v8 = vld [vmem:[%s31723_s4 + $0x113c] sm:$0xff]  }
 0xf13   :  { %v25917_v18 = vld [vmem:[%s31723_s4 + $0x10fc] sm:$0xff]  }
 0xf14   :  { %v7286_v15 = vadd.f32 %v28402_v39, %v7245_v46  ;;  %v25918_v39 = vld [vmem:[%s31723_s4 + $0x1144] sm:$0xff]  }
 0xf16   :  { %v7294_v0 = vpack.c.bf16 %v7286_v15, %v7283_v47  ;;  %v25932_v15 = vld [vmem:[%s31723_s4 + $0x11f8] sm:$0xff]  }
 0xf18   :  { %24091 = vmatprep.subr.bf16.mxu1 %v7294_v0 }
 0xf19   :  { %24092 = vmatpush3.bf16.msra.mxu1 %v7294_v0  ;;  %v25931_v0 = vld [vmem:[%s31724_s5 + $0xd8] sm:$0xff]  }
 0xf1a   :  { %23150 = vmatprep.subr.bf16.mxu1 %v25914_v45  ;;  %v25937_v45 = vld [vmem:[%s31723_s4 + $0x11c8] sm:$0xff]  }
 0xf1c   :  { %24094 = vmatmul.mubr.msk.bf16.vlgmr.msra.gmra.mrb[16].mxu1 %vm1457_vm5, %v25913_v13  ;;  %v25938_v13 = vld [vmem:[%s31723_s4 + $0x1210] sm:$0xff]  }
 0xf1d   :  { %23151 = vmatpush3.bf16.msra.mxu1 %v25915_v62  ;;  %7765 = vmatprep.mubr.bf16.mxu1 %v26786_v27  ;;  %v25939_v62 = vld [vmem:[%s31723_s4 + $0x11d0] sm:$0xff]  }
 0xf1e   :  { %23152 = vmatprep.subr.bf16.mxu1 %v25916_v8  ;;  %v25940_v8 = vld [vmem:[%s31723_s4 + $0x1218] sm:$0xff]  }
 0xf21   :  { %23153 = vmatpush3.bf16.msra.mxu1 %v25917_v18  ;;  %v25941_v18 = vld [vmem:[%s31723_s4 + $0x11d8] sm:$0xff]  }
 0xf22   :  { %23154 = vmatprep.subr.bf16.mxu1 %v25918_v39  ;;  %v25942_v39 = vld [vmem:[%s31723_s4 + $0x1220] sm:$0xff]  }
 0xf25   :  { %23155 = vmatpush3.bf16.msra.mxu1 %v25919_v2  ;;  %v25943_v2 = vld [vmem:[%s31723_s4 + $0x11e0] sm:$0xff]  }
 0xf26   :  { %23156 = vmatprep.subr.bf16.mxu1 %v25920_v28  ;;  %v25944_v28 = vld [vmem:[%s31723_s4 + $0x1228] sm:$0xff]  }
 0xf29   :  { %23157 = vmatpush3.bf16.msra.mxu1 %v25921_v5  ;;  %v25945_v5 = vld [vmem:[%s31723_s4 + $0x11e8] sm:$0xff]  }
 0xf2a   :  { %23158 = vmatprep.subr.bf16.mxu1 %v25922_v32  ;;  %v25946_v32 = vld [vmem:[%s31723_s4 + $0x1230] sm:$0xff]  }
 0xf2d   :  { %23159 = vmatpush3.bf16.msra.mxu1 %v25923_v9  ;;  %v25947_v9 = vld [vmem:[%s31723_s4 + $0x11f0] sm:$0xff]  }
 0xf2e   :  { %23160 = vmatprep.subr.bf16.mxu1 %v25924_v20  ;;  %v25948_v20 = vld [vmem:[%s31723_s4 + $0x12b8] sm:$0xff]  }
 0xf31   :  { %23161 = vmatpush3.bf16.msra.mxu1 %v25925_v52  ;;  %v25949_v52 = vld [vmem:[%s31723_s4 + $0x12c0] sm:$0xff]  }
 0xf32   :  { %23162 = vmatprep.subr.bf16.mxu1 %v25926_v44  ;;  %v25950_v44 = vld [vmem:[%s31723_s4 + $0x12c8] sm:$0xff]  }
 0xf35   :  { %23163 = vmatpush3.bf16.msra.mxu1 %v25927_v51  ;;  %v25951_v51 = vld [vmem:[%s31723_s4 + $0x12d0] sm:$0xff]  }
 0xf36   :  { %23164 = vmatprep.subr.bf16.mxu1 %v25928_v25  ;;  %v25952_v25 = vld [vmem:[%s31723_s4 + $0x12d8] sm:$0xff]  }
 0xf39   :  { %23165 = vmatpush3.bf16.msra.mxu1 %v25929_v3  ;;  %v25953_v3 = vld [vmem:[%s31723_s4 + $0x12e0] sm:$0xff]  }
 0xf3c   :  { %7766 = vmatmul.mubr.bf16.vlgmr.msra.gmra.mrb[80].mxu1 %v26784_v26 }
 0xf3d   :  { %24099 = vmatprep.mubr.msk.bf16.mxu1 %vm1457_vm5, %v25930_v59  ;;  %v25954_v59 = vld [vmem:[%s31723_s4 + $0x12e8] sm:$0xff]  }
0x100f   :  { %v23166_v35 = vpop.f32.mrb[80].mxu1 }
0x1010   :  { %v23167_v38 = vpop.f32.mrb[81].mxu1 }
0x1011   :  { %v23168_v23 = vadd.f32 %v23167_v38, %v23166_v35  ;;  %v23169_v57 = vpop.f32.mrb[82].mxu1  ;;  %v25955_v35 = vld [vmem:[%s31723_s4 + $0x12f0] sm:$0xff]   ;;  %v25956_v38 = vld [vmem:[%s31723_s4 + $0x12f8] ss:$0 sps:$4 sm:$0xff]  }
0x1012   :  { %v23170_v24 = vpop.f32.mrb[83].mxu1 }
0x1013   :  { %v7768_v49 = vadd.f32 %v23168_v23, %v28464_v63  ;;  %v23171_v12 = vadd.f32 %v23170_v24, %v23169_v57  ;;  %v25933_v63 = vld [vmem:[%s31723_s4 + $0x11b8] sm:$0xff]   ;;  %v8216_v23 = vsel %vm858_vm4, %v25956_v38, 0  ;;  %v25957_v57 = vld [vmem:[%s31724_s5 + $0xe0] sm:$0xff]  }
0x1015   :  { %v7809_v48 = vadd.f32 %v28524_v53, %v7768_v49  ;;  %v7771_v1 = vadd.f32 %v23171_v12, %v28472_v14  ;;  %v25934_v14 = vld [vmem:[%s31723_s4 + $0x1200] sm:$0xff]  }
0x1016   :  { %v25935_v53 = vld [vmem:[%s31723_s4 + $0x11c0] sm:$0xff]  }
0x1017   :  { %v7812_v47 = vadd.f32 %v28526_v55, %v7771_v1  ;;  %v25936_v55 = vld [vmem:[%s31723_s4 + $0x1208] sm:$0xff]  }
0x1019   :  { %v7820_v46 = vpack.c.bf16 %v7812_v47, %v7809_v48 }
0x101b   :  { %24097 = vmatprep.subr.bf16.mxu1 %v7820_v46 }
0x101c   :  { %24098 = vmatpush3.bf16.msra.mxu1 %v7820_v46 }
0x101d   :  { %23175 = vmatprep.subr.bf16.mxu1 %v25932_v15 }
0x101f   :  { %24100 = vmatmul.mubr.msk.bf16.vlgmr.msra.gmra.mrb[16].mxu1 %vm1457_vm5, %v25931_v0 }
0x1020   :  { %23176 = vmatpush3.bf16.msra.mxu1 %v25933_v63  ;;  %8250 = vmatprep.mubr.bf16.mxu1 %v26782_v21 }
0x1021   :  { %23177 = vmatprep.subr.bf16.mxu1 %v25934_v14 }
0x1024   :  { %23178 = vmatpush3.bf16.msra.mxu1 %v25935_v53 }
0x1025   :  { %23179 = vmatprep.subr.bf16.mxu1 %v25936_v55 }
0x1028   :  { %23180 = vmatpush3.bf16.msra.mxu1 %v25937_v45 }
0x1029   :  { %23181 = vmatprep.subr.bf16.mxu1 %v25938_v13 }
0x102c   :  { %23182 = vmatpush3.bf16.msra.mxu1 %v25939_v62  ;;  %v25959_v62 = vld [vmem:[%s31723_s4 + $0x13bc] sm:$0xff]  }
0x102d   :  { %23183 = vmatprep.subr.bf16.mxu1 %v25940_v8  ;;  %v25958_v8 = vld [vmem:[%s31724_s5 + $0xe8] sm:$0xff]  }
0x1030   :  { %23184 = vmatpush3.bf16.msra.mxu1 %v25941_v18  ;;  %v25962_v18 = vld [vmem:[%s31723_s4 + $0x1384] sm:$0xff]  }
0x1031   :  { %23185 = vmatprep.subr.bf16.mxu1 %v25942_v39  ;;  %v25963_v39 = vld [vmem:[%s31723_s4 + $0x13cc] sm:$0xff]  }
0x1034   :  { %23186 = vmatpush3.bf16.msra.mxu1 %v25943_v2  ;;  %v25964_v2 = vld [vmem:[%s31723_s4 + $0x138c] sm:$0xff]  }
0x1035   :  { %23187 = vmatprep.subr.bf16.mxu1 %v25944_v28  ;;  %v25965_v28 = vld [vmem:[%s31723_s4 + $0x13d4] sm:$0xff]  }
0x1038   :  { %23188 = vmatpush3.bf16.msra.mxu1 %v25945_v5  ;;  %v25966_v5 = vld [vmem:[%s31723_s4 + $0x1394] sm:$0xff]  }
0x1039   :  { %23189 = vmatprep.subr.bf16.mxu1 %v25946_v32  ;;  %v25967_v32 = vld [vmem:[%s31723_s4 + $0x13dc] sm:$0xff]  }
0x103c   :  { %23190 = vmatpush3.bf16.msra.mxu1 %v25947_v9  ;;  %v25968_v9 = vld [vmem:[%s31723_s4 + $0x139c] sm:$0xff]  }
0x103d   :  { %8300 = vmatprep.subr.bf16.mxu1 %v31745_v36 }
0x103f   :  { %8251 = vmatmul.mubr.bf16.vlgmr.msra.gmra.mrb[84].mxu1 %v26780_v19 }
0x1040   :  { %8301 = vmatpush1.bf16.msra.mxu1 %v25948_v20  ;;  %20464 = vmatprep.mubr.msk.bf16.mxu1 %vm395_vm3, %v26797_v33  ;;  %v25969_v20 = vld [vmem:[%s31723_s4 + $0x13e4] sm:$0xff]  }
0x1041   :  { %8302 = vmatprep.subr.bf16.mxu1 %v31745_v36 }
0x1044   :  { %8303 = vmatpush1.bf16.msra.mxu1 %v25949_v52  ;;  %v25970_v52 = vld [vmem:[%s31723_s4 + $0x13a4] sm:$0xff]  }
0x1045   :  { %8304 = vmatprep.subr.bf16.mxu1 %v31745_v36 }
0x1048   :  { %8305 = vmatpush1.bf16.msra.mxu1 %v25950_v44  ;;  %v25971_v44 = vld [vmem:[%s31723_s4 + $0x13ec] sm:$0xff]  }
0x1049   :  { %8306 = vmatprep.subr.bf16.mxu1 %v31745_v36 }
0x104c   :  { %8307 = vmatpush1.bf16.msra.mxu1 %v25951_v51  ;;  %v25972_v51 = vld [vmem:[%s31723_s4 + $0x13ac] sm:$0xff]  }
0x104d   :  { %8308 = vmatprep.subr.bf16.mxu1 %v31745_v36 }
0x1050   :  { %8309 = vmatpush1.bf16.msra.mxu1 %v25952_v25  ;;  %v25973_v25 = vld [vmem:[%s31723_s4 + $0x13f4] sm:$0xff]  }
0x1051   :  { %8310 = vmatprep.subr.bf16.mxu1 %v31745_v36 }
0x1054   :  { %8311 = vmatpush1.bf16.msra.mxu1 %v25953_v3  ;;  %v25974_v3 = vld [vmem:[%s31723_s4 + $0x13b4] sm:$0xff]  }
0x1055   :  { %8312 = vmatprep.subr.bf16.mxu1 %v31745_v36 }
0x1058   :  { %8313 = vmatpush1.bf16.msra.mxu1 %v25954_v59  ;;  %v25975_v59 = vld [vmem:[%s31724_s5 + $0xf0] sm:$0xff]  }
0x1059   :  { %8314 = vmatprep.subr.bf16.mxu1 %v31745_v36 }
0x105c   :  { %8315 = vmatpush1.bf16.msra.mxu1 %v25955_v35 }
0x105d   :  { %8316 = vmatprep.subr.bf16.mxu1 %v31745_v36 }
0x1060   :  { %8317 = vmatpush1.bf16.msra.mxu1 %v8216_v23 }
0x1063   :  { %8333 = vmatmul.mubr.bf16.vlgmr.msra.gmra.mrb[88].mxu1 %v26788_v29 }
0x1064   :  { %24105 = vmatprep.mubr.msk.bf16.mxu1 %vm1457_vm5, %v25957_v57 }
0x1112   :  { %v23191_v24 = vpop.f32.mrb[84].mxu1 }
0x1113   :  { %v23192_v49 = vpop.f32.mrb[85].mxu1 }
0x1114   :  { %v23193_v12 = vadd.f32 %v23192_v49, %v23191_v24  ;;  %v23194_v48 = vpop.f32.mrb[86].mxu1 }
0x1115   :  { %v23195_v1 = vpop.f32.mrb[87].mxu1 }
0x1116   :  { %v23196_v47 = vadd.f32 %v23195_v1, %v23194_v48  ;;  %v8294_v46 = vadd.f32 %v28566_v40, %v23193_v12  ;;  %v25960_v40 = vld [vmem:[%s31723_s4 + $0x137c] sm:$0xff]  }
0x1118   :  { %v8297_v15 = vadd.f32 %v28572_v31, %v23196_v47  ;;  %v25961_v31 = vld [vmem:[%s31723_s4 + $0x13c4] sm:$0xff]  }
0x1136   :  { %v8334_v0 = vpop.f32.mrb[88].mxu1 }
0x1137   :  { %v8335_v63 = vadd.f32 %v8334_v0, %v8294_v46  ;;  %v8336_v14 = vpop.f32.mrb[89].mxu1  ;;  %v25976_v0 = vld [vmem:[%s31724_s5 + $0xf8] sm:$0xff]  }
0x1138   :  { %v8337_v53 = vpop.f32.mrb[90].mxu1  ;;  %v25983_v14 = vld [vmem:[%s31723_s4 + $0x1498] sm:$0xff]  }
0x1139   :  { %v8338_v55 = vadd.f32 %v8337_v53, %v8297_v15  ;;  %v8339_v45 = vpop.f32.mrb[91].mxu1  ;;  %v25977_v15 = vld [vmem:[%s31723_s4 + $0x1480] sm:$0xff]   ;;  %v25984_v53 = vld [vmem:[%s31723_s4 + $0x1458] sm:$0xff]  }
0x113a   :  { %v25986_v45 = vld [vmem:[%s31723_s4 + $0x1460] sm:$0xff]  }
0x113b   :  { %v8346_v13 = vpack.c.bf16 %v8338_v55, %v8335_v63  ;;  %v25982_v63 = vld [vmem:[%s31723_s4 + $0x1450] sm:$0xff]   ;;  %v25985_v55 = vld [vmem:[%s31723_s4 + $0x14a0] sm:$0xff]  }
0x113d   :  { %24103 = vmatprep.subr.bf16.mxu1 %v8346_v13 }
0x113e   :  { %24104 = vmatpush3.bf16.msra.mxu1 %v8346_v13  ;;  %v25987_v13 = vld [vmem:[%s31723_s4 + $0x14a8] sm:$0xff]  }
0x113f   :  { %23244 = vmatprep.subr.bf16.mxu1 %v25959_v62  ;;  %v25988_v62 = vld [vmem:[%s31723_s4 + $0x1468] sm:$0xff]  }
0x1141   :  { %24106 = vmatmul.mubr.msk.bf16.vlgmr.msra.gmra.mrb[16].mxu1 %vm1457_vm5, %v25958_v8  ;;  %v25989_v8 = vld [vmem:[%s31723_s4 + $0x14b0] sm:$0xff]  }
0x1142   :  { %23245 = vmatpush3.bf16.msra.mxu1 %v25960_v40  ;;  %8817 = vmatprep.mubr.bf16.mxu1 %v26786_v27  ;;  %v25990_v40 = vld [vmem:[%s31723_s4 + $0x1470] sm:$0xff]  }
0x1143   :  { %23246 = vmatprep.subr.bf16.mxu1 %v25961_v31  ;;  %v25991_v31 = vld [vmem:[%s31723_s4 + $0x14b8] sm:$0xff]  }
0x1146   :  { %23247 = vmatpush3.bf16.msra.mxu1 %v25962_v18  ;;  %v25992_v18 = vld [vmem:[%s31723_s4 + $0x1478] sm:$0xff]  }
0x1147   :  { %23248 = vmatprep.subr.bf16.mxu1 %v25963_v39  ;;  %v25993_v39 = vld [vmem:[%s31723_s4 + $0x1540] sm:$0xff]  }
0x114a   :  { %23249 = vmatpush3.bf16.msra.mxu1 %v25964_v2  ;;  %v25994_v2 = vld [vmem:[%s31723_s4 + $0x1548] sm:$0xff]  }
0x114b   :  { %23250 = vmatprep.subr.bf16.mxu1 %v25965_v28  ;;  %v25995_v28 = vld [vmem:[%s31723_s4 + $0x1550] sm:$0xff]  }
0x114e   :  { %23251 = vmatpush3.bf16.msra.mxu1 %v25966_v5  ;;  %v25996_v5 = vld [vmem:[%s31723_s4 + $0x1558] sm:$0xff]  }
0x114f   :  { %23252 = vmatprep.subr.bf16.mxu1 %v25967_v32  ;;  %v25997_v32 = vld [vmem:[%s31723_s4 + $0x1560] sm:$0xff]  }
0x1152   :  { %23253 = vmatpush3.bf16.msra.mxu1 %v25968_v9  ;;  %v25998_v9 = vld [vmem:[%s31723_s4 + $0x1568] sm:$0xff]  }
0x1153   :  { %23254 = vmatprep.subr.bf16.mxu1 %v25969_v20  ;;  %v25999_v20 = vld [vmem:[%s31723_s4 + $0x1570] sm:$0xff]  }
0x1156   :  { %23255 = vmatpush3.bf16.msra.mxu1 %v25970_v52  ;;  %v26000_v52 = vld [vmem:[%s31723_s4 + $0x1578] sm:$0xff]  }
0x1157   :  { %23256 = vmatprep.subr.bf16.mxu1 %v25971_v44  ;;  %v26001_v44 = vld [vmem:[%s31723_s4 + $0x1580] ss:$0 sps:$4 sm:$0xff]  }
0x115a   :  { %23257 = vmatpush3.bf16.msra.mxu1 %v25972_v51  ;;  %v9268_v51 = vsel %vm858_vm4, %v26001_v44, 0  ;;  %v26022_v44 = vld [vmem:[%s31723_s4 + $0x1760] sm:$0xff]  }
0x115b   :  { %23258 = vmatprep.subr.bf16.mxu1 %v25973_v25  ;;  %v26002_v25 = vld [vmem:[%s31724_s5 + $0x100] sm:$0xff]  }
0x115e   :  { %23259 = vmatpush3.bf16.msra.mxu1 %v25974_v3 }
0x1161   :  { %8818 = vmatmul.mubr.bf16.vlgmr.msra.gmra.mrb[92].mxu1 %v26784_v26 }
0x1162   :  { %24111 = vmatprep.mubr.msk.bf16.mxu1 %vm1457_vm5, %v25975_v59 }
0x1234   :  { %v23260_v35 = vpop.f32.mrb[92].mxu1 }
0x1235   :  { %v23261_v38 = vpop.f32.mrb[93].mxu1 }
0x1236   :  { %v23262_v23 = vadd.f32 %v23261_v38, %v23260_v35  ;;  %v23263_v57 = vpop.f32.mrb[94].mxu1 }
0x1237   :  { %v23264_v24 = vpop.f32.mrb[95].mxu1 }
0x1238   :  { %v8820_v49 = vadd.f32 %v23262_v23, %v28620_v6  ;;  %v23265_v12 = vadd.f32 %v23264_v24, %v23263_v57  ;;  %v25978_v6 = vld [vmem:[%s31723_s4 + $0x1440] sm:$0xff]  }
0x123a   :  { %v8861_v48 = vadd.f32 %v28680_v60, %v8820_v49  ;;  %v8823_v1 = vadd.f32 %v23265_v12, %v28628_v37  ;;  %v25979_v37 = vld [vmem:[%s31723_s4 + $0x1488] sm:$0xff]  }
0x123b   :  { %v25980_v60 = vld [vmem:[%s31723_s4 + $0x1448] sm:$0xff]  }
0x123c   :  { %v8864_v47 = vadd.f32 %v28682_v4, %v8823_v1  ;;  %v25981_v4 = vld [vmem:[%s31723_s4 + $0x1490] sm:$0xff]  }
0x123e   :  { %v8872_v46 = vpack.c.bf16 %v8864_v47, %v8861_v48 }
0x1240   :  { %24109 = vmatprep.subr.bf16.mxu1 %v8872_v46 }
0x1241   :  { %24110 = vmatpush3.bf16.msra.mxu1 %v8872_v46 }
0x1242   :  { %23269 = vmatprep.subr.bf16.mxu1 %v25977_v15 }
0x1244   :  { %24112 = vmatmul.mubr.msk.bf16.vlgmr.msra.gmra.mrb[16].mxu1 %vm1457_vm5, %v25976_v0 }
0x1245   :  { %23270 = vmatpush3.bf16.msra.mxu1 %v25978_v6  ;;  %9302 = vmatprep.mubr.bf16.mxu1 %v26782_v21  ;;  %v26003_v6 = vld [vmem:[%s31724_s5 + $0x108] sm:$0xff]  }
0x1246   :  { %23271 = vmatprep.subr.bf16.mxu1 %v25979_v37  ;;  %v26004_v37 = vld [vmem:[%s31723_s4 + $0x1684] sm:$0xff]  }
0x1249   :  { %23272 = vmatpush3.bf16.msra.mxu1 %v25980_v60  ;;  %v26007_v60 = vld [vmem:[%s31723_s4 + $0x169c] sm:$0xff]  }
0x124a   :  { %23273 = vmatprep.subr.bf16.mxu1 %v25981_v4  ;;  %v26008_v4 = vld [vmem:[%s31723_s4 + $0x16a4] sm:$0xff]  }
0x124d   :  { %23274 = vmatpush3.bf16.msra.mxu1 %v25982_v63  ;;  %v26009_v63 = vld [vmem:[%s31723_s4 + $0x16ac] sm:$0xff]  }
0x124e   :  { %23275 = vmatprep.subr.bf16.mxu1 %v25983_v14  ;;  %v26010_v14 = vld [vmem:[%s31723_s4 + $0x16b4] sm:$0xff]  }
0x1251   :  { %23276 = vmatpush3.bf16.msra.mxu1 %v25984_v53  ;;  %v26011_v53 = vld [vmem:[%s31723_s4 + $0x16bc] sm:$0xff]  }
0x1252   :  { %23277 = vmatprep.subr.bf16.mxu1 %v25985_v55  ;;  %v26012_v55 = vld [vmem:[%s31723_s4 + $0x16c4] ss:$0 sps:$4 sm:$0xff]  }
0x1255   :  { %23278 = vmatpush3.bf16.msra.mxu1 %v25986_v45  ;;  %v9794_v45 = vsel %vm858_vm4, %v26012_v55, 0  ;;  %v26042_v55 = vld [vmem:[%s31723_s4 + $0x182c] sm:$0xff]  }
0x1256   :  { %23279 = vmatprep.subr.bf16.mxu1 %v25987_v13  ;;  %v26013_v13 = vld [vmem:[%s31724_s5 + $0x110] sm:$0xff]  }
0x1259   :  { %23280 = vmatpush3.bf16.msra.mxu1 %v25988_v62 }
0x125a   :  { %23281 = vmatprep.subr.bf16.mxu1 %v25989_v8 }
0x125d   :  { %23282 = vmatpush3.bf16.msra.mxu1 %v25990_v40 }
0x125e   :  { %23283 = vmatprep.subr.bf16.mxu1 %v25991_v31 }
0x1261   :  { %23284 = vmatpush3.bf16.msra.mxu1 %v25992_v18 }
0x1262   :  { %9352 = vmatprep.subr.bf16.mxu1 %v31745_v36 }
0x1264   :  { %9303 = vmatmul.mubr.bf16.vlgmr.msra.gmra.mrb[96].mxu1 %v26780_v19 }
0x1265   :  { %9353 = vmatpush1.bf16.msra.mxu1 %v25993_v39  ;;  %20726 = vmatprep.mubr.msk.bf16.mxu1 %vm395_vm3, %v26797_v33 }
0x1266   :  { %9354 = vmatprep.subr.bf16.mxu1 %v31745_v36 }
0x1269   :  { %9355 = vmatpush1.bf16.msra.mxu1 %v25994_v2 }
0x126a   :  { %9356 = vmatprep.subr.bf16.mxu1 %v31745_v36 }
0x126d   :  { %9357 = vmatpush1.bf16.msra.mxu1 %v25995_v28  ;;  %v26015_v28 = vld [vmem:[%s31723_s4 + $0x1788] sm:$0xff]  }
0x126e   :  { %9358 = vmatprep.subr.bf16.mxu1 %v31745_v36 }
0x1271   :  { %9359 = vmatpush1.bf16.msra.mxu1 %v25996_v5  ;;  %v26014_v5 = vld [vmem:[%s31724_s5 + $0x118] sm:$0xff]  }
0x1272   :  { %9360 = vmatprep.subr.bf16.mxu1 %v31745_v36 }
0x1275   :  { %9361 = vmatpush1.bf16.msra.mxu1 %v25997_v32  ;;  %v26018_v32 = vld [vmem:[%s31723_s4 + $0x1750] sm:$0xff]  }
0x1276   :  { %9362 = vmatprep.subr.bf16.mxu1 %v31745_v36 }
0x1279   :  { %9363 = vmatpush1.bf16.msra.mxu1 %v25998_v9  ;;  %v26019_v9 = vld [vmem:[%s31723_s4 + $0x1798] sm:$0xff]  }
0x127a   :  { %9364 = vmatprep.subr.bf16.mxu1 %v31745_v36 }
0x127d   :  { %9365 = vmatpush1.bf16.msra.mxu1 %v25999_v20  ;;  %v26020_v20 = vld [vmem:[%s31723_s4 + $0x1758] sm:$0xff]  }
0x127e   :  { %9366 = vmatprep.subr.bf16.mxu1 %v31745_v36 }
0x1281   :  { %9367 = vmatpush1.bf16.msra.mxu1 %v26000_v52  ;;  %v26021_v52 = vld [vmem:[%s31723_s4 + $0x17a0] sm:$0xff]  }
0x1282   :  { %9368 = vmatprep.subr.bf16.mxu1 %v31745_v36 }
0x1285   :  { %9369 = vmatpush1.bf16.msra.mxu1 %v9268_v51  ;;  %v26023_v51 = vld [vmem:[%s31723_s4 + $0x17a8] sm:$0xff]  }
0x1288   :  { %9385 = vmatmul.mubr.bf16.vlgmr.msra.gmra.mrb[100].mxu1 %v26788_v29 }
0x1289   :  { %24117 = vmatprep.mubr.msk.bf16.mxu1 %vm1457_vm5, %v26002_v25  ;;  %v26024_v25 = vld [vmem:[%s31723_s4 + $0x1768] sm:$0xff]  }
0x1337   :  { %v23285_v3 = vpop.f32.mrb[96].mxu1 }
0x1338   :  { %v23286_v59 = vpop.f32.mrb[97].mxu1 }
0x1339   :  { %v23287_v35 = vadd.f32 %v23286_v59, %v23285_v3  ;;  %v23288_v38 = vpop.f32.mrb[98].mxu1  ;;  %v26025_v3 = vld [vmem:[%s31723_s4 + $0x17b0] sm:$0xff]  }
0x133a   :  { %v23289_v23 = vpop.f32.mrb[99].mxu1  ;;  %v26026_v59 = vld [vmem:[%s31723_s4 + $0x1770] sm:$0xff]  }
0x133b   :  { %v23290_v57 = vadd.f32 %v23289_v23, %v23288_v38  ;;  %v9346_v24 = vadd.f32 %v28722_v22, %v23287_v35  ;;  %v26005_v22 = vld [vmem:[%s31723_s4 + $0x168c] sm:$0xff]   ;;  %v26027_v35 = vld [vmem:[%s31723_s4 + $0x17b8] sm:$0xff]   ;;  %v26029_v23 = vld [vmem:[%s31723_s4 + $0x17c0] sm:$0xff]  }
0x133c   :  { %v26028_v38 = vld [vmem:[%s31723_s4 + $0x1778] sm:$0xff]  }
0x133d   :  { %v9349_v49 = vadd.f32 %v28728_v58, %v23290_v57  ;;  %v26006_v58 = vld [vmem:[%s31723_s4 + $0x1694] sm:$0xff]   ;;  %v26030_v57 = vld [vmem:[%s31723_s4 + $0x1780] sm:$0xff]  }
0x135b   :  { %v9386_v12 = vpop.f32.mrb[100].mxu1 }
0x135c   :  { %v9387_v48 = vadd.f32 %v9386_v12, %v9346_v24  ;;  %v9388_v1 = vpop.f32.mrb[101].mxu1  ;;  %v26031_v24 = vld [vmem:[%s31724_s5 + $0x120] sm:$0xff]  }
0x135d   :  { %v9389_v47 = vpop.f32.mrb[102].mxu1 }
0x135e   :  { %v9390_v46 = vadd.f32 %v9389_v47, %v9349_v49  ;;  %v9391_v15 = vpop.f32.mrb[103].mxu1 }
0x1360   :  { %v9398_v0 = vpack.c.bf16 %v9390_v46, %v9387_v48 }
0x1362   :  { %24115 = vmatprep.subr.bf16.mxu1 %v9398_v0 }
0x1363   :  { %24116 = vmatpush3.bf16.msra.mxu1 %v9398_v0 }
0x1364   :  { %9878 = vmatprep.subr.bf16.mxu1 %v31745_v36 }
0x1366   :  { %24118 = vmatmul.mubr.msk.bf16.vlgmr.msra.gmra.mrb[16].mxu1 %vm1457_vm5, %v26003_v6 }
0x1367   :  { %9879 = vmatpush1.bf16.msra.mxu1 %v26004_v37  ;;  %20857 = vmatprep.mubr.msk.bf16.mxu1 %vm395_vm3, %v26797_v33 }
0x1368   :  { %9880 = vmatprep.subr.bf16.mxu1 %v31745_v36 }
0x136b   :  { %9881 = vmatpush1.bf16.msra.mxu1 %v26005_v22 }
0x136c   :  { %9882 = vmatprep.subr.bf16.mxu1 %v31745_v36 }
0x136f   :  { %9883 = vmatpush1.bf16.msra.mxu1 %v26006_v58  ;;  %v26033_v58 = vld [vmem:[%s31723_s4 + $0x184c] sm:$0xff]  }
0x1370   :  { %9884 = vmatprep.subr.bf16.mxu1 %v31745_v36 }
0x1373   :  { %9885 = vmatpush1.bf16.msra.mxu1 %v26007_v60  ;;  %v26032_v60 = vld [vmem:[%s31724_s5 + $0x128] sm:$0xff]  }
0x1374   :  { %9886 = vmatprep.subr.bf16.mxu1 %v31745_v36 }
0x1377   :  { %9887 = vmatpush1.bf16.msra.mxu1 %v26008_v4  ;;  %v26038_v4 = vld [vmem:[%s31723_s4 + $0x181c] sm:$0xff]  }
0x1378   :  { %9888 = vmatprep.subr.bf16.mxu1 %v31745_v36 }
0x137b   :  { %9889 = vmatpush1.bf16.msra.mxu1 %v26009_v63  ;;  %v26039_v63 = vld [vmem:[%s31723_s4 + $0x1864] sm:$0xff]  }
0x137c   :  { %9890 = vmatprep.subr.bf16.mxu1 %v31745_v36 }
0x137f   :  { %9891 = vmatpush1.bf16.msra.mxu1 %v26010_v14  ;;  %v26040_v14 = vld [vmem:[%s31723_s4 + $0x1824] sm:$0xff]  }
0x1380   :  { %9892 = vmatprep.subr.bf16.mxu1 %v31745_v36 }
0x1383   :  { %9893 = vmatpush1.bf16.msra.mxu1 %v26011_v53  ;;  %v26041_v53 = vld [vmem:[%s31723_s4 + $0x186c] sm:$0xff]  }
0x1384   :  { %9894 = vmatprep.subr.bf16.mxu1 %v31745_v36 }
0x1387   :  { %9895 = vmatpush1.bf16.msra.mxu1 %v9794_v45  ;;  %v26043_v45 = vld [vmem:[%s31723_s4 + $0x1874] sm:$0xff]  }
0x138a   :  { %9911 = vmatmul.mubr.bf16.vlgmr.msra.gmra.mrb[104].mxu1 %v26788_v29 }
0x138b   :  { %24123 = vmatprep.mubr.msk.bf16.mxu1 %vm1457_vm5, %v26013_v13  ;;  %v26044_v13 = vld [vmem:[%s31723_s4 + $0x1834] sm:$0xff]  }
0x145d   :  { %v9912_v62 = vpop.f32.mrb[104].mxu1 }
0x145e   :  { %v9913_v8 = vadd.f32 %v9912_v62, %v28878_v61  ;;  %v9914_v40 = vpop.f32.mrb[105].mxu1  ;;  %v26016_v61 = vld [vmem:[%s31723_s4 + $0x1748] sm:$0xff]   ;;  %v26045_v62 = vld [vmem:[%s31723_s4 + $0x187c] sm:$0xff]  }
0x145f   :  { %v9915_v31 = vpop.f32.mrb[106].mxu1  ;;  %v26047_v40 = vld [vmem:[%s31723_s4 + $0x1884] sm:$0xff]  }
0x1460   :  { %v9916_v18 = vadd.f32 %v9915_v31, %v28884_v10  ;;  %v9917_v39 = vpop.f32.mrb[107].mxu1  ;;  %v26017_v10 = vld [vmem:[%s31723_s4 + $0x1790] sm:$0xff]   ;;  %v26048_v31 = vld [vmem:[%s31723_s4 + $0x1844] sm:$0xff]  }
0x1461   :  { %v26050_v39 = vld [vmem:[%s31723_s4 + $0x1914] sm:$0xff]  }
0x1462   :  { %v9924_v2 = vpack.c.bf16 %v9916_v18, %v9913_v8  ;;  %v26046_v8 = vld [vmem:[%s31723_s4 + $0x183c] sm:$0xff]   ;;  %v26049_v18 = vld [vmem:[%s31723_s4 + $0x190c] sm:$0xff]  }
0x1464   :  { %24121 = vmatprep.subr.bf16.mxu1 %v9924_v2 }
0x1465   :  { %24122 = vmatpush3.bf16.msra.mxu1 %v9924_v2  ;;  %v26051_v2 = vld [vmem:[%s31723_s4 + $0x191c] sm:$0xff]  }
0x1466   :  { %23385 = vmatprep.subr.bf16.mxu1 %v26015_v28  ;;  %v26052_v28 = vld [vmem:[%s31723_s4 + $0x1924] sm:$0xff]  }
0x1468   :  { %24124 = vmatmul.mubr.msk.bf16.vlgmr.msra.gmra.mrb[16].mxu1 %vm1457_vm5, %v26014_v5  ;;  %v26053_v5 = vld [vmem:[%s31723_s4 + $0x192c] sm:$0xff]  }
0x1469   :  { %23386 = vmatpush3.bf16.msra.mxu1 %v26016_v61  ;;  %10395 = vmatprep.mubr.bf16.mxu1 %v26786_v27  ;;  %v26054_v61 = vld [vmem:[%s31723_s4 + $0x1934] sm:$0xff]  }
0x146a   :  { %23387 = vmatprep.subr.bf16.mxu1 %v26017_v10  ;;  %v26055_v10 = vld [vmem:[%s31723_s4 + $0x193c] sm:$0xff]  }
0x146d   :  { %23388 = vmatpush3.bf16.msra.mxu1 %v26018_v32  ;;  %v26056_v32 = vld [vmem:[%s31723_s4 + $0x1944] sm:$0xff]  }
0x146e   :  { %23389 = vmatprep.subr.bf16.mxu1 %v26019_v9  ;;  %v26057_v9 = vld [vmem:[%s31723_s4 + $0x194c] ss:$0 sps:$4 sm:$0xff]  }
0x1471   :  { %23390 = vmatpush3.bf16.msra.mxu1 %v26020_v20  ;;  %v10846_v20 = vsel %vm858_vm4, %v26057_v9, 0 }
0x1472   :  { %23391 = vmatprep.subr.bf16.mxu1 %v26021_v52  ;;  %v26058_v52 = vld [vmem:[%s31724_s5 + $0x130] sm:$0xff]  }
0x1475   :  { %23392 = vmatpush3.bf16.msra.mxu1 %v26022_v44 }
0x1476   :  { %23393 = vmatprep.subr.bf16.mxu1 %v26023_v51 }
0x1479   :  { %23394 = vmatpush3.bf16.msra.mxu1 %v26024_v25 }
0x147a   :  { %23395 = vmatprep.subr.bf16.mxu1 %v26025_v3 }
0x147d   :  { %23396 = vmatpush3.bf16.msra.mxu1 %v26026_v59 }
0x147e   :  { %23397 = vmatprep.subr.bf16.mxu1 %v26027_v35 }
0x1481   :  { %23398 = vmatpush3.bf16.msra.mxu1 %v26028_v38  ;;  %v31748_v38 = vld [vmem:[#allocation2_spill] sm:$0xff] }
0x1482   :  { %23399 = vmatprep.subr.bf16.mxu1 %v26029_v23 }
0x1485   :  { %23400 = vmatpush3.bf16.msra.mxu1 %v26030_v57  ;;  %v31749_v57 = vld [vmem:[#allocation3_spill] sm:$0xff] }
0x1488   :  { %10396 = vmatmul.mubr.bf16.vlgmr.msra.gmra.mrb[108].mxu1 %v26784_v26 }
0x1489   :  { %24129 = vmatprep.mubr.msk.bf16.mxu1 %vm1457_vm5, %v26031_v24 }
0x155b   :  { %v23401_v49 = vpop.f32.mrb[108].mxu1 }
0x155c   :  { %v23402_v12 = vpop.f32.mrb[109].mxu1 }
0x155d   :  { %v23403_v48 = vadd.f32 %v23402_v12, %v23401_v49  ;;  %v23404_v1 = vpop.f32.mrb[110].mxu1 }
0x155e   :  { %v23405_v47 = vpop.f32.mrb[111].mxu1 }
0x155f   :  { %v10398_v46 = vadd.f32 %v23403_v48, %v28954_v7  ;;  %v23406_v15 = vadd.f32 %v23405_v47, %v23404_v1  ;;  %v26034_v7 = vld [vmem:[%s31723_s4 + $0x180c] sm:$0xff]  }
0x1561   :  { %v10439_v0 = vadd.f32 %v29024_v41, %v10398_v46  ;;  %v10401_v6 = vadd.f32 %v23406_v15, %v28965_v30  ;;  %v26035_v30 = vld [vmem:[%s31723_s4 + $0x1854] sm:$0xff]  }
0x1562   :  { %v26036_v41 = vld [vmem:[%s31723_s4 + $0x1814] sm:$0xff]  }
0x1563   :  { %v10442_v37 = vadd.f32 %v29026_v43, %v10401_v6  ;;  %v26037_v43 = vld [vmem:[%s31723_s4 + $0x185c] sm:$0xff]  }
0x1564   :  { %v26059_v6 = vld [vmem:[%s31724_s5 + $0x138] sm:$0xff]  }
0x1565   :  { %v10450_v22 = vpack.c.bf16 %v10442_v37, %v10439_v0  ;;  %v26060_v0 = vld [vmem:[%s31723_s4 + $0x1a10] sm:$0xff]  }
0x1566   :  { %v26061_v37 = vld [vmem:[%s31723_s4 + $0x19d0] sm:$0xff]  }
0x1567   :  { %24127 = vmatprep.subr.bf16.mxu1 %v10450_v22 }
0x1568   :  { %24128 = vmatpush3.bf16.msra.mxu1 %v10450_v22  ;;  %v26062_v22 = vld [vmem:[%s31723_s4 + $0x1a18] sm:$0xff]  }
0x1569   :  { %23410 = vmatprep.subr.bf16.mxu1 %v26033_v58  ;;  %v26063_v58 = vld [vmem:[%s31723_s4 + $0x19d8] sm:$0xff]  }
0x156b   :  { %24130 = vmatmul.mubr.msk.bf16.vlgmr.msra.gmra.mrb[16].mxu1 %vm1457_vm5, %v26032_v60  ;;  %v26064_v60 = vld [vmem:[%s31723_s4 + $0x1a20] sm:$0xff]  }
0x156c   :  { %23411 = vmatpush3.bf16.msra.mxu1 %v26034_v7  ;;  %10880 = vmatprep.mubr.bf16.mxu1 %v26782_v21  ;;  %v26065_v7 = vld [vmem:[%s31723_s4 + $0x19e0] sm:$0xff]  }
0x156d   :  { %23412 = vmatprep.subr.bf16.mxu1 %v26035_v30  ;;  %v26066_v30 = vld [vmem:[%s31723_s4 + $0x1a28] sm:$0xff]  }
0x1570   :  { %23413 = vmatpush3.bf16.msra.mxu1 %v26036_v41  ;;  %v26067_v41 = vld [vmem:[%s31723_s4 + $0x19e8] sm:$0xff]  }
0x1571   :  { %23414 = vmatprep.subr.bf16.mxu1 %v26037_v43  ;;  %v26068_v43 = vld [vmem:[%s31723_s4 + $0x1a30] sm:$0xff]  }
0x1574   :  { %23415 = vmatpush3.bf16.msra.mxu1 %v26038_v4  ;;  %v26069_v4 = vld [vmem:[%s31723_s4 + $0x19f0] sm:$0xff]  }
0x1575   :  { %23416 = vmatprep.subr.bf16.mxu1 %v26039_v63  ;;  %v26070_v63 = vld [vmem:[%s31723_s4 + $0x1a38] sm:$0xff]  }
0x1578   :  { %23417 = vmatpush3.bf16.msra.mxu1 %v26040_v14  ;;  %v26071_v14 = vld [vmem:[%s31723_s4 + $0x19f8] sm:$0xff]  }
0x1579   :  { %23418 = vmatprep.subr.bf16.mxu1 %v26041_v53  ;;  %v26072_v53 = vld [vmem:[%s31723_s4 + $0x1a40] sm:$0xff]  }
0x157c   :  { %23419 = vmatpush3.bf16.msra.mxu1 %v26042_v55  ;;  %v26073_v55 = vld [vmem:[%s31723_s4 + $0x1a00] sm:$0xff]  }
0x157d   :  { %23420 = vmatprep.subr.bf16.mxu1 %v26043_v45  ;;  %v26074_v45 = vld [vmem:[%s31723_s4 + $0x1a48] sm:$0xff]  }
0x1580   :  { %23421 = vmatpush3.bf16.msra.mxu1 %v26044_v13  ;;  %v26075_v13 = vld [vmem:[%s31723_s4 + $0x1a08] sm:$0xff]  }
0x1581   :  { %23422 = vmatprep.subr.bf16.mxu1 %v26045_v62  ;;  %v26076_v62 = vld [vmem:[%s31724_s5 + $0x140] sm:$0xff]  }
0x1584   :  { %23423 = vmatpush3.bf16.msra.mxu1 %v26046_v8 }
0x1585   :  { %23424 = vmatprep.subr.bf16.mxu1 %v26047_v40 }
0x1588   :  { %23425 = vmatpush3.bf16.msra.mxu1 %v26048_v31 }
0x1589   :  { %10930 = vmatprep.subr.bf16.mxu1 %v31745_v36 }
0x158b   :  { %10881 = vmatmul.mubr.bf16.vlgmr.msra.gmra.mrb[112].mxu1 %v26780_v19 }
0x158c   :  { %10931 = vmatpush1.bf16.msra.mxu1 %v26049_v18  ;;  %21119 = vmatprep.mubr.msk.bf16.mxu1 %vm395_vm3, %v26797_v33 }
0x158d   :  { %10932 = vmatprep.subr.bf16.mxu1 %v31745_v36 }
0x1590   :  { %10933 = vmatpush1.bf16.msra.mxu1 %v26050_v39 }
0x1591   :  { %10934 = vmatprep.subr.bf16.mxu1 %v31745_v36 }
0x1594   :  { %10935 = vmatpush1.bf16.msra.mxu1 %v26051_v2  ;;  %v31750_v2 = vld [vmem:[#allocation4_spill] sm:$0xff] }
0x1595   :  { %10936 = vmatprep.subr.bf16.mxu1 %v31745_v36 }
0x1598   :  { %10937 = vmatpush1.bf16.msra.mxu1 %v26052_v28 }
0x1599   :  { %10938 = vmatprep.subr.bf16.mxu1 %v31745_v36 }
0x159c   :  { %10939 = vmatpush1.bf16.msra.mxu1 %v26053_v5 }
0x159d   :  { %10940 = vmatprep.subr.bf16.mxu1 %v31745_v36 }
0x15a0   :  { %10941 = vmatpush1.bf16.msra.mxu1 %v26054_v61  ;;  %v31751_v61 = vld [vmem:[#allocation6_spill] sm:$0xff] }
0x15a1   :  { %10942 = vmatprep.subr.bf16.mxu1 %v31745_v36 }
0x15a4   :  { %10943 = vmatpush1.bf16.msra.mxu1 %v26055_v10 }
0x15a5   :  { %10944 = vmatprep.subr.bf16.mxu1 %v31745_v36 }
0x15a8   :  { %10945 = vmatpush1.bf16.msra.mxu1 %v26056_v32  ;;  %v31752_v32 = vld [vmem:[#allocation5_spill] sm:$0xff] }
0x15a9   :  { %10946 = vmatprep.subr.bf16.mxu1 %v31745_v36 }
0x15ac   :  { %10947 = vmatpush1.bf16.msra.mxu1 %v10846_v20  ;;  %v31753_v20 = vld [vmem:[#allocation7_spill] sm:$0xff] }
0x15af   :  { %10963 = vmatmul.mubr.bf16.vlgmr.msra.gmra.mrb[116].mxu1 %v26788_v29 }
0x15b0   :  { %24135 = vmatprep.mubr.msk.bf16.mxu1 %vm1457_vm5, %v26058_v52 }
0x165e   :  { %v23426_v44 = vpop.f32.mrb[112].mxu1 }
0x165f   :  { %v23427_v51 = vpop.f32.mrb[113].mxu1 }
0x1660   :  { %v23428_v25 = vadd.f32 %v23427_v51, %v23426_v44  ;;  %v23429_v3 = vpop.f32.mrb[114].mxu1  ;;  %v26078_v51 = vld [vmem:[%s31723_s4 + $0x1b54] sm:$0xff]  }
0x1661   :  { %v23430_v59 = vpop.f32.mrb[115].mxu1 }
0x1662   :  { %v23431_v35 = vadd.f32 %v23430_v59, %v23429_v3  ;;  %v10924_v23 = vadd.f32 %v31748_v38, %v23428_v25  ;;  %v26077_v25 = vld [vmem:[%s31724_s5 + $0x148] sm:$0xff]   ;;  %v26079_v3 = vld [vmem:[%s31723_s4 + $0x1b14] sm:$0xff]   ;;  %v26080_v59 = vld [vmem:[%s31723_s4 + $0x1b5c] sm:$0xff]  }
0x1663   :  { %v26082_v38 = vld [vmem:[%s31723_s4 + $0x1b64] sm:$0xff]  }
0x1664   :  { %v10927_v24 = vadd.f32 %v31749_v57, %v23431_v35  ;;  %v26081_v35 = vld [vmem:[%s31723_s4 + $0x1b1c] sm:$0xff]   ;;  %v26084_v57 = vld [vmem:[%s31723_s4 + $0x1b6c] sm:$0xff]  }
0x1682   :  { %v10964_v49 = vpop.f32.mrb[116].mxu1 }
0x1683   :  { %v10965_v12 = vadd.f32 %v10964_v49, %v10924_v23  ;;  %v10966_v48 = vpop.f32.mrb[117].mxu1  ;;  %v26083_v23 = vld [vmem:[%s31723_s4 + $0x1b24] sm:$0xff]   ;;  %v26086_v49 = vld [vmem:[%s31723_s4 + $0x1b74] sm:$0xff]  }
0x1684   :  { %v10967_v1 = vpop.f32.mrb[118].mxu1  ;;  %v26088_v48 = vld [vmem:[%s31723_s4 + $0x1b7c] sm:$0xff]  }
0x1685   :  { %v10968_v47 = vadd.f32 %v10967_v1, %v10927_v24  ;;  %v10969_v46 = vpop.f32.mrb[119].mxu1  ;;  %v26085_v24 = vld [vmem:[%s31723_s4 + $0x1b2c] sm:$0xff]   ;;  %v26089_v1 = vld [vmem:[%s31723_s4 + $0x1b3c] sm:$0xff]  }
0x1686   :  { %v26091_v46 = vld [vmem:[%s31723_s4 + $0x1b44] sm:$0xff]  }
0x1687   :  { %v10976_v15 = vpack.c.bf16 %v10968_v47, %v10965_v12  ;;  %v26087_v12 = vld [vmem:[%s31723_s4 + $0x1b34] sm:$0xff]   ;;  %v26090_v47 = vld [vmem:[%s31723_s4 + $0x1b84] sm:$0xff]  }
0x1689   :  { %24133 = vmatprep.subr.bf16.mxu1 %v10976_v15 }
0x168a   :  { %24134 = vmatpush3.bf16.msra.mxu1 %v10976_v15  ;;  %v26092_v15 = vld [vmem:[%s31723_s4 + $0x1b8c] sm:$0xff]  }
0x168b   :  { %23479 = vmatprep.subr.bf16.mxu1 %v26060_v0  ;;  %v26093_v0 = vld [vmem:[%s31723_s4 + $0x1b4c] sm:$0xff]  }
0x168d   :  { %24136 = vmatmul.mubr.msk.bf16.vlgmr.msra.gmra.mrb[16].mxu1 %vm1457_vm5, %v26059_v6  ;;  %v26094_v6 = vld [vmem:[%s31724_s5 + $0x150] sm:$0xff]  }
0x168e   :  { %23480 = vmatpush3.bf16.msra.mxu1 %v26061_v37  ;;  %11447 = vmatprep.mubr.bf16.mxu1 %v26786_v27 }
0x168f   :  { %23481 = vmatprep.subr.bf16.mxu1 %v26062_v22 }
0x1692   :  { %23482 = vmatpush3.bf16.msra.mxu1 %v26063_v58 }
0x1693   :  { %23483 = vmatprep.subr.bf16.mxu1 %v26064_v60 }
0x1696   :  { %23484 = vmatpush3.bf16.msra.mxu1 %v26065_v7 }
0x1697   :  { %23485 = vmatprep.subr.bf16.mxu1 %v26066_v30  ;;  %v31754_v30 = vld [vmem:[#allocation8_spill] sm:$0xff] }
0x169a   :  { %23486 = vmatpush3.bf16.msra.mxu1 %v26067_v41 }
0x169b   :  { %23487 = vmatprep.subr.bf16.mxu1 %v26068_v43 }
0x169e   :  { %23488 = vmatpush3.bf16.msra.mxu1 %v26069_v4 }
0x169f   :  { %23489 = vmatprep.subr.bf16.mxu1 %v26070_v63  ;;  %v31755_v63 = vld [vmem:[#allocation9_spill] sm:$0xff] }
0x16a2   :  { %23490 = vmatpush3.bf16.msra.mxu1 %v26071_v14 }
0x16a3   :  { %23491 = vmatprep.subr.bf16.mxu1 %v26072_v53 }
0x16a6   :  { %23492 = vmatpush3.bf16.msra.mxu1 %v26073_v55 }
0x16a7   :  { %23493 = vmatprep.subr.bf16.mxu1 %v26074_v45  ;;  %v26096_v45 = vld [vmem:[%s31723_s4 + $0x1c18] sm:$0xff]  }
0x16aa   :  { %23494 = vmatpush3.bf16.msra.mxu1 %v26075_v13  ;;  %v26095_v13 = vld [vmem:[%s31724_s5 + $0x158] sm:$0xff]  }
0x16ad   :  { %11448 = vmatmul.mubr.bf16.vlgmr.msra.gmra.mrb[120].mxu1 %v26784_v26 }
0x16ae   :  { %24141 = vmatprep.mubr.msk.bf16.mxu1 %vm1457_vm5, %v26076_v62  ;;  %v26097_v62 = vld [vmem:[%s31723_s4 + $0x1bd8] sm:$0xff]  }
0x1780   :  { %v23495_v8 = vpop.f32.mrb[120].mxu1 }
0x1781   :  { %v23496_v40 = vpop.f32.mrb[121].mxu1 }
0x1782   :  { %v23497_v31 = vadd.f32 %v23496_v40, %v23495_v8  ;;  %v23498_v18 = vpop.f32.mrb[122].mxu1  ;;  %v26100_v8 = vld [vmem:[%s31723_s4 + $0x1c28] sm:$0xff]  }
0x1783   :  { %v23499_v39 = vpop.f32.mrb[123].mxu1  ;;  %v26101_v40 = vld [vmem:[%s31723_s4 + $0x1be8] sm:$0xff]  }
0x1784   :  { %v11450_v28 = vadd.f32 %v23497_v31, %v31750_v2  ;;  %v23500_v5 = vadd.f32 %v23499_v39, %v23498_v18  ;;  %v26102_v31 = vld [vmem:[%s31723_s4 + $0x1c30] sm:$0xff]   ;;  %v26104_v39 = vld [vmem:[%s31723_s4 + $0x1c38] sm:$0xff]  }
0x1785   :  { %v26103_v18 = vld [vmem:[%s31723_s4 + $0x1bf0] sm:$0xff]   ;;  %v26105_v2 = vld [vmem:[%s31723_s4 + $0x1bf8] sm:$0xff]  }
0x1786   :  { %v11491_v10 = vadd.f32 %v31751_v61, %v11450_v28  ;;  %v11453_v9 = vadd.f32 %v23500_v5, %v31752_v32  ;;  %v26106_v28 = vld [vmem:[%s31723_s4 + $0x1c40] sm:$0xff]   ;;  %v26108_v61 = vld [vmem:[%s31723_s4 + $0x1c48] sm:$0xff]   ;;  %v26110_v32 = vld [vmem:[%s31723_s4 + $0x1c50] sm:$0xff]  }
0x1787   :  { %v26107_v5 = vld [vmem:[%s31723_s4 + $0x1c00] sm:$0xff]  }
0x1788   :  { %v11494_v52 = vadd.f32 %v31753_v20, %v11453_v9  ;;  %v26111_v9 = vld [vmem:[%s31723_s4 + $0x1c10] sm:$0xff]   ;;  %v26112_v20 = vld [vmem:[%s31723_s4 + $0x1cd8] sm:$0xff]  }
0x178a   :  { %v11502_v44 = vpack.c.bf16 %v11494_v52, %v11491_v10  ;;  %v26109_v10 = vld [vmem:[%s31723_s4 + $0x1c08] sm:$0xff]   ;;  %v26113_v52 = vld [vmem:[%s31723_s4 + $0x1ce0] sm:$0xff]  }
0x178c   :  { %24139 = vmatprep.subr.bf16.mxu1 %v11502_v44 }
0x178d   :  { %24140 = vmatpush3.bf16.msra.mxu1 %v11502_v44  ;;  %v26114_v44 = vld [vmem:[%s31723_s4 + $0x1ce8] sm:$0xff]  }
0x178e   :  { %23526 = vmatprep.subr.bf16.mxu1 %v26078_v51  ;;  %v26115_v51 = vld [vmem:[%s31723_s4 + $0x1cf0] sm:$0xff]  }
0x1790   :  { %24142 = vmatmul.mubr.msk.bf16.vlgmr.msra.gmra.mrb[16].mxu1 %vm1457_vm5, %v26077_v25  ;;  %v26116_v25 = vld [vmem:[%s31723_s4 + $0x1cf8] sm:$0xff]  }
0x1791   :  { %23527 = vmatpush3.bf16.msra.mxu1 %v26079_v3  ;;  %11973 = vmatprep.mubr.bf16.mxu1 %v26786_v27  ;;  %v26117_v3 = vld [vmem:[%s31723_s4 + $0x1d00] sm:$0xff]  }
0x1792   :  { %23528 = vmatprep.subr.bf16.mxu1 %v26080_v59  ;;  %v26118_v59 = vld [vmem:[%s31723_s4 + $0x1d08] sm:$0xff]  }
0x1795   :  { %23529 = vmatpush3.bf16.msra.mxu1 %v26081_v35  ;;  %v26119_v35 = vld [vmem:[%s31723_s4 + $0x1d10] sm:$0xff]  }
0x1796   :  { %23530 = vmatprep.subr.bf16.mxu1 %v26082_v38  ;;  %v26120_v38 = vld [vmem:[%s31723_s4 + $0x1d18] ss:$0 sps:$4 sm:$0xff]  }
0x1799   :  { %23531 = vmatpush3.bf16.msra.mxu1 %v26083_v23  ;;  %v12424_v23 = vsel %vm858_vm4, %v26120_v38, 0  ;;  %v26149_v38 = vld [vmem:[%s31723_s4 + $0x1ec0] sm:$0xff]  }
0x179a   :  { %23532 = vmatprep.subr.bf16.mxu1 %v26084_v57  ;;  %v26121_v57 = vld [vmem:[%s31724_s5 + $0x160] sm:$0xff]  }
0x179d   :  { %23533 = vmatpush3.bf16.msra.mxu1 %v26085_v24 }
0x179e   :  { %23534 = vmatprep.subr.bf16.mxu1 %v26086_v49 }
0x17a1   :  { %23535 = vmatpush3.bf16.msra.mxu1 %v26087_v12 }
0x17a2   :  { %23536 = vmatprep.subr.bf16.mxu1 %v26088_v48 }
0x17a5   :  { %23537 = vmatpush3.bf16.msra.mxu1 %v26089_v1 }
0x17a6   :  { %23538 = vmatprep.subr.bf16.mxu1 %v26090_v47 }
0x17a9   :  { %23539 = vmatpush3.bf16.msra.mxu1 %v26091_v46 }
0x17aa   :  { %23540 = vmatprep.subr.bf16.mxu1 %v26092_v15 }
0x17ad   :  { %23541 = vmatpush3.bf16.msra.mxu1 %v26093_v0 }
0x17b0   :  { %11974 = vmatmul.mubr.bf16.vlgmr.msra.gmra.mrb[124].mxu1 %v26784_v26 }
0x17b1   :  { %24147 = vmatprep.mubr.msk.bf16.mxu1 %vm1457_vm5, %v26094_v6 }
0x1883   :  { %v23542_v37 = vpop.f32.mrb[124].mxu1 }
0x1884   :  { %v23543_v22 = vpop.f32.mrb[125].mxu1 }
0x1885   :  { %v23544_v58 = vadd.f32 %v23543_v22, %v23542_v37  ;;  %v23545_v60 = vpop.f32.mrb[126].mxu1 }
0x1886   :  { %v23546_v7 = vpop.f32.mrb[127].mxu1 }
0x1887   :  { %v11976_v41 = vadd.f32 %v23544_v58, %v31754_v30  ;;  %v23547_v43 = vadd.f32 %v23546_v7, %v23545_v60  ;;  %v26123_v30 = vld [vmem:[%s31723_s4 + $0x1ddc] sm:$0xff]  }
0x1889   :  { %v12017_v4 = vadd.f32 %v29162_v11, %v11976_v41  ;;  %v11979_v14 = vadd.f32 %v23547_v43, %v31755_v63  ;;  %v26099_v11 = vld [vmem:[%s31723_s4 + $0x1be0] sm:$0xff]   ;;  %v26122_v41 = vld [vmem:[%s31724_s5 + $0x168] sm:$0xff]  }
0x188a   :  { %v26126_v43 = vld [vmem:[%s31723_s4 + $0x1da4] sm:$0xff]   ;;  %v26128_v63 = vld [vmem:[%s31723_s4 + $0x1dac] sm:$0xff]  }
0x188b   :  { %v12020_v53 = vadd.f32 %v29164_v34, %v11979_v14  ;;  %v26098_v34 = vld [vmem:[%s31723_s4 + $0x1c20] sm:$0xff]   ;;  %v26129_v14 = vld [vmem:[%s31723_s4 + $0x1df4] sm:$0xff]  }
0x188d   :  { %v12028_v55 = vpack.c.bf16 %v12020_v53, %v12017_v4  ;;  %v26127_v4 = vld [vmem:[%s31723_s4 + $0x1dec] sm:$0xff]   ;;  %v26131_v53 = vld [vmem:[%s31723_s4 + $0x1dfc] sm:$0xff]  }
0x188f   :  { %24145 = vmatprep.subr.bf16.mxu1 %v12028_v55 }
0x1890   :  { %24146 = vmatpush3.bf16.msra.mxu1 %v12028_v55  ;;  %v26132_v55 = vld [vmem:[%s31723_s4 + $0x1dbc] sm:$0xff]  }
0x1891   :  { %23551 = vmatprep.subr.bf16.mxu1 %v26096_v45  ;;  %v26133_v45 = vld [vmem:[%s31723_s4 + $0x1e04] sm:$0xff]  }
0x1893   :  { %24148 = vmatmul.mubr.msk.bf16.vlgmr.msra.gmra.mrb[16].mxu1 %vm1457_vm5, %v26095_v13  ;;  %v26134_v13 = vld [vmem:[%s31723_s4 + $0x1dc4] sm:$0xff]  }
0x1894   :  { %23552 = vmatpush3.bf16.msra.mxu1 %v26097_v62  ;;  %12458 = vmatprep.mubr.bf16.mxu1 %v26782_v21  ;;  %v26135_v62 = vld [vmem:[%s31723_s4 + $0x1e0c] sm:$0xff]  }
0x1895   :  { %23553 = vmatprep.subr.bf16.mxu1 %v26098_v34  ;;  %v26136_v34 = vld [vmem:[%s31723_s4 + $0x1dcc] sm:$0xff]  }
0x1898   :  { %23554 = vmatpush3.bf16.msra.mxu1 %v26099_v11  ;;  %v26137_v11 = vld [vmem:[%s31723_s4 + $0x1e14] sm:$0xff]  }
0x1899   :  { %23555 = vmatprep.subr.bf16.mxu1 %v26100_v8  ;;  %v26138_v8 = vld [vmem:[%s31723_s4 + $0x1dd4] sm:$0xff]  }
0x189c   :  { %23556 = vmatpush3.bf16.msra.mxu1 %v26101_v40  ;;  %v26139_v40 = vld [vmem:[%s31724_s5 + $0x170] sm:$0xff]  }
0x189d   :  { %23557 = vmatprep.subr.bf16.mxu1 %v26102_v31 }
0x18a0   :  { %23558 = vmatpush3.bf16.msra.mxu1 %v26103_v18 }
0x18a1   :  { %23559 = vmatprep.subr.bf16.mxu1 %v26104_v39 }
0x18a4   :  { %23560 = vmatpush3.bf16.msra.mxu1 %v26105_v2 }
0x18a5   :  { %23561 = vmatprep.subr.bf16.mxu1 %v26106_v28 }
0x18a8   :  { %23562 = vmatpush3.bf16.msra.mxu1 %v26107_v5 }
0x18a9   :  { %23563 = vmatprep.subr.bf16.mxu1 %v26108_v61 }
0x18ac   :  { %23564 = vmatpush3.bf16.msra.mxu1 %v26109_v10 }
0x18ad   :  { %23565 = vmatprep.subr.bf16.mxu1 %v26110_v32  ;;  %v31756_v32 = vld [vmem:[#allocation10_spill] sm:$0xff] }
0x18b0   :  { %23566 = vmatpush3.bf16.msra.mxu1 %v26111_v9 }
0x18b1   :  { %12508 = vmatprep.subr.bf16.mxu1 %v31745_v36 }
0x18b3   :  { %12459 = vmatmul.mubr.bf16.vlgmr.msra.gmra.mrb[128].mxu1 %v26780_v19 }
0x18b4   :  { %12509 = vmatpush1.bf16.msra.mxu1 %v26112_v20  ;;  %21512 = vmatprep.mubr.msk.bf16.mxu1 %vm395_vm3, %v26797_v33  ;;  %v31757_v20 = vld [vmem:[#allocation11_spill] sm:$0xff] }
0x18b5   :  { %12510 = vmatprep.subr.bf16.mxu1 %v31745_v36 }
0x18b8   :  { %12511 = vmatpush1.bf16.msra.mxu1 %v26113_v52 }
0x18b9   :  { %12512 = vmatprep.subr.bf16.mxu1 %v31745_v36 }
0x18bc   :  { %12513 = vmatpush1.bf16.msra.mxu1 %v26114_v44  ;;  %v26141_v44 = vld [vmem:[%s31723_s4 + $0x1ea0] sm:$0xff]  }
0x18bd   :  { %12514 = vmatprep.subr.bf16.mxu1 %v31745_v36 }
0x18c0   :  { %12515 = vmatpush1.bf16.msra.mxu1 %v26115_v51  ;;  %v26140_v51 = vld [vmem:[%s31724_s5 + $0x178] sm:$0xff]  }
0x18c1   :  { %12516 = vmatprep.subr.bf16.mxu1 %v31745_v36 }
0x18c4   :  { %12517 = vmatpush1.bf16.msra.mxu1 %v26116_v25  ;;  %v26144_v25 = vld [vmem:[%s31723_s4 + $0x1e68] sm:$0xff]  }
0x18c5   :  { %12518 = vmatprep.subr.bf16.mxu1 %v31745_v36 }
0x18c8   :  { %12519 = vmatpush1.bf16.msra.mxu1 %v26117_v3  ;;  %v26145_v3 = vld [vmem:[%s31723_s4 + $0x1eb0] sm:$0xff]  }
0x18c9   :  { %12520 = vmatprep.subr.bf16.mxu1 %v31745_v36 }
0x18cc   :  { %12521 = vmatpush1.bf16.msra.mxu1 %v26118_v59  ;;  %v26146_v59 = vld [vmem:[%s31723_s4 + $0x1e70] sm:$0xff]  }
0x18cd   :  { %12522 = vmatprep.subr.bf16.mxu1 %v31745_v36 }
0x18d0   :  { %12523 = vmatpush1.bf16.msra.mxu1 %v26119_v35  ;;  %v26147_v35 = vld [vmem:[%s31723_s4 + $0x1eb8] sm:$0xff]  }
0x18d1   :  { %12524 = vmatprep.subr.bf16.mxu1 %v31745_v36 }
0x18d4   :  { %12525 = vmatpush1.bf16.msra.mxu1 %v12424_v23  ;;  %v26150_v23 = vld [vmem:[%s31723_s4 + $0x1e80] sm:$0xff]  }
0x18d7   :  { %12541 = vmatmul.mubr.bf16.vlgmr.msra.gmra.mrb[132].mxu1 %v26788_v29 }
0x18d8   :  { %24153 = vmatprep.mubr.msk.bf16.mxu1 %vm1457_vm5, %v26121_v57  ;;  %v26151_v57 = vld [vmem:[%s31723_s4 + $0x1ec8] sm:$0xff]  }
0x1986   :  { %v23567_v24 = vpop.f32.mrb[128].mxu1 }
0x1987   :  { %v23568_v49 = vpop.f32.mrb[129].mxu1 }
0x1988   :  { %v23569_v12 = vadd.f32 %v23568_v49, %v23567_v24  ;;  %v23570_v48 = vpop.f32.mrb[130].mxu1  ;;  %v26152_v24 = vld [vmem:[%s31723_s4 + $0x1e88] sm:$0xff]   ;;  %v26153_v49 = vld [vmem:[%s31723_s4 + $0x1ed0] sm:$0xff]  }
0x1989   :  { %v23571_v1 = vpop.f32.mrb[131].mxu1 }
0x198a   :  { %v23572_v47 = vadd.f32 %v23571_v1, %v23570_v48  ;;  %v12502_v46 = vadd.f32 %v29179_v54, %v23569_v12  ;;  %v26124_v54 = vld [vmem:[%s31723_s4 + $0x1d9c] sm:$0xff]   ;;  %v26154_v12 = vld [vmem:[%s31723_s4 + $0x1e90] sm:$0xff]  }
0x198b   :  { %v26155_v48 = vld [vmem:[%s31723_s4 + $0x1ed8] sm:$0xff]  }
0x198c   :  { %v12505_v15 = vadd.f32 %v29182_v50, %v23572_v47  ;;  %v26125_v50 = vld [vmem:[%s31723_s4 + $0x1de4] sm:$0xff]   ;;  %v26156_v1 = vld [vmem:[%s31723_s4 + $0x1e98] sm:$0xff]  }
0x198d   :  { %v26157_v47 = vld [vmem:[%s31723_s4 + $0x1f60] sm:$0xff]  }
0x19aa   :  { %v12542_v0 = vpop.f32.mrb[132].mxu1 }
0x19ab   :  { %v12543_v6 = vadd.f32 %v12542_v0, %v12502_v46  ;;  %v12544_v37 = vpop.f32.mrb[133].mxu1  ;;  %v26158_v46 = vld [vmem:[%s31723_s4 + $0x1f68] sm:$0xff]  }
0x19ac   :  { %v12545_v22 = vpop.f32.mrb[134].mxu1  ;;  %v26162_v0 = vld [vmem:[%s31723_s4 + $0x1f88] sm:$0xff]   ;;  %v26164_v37 = vld [vmem:[%s31723_s4 + $0x1f98] sm:$0xff]  }
0x19ad   :  { %v12546_v58 = vadd.f32 %v12545_v22, %v12505_v15  ;;  %v12547_v60 = vpop.f32.mrb[135].mxu1  ;;  %v26159_v15 = vld [vmem:[%s31723_s4 + $0x1f70] sm:$0xff]   ;;  %v26165_v22 = vld [vmem:[%s31723_s4 + $0x1fa0] ss:$0 sps:$4 sm:$0xff]  }
0x19ae   :  { %v26166_v60 = vld [vmem:[%s31724_s5 + $0x180] sm:$0xff]  }
0x19af   :  { %v12554_v7 = vpack.c.bf16 %v12546_v58, %v12543_v6  ;;  %v26163_v6 = vld [vmem:[%s31723_s4 + $0x1f90] sm:$0xff]   ;;  %v13476_v58 = vsel %vm858_vm4, %v26165_v22, 0 }
0x19b1   :  { %24151 = vmatprep.subr.bf16.mxu1 %v12554_v7 }
0x19b2   :  { %24152 = vmatpush3.bf16.msra.mxu1 %v12554_v7 }
0x19b3   :  { %23620 = vmatprep.subr.bf16.mxu1 %v26123_v30 }
0x19b5   :  { %24154 = vmatmul.mubr.msk.bf16.vlgmr.msra.gmra.mrb[16].mxu1 %vm1457_vm5, %v26122_v41 }
0x19b6   :  { %23621 = vmatpush3.bf16.msra.mxu1 %v26124_v54  ;;  %13025 = vmatprep.mubr.bf16.mxu1 %v26786_v27  ;;  %v26130_v27 = vld [vmem:[%s31723_s4 + $0x1db4] sm:$0xff]  }
0x19b7   :  { %23622 = vmatprep.subr.bf16.mxu1 %v26125_v50 }
0x19ba   :  { %23623 = vmatpush3.bf16.msra.mxu1 %v26126_v43 }
0x19bb   :  { %23624 = vmatprep.subr.bf16.mxu1 %v26127_v4 }
0x19be   :  { %23625 = vmatpush3.bf16.msra.mxu1 %v26128_v63 }
0x19bf   :  { %23626 = vmatprep.subr.bf16.mxu1 %v26129_v14 }
0x19c2   :  { %23627 = vmatpush3.bf16.msra.mxu1 %v26130_v27 }
0x19c3   :  { %23628 = vmatprep.subr.bf16.mxu1 %v26131_v53 }
0x19c6   :  { %23629 = vmatpush3.bf16.msra.mxu1 %v26132_v55 }
0x19c7   :  { %23630 = vmatprep.subr.bf16.mxu1 %v26133_v45 }
0x19ca   :  { %23631 = vmatpush3.bf16.msra.mxu1 %v26134_v13  ;;  %v26167_v13 = vld [vmem:[%s31724_s5 + $0x188] sm:$0xff]  }
0x19cb   :  { %23632 = vmatprep.subr.bf16.mxu1 %v26135_v62 }
0x19ce   :  { %23633 = vmatpush3.bf16.msra.mxu1 %v26136_v34 }
0x19cf   :  { %23634 = vmatprep.subr.bf16.mxu1 %v26137_v11 }
0x19d2   :  { %23635 = vmatpush3.bf16.msra.mxu1 %v26138_v8 }
0x19d5   :  { %13026 = vmatmul.mubr.bf16.vlgmr.msra.gmra.mrb[136].mxu1 %v26784_v26 }
0x19d6   :  { %24159 = vmatprep.mubr.msk.bf16.mxu1 %vm1457_vm5, %v26139_v40 }
0x1aa8   :  { %v23636_v31 = vpop.f32.mrb[136].mxu1 }
0x1aa9   :  { %v23637_v18 = vpop.f32.mrb[137].mxu1 }
0x1aaa   :  { %v23638_v39 = vadd.f32 %v23637_v18, %v23636_v31  ;;  %v23639_v2 = vpop.f32.mrb[138].mxu1  ;;  %v13676_v18 = vld [vmem:[%s31725_s6] sm:$0xff] }
0x1aab   :  { %v23640_v28 = vpop.f32.mrb[139].mxu1 }
0x1aac   :  { %v13028_v5 = vadd.f32 %v23638_v39, %v29213_v16  ;;  %v23641_v61 = vadd.f32 %v23640_v28, %v23639_v2  ;;  %v26142_v16 = vld [vmem:[%s31723_s4 + $0x1e60] sm:$0xff]   ;;  %v13677_v39 = vld [vmem:[%s31725_s6 + $0x8] sm:$0xff]  ;;  %v13679_v2 = vld [vmem:[%s31725_s6 + $0x18] sm:$0xff] }
0x1aad   :  { %v13678_v28 = vld [vmem:[%s31725_s6 + $0x10] sm:$0xff] }
0x1aae   :  { %v13069_v10 = vadd.f32 %v29218_v17, %v13028_v5  ;;  %v13031_v9 = vadd.f32 %v23641_v61, %v31756_v32  ;;  %v26143_v17 = vld [vmem:[%s31723_s4 + $0x1ea8] sm:$0xff]   ;;  %v13680_v61 = vld [vmem:[%s31726_s7] sm:$0xff] }
0x1aaf   :  { %v13681_v5 = vld [vmem:[%s31726_s7 + $0x8] sm:$0xff] }
0x1ab0   :  { %v13072_v26 = vadd.f32 %v31757_v20, %v13031_v9 }
0x1ab2   :  { %v13080_v52 = vpack.c.bf16 %v13072_v26, %v13069_v10 }
0x1ab4   :  { %24157 = vmatprep.subr.bf16.mxu1 %v13080_v52 }
0x1ab5   :  { %24158 = vmatpush3.bf16.msra.mxu1 %v13080_v52 }
0x1ab6   :  { %23645 = vmatprep.subr.bf16.mxu1 %v26141_v44 }
0x1ab8   :  { %24160 = vmatmul.mubr.msk.bf16.vlgmr.msra.gmra.mrb[16].mxu1 %vm1457_vm5, %v26140_v51 }
0x1ab9   :  { %23646 = vmatpush3.bf16.msra.mxu1 %v26142_v16  ;;  %13510 = vmatprep.mubr.bf16.mxu1 %v26782_v21  ;;  %v26148_v21 = vld [vmem:[%s31723_s4 + $0x1e78] sm:$0xff]  }
0x1aba   :  { %23647 = vmatprep.subr.bf16.mxu1 %v26143_v17 }
0x1abd   :  { %23648 = vmatpush3.bf16.msra.mxu1 %v26144_v25 }
0x1abe   :  { %23649 = vmatprep.subr.bf16.mxu1 %v26145_v3 }
0x1ac1   :  { %23650 = vmatpush3.bf16.msra.mxu1 %v26146_v59 }
0x1ac2   :  { %23651 = vmatprep.subr.bf16.mxu1 %v26147_v35 }
0x1ac5   :  { %23652 = vmatpush3.bf16.msra.mxu1 %v26148_v21 }
0x1ac6   :  { %23653 = vmatprep.subr.bf16.mxu1 %v26149_v38 }
0x1ac9   :  { %23654 = vmatpush3.bf16.msra.mxu1 %v26150_v23 }
0x1aca   :  { %23655 = vmatprep.subr.bf16.mxu1 %v26151_v57 }
0x1acd   :  { %23656 = vmatpush3.bf16.msra.mxu1 %v26152_v24 }
0x1ace   :  { %23657 = vmatprep.subr.bf16.mxu1 %v26153_v49 }
0x1ad1   :  { %23658 = vmatpush3.bf16.msra.mxu1 %v26154_v12  ;;  %v13683_v12 = vld [vmem:[%s31726_s7 + $0x18] sm:$0xff] }
0x1ad2   :  { %23659 = vmatprep.subr.bf16.mxu1 %v26155_v48  ;;  %v26168_v48 = vld [vmem:[%s31727_s8] sm:$0xff]  }
0x1ad3   :  { %24169 = vmatprep.subr.bf16.mxu0 %v26168_v48 }
0x1ad4   :  { %24170 = vmatpush3.bf16.msra.mxu0 %v26168_v48  ;;  %v26187_v48 = vld [vmem:[%s31727_s8 + $0xc4] sm:$0xff]  }
0x1ad5   :  { %23660 = vmatpush3.bf16.msra.mxu1 %v26156_v1  ;;  %v13682_v1 = vld [vmem:[%s31726_s7 + $0x10] sm:$0xff] }
0x1ad6   :  { %13560 = vmatprep.subr.bf16.mxu1 %v31745_v36 }
0x1ad8   :  { %13511 = vmatmul.mubr.bf16.vlgmr.msra.gmra.mrb[140].mxu1 %v26780_v19  ;;  %v26160_v19 = vld [vmem:[%s31723_s4 + $0x1f78] sm:$0xff]  }
0x1ad9   :  { %13561 = vmatpush1.bf16.msra.mxu1 %v26157_v47  ;;  %21774 = vmatprep.mubr.msk.bf16.mxu1 %vm395_vm3, %v26797_v33  ;;  %v26161_v33 = vld [vmem:[%s31723_s4 + $0x1f80] sm:$0xff]   ;;  %v26169_v47 = vld [vmem:[%s31727_s8 + $0x8] sm:$0xff]  }
0x1ada   :  { %13562 = vmatprep.subr.bf16.mxu1 %v31745_v36  ;;  %24171 = vmatprep.subr.bf16.mxu0 %v26169_v47 }
0x1adb   :  { %24172 = vmatpush3.bf16.msra.mxu0 %v26169_v47 }
0x1add   :  { %13563 = vmatpush1.bf16.msra.mxu1 %v26158_v46  ;;  %v26170_v46 = vld [vmem:[%s31727_s8 + $0x10] sm:$0xff]  }
0x1ade   :  { %13564 = vmatprep.subr.bf16.mxu1 %v31745_v36  ;;  %24173 = vmatprep.subr.bf16.mxu0 %v26170_v46 }
0x1adf   :  { %24174 = vmatpush3.bf16.msra.mxu0 %v26170_v46  ;;  %v26189_v46 = vld [vmem:[%s31727_s8 + $0xd0] sm:$0xff]  }
0x1ae1   :  { %13565 = vmatpush1.bf16.msra.mxu1 %v26159_v15  ;;  %v26171_v15 = vld [vmem:[%s31727_s8 + $0x18] sm:$0xff]  }
0x1ae2   :  { %13566 = vmatprep.subr.bf16.mxu1 %v31745_v36  ;;  %24175 = vmatprep.subr.bf16.mxu0 %v26171_v15 }
0x1ae3   :  { %24176 = vmatpush3.bf16.msra.mxu0 %v26171_v15  ;;  %v26190_v15 = vld [vmem:[%s31727_s8 + $0xd8] sm:$0xff]  }
0x1ae5   :  { %13567 = vmatpush1.bf16.msra.mxu1 %v26160_v19  ;;  %v26172_v19 = vld [vmem:[%s31727_s8 + $0x20] sm:$0xff]  }
0x1ae6   :  { %13568 = vmatprep.subr.bf16.mxu1 %v31745_v36  ;;  %24177 = vmatprep.subr.bf16.mxu0 %v26172_v19 }
0x1ae7   :  { %24178 = vmatpush3.bf16.msra.mxu0 %v26172_v19  ;;  %v26191_v19 = vld [vmem:[%s31727_s8 + $0xe0] sm:$0xff]  }
0x1ae9   :  { %13569 = vmatpush1.bf16.msra.mxu1 %v26161_v33  ;;  %v26173_v33 = vld [vmem:[%s31727_s8 + $0x28] sm:$0xff]  }
0x1aea   :  { %13570 = vmatprep.subr.bf16.mxu1 %v31745_v36  ;;  %24179 = vmatprep.subr.bf16.mxu0 %v26173_v33 }
0x1aeb   :  { %24180 = vmatpush3.bf16.msra.mxu0 %v26173_v33  ;;  %v26192_v33 = vld [vmem:[%s31727_s8 + $0xe8] sm:$0xff]  }
0x1aed   :  { %13571 = vmatpush1.bf16.msra.mxu1 %v26162_v0  ;;  %v26174_v0 = vld [vmem:[%s31727_s8 + $0x30] ss:$0 sps:$4 sm:$0x11]  }
0x1aee   :  { %13572 = vmatprep.subr.bf16.mxu1 %v31745_v36  ;;  %25016 = vmatprep.subr.msk.bf16.mxu0 %vm13850_vm7, %v26174_v0 }
0x1af1   :  { %13573 = vmatpush1.bf16.msra.mxu1 %v26163_v6  ;;  %v13852_v6 = vsel %vm13850_vm7, %v26174_v0, 0  ;;  %v26193_v0 = vld [vmem:[%s31727_s8 + $0xf0] sm:$0xff]  }
0x1af2   :  { %13574 = vmatprep.subr.bf16.mxu1 %v31745_v36  ;;  %24182 = vmatpush3.bf16.msra.mxu0 %v13852_v6  ;;  %v26194_v6 = vld [vmem:[%s31727_s8 + $0xf8] sm:$0xff]  }
0x1af5   :  { %13575 = vmatpush1.bf16.msra.mxu1 %v26164_v37  ;;  %v26175_v37 = vld [vmem:[%s31727_s8 + $0x34] sm:$0xff]  }
0x1af6   :  { %13576 = vmatprep.subr.bf16.mxu1 %v31745_v36  ;;  %24187 = vmatprep.subr.bf16.mxu0 %v26175_v37 }
0x1af9   :  { %13577 = vmatpush1.bf16.msra.mxu1 %v13476_v58 }
0x1afc   :  { %13593 = vmatmul.mubr.bf16.vlgmr.msra.gmra.mrb[144].mxu1 %v26788_v29 }
0x1afd   :  { %24165 = vmatprep.mubr.msk.bf16.mxu1 %vm1457_vm5, %v26166_v60 }
0x1bab   :  { %v23661_v7 = vpop.f32.mrb[140].mxu1 }
0x1bac   :  { %v23662_v30 = vpop.f32.mrb[141].mxu1 }
0x1bad   :  { %v23663_v41 = vadd.f32 %v23662_v30, %v23661_v7  ;;  %v23664_v54 = vpop.f32.mrb[142].mxu1 }
0x1bae   :  { %v23665_v50 = vpop.f32.mrb[143].mxu1 }
0x1baf   :  { %v23666_v43 = vadd.f32 %v23665_v50, %v23664_v54  ;;  %v13554_v4 = vadd.f32 %v29222_v56, %v23663_v41 }
0x1bb1   :  { %v13557_v36 = vadd.f32 %v29224_v42, %v23666_v43 }
0x1bcf   :  { %v13594_v63 = vpop.f32.mrb[144].mxu1 }
0x1bd0   :  { %v13595_v14 = vadd.f32 %v13594_v63, %v13554_v4  ;;  %v13596_v27 = vpop.f32.mrb[145].mxu1 }
0x1bd1   :  { %v13597_v29 = vpop.f32.mrb[146].mxu1 }
0x1bd2   :  { %v13598_v53 = vadd.f32 %v13597_v29, %v13557_v36  ;;  %v13599_v55 = vpop.f32.mrb[147].mxu1 }
0x1bd4   :  { %v13606_v45 = vpack.c.bf16 %v13598_v53, %v13595_v14 }
0x1bd6   :  { %24163 = vmatprep.subr.bf16.mxu1 %v13606_v45 }
0x1bd7   :  { %24164 = vmatpush3.bf16.msra.mxu1 %v13606_v45 }
0x1bda   :  { %24166 = vmatmul.mubr.msk.bf16.vlgmr.msra.gmra.mrb[16].mxu1 %vm1457_vm5, %v26167_v13 }
0x1cad   :  { %v24167_v62 = vpop.f32.mrb[16].mxu1 }
0x1cae   :  { %v13657_v56 = vpop.f32.mrb[17].mxu1  ;;  %v13691_v40 = vsel %vm13684_vm6, %v24167_v62, 0.0 }
0x1caf   :  { %v24168_v34 = vpop.f32.mrb[18].mxu1  ;;  %v13685_v42 = vsel %vm13684_vm6, %v13657_v56, 0.0 }
0x1cb0   :  { %13686 = vadd.xlane.f32.xlu1 %v13685_v42  ;;  %v13660_v11 = vpop.f32.mrb[19].mxu1  ;;  %v13694_v31 = vsel %vm13684_vm6, %v24168_v34, 0.0 }
0x1cb1   :  { %v13688_v8 = vsel %vm13684_vm6, %v13660_v11, 0.0 }
0x1cb2   :  { %13689 = vadd.xlane.f32.xlu0 %v13688_v8 }
0x1cb4   :  { %13692 = vadd.xlane.f32.xlu1 %v13691_v40 }
0x1cb8   :  { %13695 = vadd.xlane.f32.xlu1 %v13694_v31 }
0x1cc8   :  { %13740 = vperm.xlu0 %25045, %v13676_v18  }
0x1cc9   :  { %13745 = vperm.xlu1 %25046, %v13677_v39  }
0x1ccc   :  { %13755 = vperm.xlu0 %25045, %v13679_v2  }
0x1ccd   :  { %13750 = vperm.xlu1 %25046, %v13678_v28  }
0x1cd0   :  { %13769 = vperm.xlu0 %25045, %v13681_v5  }
0x1cd1   :  { %13764 = vperm.xlu1 %25046, %v13680_v61  }
0x1d3d   :  { %v13687_v10 = vpop.xlane.xlu1 %13686 }
0x1d3e   :  { %v13698_v32 = vmul.f32 0.010204081, %v13687_v10 }
0x1d3f   :  { %v13690_v20 = vpop.xlane.xlu0 %13689 }
0x1d40   :  { %v30616_v9 = vsub.f32 %v13657_v56, %v13698_v32  ;;  %v13699_v51 = vmul.f32 0.010204081, %v13690_v20 }
0x1d41   :  { %v13693_v26 = vpop.xlane.xlu1 %13692 }
0x1d42   :  { %v13700_v52 = vmul.f32 0.010204081, %v13693_v26  ;;  %v13706_v44 = vmul.f32 %v30616_v9, %v30616_v9  ;;  %v30625_v35 = vsub.f32 %v13660_v11, %v13699_v51 }
0x1d44   :  { %v30620_v16 = vsub.f32 %v24167_v62, %v13700_v52  ;;  %v13710_v17 = vsel %vm13684_vm6, %v13706_v44, 0.0  ;;  %v13707_v24 = vmul.f32 %v30625_v35, %v30625_v35 }
0x1d45   :  { %13711 = vadd.xlane.f32.xlu1 %v13710_v17  ;;  %v13696_v25 = vpop.xlane.xlu1 %13695  ;;  %v26176_v17 = vld [vmem:[%s31727_s8 + $0x3c] sm:$0xff]  }
0x1d46   :  { %v13701_v3 = vmul.f32 0.010204081, %v13696_v25  ;;  %v13708_v59 = vmul.f32 %v30620_v16, %v30620_v16  ;;  %v13713_v49 = vsel %vm13684_vm6, %v13707_v24, 0.0  ;;  %v26177_v25 = vld [vmem:[%s31727_s8 + $0x44] sm:$0xff]   ;;  %v26184_v24 = vld [vmem:[%s31727_s8 + $0xac] sm:$0xff]  }
0x1d47   :  { %v13741_v58 = vpop.permute.xlu0 %13740 }
0x1d48   :  { %v30627_v21 = vsub.f32 %v24168_v34, %v13701_v3  ;;  %v13716_v38 = vsel %vm13684_vm6, %v13708_v59, 0.0  ;;  %v26178_v3 = vld [vmem:[%s31727_s8 + $0x4c] sm:$0xff]   ;;  %v26179_v59 = vld [vmem:[%s31727_s8 + $0x54] sm:$0xff]  }
0x1d49   :  { %13717 = vadd.xlane.f32.xlu0 %v13716_v38  ;;  %v13746_v22 = vpop.permute.xlu1 %13745 }
0x1d4a   :  { %v13709_v23 = vmul.f32 %v30627_v21, %v30627_v21 }
0x1d4b   :  { %v13756_v7 = vpop.permute.xlu0 %13755 }
0x1d4c   :  { %v13719_v57 = vsel %vm13684_vm6, %v13709_v23, 0.0  ;;  %v26182_v23 = vld [vmem:[%s31727_s8 + $0x9c] sm:$0xff]  }
0x1d4d   :  { %13720 = vadd.xlane.f32.xlu1 %v13719_v57  ;;  %v13751_v60 = vpop.permute.xlu1 %13750  ;;  %v26183_v57 = vld [vmem:[%s31727_s8 + $0xa4] sm:$0xff]  }
0x1d4f   :  { %v13770_v41 = vpop.permute.xlu0 %13769 }
0x1d51   :  { %13714 = vadd.xlane.f32.xlu1 %v13713_v49  ;;  %v13765_v30 = vpop.permute.xlu1 %13764  ;;  %v26185_v49 = vld [vmem:[%s31727_s8 + $0xb4] sm:$0xff]  }
0x1d5f   :  { %13779 = vperm.xlu0 %25045, %v13683_v12   ;;  %v26186_v12 = vld [vmem:[%s31727_s8 + $0xbc] sm:$0xff]  }
0x1d62   :  { %13774 = vperm.xlu1 %25046, %v13682_v1   ;;  %v26188_v1 = vld [vmem:[%s31727_s8 + $0xcc] ss:$0 sps:$4 sm:$0x11]  }
0x1d63   :  { %v14387_v47 = vsel %vm13850_vm7, %v26188_v1, 0 }
0x1dd2   :  { %v13712_v54 = vpop.xlane.xlu1 %13711 }
0x1dd3   :  { %v13722_v50 = vmul.f32 0.010204081, %v13712_v54  ;;  %v26201_v54 = vld [vmem:[%s31727_s8 + $0x160] sm:$0xff]  }
0x1dd5   :  { %v13726_v4 = vadd.f32 1e-05, %v13722_v50  ;;  %v26202_v50 = vld [vmem:[%s31727_s8 + $0x168] ss:$0 sps:$4 sm:$0x11]  }
0x1dd6   :  { %v13718_v43 = vpop.xlane.xlu0 %13717 }
0x1dd7   :  { %v13724_v36 = vmul.f32 0.010204081, %v13718_v43  ;;  %26397 = vrsqrt.f32 %v13726_v4  ;;  %v14930_v43 = vsel %vm13850_vm7, %v26202_v50, 0  ;;  %v26203_v4 = vld [vmem:[%s31727_s8 + $0x16c] sm:$0xff]  }
0x1dd9   :  { %v13728_v63 = vadd.f32 1e-05, %v13724_v36  ;;  %v26204_v36 = vld [vmem:[%s31727_s8 + $0x174] sm:$0xff]  }
0x1dda   :  { %v13721_v14 = vpop.xlane.xlu1 %13720 }
0x1ddb   :  { %v13725_v27 = vmul.f32 0.010204081, %v13721_v14  ;;  %26399 = vrsqrt.f32 %v13728_v63  ;;  %v26205_v63 = vld [vmem:[%s31727_s8 + $0x17c] sm:$0xff]   ;;  %v26206_v14 = vld [vmem:[%s31727_s8 + $0x184] sm:$0xff]  }
0x1ddd   :  { %v13729_v29 = vadd.f32 1e-05, %v13725_v27  ;;  %v26207_v27 = vld [vmem:[%s31727_s8 + $0x18c] sm:$0xff]  }
0x1dde   :  { %v13715_v53 = vpop.xlane.xlu1 %13714  ;;  %v13780_v2 = vpop.permute.xlu0 %13779 }
0x1ddf   :  { %26401 = vrsqrt.f32 %v13729_v29  ;;  %v13723_v55 = vmul.f32 0.010204081, %v13715_v53  ;;  %v26238_v29 = vld [vmem:[%s31728_s9 + $0x10] sm:$0xff]  }
0x1de0   :  { %v26208_v53 = vld [vmem:[%s31727_s8 + $0x194] sm:$0xff]   ;;  %24209 = vmatprep.mubr.msk.bf16.mxu1 %vm14031_vm8, %v26238_v29 }
0x1de1   :  { %v13727_v45 = vadd.f32 1e-05, %v13723_v55  ;;  %v26398_v13 = vpop.eup %26397  ;;  %v26209_v55 = vld [vmem:[%s31727_s8 + $0x19c] ss:$0 sps:$4 sm:$0x11]  }
0x1de2   :  { %v13734_v56 = vmul.f32 %v26398_v13, %v30616_v9  ;;  %v13775_v10 = vpop.permute.xlu1 %13774  ;;  %v26210_v13 = vld [vmem:[%s31727_s8 + $0x1d4] sm:$0xff]  }
0x1de3   :  { %26403 = vrsqrt.f32 %v13727_v45  ;;  %v15111_v45 = vsel %vm13850_vm7, %v26209_v55, 0 }
0x1de4   :  { %v13758_v8 = vmul.f32 %v13741_v58, %v13734_v56  ;;  %v26196_v58 = vld [vmem:[%s31727_s8 + $0x138] sm:$0xff]   ;;  %v26212_v56 = vld [vmem:[%s31727_s8 + $0x1e4] sm:$0xff]  }
0x1de5   :  { %v26400_v62 = vpop.eup %26399 }
0x1de6   :  { %v13736_v42 = vmul.f32 %v26400_v62, %v30620_v16  ;;  %v13782_v5 = vadd.f32 %v13765_v30, %v13758_v8  ;;  %v26199_v30 = vld [vmem:[%s31727_s8 + $0x150] sm:$0xff]   ;;  %v26211_v62 = vld [vmem:[%s31727_s8 + $0x1dc] sm:$0xff]   ;;  %v26216_v8 = vld [vmem:[%s31727_s8 + $0x204] ss:$0 sps:$4 sm:$0x11]  }
0x1de8   :  { %v13760_v18 = vmul.f32 %v13751_v60, %v13736_v42  ;;  %v13786_v9 = vmax.f32 %v13782_v5, 0.0  ;;  %v26197_v60 = vld [vmem:[%s31727_s8 + $0x140] sm:$0xff]   ;;  %v26214_v42 = vld [vmem:[%s31727_s8 + $0x1f4] sm:$0xff]  }
0x1de9   :  { %v26402_v34 = vpop.eup %26401  ;;  %v26222_v5 = vld [vmem:[%s31727_s8 + $0x230] sm:$0xff]  }
0x1dea   :  { %v13737_v11 = vmul.f32 %v26402_v34, %v30627_v21  ;;  %v13784_v32 = vadd.f32 %v13775_v10, %v13760_v18  ;;  %v26181_v21 = vld [vmem:[%s31727_s8 + $0x64] ss:$0 sps:$4 sm:$0x11]   ;;  %v26213_v34 = vld [vmem:[%s31727_s8 + $0x1ec] sm:$0xff]  }
0x1deb   :  { %v13963_v38 = vsel %vm13850_vm7, %v26181_v21, 0  ;;  %v26218_v18 = vld [vmem:[%s31727_s8 + $0x210] sm:$0xff]  }
0x1dec   :  { %v13761_v40 = vmul.f32 %v13756_v7, %v13737_v11  ;;  %v13788_v44 = vmax.f32 %v13784_v32, 0.0  ;;  %v26198_v7 = vld [vmem:[%s31727_s8 + $0x148] sm:$0xff]   ;;  %v26215_v11 = vld [vmem:[%s31727_s8 + $0x1fc] sm:$0xff]   ;;  %v26224_v32 = vld [vmem:[%s31727_s8 + $0x270] sm:$0xff]  }
0x1ded   :  { %v26404_v31 = vpop.eup %26403 }
0x1dee   :  { %v13735_v39 = vmul.f32 %v26404_v31, %v30625_v35  ;;  %v13785_v28 = vadd.f32 %v13780_v2, %v13761_v40  ;;  %v26180_v35 = vld [vmem:[%s31727_s8 + $0x5c] sm:$0xff]   ;;  %v15473_v40 = vsel %vm13850_vm7, %v26216_v8, 0  ;;  %v26217_v31 = vld [vmem:[%s31727_s8 + $0x208] sm:$0xff]  }
0x1def   :  { %v26220_v2 = vld [vmem:[%s31727_s8 + $0x220] sm:$0xff]  }
0x1df0   :  { %v13759_v61 = vmul.f32 %v13746_v22, %v13735_v39  ;;  %v13789_v26 = vmax.f32 %v13785_v28, 0.0  ;;  %v26219_v39 = vld [vmem:[%s31727_s8 + $0x218] sm:$0xff]   ;;  %v26221_v28 = vld [vmem:[%s31727_s8 + $0x228] sm:$0xff]  }
0x1df2   :  { %v13783_v20 = vadd.f32 %v13770_v41, %v13759_v61  ;;  %v30674_v16 = vpack.c.bf16 %v13789_v26, %v13788_v44  ;;  %v26200_v41 = vld [vmem:[%s31727_s8 + $0x158] sm:$0xff]   ;;  %v26226_v26 = vld [vmem:[%s31727_s8 + $0x280] sm:$0xff]  }
0x1df3   :  { %v26223_v61 = vld [vmem:[%s31727_s8 + $0x238] ss:$0 sps:$4 sm:$0x11]  }
0x1df4   :  { %v13787_v52 = vmax.f32 %v13783_v20, 0.0  ;;  %v15654_v10 = vsel %vm13850_vm7, %v26223_v61, 0  ;;  %v26225_v20 = vld [vmem:[%s31727_s8 + $0x278] sm:$0xff]  }
0x1df5   :  { %v26229_v44 = vld [vmem:[%s31727_s8 + $0x298] sm:$0xff]  }
0x1df6   :  { %v30672_v51 = vpack.c.bf16 %v13787_v52, %v13786_v9  ;;  %v26227_v9 = vld [vmem:[%s31727_s8 + $0x288] sm:$0xff]   ;;  %v26228_v52 = vld [vmem:[%s31727_s8 + $0x290] sm:$0xff]  }
0x1df8   :  { %24183 = vmatprep.mubr.msk.bf16.mxu0 %vm13684_vm6, %v30672_v51 }
0x1df9   :  { %24184 = vmatmul.mubr.msk.bf16.vlgmr.msra.gmra.mrb[168].mxu0 %vm13684_vm6, %v30674_v16 }
0x1dfa   :  { %24188 = vmatpush3.bf16.msra.mxu0 %v26175_v37  ;;  %24201 = vmatprep.mubr.msk.bf16.mxu0 %vm13684_vm6, %v30672_v51  ;;  %v26195_v37 = vld [vmem:[%s31727_s8 + $0x100] ss:$0 sps:$4 sm:$0x11]  }
0x1dfb   :  { %24189 = vmatprep.subr.bf16.mxu0 %v26176_v17  ;;  %v14568_v22 = vsel %vm13850_vm7, %v26195_v37, 0 }
0x1dfe   :  { %24190 = vmatpush3.bf16.msra.mxu0 %v26176_v17 }
0x1dff   :  { %24191 = vmatprep.subr.bf16.mxu0 %v26177_v25 }
0x1e02   :  { %24192 = vmatpush3.bf16.msra.mxu0 %v26177_v25 }
0x1e03   :  { %24193 = vmatprep.subr.bf16.mxu0 %v26178_v3 }
0x1e06   :  { %24194 = vmatpush3.bf16.msra.mxu0 %v26178_v3 }
0x1e07   :  { %24195 = vmatprep.subr.bf16.mxu0 %v26179_v59 }
0x1e0a   :  { %24196 = vmatpush3.bf16.msra.mxu0 %v26179_v59 }
0x1e0b   :  { %24197 = vmatprep.subr.bf16.mxu0 %v26180_v35 }
0x1e0e   :  { %24198 = vmatpush3.bf16.msra.mxu0 %v26180_v35 }
0x1e0f   :  { %25017 = vmatprep.subr.msk.bf16.mxu0 %vm13850_vm7, %v26181_v21  ;;  %v26230_v21 = vld [vmem:[%s31727_s8 + $0x2a0] ss:$0 sps:$4 sm:$0x11]  }
0x1e12   :  { %24200 = vmatpush3.bf16.msra.mxu0 %v13963_v38 }
0x1e13   :  { %24247 = vmatprep.subr.bf16.mxu0 %v26182_v23 }
0x1e15   :  { %24202 = vmatmul.mubr.msk.bf16.vlgmr.msra.gmra.mrb[172].mxu0 %vm13684_vm6, %v30674_v16 }
0x1e16   :  { %24248 = vmatpush3.bf16.msra.mxu0 %v26182_v23  ;;  %24261 = vmatprep.mubr.msk.bf16.mxu0 %vm13684_vm6, %v30672_v51  ;;  %v16016_v23 = vsel %vm13850_vm7, %v26230_v21, 0 }
0x1e17   :  { %24249 = vmatprep.subr.bf16.mxu0 %v26183_v57 }
0x1e1a   :  { %24250 = vmatpush3.bf16.msra.mxu0 %v26183_v57  ;;  %v26231_v57 = vld [vmem:[%s31727_s8 + $0x2d8] sm:$0xff]  }
0x1e1b   :  { %24251 = vmatprep.subr.bf16.mxu0 %v26184_v24 }
0x1e1e   :  { %24252 = vmatpush3.bf16.msra.mxu0 %v26184_v24  ;;  %v26232_v24 = vld [vmem:[%s31727_s8 + $0x2e0] sm:$0xff]  }
0x1e1f   :  { %24253 = vmatprep.subr.bf16.mxu0 %v26185_v49 }
0x1e22   :  { %24254 = vmatpush3.bf16.msra.mxu0 %v26185_v49  ;;  %v26233_v49 = vld [vmem:[%s31727_s8 + $0x2e8] sm:$0xff]  }
0x1e23   :  { %24255 = vmatprep.subr.bf16.mxu0 %v26186_v12 }
0x1e26   :  { %24256 = vmatpush3.bf16.msra.mxu0 %v26186_v12  ;;  %v26234_v12 = vld [vmem:[%s31727_s8 + $0x2f0] sm:$0xff]  }
0x1e27   :  { %24257 = vmatprep.subr.bf16.mxu0 %v26187_v48 }
0x1e2a   :  { %24258 = vmatpush3.bf16.msra.mxu0 %v26187_v48  ;;  %v26235_v48 = vld [vmem:[%s31727_s8 + $0x2f8] sm:$0xff]  }
0x1e2b   :  { %25019 = vmatprep.subr.msk.bf16.mxu0 %vm13850_vm7, %v26188_v1  ;;  %v26236_v1 = vld [vmem:[%s31727_s8 + $0x300] sm:$0xff]  }
0x1e2e   :  { %24260 = vmatpush3.bf16.msra.mxu0 %v14387_v47 }
0x1e2f   :  { %24273 = vmatprep.subr.bf16.mxu0 %v26189_v46 }
0x1e31   :  { %24262 = vmatmul.mubr.msk.bf16.vlgmr.msra.gmra.mrb[176].mxu0 %vm13684_vm6, %v30674_v16 }
0x1e32   :  { %24274 = vmatpush3.bf16.msra.mxu0 %v26189_v46  ;;  %24287 = vmatprep.mubr.msk.bf16.mxu0 %vm13684_vm6, %v30672_v51 }
0x1e33   :  { %24275 = vmatprep.subr.bf16.mxu0 %v26190_v15 }
0x1e36   :  { %24276 = vmatpush3.bf16.msra.mxu0 %v26190_v15 }
0x1e37   :  { %24277 = vmatprep.subr.bf16.mxu0 %v26191_v19 }
0x1e3a   :  { %24278 = vmatpush3.bf16.msra.mxu0 %v26191_v19 }
0x1e3b   :  { %24279 = vmatprep.subr.bf16.mxu0 %v26192_v33 }
0x1e3e   :  { %24280 = vmatpush3.bf16.msra.mxu0 %v26192_v33 }
0x1e3f   :  { %24281 = vmatprep.subr.bf16.mxu0 %v26193_v0 }
0x1e42   :  { %24282 = vmatpush3.bf16.msra.mxu0 %v26193_v0  ;;  %v26237_v0 = vld [vmem:[%s31727_s8 + $0x308] ss:$0 sps:$4 sm:$0x11]  }
0x1e43   :  { %24283 = vmatprep.subr.bf16.mxu0 %v26194_v6 }
0x1e46   :  { %24284 = vmatpush3.bf16.msra.mxu0 %v26194_v6 }
0x1e47   :  { %25020 = vmatprep.subr.msk.bf16.mxu0 %vm13850_vm7, %v26195_v37  ;;  %v16378_v37 = vsel %vm13850_vm7, %v26237_v0, 0 }
0x1e4a   :  { %24286 = vmatpush3.bf16.msra.mxu0 %v14568_v22  ;;  %v26239_v22 = vld [vmem:[%s31727_s8 + $0x30c] sm:$0xff]  }
0x1e4b   :  { %24325 = vmatprep.subr.bf16.mxu0 %v26196_v58 }
0x1e4d   :  { %24288 = vmatmul.mubr.msk.bf16.vlgmr.msra.gmra.mrb[180].mxu0 %vm13684_vm6, %v30674_v16 }
0x1e4e   :  { %24326 = vmatpush3.bf16.msra.mxu0 %v26196_v58  ;;  %24339 = vmatprep.mubr.msk.bf16.mxu0 %vm13684_vm6, %v30672_v51  ;;  %v26240_v58 = vld [vmem:[%s31728_s9 + $0x18] sm:$0xff]  }
0x1e4f   :  { %24327 = vmatprep.subr.bf16.mxu0 %v26197_v60 }
0x1e52   :  { %24328 = vmatpush3.bf16.msra.mxu0 %v26197_v60  ;;  %v26241_v60 = vld [vmem:[%s31727_s8 + $0x314] sm:$0xff]  }
0x1e53   :  { %24329 = vmatprep.subr.bf16.mxu0 %v26198_v7 }
0x1e56   :  { %24330 = vmatpush3.bf16.msra.mxu0 %v26198_v7  ;;  %v26243_v7 = vld [vmem:[%s31728_s9] sm:$0xff]  }
0x1e57   :  { %24331 = vmatprep.subr.bf16.mxu0 %v26199_v30 }
0x1e5a   :  { %24332 = vmatpush3.bf16.msra.mxu0 %v26199_v30  ;;  %v26242_v30 = vld [vmem:[%s31727_s8 + $0x31c] sm:$0xff]  }
0x1e5b   :  { %24333 = vmatprep.subr.bf16.mxu0 %v26200_v41 }
0x1e5e   :  { %24334 = vmatpush3.bf16.msra.mxu0 %v26200_v41  ;;  %v26244_v41 = vld [vmem:[%s31727_s8 + $0x68] sm:$0xff]  }
0x1e5f   :  { %24335 = vmatprep.subr.bf16.mxu0 %v26201_v54 }
0x1e62   :  { %24336 = vmatpush3.bf16.msra.mxu0 %v26201_v54  ;;  %v26245_v54 = vld [vmem:[%s31727_s8 + $0x324] sm:$0xff]  }
0x1e63   :  { %25022 = vmatprep.subr.msk.bf16.mxu0 %vm13850_vm7, %v26202_v50  ;;  %v26246_v50 = vld [vmem:[%s31728_s9 + $0x8] sm:$0xff]  }
0x1e66   :  { %24338 = vmatpush3.bf16.msra.mxu0 %v14930_v43  ;;  %v26247_v43 = vld [vmem:[%s31727_s8 + $0x70] sm:$0xff]  }
0x1e67   :  { %24351 = vmatprep.subr.bf16.mxu0 %v26203_v4 }
0x1e69   :  { %24340 = vmatmul.mubr.msk.bf16.vlgmr.msra.gmra.mrb[184].mxu0 %vm13684_vm6, %v30674_v16 }
0x1e6a   :  { %24352 = vmatpush3.bf16.msra.mxu0 %v26203_v4  ;;  %24365 = vmatprep.mubr.msk.bf16.mxu0 %vm13684_vm6, %v30672_v51  ;;  %v26248_v4 = vld [vmem:[%s31727_s8 + $0x32c] sm:$0xff]  }
0x1e6b   :  { %24353 = vmatprep.subr.bf16.mxu0 %v26204_v36 }
0x1e6e   :  { %24354 = vmatpush3.bf16.msra.mxu0 %v26204_v36  ;;  %v26250_v36 = vld [vmem:[%s31727_s8 + $0x334] sm:$0xff]  }
0x1e6f   :  { %24355 = vmatprep.subr.bf16.mxu0 %v26205_v63 }
0x1e72   :  { %24356 = vmatpush3.bf16.msra.mxu0 %v26205_v63 }
0x1e73   :  { %24357 = vmatprep.subr.bf16.mxu0 %v26206_v14 }
0x1e76   :  { %24358 = vmatpush3.bf16.msra.mxu0 %v26206_v14  ;;  %v26249_v14 = vld [vmem:[%s31727_s8 + $0x78] sm:$0xff]  }
0x1e77   :  { %24359 = vmatprep.subr.bf16.mxu0 %v26207_v27 }
0x1e7a   :  { %24360 = vmatpush3.bf16.msra.mxu0 %v26207_v27 }
0x1e7b   :  { %24361 = vmatprep.subr.bf16.mxu0 %v26208_v53 }
0x1e7e   :  { %24362 = vmatpush3.bf16.msra.mxu0 %v26208_v53 }
0x1e7f   :  { %25023 = vmatprep.subr.msk.bf16.mxu0 %vm13850_vm7, %v26209_v55 }
0x1e82   :  { %24364 = vmatpush3.bf16.msra.mxu0 %v15111_v45  ;;  %v26252_v45 = vld [vmem:[%s31727_s8 + $0x33c] ss:$0 sps:$4 sm:$0x11]  }
0x1e83   :  { %24403 = vmatprep.subr.bf16.mxu0 %v26210_v13 }
0x1e85   :  { %24366 = vmatmul.mubr.msk.bf16.vlgmr.msra.gmra.mrb[188].mxu0 %vm13684_vm6, %v30674_v16 }
0x1e86   :  { %24404 = vmatpush3.bf16.msra.mxu0 %v26210_v13  ;;  %24417 = vmatprep.mubr.msk.bf16.mxu0 %vm13684_vm6, %v30672_v51 }
0x1e87   :  { %24405 = vmatprep.subr.bf16.mxu0 %v26211_v62 }
0x1e8a   :  { %24406 = vmatpush3.bf16.msra.mxu0 %v26211_v62  ;;  %v26251_v62 = vld [vmem:[%s31727_s8 + $0x80] sm:$0xff]  }
0x1e8b   :  { %24407 = vmatprep.subr.bf16.mxu0 %v26212_v56 }
0x1e8e   :  { %24408 = vmatpush3.bf16.msra.mxu0 %v26212_v56  ;;  %v16559_v56 = vsel %vm13850_vm7, %v26252_v45, 0 }
0x1e8f   :  { %24409 = vmatprep.subr.bf16.mxu0 %v26213_v34 }
0x1e92   :  { %24410 = vmatpush3.bf16.msra.mxu0 %v26213_v34  ;;  %v26254_v34 = vld [vmem:[%s31727_s8 + $0x374] sm:$0xff]  }
0x1e93   :  { %24411 = vmatprep.subr.bf16.mxu0 %v26214_v42 }
0x1e96   :  { %24412 = vmatpush3.bf16.msra.mxu0 %v26214_v42  ;;  %v26253_v42 = vld [vmem:[%s31727_s8 + $0x88] sm:$0xff]  }
0x1e97   :  { %24413 = vmatprep.subr.bf16.mxu0 %v26215_v11 }
0x1e9a   :  { %24414 = vmatpush3.bf16.msra.mxu0 %v26215_v11  ;;  %v26256_v11 = vld [vmem:[%s31727_s8 + $0x37c] sm:$0xff]  }
0x1e9b   :  { %25025 = vmatprep.subr.msk.bf16.mxu0 %vm13850_vm7, %v26216_v8  ;;  %v26255_v8 = vld [vmem:[%s31727_s8 + $0x90] sm:$0xff]  }
0x1e9e   :  { %24416 = vmatpush3.bf16.msra.mxu0 %v15473_v40  ;;  %v26258_v40 = vld [vmem:[%s31727_s8 + $0x384] sm:$0xff]  }
0x1e9f   :  { %24429 = vmatprep.subr.bf16.mxu0 %v26217_v31 }
0x1ea1   :  { %24418 = vmatmul.mubr.msk.bf16.vlgmr.msra.gmra.mrb[192].mxu0 %vm13684_vm6, %v30674_v16 }
0x1ea2   :  { %24430 = vmatpush3.bf16.msra.mxu0 %v26217_v31  ;;  %24443 = vmatprep.mubr.msk.bf16.mxu0 %vm13684_vm6, %v30672_v51  ;;  %v26257_v31 = vld [vmem:[%s31727_s8 + $0x98] ss:$0 sps:$4 sm:$0x11]  }
0x1ea3   :  { %24431 = vmatprep.subr.bf16.mxu0 %v26218_v18 }
0x1ea6   :  { %24432 = vmatpush3.bf16.msra.mxu0 %v26218_v18  ;;  %v26259_v18 = vld [vmem:[%s31727_s8 + $0x38c] sm:$0xff]  }
0x1ea7   :  { %24433 = vmatprep.subr.bf16.mxu0 %v26219_v39 }
0x1eaa   :  { %24434 = vmatpush3.bf16.msra.mxu0 %v26219_v39  ;;  %v14206_v39 = vsel %vm13850_vm7, %v26257_v31, 0 }
0x1eab   :  { %24435 = vmatprep.subr.bf16.mxu0 %v26220_v2 }
0x1eae   :  { %24436 = vmatpush3.bf16.msra.mxu0 %v26220_v2  ;;  %v26260_v2 = vld [vmem:[%s31727_s8 + $0x394] sm:$0xff]  }
0x1eaf   :  { %24437 = vmatprep.subr.bf16.mxu0 %v26221_v28 }
0x1eb2   :  { %24438 = vmatpush3.bf16.msra.mxu0 %v26221_v28  ;;  %v26261_v28 = vld [vmem:[%s31727_s8 + $0x39c] sm:$0xff]  }
0x1eb3   :  { %24439 = vmatprep.subr.bf16.mxu0 %v26222_v5 }
0x1eb6   :  { %24440 = vmatpush3.bf16.msra.mxu0 %v26222_v5 }
0x1eb7   :  { %25026 = vmatprep.subr.msk.bf16.mxu0 %vm13850_vm7, %v26223_v61 }
0x1eba   :  { %24442 = vmatpush3.bf16.msra.mxu0 %v15654_v10 }
0x1ebb   :  { %24481 = vmatprep.subr.bf16.mxu0 %v26224_v32 }
0x1ebd   :  { %24444 = vmatmul.mubr.msk.bf16.vlgmr.msra.gmra.mrb[196].mxu0 %vm13684_vm6, %v30674_v16 }
0x1ebe   :  { %24482 = vmatpush3.bf16.msra.mxu0 %v26224_v32  ;;  %24495 = vmatprep.mubr.msk.bf16.mxu0 %vm13684_vm6, %v30672_v51 }
0x1ebf   :  { %24483 = vmatprep.subr.bf16.mxu0 %v26225_v20 }
0x1ec2   :  { %24484 = vmatpush3.bf16.msra.mxu0 %v26225_v20 }
0x1ec3   :  { %24485 = vmatprep.subr.bf16.mxu0 %v26226_v26 }
0x1ec6   :  { %24486 = vmatpush3.bf16.msra.mxu0 %v26226_v26  ;;  %v26262_v26 = vld [vmem:[%s31727_s8 + $0x3a4] ss:$0 sps:$4 sm:$0x11]  }
0x1ec7   :  { %24487 = vmatprep.subr.bf16.mxu0 %v26227_v9 }
0x1eca   :  { %24488 = vmatpush3.bf16.msra.mxu0 %v26227_v9 }
0x1ecb   :  { %24489 = vmatprep.subr.bf16.mxu0 %v26228_v52 }
0x1ecc   :  { %v24185_v17 = vpop.f32.mrb[168].mxu0 }
0x1ecd   :  { %v13888_v25 = vpop.f32.mrb[169].mxu0 }
0x1ece   :  { %24490 = vmatpush3.bf16.msra.mxu0 %v26228_v52  ;;  %v24186_v3 = vpop.f32.mrb[170].mxu0  ;;  %v16921_v52 = vsel %vm13850_vm7, %v26262_v26, 0 }
0x1ecf   :  { %v13908_v59 = vpack.c.bf16 %v24186_v3, %v24185_v17  ;;  %v13891_v35 = vpop.f32.mrb[171].mxu0  ;;  %24491 = vmatprep.subr.bf16.mxu0 %v26229_v44  ;;  %v26264_v17 = vld [vmem:[%s31727_s8 + $0x3b0] sm:$0xff]   ;;  %v26266_v3 = vld [vmem:[%s31727_s8 + $0x3c0] sm:$0xff]  }
0x1ed0   :  { %v13907_v38 = vpack.c.bf16 %v13891_v35, %v13888_v25  ;;  %v26265_v25 = vld [vmem:[%s31727_s8 + $0x3b8] sm:$0xff]   ;;  %v26268_v35 = vld [vmem:[%s31727_s8 + $0x3d0] sm:$0xff]  }
0x1ed2   :  { %24492 = vmatpush3.bf16.msra.mxu0 %v26229_v44  ;;  %v26263_v44 = vld [vmem:[%s31727_s8 + $0x3a8] sm:$0xff]  }
0x1ed3   :  { %25028 = vmatprep.subr.msk.bf16.mxu0 %vm13850_vm7, %v26230_v21 }
0x1ed6   :  { %24494 = vmatpush3.bf16.msra.mxu0 %v16016_v23 }
0x1ed7   :  { %24533 = vmatprep.subr.bf16.mxu0 %v26231_v57 }
0x1ed9   :  { %24496 = vmatmul.mubr.msk.bf16.vlgmr.msra.gmra.mrb[200].mxu0 %vm13684_vm6, %v30674_v16 }
0x1eda   :  { %24534 = vmatpush3.bf16.msra.mxu0 %v26231_v57  ;;  %24547 = vmatprep.mubr.msk.bf16.mxu0 %vm13684_vm6, %v30672_v51 }
0x1edb   :  { %24535 = vmatprep.subr.bf16.mxu0 %v26232_v24 }
0x1ede   :  { %24536 = vmatpush3.bf16.msra.mxu0 %v26232_v24 }
0x1edf   :  { %24537 = vmatprep.subr.bf16.mxu0 %v26233_v49 }
0x1ee2   :  { %24538 = vmatpush3.bf16.msra.mxu0 %v26233_v49  ;;  %v26269_v49 = vld [vmem:[%s31727_s8 + $0x3d8] ss:$0 sps:$4 sm:$0x11]  }
0x1ee3   :  { %24539 = vmatprep.subr.bf16.mxu0 %v26234_v12 }
0x1ee6   :  { %24540 = vmatpush3.bf16.msra.mxu0 %v26234_v12 }
0x1ee7   :  { %24541 = vmatprep.subr.bf16.mxu0 %v26235_v48 }
0x1ee8   :  { %v24203_v47 = vpop.f32.mrb[172].mxu0 }
0x1ee9   :  { %v13999_v46 = vpop.f32.mrb[173].mxu0 }
0x1eea   :  { %v24204_v15 = vpop.f32.mrb[174].mxu0  ;;  %24542 = vmatpush3.bf16.msra.mxu0 %v26235_v48  ;;  %v17102_v48 = vsel %vm13850_vm7, %v26269_v49, 0 }
0x1eeb   :  { %v14020_v19 = vpack.c.bf16 %v24204_v15, %v24203_v47  ;;  %v14002_v33 = vpop.f32.mrb[175].mxu0  ;;  %24543 = vmatprep.subr.bf16.mxu0 %v26236_v1  ;;  %v26271_v47 = vld [vmem:[%s31727_s8 + $0x418] sm:$0xff]   ;;  %v26273_v15 = vld [vmem:[%s31727_s8 + $0x428] sm:$0xff]  }
0x1eec   :  { %v14019_v6 = vpack.c.bf16 %v14002_v33, %v13999_v46  ;;  %v26272_v46 = vld [vmem:[%s31727_s8 + $0x420] sm:$0xff]   ;;  %v26275_v33 = vld [vmem:[%s31727_s8 + $0x438] sm:$0xff]  }
0x1eee   :  { %24205 = vmatprep.subr.bf16.mxu1 %v14019_v6  ;;  %24544 = vmatpush3.bf16.msra.mxu0 %v26236_v1  ;;  %v26270_v1 = vld [vmem:[%s31727_s8 + $0x410] sm:$0xff]  }
0x1eef   :  { %24206 = vmatpush3.bf16.msra.mxu1 %v14019_v6  ;;  %25030 = vmatprep.subr.msk.bf16.mxu0 %vm13850_vm7, %v26237_v0 }
0x1ef0   :  { %24207 = vmatprep.subr.bf16.mxu1 %v14020_v19 }
0x1ef2   :  { %24546 = vmatpush3.bf16.msra.mxu0 %v16378_v37 }
0x1ef3   :  { %24208 = vmatpush3.bf16.msra.mxu1 %v14020_v19  ;;  %24559 = vmatprep.subr.bf16.mxu0 %v26239_v22  ;;  %v26274_v19 = vld [vmem:[%s31727_s8 + $0x430] sm:$0xff]  }
0x1ef4   :  { %24213 = vmatprep.subr.bf16.mxu1 %v13907_v38 }
0x1ef5   :  { %24548 = vmatmul.mubr.msk.bf16.vlgmr.msra.gmra.mrb[204].mxu0 %vm13684_vm6, %v30674_v16 }
0x1ef6   :  { %24210 = vmatmul.mubr.msk.bf16.vlgmr.msra.gmra.mrb[148].mxu1 %vm14031_vm8, %v26240_v58  ;;  %24560 = vmatpush3.bf16.msra.mxu0 %v26239_v22 }
0x1ef7   :  { %24573 = vmatprep.mubr.msk.bf16.mxu0 %vm13684_vm6, %v30672_v51  ;;  %24214 = vmatpush3.bf16.msra.mxu1 %v13907_v38 }
0x1ef8   :  { %24215 = vmatprep.subr.bf16.mxu1 %v13908_v59  ;;  %24561 = vmatprep.subr.bf16.mxu0 %v26241_v60 }
0x1ef9   :  { %24217 = vmatprep.mubr.msk.bf16.mxu1 %vm14031_vm8, %v26243_v7 }
0x1efa   :  { %24562 = vmatpush3.bf16.msra.mxu0 %v26241_v60  ;;  %v26276_v60 = vld [vmem:[%s31727_s8 + $0x440] ss:$0 sps:$4 sm:$0x11]  }
0x1efb   :  { %24216 = vmatpush3.bf16.msra.mxu1 %v13908_v59  ;;  %24563 = vmatprep.subr.bf16.mxu0 %v26242_v30  ;;  %v26267_v59 = vld [vmem:[%s31727_s8 + $0x3c8] sm:$0xff]  }
0x1efc   :  { %24221 = vmatprep.subr.bf16.mxu1 %v26244_v41 }
0x1efe   :  { %24564 = vmatpush3.bf16.msra.mxu0 %v26242_v30  ;;  %v17464_v30 = vsel %vm13850_vm7, %v26276_v60, 0 }
0x1eff   :  { %24565 = vmatprep.subr.bf16.mxu0 %v26245_v54 }
0x1f02   :  { %24218 = vmatmul.mubr.msk.bf16.vlgmr.msra.gmra.mrb[148].mxu1 %vm14031_vm8, %v26246_v50  ;;  %24566 = vmatpush3.bf16.msra.mxu0 %v26245_v54  ;;  %v26278_v54 = vld [vmem:[%s31727_s8 + $0x44c] sm:$0xff]   ;;  %v26279_v50 = vld [vmem:[%s31727_s8 + $0x454] sm:$0xff]  }
0x1f03   :  { %24222 = vmatpush3.bf16.msra.mxu1 %v26244_v41  ;;  %24235 = vmatprep.mubr.msk.bf16.mxu1 %vm13684_vm6, %v30672_v51  ;;  %v26277_v41 = vld [vmem:[%s31727_s8 + $0x444] sm:$0xff]  }
0x1f04   :  { %v24263_v63 = vpop.f32.mrb[176].mxu0  ;;  %24223 = vmatprep.subr.bf16.mxu1 %v26247_v43  ;;  %24567 = vmatprep.subr.bf16.mxu0 %v26248_v4 }
0x1f05   :  { %v14423_v27 = vpop.f32.mrb[177].mxu0 }
0x1f06   :  { %v24264_v29 = vpop.f32.mrb[178].mxu0  ;;  %24568 = vmatpush3.bf16.msra.mxu0 %v26248_v4  ;;  %v26281_v4 = vld [vmem:[%s31727_s8 + $0x464] sm:$0xff]  }
0x1f07   :  { %24224 = vmatpush3.bf16.msra.mxu1 %v26247_v43  ;;  %v30967_v53 = vpack.c.bf16 %v24264_v29, %v24263_v63  ;;  %v14426_v55 = vpop.f32.mrb[179].mxu0  ;;  %24569 = vmatprep.subr.bf16.mxu0 %v26250_v36  ;;  %v26280_v43 = vld [vmem:[%s31727_s8 + $0x45c] sm:$0xff]  }
0x1f08   :  { %v30972_v13 = vpack.c.bf16 %v14426_v55, %v14423_v27  ;;  %24225 = vmatprep.subr.bf16.mxu1 %v26249_v14 }
0x1f0a   :  { %24570 = vmatpush3.bf16.msra.mxu0 %v26250_v36  ;;  %v26282_v36 = vld [vmem:[%s31727_s8 + $0x46c] sm:$0xff]  }
0x1f0b   :  { %24226 = vmatpush3.bf16.msra.mxu1 %v26249_v14  ;;  %25031 = vmatprep.subr.msk.bf16.mxu0 %vm13850_vm7, %v26252_v45  ;;  %v26283_v45 = vld [vmem:[%s31727_s8 + $0x474] ss:$0 sps:$4 sm:$0x11]  }
0x1f0c   :  { %24227 = vmatprep.subr.bf16.mxu1 %v26251_v62 }
0x1f0e   :  { %24572 = vmatpush3.bf16.msra.mxu0 %v16559_v56  ;;  %v17645_v56 = vsel %vm13850_vm7, %v26283_v45, 0 }
0x1f0f   :  { %24228 = vmatpush3.bf16.msra.mxu1 %v26251_v62  ;;  %24611 = vmatprep.subr.bf16.mxu0 %v26254_v34 }
0x1f10   :  { %24229 = vmatprep.subr.bf16.mxu1 %v26253_v42 }
0x1f11   :  { %24574 = vmatmul.mubr.msk.bf16.vlgmr.msra.gmra.mrb[208].mxu0 %vm13684_vm6, %v30674_v16 }
0x1f12   :  { %24612 = vmatpush3.bf16.msra.mxu0 %v26254_v34  ;;  %24625 = vmatprep.mubr.msk.bf16.mxu0 %vm13684_vm6, %v30672_v51  ;;  %v26284_v34 = vld [vmem:[%s31727_s8 + $0x4ac] sm:$0xff]  }
0x1f13   :  { %24230 = vmatpush3.bf16.msra.mxu1 %v26253_v42  ;;  %24613 = vmatprep.subr.bf16.mxu0 %v26256_v11  ;;  %v26298_v42 = vld [vmem:[%s31728_s9 + $0x20] sm:$0xff]  }
0x1f14   :  { %24231 = vmatprep.subr.bf16.mxu1 %v26255_v8 }
0x1f16   :  { %24614 = vmatpush3.bf16.msra.mxu0 %v26256_v11  ;;  %v26285_v11 = vld [vmem:[%s31727_s8 + $0x4b4] sm:$0xff]  }
0x1f17   :  { %24232 = vmatpush3.bf16.msra.mxu1 %v26255_v8  ;;  %24615 = vmatprep.subr.bf16.mxu0 %v26258_v40  ;;  %v26286_v8 = vld [vmem:[%s31727_s8 + $0x4bc] sm:$0xff]  }
0x1f18   :  { %25018 = vmatprep.subr.msk.bf16.mxu1 %vm13850_vm7, %v26257_v31  ;;  %v26288_v31 = vld [vmem:[%s31727_s8 + $0x4cc] sm:$0xff]  }
0x1f1a   :  { %24616 = vmatpush3.bf16.msra.mxu0 %v26258_v40  ;;  %v26287_v40 = vld [vmem:[%s31727_s8 + $0x4c4] sm:$0xff]  }
0x1f1b   :  { %24234 = vmatpush3.bf16.msra.mxu1 %v14206_v39  ;;  %24617 = vmatprep.subr.bf16.mxu0 %v26259_v18 }
0x1f1e   :  { %24236 = vmatmul.mubr.msk.bf16.vlgmr.msra.gmra.mrb[152].mxu1 %vm13684_vm6, %v30674_v16  ;;  %24618 = vmatpush3.bf16.msra.mxu0 %v26259_v18  ;;  %v26289_v18 = vld [vmem:[%s31727_s8 + $0x4d4] sm:$0xff]  }
0x1f1f   :  { %24619 = vmatprep.subr.bf16.mxu0 %v26260_v2  ;;  %24243 = vmatprep.mubr.msk.bf16.mxu1 %vm14031_vm8, %v26298_v42 }
0x1f20   :  { %v24289_v5 = vpop.f32.mrb[180].mxu0 }
0x1f21   :  { %v14604_v61 = vpop.f32.mrb[181].mxu0 }
0x1f22   :  { %v24290_v10 = vpop.f32.mrb[182].mxu0  ;;  %24620 = vmatpush3.bf16.msra.mxu0 %v26260_v2 }
0x1f23   :  { %v31014_v32 = vpack.c.bf16 %v24290_v10, %v24289_v5  ;;  %v14607_v20 = vpop.f32.mrb[183].mxu0  ;;  %24621 = vmatprep.subr.bf16.mxu0 %v26261_v28  ;;  %v26290_v10 = vld [vmem:[%s31727_s8 + $0x4dc] ss:$0 sps:$4 sm:$0x11]  }
0x1f24   :  { %v31019_v9 = vpack.c.bf16 %v14607_v20, %v14604_v61 }
0x1f26   :  { %24622 = vmatpush3.bf16.msra.mxu0 %v26261_v28 }
0x1f27   :  { %25033 = vmatprep.subr.msk.bf16.mxu0 %vm13850_vm7, %v26262_v26  ;;  %v18007_v26 = vsel %vm13850_vm7, %v26290_v10, 0 }
0x1f2a   :  { %24624 = vmatpush3.bf16.msra.mxu0 %v16921_v52  ;;  %v26291_v52 = vld [vmem:[%s31727_s8 + $0x4e0] sm:$0xff]  }
0x1f2b   :  { %24637 = vmatprep.subr.bf16.mxu0 %v26263_v44 }
0x1f2d   :  { %24626 = vmatmul.mubr.msk.bf16.vlgmr.msra.gmra.mrb[212].mxu0 %vm13684_vm6, %v30674_v16 }
0x1f2e   :  { %24638 = vmatpush3.bf16.msra.mxu0 %v26263_v44  ;;  %24651 = vmatprep.mubr.msk.bf16.mxu0 %vm13684_vm6, %v30672_v51  ;;  %v26292_v44 = vld [vmem:[%s31727_s8 + $0x4e8] sm:$0xff]  }
0x1f2f   :  { %24639 = vmatprep.subr.bf16.mxu0 %v26264_v17 }
0x1f32   :  { %24640 = vmatpush3.bf16.msra.mxu0 %v26264_v17  ;;  %v26293_v17 = vld [vmem:[%s31727_s8 + $0x4f0] sm:$0xff]  }
0x1f33   :  { %24641 = vmatprep.subr.bf16.mxu0 %v26265_v25 }
0x1f36   :  { %24642 = vmatpush3.bf16.msra.mxu0 %v26265_v25  ;;  %v26294_v25 = vld [vmem:[%s31727_s8 + $0x4f8] sm:$0xff]  }
0x1f37   :  { %24643 = vmatprep.subr.bf16.mxu0 %v26266_v3 }
0x1f3a   :  { %24644 = vmatpush3.bf16.msra.mxu0 %v26266_v3  ;;  %v26295_v3 = vld [vmem:[%s31727_s8 + $0x500] sm:$0xff]  }
0x1f3b   :  { %24645 = vmatprep.subr.bf16.mxu0 %v26267_v59 }
0x1f3c   :  { %v24341_v21 = vpop.f32.mrb[184].mxu0 }
0x1f3d   :  { %v14966_v38 = vpop.f32.mrb[185].mxu0 }
0x1f3e   :  { %v24342_v23 = vpop.f32.mrb[186].mxu0  ;;  %24646 = vmatpush3.bf16.msra.mxu0 %v26267_v59  ;;  %v26296_v59 = vld [vmem:[%s31727_s8 + $0x508] sm:$0xff]  }
0x1f3f   :  { %v31045_v57 = vpack.c.bf16 %v24342_v23, %v24341_v21  ;;  %v14969_v24 = vpop.f32.mrb[187].mxu0  ;;  %24647 = vmatprep.subr.bf16.mxu0 %v26268_v35 }
0x1f40   :  { %v31050_v12 = vpack.c.bf16 %v14969_v24, %v14966_v38 }
0x1f42   :  { %24648 = vmatpush3.bf16.msra.mxu0 %v26268_v35 }
0x1f43   :  { %25034 = vmatprep.subr.msk.bf16.mxu0 %vm13850_vm7, %v26269_v49  ;;  %v26297_v49 = vld [vmem:[%s31727_s8 + $0x510] ss:$0 sps:$4 sm:$0x11]  }
0x1f46   :  { %24650 = vmatpush3.bf16.msra.mxu0 %v17102_v48 }
0x1f47   :  { %24689 = vmatprep.subr.bf16.mxu0 %v26270_v1 }
0x1f49   :  { %24652 = vmatmul.mubr.msk.bf16.vlgmr.msra.gmra.mrb[216].mxu0 %vm13684_vm6, %v30674_v16 }
0x1f4a   :  { %24690 = vmatpush3.bf16.msra.mxu0 %v26270_v1  ;;  %24703 = vmatprep.mubr.msk.bf16.mxu0 %vm13684_vm6, %v30672_v51  ;;  %v18188_v1 = vsel %vm13850_vm7, %v26297_v49, 0 }
0x1f4b   :  { %24691 = vmatprep.subr.bf16.mxu0 %v26271_v47 }
0x1f4e   :  { %24692 = vmatpush3.bf16.msra.mxu0 %v26271_v47 }
0x1f4f   :  { %24693 = vmatprep.subr.bf16.mxu0 %v26272_v46 }
0x1f52   :  { %24694 = vmatpush3.bf16.msra.mxu0 %v26272_v46 }
0x1f53   :  { %24695 = vmatprep.subr.bf16.mxu0 %v26273_v15 }
0x1f56   :  { %24696 = vmatpush3.bf16.msra.mxu0 %v26273_v15 }
0x1f57   :  { %24697 = vmatprep.subr.bf16.mxu0 %v26274_v19 }
0x1f58   :  { %v24367_v0 = vpop.f32.mrb[188].mxu0 }
0x1f59   :  { %v15147_v6 = vpop.f32.mrb[189].mxu0 }
0x1f5a   :  { %v24368_v37 = vpop.f32.mrb[190].mxu0  ;;  %24698 = vmatpush3.bf16.msra.mxu0 %v26274_v19 }
0x1f5b   :  { %v31076_v22 = vpack.c.bf16 %v24368_v37, %v24367_v0  ;;  %v15150_v58 = vpop.f32.mrb[191].mxu0  ;;  %24699 = vmatprep.subr.bf16.mxu0 %v26275_v33 }
0x1f5c   :  { %v31081_v7 = vpack.c.bf16 %v15150_v58, %v15147_v6 }
0x1f5e   :  { %24700 = vmatpush3.bf16.msra.mxu0 %v26275_v33 }
0x1f5f   :  { %25036 = vmatprep.subr.msk.bf16.mxu0 %vm13850_vm7, %v26276_v60 }
0x1f62   :  { %24702 = vmatpush3.bf16.msra.mxu0 %v17464_v30 }
0x1f63   :  { %24715 = vmatprep.subr.bf16.mxu0 %v26277_v41 }
0x1f65   :  { %24704 = vmatmul.mubr.msk.bf16.vlgmr.msra.gmra.mrb[220].mxu0 %vm13684_vm6, %v30674_v16 }
0x1f66   :  { %24716 = vmatpush3.bf16.msra.mxu0 %v26277_v41  ;;  %24729 = vmatprep.mubr.msk.bf16.mxu0 %vm13684_vm6, %v30672_v51 }
0x1f67   :  { %24717 = vmatprep.subr.bf16.mxu0 %v26278_v54 }
0x1f6a   :  { %24718 = vmatpush3.bf16.msra.mxu0 %v26278_v54 }
0x1f6b   :  { %24719 = vmatprep.subr.bf16.mxu0 %v26279_v50 }
0x1f6e   :  { %24720 = vmatpush3.bf16.msra.mxu0 %v26279_v50 }
0x1f6f   :  { %24721 = vmatprep.subr.bf16.mxu0 %v26280_v43 }
0x1f72   :  { %24722 = vmatpush3.bf16.msra.mxu0 %v26280_v43 }
0x1f73   :  { %24723 = vmatprep.subr.bf16.mxu0 %v26281_v4 }
0x1f74   :  { %v24419_v63 = vpop.f32.mrb[192].mxu0 }
0x1f75   :  { %v15509_v14 = vpop.f32.mrb[193].mxu0 }
0x1f76   :  { %v24420_v27 = vpop.f32.mrb[194].mxu0  ;;  %24724 = vmatpush3.bf16.msra.mxu0 %v26281_v4 }
0x1f77   :  { %v31107_v29 = vpack.c.bf16 %v24420_v27, %v24419_v63  ;;  %v15512_v55 = vpop.f32.mrb[195].mxu0  ;;  %24725 = vmatprep.subr.bf16.mxu0 %v26282_v36  ;;  %v26300_v27 = vld [vmem:[%s31728_s9 + $0x30] sm:$0xff]  }
0x1f78   :  { %v31112_v62 = vpack.c.bf16 %v15512_v55, %v15509_v14  ;;  %v26299_v14 = vld [vmem:[%s31728_s9 + $0x28] sm:$0xff]  }
0x1f7a   :  { %24726 = vmatpush3.bf16.msra.mxu0 %v26282_v36 }
0x1f7b   :  { %25037 = vmatprep.subr.msk.bf16.mxu0 %vm13850_vm7, %v26283_v45 }
0x1f7e   :  { %24728 = vmatpush3.bf16.msra.mxu0 %v17645_v56 }
0x1f7f   :  { %24767 = vmatprep.subr.bf16.mxu0 %v26284_v34 }
0x1f81   :  { %24730 = vmatmul.mubr.msk.bf16.vlgmr.msra.gmra.mrb[224].mxu0 %vm13684_vm6, %v30674_v16 }
0x1f82   :  { %24768 = vmatpush3.bf16.msra.mxu0 %v26284_v34  ;;  %24781 = vmatprep.mubr.msk.bf16.mxu0 %vm13684_vm6, %v30672_v51 }
0x1f83   :  { %24769 = vmatprep.subr.bf16.mxu0 %v26285_v11 }
0x1f86   :  { %24770 = vmatpush3.bf16.msra.mxu0 %v26285_v11 }
0x1f87   :  { %24771 = vmatprep.subr.bf16.mxu0 %v26286_v8 }
0x1f8a   :  { %24772 = vmatpush3.bf16.msra.mxu0 %v26286_v8  ;;  %v26302_v8 = vld [vmem:[%s31728_s9 + $0x40] sm:$0xff]  }
0x1f8b   :  { %24773 = vmatprep.subr.bf16.mxu0 %v26287_v40 }
0x1f8e   :  { %24774 = vmatpush3.bf16.msra.mxu0 %v26287_v40  ;;  %v26304_v40 = vld [vmem:[%s31728_s9 + $0x48] sm:$0xff]  }
0x1f8f   :  { %24775 = vmatprep.subr.bf16.mxu0 %v26288_v31 }
0x1f90   :  { %v24445_v39 = vpop.f32.mrb[196].mxu0 }
0x1f91   :  { %v15690_v2 = vpop.f32.mrb[197].mxu0 }
0x1f92   :  { %v24446_v28 = vpop.f32.mrb[198].mxu0  ;;  %24776 = vmatpush3.bf16.msra.mxu0 %v26288_v31  ;;  %v26305_v31 = vld [vmem:[%s31727_s8 + $0x10c] sm:$0xff]  }
0x1f93   :  { %v31142_v5 = vpack.c.bf16 %v24446_v28, %v24445_v39  ;;  %v15693_v61 = vpop.f32.mrb[199].mxu0  ;;  %24777 = vmatprep.subr.bf16.mxu0 %v26289_v18  ;;  %v26307_v39 = vld [vmem:[%s31727_s8 + $0x11c] sm:$0xff]  }
0x1f94   :  { %v31147_v20 = vpack.c.bf16 %v15693_v61, %v15690_v2 }
0x1f96   :  { %24778 = vmatpush3.bf16.msra.mxu0 %v26289_v18 }
0x1f97   :  { %25039 = vmatprep.subr.msk.bf16.mxu0 %vm13850_vm7, %v26290_v10 }
0x1f9a   :  { %24780 = vmatpush3.bf16.msra.mxu0 %v18007_v26  ;;  %v26308_v26 = vld [vmem:[%s31727_s8 + $0x124] sm:$0xff]  }
0x1f9b   :  { %24793 = vmatprep.subr.bf16.mxu0 %v26291_v52 }
0x1f9d   :  { %24782 = vmatmul.mubr.msk.bf16.vlgmr.msra.gmra.mrb[228].mxu0 %vm13684_vm6, %v30674_v16 }
0x1f9e   :  { %24794 = vmatpush3.bf16.msra.mxu0 %v26291_v52  ;;  %24807 = vmatprep.mubr.msk.bf16.mxu0 %vm13684_vm6, %v30672_v51  ;;  %v26309_v52 = vld [vmem:[%s31727_s8 + $0x12c] sm:$0xff]  }
0x1f9f   :  { %24795 = vmatprep.subr.bf16.mxu0 %v26292_v44 }
0x1fa2   :  { %24796 = vmatpush3.bf16.msra.mxu0 %v26292_v44  ;;  %v26310_v44 = vld [vmem:[%s31727_s8 + $0x134] ss:$0 sps:$4 sm:$0x11]  }
0x1fa3   :  { %24797 = vmatprep.subr.bf16.mxu0 %v26293_v17 }
0x1fa6   :  { %24798 = vmatpush3.bf16.msra.mxu0 %v26293_v17  ;;  %v14749_v17 = vsel %vm13850_vm7, %v26310_v44, 0 }
0x1fa7   :  { %24799 = vmatprep.subr.bf16.mxu0 %v26294_v25 }
0x1faa   :  { %24800 = vmatpush3.bf16.msra.mxu0 %v26294_v25 }
0x1fab   :  { %24801 = vmatprep.subr.bf16.mxu0 %v26295_v3 }
0x1fac   :  { %v24497_v35 = vpop.f32.mrb[200].mxu0 }
0x1fad   :  { %v16052_v21 = vpop.f32.mrb[201].mxu0 }
0x1fae   :  { %v24498_v38 = vpop.f32.mrb[202].mxu0  ;;  %24802 = vmatpush3.bf16.msra.mxu0 %v26295_v3 }
0x1faf   :  { %v31173_v23 = vpack.c.bf16 %v24498_v38, %v24497_v35  ;;  %v16055_v24 = vpop.f32.mrb[203].mxu0  ;;  %24803 = vmatprep.subr.bf16.mxu0 %v26296_v59 }
0x1fb0   :  { %v31178_v48 = vpack.c.bf16 %v16055_v24, %v16052_v21 }
0x1fb2   :  { %24804 = vmatpush3.bf16.msra.mxu0 %v26296_v59 }
0x1fb3   :  { %25040 = vmatprep.subr.msk.bf16.mxu0 %vm13850_vm7, %v26297_v49 }
0x1fb6   :  { %24806 = vmatpush3.bf16.msra.mxu0 %v18188_v1 }
0x1fb9   :  { %24808 = vmatmul.mubr.msk.bf16.vlgmr.msra.gmra.mrb[232].mxu0 %vm13684_vm6, %v30674_v16 }
0x1fc8   :  { %v24549_v47 = vpop.f32.mrb[204].mxu0 }
0x1fc9   :  { %v16414_v46 = vpop.f32.mrb[205].mxu0 }
0x1fca   :  { %v24550_v15 = vpop.f32.mrb[206].mxu0 }
0x1fcb   :  { %v31184_v19 = vpack.c.bf16 %v24550_v15, %v24549_v47  ;;  %v16417_v33 = vpop.f32.mrb[207].mxu0 }
0x1fcc   :  { %v31186_v0 = vpack.c.bf16 %v16417_v33, %v16414_v46 }
0x1fe4   :  { %v24575_v6 = vpop.f32.mrb[208].mxu0 }
0x1fe5   :  { %v16595_v37 = vpop.f32.mrb[209].mxu0 }
0x1fe6   :  { %v24576_v58 = vpop.f32.mrb[210].mxu0 }
0x1fe7   :  { %v31188_v60 = vpack.c.bf16 %v24576_v58, %v24575_v6  ;;  %v16598_v30 = vpop.f32.mrb[211].mxu0 }
0x1fe8   :  { %v31190_v41 = vpack.c.bf16 %v16598_v30, %v16595_v37 }
0x1ff1   :  { %v24237_v54 = vpop.f32.mrb[152].mxu1 }
0x1ff2   :  { %v14242_v50 = vpop.f32.mrb[153].mxu1 }
0x1ff3   :  { %v24238_v43 = vpop.f32.mrb[154].mxu1 }
0x1ff4   :  { %v14263_v4 = vpack.c.bf16 %v24238_v43, %v24237_v54  ;;  %v14245_v36 = vpop.f32.mrb[155].mxu1 }
0x1ff5   :  { %v14262_v63 = vpack.c.bf16 %v14245_v36, %v14242_v50 }
0x1ff7   :  { %24239 = vmatprep.subr.bf16.mxu1 %v14262_v63 }
0x1ff8   :  { %24240 = vmatpush3.bf16.msra.mxu1 %v14262_v63 }
0x1ff9   :  { %24241 = vmatprep.subr.bf16.mxu1 %v14263_v4 }
0x1ffc   :  { %24242 = vmatpush3.bf16.msra.mxu1 %v14263_v4 }
0x1ffd   :  { %24265 = vmatprep.subr.bf16.mxu1 %v30972_v13 }
0x1fff   :  { %24244 = vmatmul.mubr.msk.bf16.vlgmr.msra.gmra.mrb[148].mxu1 %vm14031_vm8, %v26299_v14 }
0x2000   :  { %24266 = vmatpush3.bf16.msra.mxu1 %v30972_v13  ;;  %v24627_v55 = vpop.f32.mrb[212].mxu0  ;;  %24269 = vmatprep.mubr.msk.bf16.mxu1 %vm14031_vm8, %v26300_v27  ;;  %v26301_v13 = vld [vmem:[%s31728_s9 + $0x38] sm:$0xff]   ;;  %v26311_v27 = vld [vmem:[%s31728_s9 + $0x50] sm:$0xff]  }
0x2001   :  { %24267 = vmatprep.subr.bf16.mxu1 %v30967_v53  ;;  %v16957_v45 = vpop.f32.mrb[213].mxu0 }
0x2002   :  { %v24628_v56 = vpop.f32.mrb[214].mxu0 }
0x2003   :  { %v31203_v34 = vpack.c.bf16 %v24628_v56, %v24627_v55  ;;  %v16960_v42 = vpop.f32.mrb[215].mxu0 }
0x2004   :  { %24268 = vmatpush3.bf16.msra.mxu1 %v30967_v53  ;;  %v31206_v11 = vpack.c.bf16 %v16960_v42, %v16957_v45  ;;  %v26303_v53 = vld [vmem:[%s31727_s8 + $0x104] sm:$0xff]  }
0x2005   :  { %24291 = vmatprep.subr.bf16.mxu1 %v31019_v9 }
0x200b   :  { %24270 = vmatmul.mubr.msk.bf16.vlgmr.msra.gmra.mrb[148].mxu1 %vm14031_vm8, %v26301_v13 }
0x200c   :  { %24292 = vmatpush3.bf16.msra.mxu1 %v31019_v9  ;;  %24295 = vmatprep.mubr.msk.bf16.mxu1 %vm14031_vm8, %v26302_v8 }
0x200d   :  { %24293 = vmatprep.subr.bf16.mxu1 %v31014_v32 }
0x2010   :  { %24294 = vmatpush3.bf16.msra.mxu1 %v31014_v32  ;;  %v26306_v32 = vld [vmem:[%s31727_s8 + $0x114] sm:$0xff]  }
0x2011   :  { %24299 = vmatprep.subr.bf16.mxu1 %v26303_v53 }
0x2017   :  { %24296 = vmatmul.mubr.msk.bf16.vlgmr.msra.gmra.mrb[148].mxu1 %vm14031_vm8, %v26304_v40  ;;  %v26313_v40 = vld [vmem:[%s31728_s9 + $0x60] sm:$0xff]  }
0x2018   :  { %24300 = vmatpush3.bf16.msra.mxu1 %v26303_v53  ;;  %24313 = vmatprep.mubr.msk.bf16.mxu1 %vm13684_vm6, %v30672_v51  ;;  %v26312_v53 = vld [vmem:[%s31728_s9 + $0x58] sm:$0xff]  }
0x2019   :  { %24301 = vmatprep.subr.bf16.mxu1 %v26305_v31 }
0x201c   :  { %24302 = vmatpush3.bf16.msra.mxu1 %v26305_v31  ;;  %v24653_v9 = vpop.f32.mrb[216].mxu0  ;;  %v26314_v31 = vld [vmem:[%s31728_s9 + $0x68] sm:$0xff]  }
0x201d   :  { %24303 = vmatprep.subr.bf16.mxu1 %v26306_v32  ;;  %v17138_v18 = vpop.f32.mrb[217].mxu0 }
0x201e   :  { %v24654_v2 = vpop.f32.mrb[218].mxu0 }
0x201f   :  { %v31238_v28 = vpack.c.bf16 %v24654_v2, %v24653_v9  ;;  %v17141_v61 = vpop.f32.mrb[219].mxu0  ;;  %v26318_v9 = vld [vmem:[%s31727_s8 + $0x1a8] sm:$0xff]   ;;  %v26323_v2 = vld [vmem:[%s31727_s8 + $0x1d0] ss:$0 sps:$4 sm:$0x11]  }
0x2020   :  { %24304 = vmatpush3.bf16.msra.mxu1 %v26306_v32  ;;  %v31240_v10 = vpack.c.bf16 %v17141_v61, %v17138_v18  ;;  %v26315_v32 = vld [vmem:[%s31728_s9 + $0x70] sm:$0xff]   ;;  %v26321_v18 = vld [vmem:[%s31727_s8 + $0x1c0] sm:$0xff]   ;;  %v15292_v61 = vsel %vm13850_vm7, %v26323_v2, 0 }
0x2021   :  { %24305 = vmatprep.subr.bf16.mxu1 %v26307_v39 }
0x2024   :  { %24306 = vmatpush3.bf16.msra.mxu1 %v26307_v39  ;;  %v26322_v39 = vld [vmem:[%s31727_s8 + $0x1c8] sm:$0xff]  }
0x2025   :  { %24307 = vmatprep.subr.bf16.mxu1 %v26308_v26 }
0x2028   :  { %24308 = vmatpush3.bf16.msra.mxu1 %v26308_v26  ;;  %v26324_v26 = vld [vmem:[%s31728_s9 + $0x80] sm:$0xff]  }
0x2029   :  { %24309 = vmatprep.subr.bf16.mxu1 %v26309_v52 }
0x202c   :  { %24310 = vmatpush3.bf16.msra.mxu1 %v26309_v52 }
0x202d   :  { %25021 = vmatprep.subr.msk.bf16.mxu1 %vm13850_vm7, %v26310_v44 }
0x2030   :  { %24312 = vmatpush3.bf16.msra.mxu1 %v14749_v17 }
0x2033   :  { %24314 = vmatmul.mubr.msk.bf16.vlgmr.msra.gmra.mrb[156].mxu1 %vm13684_vm6, %v30674_v16 }
0x2034   :  { %24321 = vmatprep.mubr.msk.bf16.mxu1 %vm14031_vm8, %v26311_v27 }
0x2038   :  { %v24705_v25 = vpop.f32.mrb[220].mxu0 }
0x2039   :  { %v17500_v3 = vpop.f32.mrb[221].mxu0 }
0x203a   :  { %v24706_v59 = vpop.f32.mrb[222].mxu0 }
0x203b   :  { %v31255_v35 = vpack.c.bf16 %v24706_v59, %v24705_v25  ;;  %v17503_v21 = vpop.f32.mrb[223].mxu0 }
0x203c   :  { %v31257_v38 = vpack.c.bf16 %v17503_v21, %v17500_v3  ;;  %v26325_v21 = vld [vmem:[%s31728_s9 + $0x88] sm:$0xff]  }
0x2054   :  { %v24731_v24 = vpop.f32.mrb[224].mxu0 }
0x2055   :  { %v17681_v49 = vpop.f32.mrb[225].mxu0 }
0x2056   :  { %v24732_v1 = vpop.f32.mrb[226].mxu0 }
0x2057   :  { %v31259_v47 = vpack.c.bf16 %v24732_v1, %v24731_v24  ;;  %v17684_v46 = vpop.f32.mrb[227].mxu0  ;;  %v26326_v24 = vld [vmem:[%s31728_s9 + $0x90] sm:$0xff]   ;;  %v26328_v1 = vld [vmem:[%s31728_s9 + $0xa0] sm:$0xff]  }
0x2058   :  { %v31261_v15 = vpack.c.bf16 %v17684_v46, %v17681_v49  ;;  %v26327_v49 = vld [vmem:[%s31728_s9 + $0x98] sm:$0xff]   ;;  %v26331_v46 = vld [vmem:[%s31727_s8 + $0x244] sm:$0xff]  }
0x2070   :  { %v24783_v33 = vpop.f32.mrb[228].mxu0 }
0x2071   :  { %v18043_v6 = vpop.f32.mrb[229].mxu0 }
0x2072   :  { %v24784_v37 = vpop.f32.mrb[230].mxu0 }
0x2073   :  { %v31263_v58 = vpack.c.bf16 %v24784_v37, %v24783_v33  ;;  %v18046_v30 = vpop.f32.mrb[231].mxu0  ;;  %v26334_v33 = vld [vmem:[%s31727_s8 + $0x25c] sm:$0xff]   ;;  %v26336_v37 = vld [vmem:[%s31727_s8 + $0x26c] ss:$0 sps:$4 sm:$0x11]  }
0x2074   :  { %v31265_v54 = vpack.c.bf16 %v18046_v30, %v18043_v6  ;;  %v26335_v6 = vld [vmem:[%s31727_s8 + $0x264] sm:$0xff]   ;;  %v15835_v30 = vsel %vm13850_vm7, %v26336_v37, 0 }
0x208c   :  { %v24809_v50 = vpop.f32.mrb[232].mxu0 }
0x208d   :  { %v18224_v43 = vpop.f32.mrb[233].mxu0 }
0x208e   :  { %v24810_v4 = vpop.f32.mrb[234].mxu0 }
0x208f   :  { %v31267_v36 = vpack.c.bf16 %v24810_v4, %v24809_v50  ;;  %v18227_v63 = vpop.f32.mrb[235].mxu0  ;;  %v26337_v50 = vld [vmem:[%s31728_s9 + $0xb0] sm:$0xff]  }
0x2090   :  { %v31269_v14 = vpack.c.bf16 %v18227_v63, %v18224_v43 }
0x2106   :  { %v24315_v55 = vpop.f32.mrb[156].mxu1 }
0x2107   :  { %v14785_v45 = vpop.f32.mrb[157].mxu1 }
0x2108   :  { %v24316_v56 = vpop.f32.mrb[158].mxu1 }
0x2109   :  { %v14806_v42 = vpack.c.bf16 %v24316_v56, %v24315_v55  ;;  %v14788_v13 = vpop.f32.mrb[159].mxu1  ;;  %v26338_v56 = vld [vmem:[%s31728_s9 + $0xb8] sm:$0xff]  }
0x210a   :  { %v14805_v8 = vpack.c.bf16 %v14788_v13, %v14785_v45  ;;  %v26340_v13 = vld [vmem:[%s31727_s8 + $0x2a4] sm:$0xff]  }
0x210c   :  { %24317 = vmatprep.subr.bf16.mxu1 %v14805_v8 }
0x210d   :  { %24318 = vmatpush3.bf16.msra.mxu1 %v14805_v8  ;;  %v26341_v8 = vld [vmem:[%s31728_s9 + $0xc8] sm:$0xff]  }
0x210e   :  { %24319 = vmatprep.subr.bf16.mxu1 %v14806_v42 }
0x2111   :  { %24320 = vmatpush3.bf16.msra.mxu1 %v14806_v42  ;;  %v26339_v42 = vld [vmem:[%s31728_s9 + $0xc0] sm:$0xff]  }
0x2112   :  { %24343 = vmatprep.subr.bf16.mxu1 %v31050_v12 }
0x2114   :  { %24322 = vmatmul.mubr.msk.bf16.vlgmr.msra.gmra.mrb[148].mxu1 %vm14031_vm8, %v26312_v53  ;;  %v26342_v53 = vld [vmem:[%s31727_s8 + $0x2ac] sm:$0xff]  }
0x2115   :  { %24344 = vmatpush3.bf16.msra.mxu1 %v31050_v12  ;;  %24347 = vmatprep.mubr.msk.bf16.mxu1 %vm14031_vm8, %v26313_v40  ;;  %v26317_v12 = vld [vmem:[%s31728_s9 + $0x78] sm:$0xff]   ;;  %v26345_v40 = vld [vmem:[%s31727_s8 + $0x2c4] sm:$0xff]  }
0x2116   :  { %24345 = vmatprep.subr.bf16.mxu1 %v31045_v57 }
0x2119   :  { %24346 = vmatpush3.bf16.msra.mxu1 %v31045_v57  ;;  %v26316_v57 = vld [vmem:[%s31727_s8 + $0x1a0] sm:$0xff]  }
0x211a   :  { %24369 = vmatprep.subr.bf16.mxu1 %v31081_v7 }
0x2120   :  { %24348 = vmatmul.mubr.msk.bf16.vlgmr.msra.gmra.mrb[148].mxu1 %vm14031_vm8, %v26314_v31  ;;  %v26346_v31 = vld [vmem:[%s31727_s8 + $0x2cc] sm:$0xff]  }
0x2121   :  { %24370 = vmatpush3.bf16.msra.mxu1 %v31081_v7  ;;  %24373 = vmatprep.mubr.msk.bf16.mxu1 %vm14031_vm8, %v26315_v32  ;;  %v26320_v7 = vld [vmem:[%s31727_s8 + $0x1b8] sm:$0xff]   ;;  %v26347_v32 = vld [vmem:[%s31727_s8 + $0x2d4] ss:$0 sps:$4 sm:$0x11]  }
0x2122   :  { %24371 = vmatprep.subr.bf16.mxu1 %v31076_v22 }
0x2125   :  { %24372 = vmatpush3.bf16.msra.mxu1 %v31076_v22  ;;  %v26319_v22 = vld [vmem:[%s31727_s8 + $0x1b0] sm:$0xff]  }
0x2126   :  { %24377 = vmatprep.subr.bf16.mxu1 %v26316_v57 }
0x212c   :  { %24374 = vmatmul.mubr.msk.bf16.vlgmr.msra.gmra.mrb[148].mxu1 %vm14031_vm8, %v26317_v12  ;;  %v26348_v12 = vld [vmem:[%s31728_s9 + $0xd0] sm:$0xff]  }
0x212d   :  { %24378 = vmatpush3.bf16.msra.mxu1 %v26316_v57  ;;  %24391 = vmatprep.mubr.msk.bf16.mxu1 %vm13684_vm6, %v30672_v51  ;;  %v16197_v57 = vsel %vm13850_vm7, %v26347_v32, 0 }
0x212e   :  { %24379 = vmatprep.subr.bf16.mxu1 %v26318_v9 }
0x2131   :  { %24380 = vmatpush3.bf16.msra.mxu1 %v26318_v9 }
0x2132   :  { %24381 = vmatprep.subr.bf16.mxu1 %v26319_v22 }
0x2135   :  { %24382 = vmatpush3.bf16.msra.mxu1 %v26319_v22 }
0x2136   :  { %24383 = vmatprep.subr.bf16.mxu1 %v26320_v7 }
0x2139   :  { %24384 = vmatpush3.bf16.msra.mxu1 %v26320_v7 }
0x213a   :  { %24385 = vmatprep.subr.bf16.mxu1 %v26321_v18 }
0x213d   :  { %24386 = vmatpush3.bf16.msra.mxu1 %v26321_v18 }
0x213e   :  { %24387 = vmatprep.subr.bf16.mxu1 %v26322_v39 }
0x2141   :  { %24388 = vmatpush3.bf16.msra.mxu1 %v26322_v39 }
0x2142   :  { %25024 = vmatprep.subr.msk.bf16.mxu1 %vm13850_vm7, %v26323_v2 }
0x2145   :  { %24390 = vmatpush3.bf16.msra.mxu1 %v15292_v61  ;;  %v26349_v61 = vld [vmem:[%s31728_s9 + $0xd8] sm:$0xff]  }
0x2148   :  { %24392 = vmatmul.mubr.msk.bf16.vlgmr.msra.gmra.mrb[160].mxu1 %vm13684_vm6, %v30674_v16 }
0x2149   :  { %24399 = vmatprep.mubr.msk.bf16.mxu1 %vm14031_vm8, %v26324_v26  ;;  %v26350_v26 = vld [vmem:[%s31728_s9 + $0xe0] sm:$0xff]  }
0x221b   :  { %v24393_v52 = vpop.f32.mrb[160].mxu1 }
0x221c   :  { %v15328_v44 = vpop.f32.mrb[161].mxu1 }
0x221d   :  { %v24394_v17 = vpop.f32.mrb[162].mxu1 }
0x221e   :  { %v15349_v25 = vpack.c.bf16 %v24394_v17, %v24393_v52  ;;  %v15331_v3 = vpop.f32.mrb[163].mxu1  ;;  %v26351_v52 = vld [vmem:[%s31728_s9 + $0xe8] sm:$0xff]  }
0x221f   :  { %v15348_v59 = vpack.c.bf16 %v15331_v3, %v15328_v44  ;;  %v26352_v44 = vld [vmem:[%s31728_s9 + $0xf0] sm:$0xff]   ;;  %v26355_v17 = vld [vmem:[%s31727_s8 + $0x348] sm:$0xff]  }
0x2220   :  { %v26359_v3 = vld [vmem:[%s31727_s8 + $0x368] sm:$0xff]  }
0x2221   :  { %24395 = vmatprep.subr.bf16.mxu1 %v15348_v59 }
0x2222   :  { %24396 = vmatpush3.bf16.msra.mxu1 %v15348_v59  ;;  %v26360_v59 = vld [vmem:[%s31727_s8 + $0x370] ss:$0 sps:$4 sm:$0x11]  }
0x2223   :  { %24397 = vmatprep.subr.bf16.mxu1 %v15349_v25 }
0x2226   :  { %24398 = vmatpush3.bf16.msra.mxu1 %v15349_v25  ;;  %v26358_v25 = vld [vmem:[%s31727_s8 + $0x360] sm:$0xff]  }
0x2227   :  { %24421 = vmatprep.subr.bf16.mxu1 %v31112_v62 }
0x2229   :  { %24400 = vmatmul.mubr.msk.bf16.vlgmr.msra.gmra.mrb[148].mxu1 %vm14031_vm8, %v26325_v21  ;;  %v16740_v21 = vsel %vm13850_vm7, %v26360_v59, 0 }
0x222a   :  { %24422 = vmatpush3.bf16.msra.mxu1 %v31112_v62  ;;  %24425 = vmatprep.mubr.msk.bf16.mxu1 %vm14031_vm8, %v26326_v24  ;;  %v26330_v62 = vld [vmem:[%s31728_s9 + $0xa8] sm:$0xff]   ;;  %v26361_v24 = vld [vmem:[%s31728_s9 + $0x100] sm:$0xff]  }
0x222b   :  { %24423 = vmatprep.subr.bf16.mxu1 %v31107_v29 }
0x222e   :  { %24424 = vmatpush3.bf16.msra.mxu1 %v31107_v29  ;;  %v26329_v29 = vld [vmem:[%s31727_s8 + $0x23c] sm:$0xff]  }
0x222f   :  { %24447 = vmatprep.subr.bf16.mxu1 %v31147_v20 }
0x2235   :  { %24426 = vmatmul.mubr.msk.bf16.vlgmr.msra.gmra.mrb[148].mxu1 %vm14031_vm8, %v26327_v49 }
0x2236   :  { %24448 = vmatpush3.bf16.msra.mxu1 %v31147_v20  ;;  %24451 = vmatprep.mubr.msk.bf16.mxu1 %vm14031_vm8, %v26328_v1  ;;  %v26333_v20 = vld [vmem:[%s31727_s8 + $0x254] sm:$0xff]  }
0x2237   :  { %24449 = vmatprep.subr.bf16.mxu1 %v31142_v5 }
0x223a   :  { %24450 = vmatpush3.bf16.msra.mxu1 %v31142_v5  ;;  %v26332_v5 = vld [vmem:[%s31727_s8 + $0x24c] sm:$0xff]  }
0x223b   :  { %24455 = vmatprep.subr.bf16.mxu1 %v26329_v29 }
0x2241   :  { %24452 = vmatmul.mubr.msk.bf16.vlgmr.msra.gmra.mrb[148].mxu1 %vm14031_vm8, %v26330_v62 }
0x2242   :  { %24456 = vmatpush3.bf16.msra.mxu1 %v26329_v29  ;;  %24469 = vmatprep.mubr.msk.bf16.mxu1 %vm13684_vm6, %v30672_v51 }
0x2243   :  { %24457 = vmatprep.subr.bf16.mxu1 %v26331_v46 }
0x2246   :  { %24458 = vmatpush3.bf16.msra.mxu1 %v26331_v46 }
0x2247   :  { %24459 = vmatprep.subr.bf16.mxu1 %v26332_v5 }
0x224a   :  { %24460 = vmatpush3.bf16.msra.mxu1 %v26332_v5 }
0x224b   :  { %24461 = vmatprep.subr.bf16.mxu1 %v26333_v20 }
0x224e   :  { %24462 = vmatpush3.bf16.msra.mxu1 %v26333_v20  ;;  %v26362_v20 = vld [vmem:[%s31728_s9 + $0x108] sm:$0xff]  }
0x224f   :  { %24463 = vmatprep.subr.bf16.mxu1 %v26334_v33 }
0x2252   :  { %24464 = vmatpush3.bf16.msra.mxu1 %v26334_v33  ;;  %v26363_v33 = vld [vmem:[%s31728_s9 + $0x110] sm:$0xff]  }
0x2253   :  { %24465 = vmatprep.subr.bf16.mxu1 %v26335_v6 }
0x2256   :  { %24466 = vmatpush3.bf16.msra.mxu1 %v26335_v6  ;;  %v26364_v6 = vld [vmem:[%s31728_s9 + $0x118] sm:$0xff]  }
0x2257   :  { %25027 = vmatprep.subr.msk.bf16.mxu1 %vm13850_vm7, %v26336_v37  ;;  %v26365_v37 = vld [vmem:[%s31728_s9 + $0x120] sm:$0xff]  }
0x225a   :  { %24468 = vmatpush3.bf16.msra.mxu1 %v15835_v30  ;;  %v26368_v30 = vld [vmem:[%s31727_s8 + $0x3e4] sm:$0xff]  }
0x225d   :  { %24470 = vmatmul.mubr.msk.bf16.vlgmr.msra.gmra.mrb[164].mxu1 %vm13684_vm6, %v30674_v16 }
0x225e   :  { %24477 = vmatprep.mubr.msk.bf16.mxu1 %vm14031_vm8, %v26337_v50  ;;  %v26371_v50 = vld [vmem:[%s31727_s8 + $0x3fc] sm:$0xff]  }
0x2330   :  { %v24471_v43 = vpop.f32.mrb[164].mxu1 }
0x2331   :  { %v15871_v4 = vpop.f32.mrb[165].mxu1 }
0x2332   :  { %v24472_v63 = vpop.f32.mrb[166].mxu1 }
0x2333   :  { %v15892_v27 = vpack.c.bf16 %v24472_v63, %v24471_v43  ;;  %v15874_v55 = vpop.f32.mrb[167].mxu1  ;;  %v26372_v43 = vld [vmem:[%s31727_s8 + $0x404] sm:$0xff]  }
0x2334   :  { %v15891_v45 = vpack.c.bf16 %v15874_v55, %v15871_v4  ;;  %v26373_v4 = vld [vmem:[%s31727_s8 + $0x40c] ss:$0 sps:$4 sm:$0x11]  }
0x2335   :  { %v17283_v63 = vsel %vm13850_vm7, %v26373_v4, 0 }
0x2336   :  { %24473 = vmatprep.subr.bf16.mxu1 %v15891_v45 }
0x2337   :  { %24474 = vmatpush3.bf16.msra.mxu1 %v15891_v45 }
0x2338   :  { %24475 = vmatprep.subr.bf16.mxu1 %v15892_v27 }
0x233b   :  { %24476 = vmatpush3.bf16.msra.mxu1 %v15892_v27  ;;  %v26374_v27 = vld [vmem:[%s31728_s9 + $0x130] sm:$0xff]  }
0x233c   :  { %24499 = vmatprep.subr.bf16.mxu1 %v31178_v48 }
0x233e   :  { %24478 = vmatmul.mubr.msk.bf16.vlgmr.msra.gmra.mrb[148].mxu1 %vm14031_vm8, %v26338_v56 }
0x233f   :  { %24500 = vmatpush3.bf16.msra.mxu1 %v31178_v48  ;;  %24503 = vmatprep.mubr.msk.bf16.mxu1 %vm14031_vm8, %v26339_v42  ;;  %v26344_v48 = vld [vmem:[%s31727_s8 + $0x2bc] sm:$0xff]  }
0x2340   :  { %24501 = vmatprep.subr.bf16.mxu1 %v31173_v23 }
0x2343   :  { %24502 = vmatpush3.bf16.msra.mxu1 %v31173_v23  ;;  %v26343_v23 = vld [vmem:[%s31727_s8 + $0x2b4] sm:$0xff]  }
0x2344   :  { %24507 = vmatprep.subr.bf16.mxu1 %v26340_v13 }
0x234a   :  { %24504 = vmatmul.mubr.msk.bf16.vlgmr.msra.gmra.mrb[148].mxu1 %vm14031_vm8, %v26341_v8 }
0x234b   :  { %24508 = vmatpush3.bf16.msra.mxu1 %v26340_v13  ;;  %24521 = vmatprep.mubr.msk.bf16.mxu1 %vm13684_vm6, %v30672_v51 }
0x234c   :  { %24509 = vmatprep.subr.bf16.mxu1 %v26342_v53 }
0x234f   :  { %24510 = vmatpush3.bf16.msra.mxu1 %v26342_v53  ;;  %v26375_v53 = vld [vmem:[%s31728_s9 + $0x138] sm:$0xff]  }
0x2350   :  { %24511 = vmatprep.subr.bf16.mxu1 %v26343_v23 }
0x2353   :  { %24512 = vmatpush3.bf16.msra.mxu1 %v26343_v23  ;;  %v26376_v23 = vld [vmem:[%s31728_s9 + $0x140] sm:$0xff]  }
0x2354   :  { %24513 = vmatprep.subr.bf16.mxu1 %v26344_v48 }
0x2357   :  { %24514 = vmatpush3.bf16.msra.mxu1 %v26344_v48  ;;  %v26377_v48 = vld [vmem:[%s31728_s9 + $0x148] sm:$0xff]  }
0x2358   :  { %24515 = vmatprep.subr.bf16.mxu1 %v26345_v40 }
0x235b   :  { %24516 = vmatpush3.bf16.msra.mxu1 %v26345_v40  ;;  %v26378_v40 = vld [vmem:[%s31728_s9 + $0x150] sm:$0xff]  }
0x235c   :  { %24517 = vmatprep.subr.bf16.mxu1 %v26346_v31 }
0x235f   :  { %24518 = vmatpush3.bf16.msra.mxu1 %v26346_v31  ;;  %v26381_v31 = vld [vmem:[%s31727_s8 + $0x480] sm:$0xff]  }
0x2360   :  { %25029 = vmatprep.subr.msk.bf16.mxu1 %vm13850_vm7, %v26347_v32  ;;  %v26384_v32 = vld [vmem:[%s31727_s8 + $0x498] sm:$0xff]  }
0x2363   :  { %24520 = vmatpush3.bf16.msra.mxu1 %v16197_v57  ;;  %v26386_v57 = vld [vmem:[%s31727_s8 + $0x4a8] ss:$0 sps:$4 sm:$0x11]  }
0x2366   :  { %24522 = vmatmul.mubr.msk.bf16.vlgmr.msra.gmra.mrb[168].mxu1 %vm13684_vm6, %v30674_v16 }
0x2367   :  { %24529 = vmatprep.mubr.msk.bf16.mxu1 %vm14031_vm8, %v26348_v12  ;;  %v17826_v12 = vsel %vm13850_vm7, %v26386_v57, 0 }
0x2439   :  { %v24523_v9 = vpop.f32.mrb[168].mxu1 }
0x243a   :  { %v16233_v22 = vpop.f32.mrb[169].mxu1 }
0x243b   :  { %v24524_v7 = vpop.f32.mrb[170].mxu1 }
0x243c   :  { %v16254_v18 = vpack.c.bf16 %v24524_v7, %v24523_v9  ;;  %v16236_v39 = vpop.f32.mrb[171].mxu1  ;;  %v26387_v9 = vld [vmem:[%s31728_s9 + $0x160] sm:$0xff]  }
0x243d   :  { %v16253_v2 = vpack.c.bf16 %v16236_v39, %v16233_v22 }
0x243f   :  { %24525 = vmatprep.subr.bf16.mxu1 %v16253_v2 }
0x2440   :  { %24526 = vmatpush3.bf16.msra.mxu1 %v16253_v2 }
0x2441   :  { %24527 = vmatprep.subr.bf16.mxu1 %v16254_v18 }
0x2444   :  { %24528 = vmatpush3.bf16.msra.mxu1 %v16254_v18 }
0x2445   :  { %24551 = vmatprep.subr.bf16.mxu1 %v31186_v0 }
0x2447   :  { %24530 = vmatmul.mubr.msk.bf16.vlgmr.msra.gmra.mrb[148].mxu1 %vm14031_vm8, %v26349_v61 }
0x2448   :  { %24552 = vmatpush3.bf16.msra.mxu1 %v31186_v0  ;;  %24555 = vmatprep.mubr.msk.bf16.mxu1 %vm14031_vm8, %v26350_v26  ;;  %v26354_v0 = vld [vmem:[%s31728_s9 + $0xf8] sm:$0xff]   ;;  %v26388_v26 = vld [vmem:[%s31728_s9 + $0x168] sm:$0xff]  }
0x2449   :  { %24553 = vmatprep.subr.bf16.mxu1 %v31184_v19 }
0x244c   :  { %24554 = vmatpush3.bf16.msra.mxu1 %v31184_v19  ;;  %v26353_v19 = vld [vmem:[%s31727_s8 + $0x340] sm:$0xff]  }
0x244d   :  { %24577 = vmatprep.subr.bf16.mxu1 %v31190_v41 }
0x2453   :  { %24556 = vmatmul.mubr.msk.bf16.vlgmr.msra.gmra.mrb[148].mxu1 %vm14031_vm8, %v26351_v52  ;;  %v26390_v52 = vld [vmem:[%s31728_s9 + $0x178] sm:$0xff]  }
0x2454   :  { %24578 = vmatpush3.bf16.msra.mxu1 %v31190_v41  ;;  %24581 = vmatprep.mubr.msk.bf16.mxu1 %vm14031_vm8, %v26352_v44  ;;  %v26357_v41 = vld [vmem:[%s31727_s8 + $0x358] sm:$0xff]   ;;  %v26391_v44 = vld [vmem:[%s31728_s9 + $0x180] sm:$0xff]  }
0x2455   :  { %24579 = vmatprep.subr.bf16.mxu1 %v31188_v60 }
0x2458   :  { %24580 = vmatpush3.bf16.msra.mxu1 %v31188_v60  ;;  %v26356_v60 = vld [vmem:[%s31727_s8 + $0x350] sm:$0xff]  }
0x2459   :  { %24585 = vmatprep.subr.bf16.mxu1 %v26353_v19 }
0x245f   :  { %24582 = vmatmul.mubr.msk.bf16.vlgmr.msra.gmra.mrb[148].mxu1 %vm14031_vm8, %v26354_v0 }
0x2460   :  { %24586 = vmatpush3.bf16.msra.mxu1 %v26353_v19  ;;  %24599 = vmatprep.mubr.msk.bf16.mxu1 %vm13684_vm6, %v30672_v51 }
0x2461   :  { %24587 = vmatprep.subr.bf16.mxu1 %v26355_v17 }
0x2464   :  { %24588 = vmatpush3.bf16.msra.mxu1 %v26355_v17 }
0x2465   :  { %24589 = vmatprep.subr.bf16.mxu1 %v26356_v60 }
0x2468   :  { %24590 = vmatpush3.bf16.msra.mxu1 %v26356_v60 }
0x2469   :  { %24591 = vmatprep.subr.bf16.mxu1 %v26357_v41 }
0x246c   :  { %24592 = vmatpush3.bf16.msra.mxu1 %v26357_v41 }
0x246d   :  { %24593 = vmatprep.subr.bf16.mxu1 %v26358_v25 }
0x2470   :  { %24594 = vmatpush3.bf16.msra.mxu1 %v26358_v25  ;;  %v18316_v25 = vld [vmem:[%s31729_s10 + $0x8] sm:$0xff] }
0x2471   :  { %24595 = vmatprep.subr.bf16.mxu1 %v26359_v3 }
0x2474   :  { %24596 = vmatpush3.bf16.msra.mxu1 %v26359_v3  ;;  %v18317_v3 = vld [vmem:[%s31729_s10 + $0x10] sm:$0xff] }
0x2475   :  { %25032 = vmatprep.subr.msk.bf16.mxu1 %vm13850_vm7, %v26360_v59  ;;  %v18315_v59 = vld [vmem:[%s31729_s10] sm:$0xff] }
0x2478   :  { %24598 = vmatpush3.bf16.msra.mxu1 %v16740_v21  ;;  %v18320_v21 = vld [vmem:[%s31730_s11 + $0x8] sm:$0xff] }
0x247b   :  { %24600 = vmatmul.mubr.msk.bf16.vlgmr.msra.gmra.mrb[172].mxu1 %vm13684_vm6, %v30674_v16 }
0x247c   :  { %24607 = vmatprep.mubr.msk.bf16.mxu1 %vm14031_vm8, %v26361_v24  ;;  %v18319_v24 = vld [vmem:[%s31730_s11] sm:$0xff] }
0x254e   :  { %v24601_v49 = vpop.f32.mrb[172].mxu1 }
0x254f   :  { %v16776_v1 = vpop.f32.mrb[173].mxu1 }
0x2550   :  { %v24602_v29 = vpop.f32.mrb[174].mxu1 }
0x2551   :  { %v16797_v62 = vpack.c.bf16 %v24602_v29, %v24601_v49  ;;  %v16779_v46 = vpop.f32.mrb[175].mxu1  ;;  %v18318_v49 = vld [vmem:[%s31729_s10 + $0x18] sm:$0xff] }
0x2552   :  { %v16796_v5 = vpack.c.bf16 %v16779_v46, %v16776_v1 }
0x2554   :  { %24603 = vmatprep.subr.bf16.mxu1 %v16796_v5 }
0x2555   :  { %24604 = vmatpush3.bf16.msra.mxu1 %v16796_v5 }
0x2556   :  { %24605 = vmatprep.subr.bf16.mxu1 %v16797_v62 }
0x2559   :  { %24606 = vmatpush3.bf16.msra.mxu1 %v16797_v62 }
0x255a   :  { %24629 = vmatprep.subr.bf16.mxu1 %v31206_v11 }
0x255c   :  { %24608 = vmatmul.mubr.msk.bf16.vlgmr.msra.gmra.mrb[148].mxu1 %vm14031_vm8, %v26362_v20 }
0x255d   :  { %24630 = vmatpush3.bf16.msra.mxu1 %v31206_v11  ;;  %24633 = vmatprep.mubr.msk.bf16.mxu1 %vm14031_vm8, %v26363_v33  ;;  %v26367_v11 = vld [vmem:[%s31728_s9 + $0x128] sm:$0xff]  }
0x255e   :  { %24631 = vmatprep.subr.bf16.mxu1 %v31203_v34 }
0x2561   :  { %24632 = vmatpush3.bf16.msra.mxu1 %v31203_v34  ;;  %v26366_v34 = vld [vmem:[%s31727_s8 + $0x3dc] sm:$0xff]  }
0x2562   :  { %24655 = vmatprep.subr.bf16.mxu1 %v31240_v10 }
0x2568   :  { %24634 = vmatmul.mubr.msk.bf16.vlgmr.msra.gmra.mrb[148].mxu1 %vm14031_vm8, %v26364_v6 }
0x2569   :  { %24656 = vmatpush3.bf16.msra.mxu1 %v31240_v10  ;;  %24659 = vmatprep.mubr.msk.bf16.mxu1 %vm14031_vm8, %v26365_v37  ;;  %v26370_v10 = vld [vmem:[%s31727_s8 + $0x3f4] sm:$0xff]  }
0x256a   :  { %24657 = vmatprep.subr.bf16.mxu1 %v31238_v28 }
0x256d   :  { %24658 = vmatpush3.bf16.msra.mxu1 %v31238_v28  ;;  %v26369_v28 = vld [vmem:[%s31727_s8 + $0x3ec] sm:$0xff]  }
0x256e   :  { %24663 = vmatprep.subr.bf16.mxu1 %v26366_v34 }
0x2574   :  { %24660 = vmatmul.mubr.msk.bf16.vlgmr.msra.gmra.mrb[148].mxu1 %vm14031_vm8, %v26367_v11 }
0x2575   :  { %24664 = vmatpush3.bf16.msra.mxu1 %v26366_v34  ;;  %24677 = vmatprep.mubr.msk.bf16.mxu1 %vm13684_vm6, %v30672_v51 }
0x2576   :  { %24665 = vmatprep.subr.bf16.mxu1 %v26368_v30 }
0x2579   :  { %24666 = vmatpush3.bf16.msra.mxu1 %v26368_v30 }
0x257a   :  { %24667 = vmatprep.subr.bf16.mxu1 %v26369_v28 }
0x257d   :  { %24668 = vmatpush3.bf16.msra.mxu1 %v26369_v28 }
0x257e   :  { %24669 = vmatprep.subr.bf16.mxu1 %v26370_v10 }
0x2581   :  { %24670 = vmatpush3.bf16.msra.mxu1 %v26370_v10 }
0x2582   :  { %24671 = vmatprep.subr.bf16.mxu1 %v26371_v50 }
0x2585   :  { %24672 = vmatpush3.bf16.msra.mxu1 %v26371_v50 }
0x2586   :  { %24673 = vmatprep.subr.bf16.mxu1 %v26372_v43 }
0x2589   :  { %24674 = vmatpush3.bf16.msra.mxu1 %v26372_v43 }
0x258a   :  { %25035 = vmatprep.subr.msk.bf16.mxu1 %vm13850_vm7, %v26373_v4 }
0x258d   :  { %24676 = vmatpush3.bf16.msra.mxu1 %v17283_v63 }
0x2590   :  { %24678 = vmatmul.mubr.msk.bf16.vlgmr.msra.gmra.mrb[176].mxu1 %vm13684_vm6, %v30674_v16 }
0x2591   :  { %24685 = vmatprep.mubr.msk.bf16.mxu1 %vm14031_vm8, %v26374_v27 }
0x2663   :  { %v24679_v55 = vpop.f32.mrb[176].mxu1 }
0x2664   :  { %v17319_v45 = vpop.f32.mrb[177].mxu1 }
0x2665   :  { %v24680_v56 = vpop.f32.mrb[178].mxu1 }
0x2666   :  { %v17340_v42 = vpack.c.bf16 %v24680_v56, %v24679_v55  ;;  %v17322_v13 = vpop.f32.mrb[179].mxu1  ;;  %v18471_v56 = vld [vmem:[%s31731_s14] sm:$0x3] }
0x2667   :  { %v17339_v8 = vpack.c.bf16 %v17322_v13, %v17319_v45  ;;  %v18321_v45 = vld [vmem:[%s31730_s11 + $0x10] sm:$0xff]  ;;  %v26415_v13 = vmov 0.0  }
0x2669   :  { %24681 = vmatprep.subr.bf16.mxu1 %v17339_v8 }
0x266a   :  { %24682 = vmatpush3.bf16.msra.mxu1 %v17339_v8  ;;  %v18470_v8 = vld [vmem:[%s31732_s13] sm:$0xff] }
0x266b   :  { %24683 = vmatprep.subr.bf16.mxu1 %v17340_v42 }
0x266e   :  { %24684 = vmatpush3.bf16.msra.mxu1 %v17340_v42  ;;  %v18322_v42 = vld [vmem:[%s31730_s11 + $0x18] sm:$0xff] }
0x266f   :  { %24707 = vmatprep.subr.bf16.mxu1 %v31257_v38 }
0x2671   :  { %24686 = vmatmul.mubr.msk.bf16.vlgmr.msra.gmra.mrb[148].mxu1 %vm14031_vm8, %v26375_v53 }
0x2672   :  { %24708 = vmatpush3.bf16.msra.mxu1 %v31257_v38  ;;  %24711 = vmatprep.mubr.msk.bf16.mxu1 %vm14031_vm8, %v26376_v23  ;;  %v26380_v38 = vld [vmem:[%s31728_s9 + $0x158] sm:$0xff]  }
0x2673   :  { %24709 = vmatprep.subr.bf16.mxu1 %v31255_v35 }
0x2676   :  { %24710 = vmatpush3.bf16.msra.mxu1 %v31255_v35  ;;  %v26379_v35 = vld [vmem:[%s31727_s8 + $0x478] sm:$0xff]  }
0x2677   :  { %24733 = vmatprep.subr.bf16.mxu1 %v31261_v15 }
0x267d   :  { %24712 = vmatmul.mubr.msk.bf16.vlgmr.msra.gmra.mrb[148].mxu1 %vm14031_vm8, %v26377_v48 }
0x267e   :  { %24734 = vmatpush3.bf16.msra.mxu1 %v31261_v15  ;;  %24737 = vmatprep.mubr.msk.bf16.mxu1 %vm14031_vm8, %v26378_v40  ;;  %v26383_v15 = vld [vmem:[%s31727_s8 + $0x490] sm:$0xff]  }
0x267f   :  { %24735 = vmatprep.subr.bf16.mxu1 %v31259_v47 }
0x2682   :  { %24736 = vmatpush3.bf16.msra.mxu1 %v31259_v47  ;;  %v26382_v47 = vld [vmem:[%s31727_s8 + $0x488] sm:$0xff]  }
0x2683   :  { %24741 = vmatprep.subr.bf16.mxu1 %v26379_v35 }
0x2689   :  { %24738 = vmatmul.mubr.msk.bf16.vlgmr.msra.gmra.mrb[148].mxu1 %vm14031_vm8, %v26380_v38 }
0x268a   :  { %24742 = vmatpush3.bf16.msra.mxu1 %v26379_v35  ;;  %24755 = vmatprep.mubr.msk.bf16.mxu1 %vm13684_vm6, %v30672_v51  ;;  %v26385_v51 = vld [vmem:[%s31727_s8 + $0x4a0] sm:$0xff]  }
0x268b   :  { %24743 = vmatprep.subr.bf16.mxu1 %v26381_v31 }
0x268e   :  { %24744 = vmatpush3.bf16.msra.mxu1 %v26381_v31 }
0x268f   :  { %24745 = vmatprep.subr.bf16.mxu1 %v26382_v47 }
0x2692   :  { %24746 = vmatpush3.bf16.msra.mxu1 %v26382_v47 }
0x2693   :  { %24747 = vmatprep.subr.bf16.mxu1 %v26383_v15 }
0x2696   :  { %24748 = vmatpush3.bf16.msra.mxu1 %v26383_v15 }
0x2697   :  { %24749 = vmatprep.subr.bf16.mxu1 %v26384_v32 }
0x269a   :  { %24750 = vmatpush3.bf16.msra.mxu1 %v26384_v32 }
0x269b   :  { %24751 = vmatprep.subr.bf16.mxu1 %v26385_v51 }
0x269e   :  { %24752 = vmatpush3.bf16.msra.mxu1 %v26385_v51 }
0x269f   :  { %25038 = vmatprep.subr.msk.bf16.mxu1 %vm13850_vm7, %v26386_v57 }
0x26a2   :  { %24754 = vmatpush3.bf16.msra.mxu1 %v17826_v12 }
0x26a5   :  { %24756 = vmatmul.mubr.msk.bf16.vlgmr.msra.gmra.mrb[180].mxu1 %vm13684_vm6, %v30674_v16  ;;  %v26389_v16 = vld [vmem:[%s31728_s9 + $0x170] sm:$0xff]  }
0x26a6   :  { %24763 = vmatprep.mubr.msk.bf16.mxu1 %vm14031_vm8, %v26387_v9 }
0x2778   :  { %v24757_v22 = vpop.f32.mrb[180].mxu1 }
0x2779   :  { %v17862_v7 = vpop.f32.mrb[181].mxu1 }
0x277a   :  { %v24758_v18 = vpop.f32.mrb[182].mxu1 }
0x277b   :  { %v17883_v39 = vpack.c.bf16 %v24758_v18, %v24757_v22  ;;  %v17865_v2 = vpop.f32.mrb[183].mxu1 }
0x277c   :  { %v17882_v61 = vpack.c.bf16 %v17865_v2, %v17862_v7 }
0x277e   :  { %24759 = vmatprep.subr.bf16.mxu1 %v17882_v61 }
0x277f   :  { %24760 = vmatpush3.bf16.msra.mxu1 %v17882_v61 }
0x2780   :  { %24761 = vmatprep.subr.bf16.mxu1 %v17883_v39 }
0x2783   :  { %24762 = vmatpush3.bf16.msra.mxu1 %v17883_v39 }
0x2784   :  { %24785 = vmatprep.subr.bf16.mxu1 %v31265_v54 }
0x2786   :  { %24764 = vmatmul.mubr.msk.bf16.vlgmr.msra.gmra.mrb[148].mxu1 %vm14031_vm8, %v26388_v26 }
0x2787   :  { %24786 = vmatpush3.bf16.msra.mxu1 %v31265_v54  ;;  %24789 = vmatprep.mubr.msk.bf16.mxu1 %vm14031_vm8, %v26389_v16 }
0x2788   :  { %24787 = vmatprep.subr.bf16.mxu1 %v31263_v58 }
0x278b   :  { %24788 = vmatpush3.bf16.msra.mxu1 %v31263_v58  ;;  %v26392_v58 = vld [vmem:[%s31728_s9 + $0x188] sm:$0xff]  }
0x278c   :  { %24811 = vmatprep.subr.bf16.mxu1 %v31269_v14 }
0x2792   :  { %24790 = vmatmul.mubr.msk.bf16.vlgmr.msra.gmra.mrb[148].mxu1 %vm14031_vm8, %v26390_v52 }
0x2793   :  { %24812 = vmatpush3.bf16.msra.mxu1 %v31269_v14  ;;  %24815 = vmatprep.mubr.msk.bf16.mxu1 %vm14031_vm8, %v26391_v44 }
0x2794   :  { %24813 = vmatprep.subr.bf16.mxu1 %v31267_v36 }
0x2797   :  { %24814 = vmatpush3.bf16.msra.mxu1 %v31267_v36 }
0x2798   :  { %24819 = vmatprep.subr.mxu1 %v26415_v13 }
0x279e   :  { %24816 = vmatmul.mubr.msk.bf16.vlgmr.msra.gmra.mrb[148].mxu1 %vm14031_vm8, %v26392_v58 }
0x279f   :  { %24821 = vmatprep.mubr.msk.f32.mxu1 %vm26416_vm9, %v26415_v13  ;;  %24820 = vmatpush3.msra.mxu1 %v18470_v8 }
0x2871   :  { %v24817_v54 = vpop.f32.mrb[148].mxu1 }
0x2872   :  { %v18296_v19 = vpop.f32.mrb[149].mxu1  ;;  %v18329_v36 = vsel %vm395_vm3, %v24817_v54, 0.0 }
0x2873   :  { %v24818_v0 = vpop.f32.mrb[150].mxu1  ;;  %v18323_v17 = vsel %vm395_vm3, %v18296_v19, 0.0 }
0x2874   :  { %18324 = vadd.xlane.f32.xlu1 %v18323_v17  ;;  %v18299_v60 = vpop.f32.mrb[151].mxu1  ;;  %v18332_v41 = vsel %vm395_vm3, %v24818_v0, 0.0 }
0x2875   :  { %v18326_v14 = vsel %vm395_vm3, %v18299_v60, 0.0 }
0x2876   :  { %18327 = vadd.xlane.f32.xlu0 %v18326_v14 }
0x2878   :  { %18333 = vadd.xlane.f32.xlu1 %v18332_v41 }
0x287a   :  { %18330 = vadd.xlane.f32.xlu0 %v18329_v36 }
0x2889   :  { %18383 = vperm.xlu1 %25046, %v18316_v25  }
0x288d   :  { %18388 = vperm.xlu1 %25046, %v18317_v3  }
0x2890   :  { %18378 = vperm.xlu0 %25045, %v18315_v59   ;;  %v18429_v59 = vld [vmem:[%s31733_s12 + $0x8] sm:$0xff] }
0x2891   :  { %18407 = vperm.xlu1 %25046, %v18320_v21   ;;  %v18433_v21 = vld [vmem:[%s31733_s12 + $0x28] sm:$0xff] }
0x2894   :  { %18402 = vperm.xlu0 %25045, %v18319_v24  }
0x2898   :  { %18393 = vperm.xlu0 %25045, %v18318_v49   ;;  %v18428_v49 = vld [vmem:[%s31733_s12] sm:$0xff] }
0x2901   :  { %v18325_v1 = vpop.xlane.xlu1 %18324 }
0x2902   :  { %v18336_v5 = vmul.f32 0.125, %v18325_v1 }
0x2903   :  { %v18328_v29 = vpop.xlane.xlu0 %18327 }
0x2904   :  { %v18337_v62 = vmul.f32 0.125, %v18328_v29  ;;  %v18340_v11 = vsub.f32 %v18296_v19, %v18336_v5  ;;  %v18434_v5 = vld [vmem:[%s31733_s12 + $0x30] sm:$0xff] }
0x2905   :  { %v18334_v46 = vpop.xlane.xlu1 %18333 }
0x2906   :  { %v18339_v20 = vmul.f32 0.125, %v18334_v46  ;;  %v18341_v6 = vsub.f32 %v18299_v60, %v18337_v62  ;;  %v18344_v63 = vmul.f32 %v18340_v11, %v18340_v11  ;;  %v18430_v62 = vld [vmem:[%s31733_s12 + $0x10] sm:$0xff]  ;;  %v18432_v46 = vld [vmem:[%s31733_s12 + $0x20] sm:$0xff] }
0x2907   :  { %v18331_v33 = vpop.xlane.xlu0 %18330 }
0x2908   :  { %v18343_v37 = vsub.f32 %v24818_v0, %v18339_v20  ;;  %v18338_v34 = vmul.f32 0.125, %v18331_v33  ;;  %v18345_v43 = vmul.f32 %v18341_v6, %v18341_v6  ;;  %v18348_v55 = vsel %vm395_vm3, %v18344_v63, 0.0 }
0x2909   :  { %v18384_v53 = vpop.permute.xlu1 %18383 }
0x290a   :  { %v18342_v30 = vsub.f32 %v24817_v54, %v18338_v34  ;;  %v18347_v28 = vmul.f32 %v18343_v37, %v18343_v37  ;;  %v18351_v27 = vsel %vm395_vm3, %v18345_v43, 0.0  ;;  %v18431_v34 = vld [vmem:[%s31733_s12 + $0x18] sm:$0xff] }
0x290c   :  { %v18357_v10 = vsel %vm395_vm3, %v18347_v28, 0.0  ;;  %v18346_v50 = vmul.f32 %v18342_v30, %v18342_v30 }
0x290d   :  { %18358 = vadd.xlane.f32.xlu1 %v18357_v10  ;;  %v18389_v48 = vpop.permute.xlu1 %18388 }
0x290e   :  { %v18354_v4 = vsel %vm395_vm3, %v18346_v50, 0.0 }
0x290f   :  { %18355 = vadd.xlane.f32.xlu0 %v18354_v4  ;;  %v18379_v23 = vpop.permute.xlu0 %18378 }
0x2911   :  { %18352 = vadd.xlane.f32.xlu1 %v18351_v27  ;;  %v18408_v35 = vpop.permute.xlu1 %18407 }
0x2913   :  { %18349 = vadd.xlane.f32.xlu0 %v18348_v55  ;;  %v18403_v40 = vpop.permute.xlu0 %18402 }
0x2917   :  { %v18394_v38 = vpop.permute.xlu0 %18393 }
0x2922   :  { %18412 = vperm.xlu1 %25046, %v18321_v45  }
0x2926   :  { %18474 = vperm.xlu1 %25046, %v18471_v56  }
0x2929   :  { %18417 = vperm.xlu0 %25045, %v18322_v42  }
0x299a   :  { %v18359_v31 = vpop.xlane.xlu1 %18358 }
0x299b   :  { %v18363_v47 = vmul.f32 0.125, %v18359_v31 }
0x299c   :  { %v18356_v15 = vpop.xlane.xlu0 %18355 }
0x299d   :  { %v18367_v32 = vadd.f32 1e-05, %v18363_v47  ;;  %v18362_v51 = vmul.f32 0.125, %v18356_v15 }
0x299e   :  { %v18353_v57 = vpop.xlane.xlu1 %18352 }
0x299f   :  { %26405 = vrsqrt.f32 %v18367_v32  ;;  %v18366_v12 = vadd.f32 1e-05, %v18362_v51  ;;  %v18361_v9 = vmul.f32 0.125, %v18353_v57 }
0x29a0   :  { %v18350_v22 = vpop.xlane.xlu0 %18349 }
0x29a1   :  { %26407 = vrsqrt.f32 %v18366_v12  ;;  %v18365_v7 = vadd.f32 1e-05, %v18361_v9  ;;  %v18360_v18 = vmul.f32 0.125, %v18350_v22 }
0x29a2   :  { %v18413_v0 = vpop.permute.xlu1 %18412 }
0x29a3   :  { %26409 = vrsqrt.f32 %v18365_v7  ;;  %v18364_v39 = vadd.f32 1e-05, %v18360_v18 }
0x29a5   :  { %26411 = vrsqrt.f32 %v18364_v39 }
0x29a8   :  { %v18418_v41 = vpop.permute.xlu0 %18417 }
0x29a9   :  { %v26406_v2 = vpop.eup %26405 }
0x29aa   :  { %v18375_v61 = vmul.f32 %v26406_v2, %v18343_v37 }
0x29ab   :  { %v26408_v26 = vpop.eup %26407 }
0x29ac   :  { %v18374_v16 = vmul.f32 %v26408_v26, %v18342_v30  ;;  %v18399_v44 = vmul.f32 %v18394_v38, %v18375_v61  ;;  %v18475_v61 = vpop.permute.xlu1 %18474 }
0x29ad   :  { %v26410_v52 = vpop.eup %26409 }
0x29ae   :  { %v18373_v58 = vmul.f32 %v26410_v52, %v18341_v6  ;;  %v18398_v54 = vmul.f32 %v18389_v48, %v18374_v16  ;;  %v18423_v36 = vadd.f32 %v18418_v41, %v18399_v44 }
0x29af   :  { %v26412_v19 = vpop.eup %26411 }
0x29b0   :  { %v18397_v17 = vmul.f32 %v18384_v53, %v18373_v58  ;;  %v18372_v60 = vmul.f32 %v26412_v19, %v18340_v11  ;;  %v18422_v14 = vadd.f32 %v18413_v0, %v18398_v54  ;;  %v18427_v20 = vmax.f32 %v18423_v36, 0.0  ;;  %v18435_v11 = vld [vmem:[%s31733_s12 + $0x38] sm:$0xff] }
0x29b2   :  { %v18396_v25 = vmul.f32 %v18379_v23, %v18372_v60  ;;  %v18421_v3 = vadd.f32 %v18408_v35, %v18397_v17  ;;  %v18426_v29 = vmax.f32 %v18422_v14, 0.0  ;;  %v18439_v43 = vmul.f32 %v18431_v34, %v18427_v20 }
0x29b3   :  { %v18443_v4 = vmul.f32 %v18435_v11, %v18427_v20 }
0x29b4   :  { %v18425_v24 = vmax.f32 %v18421_v3, 0.0  ;;  %v18420_v1 = vadd.f32 %v18403_v40, %v18396_v25  ;;  %v18438_v28 = vmul.f32 %v18430_v62, %v18426_v29  ;;  %v18442_v50 = vmul.f32 %v18434_v5, %v18426_v29 }
0x29b5   :  { %v18449_v48 = vsel %vm395_vm3, %v18439_v43, 0.0  ;;  %v18462_v40 = vsel %vm395_vm3, %v18443_v4, 0.0 }
0x29b6   :  { %v18437_v33 = vmul.f32 %v18429_v59, %v18425_v24  ;;  %v18441_v6 = vmul.f32 %v18433_v21, %v18425_v24  ;;  %v18424_v37 = vmax.f32 %v18420_v1, 0.0  ;;  %v18447_v13 = vsel %vm395_vm3, %v18438_v28, 0.0 }
0x29b7   :  { %v18460_v8 = vsel %vm395_vm3, %v18442_v50, 0.0 }
0x29b8   :  { %v18436_v30 = vmul.f32 %v18428_v49, %v18424_v37  ;;  %v18440_v10 = vmul.f32 %v18432_v46, %v18424_v37  ;;  %v18445_v63 = vsel %vm395_vm3, %v18437_v33, 0.0  ;;  %v18458_v27 = vsel %vm395_vm3, %v18441_v6, 0.0 }
0x29ba   :  { %v18444_v55 = vsel %vm395_vm3, %v18436_v30, 0.0  ;;  %v18457_v45 = vsel %vm395_vm3, %v18440_v10, 0.0 }
0x29bb   :  { %v18446_v56 = vadd.f32 %v18445_v63, %v18444_v55  ;;  %v18459_v42 = vadd.f32 %v18458_v27, %v18457_v45 }
0x29bd   :  { %v18448_v53 = vadd.f32 %v18447_v13, %v18446_v56  ;;  %v18461_v23 = vadd.f32 %v18460_v8, %v18459_v42 }
0x29bf   :  { %v18450_v35 = vadd.f32 %v18449_v48, %v18448_v53  ;;  %v18463_v38 = vadd.f32 %v18462_v40, %v18461_v23 }
0x29c1   :  { %v18451_v31 = vrot.slane %v18450_v35, 4  ;;  %v18464_v47 = vrot.slane %v18463_v38, 4 }
0x29c3   :  { %v18452_v15 = vadd.f32 %v18451_v31, %v18450_v35  ;;  %v18465_v32 = vadd.f32 %v18464_v47, %v18463_v38 }
0x29c5   :  { %v18453_v51 = vrot.slane %v18452_v15, 2  ;;  %v18466_v57 = vrot.slane %v18465_v32, 2 }
0x29c7   :  { %v18454_v12 = vadd.f32 %v18453_v51, %v18452_v15  ;;  %v18467_v9 = vadd.f32 %v18466_v57, %v18465_v32 }
0x29c9   :  { %v18455_v22 = vrot.slane %v18454_v12, 1  ;;  %v18468_v7 = vrot.slane %v18467_v9, 1 }
0x29cb   :  { %v18456_v18 = vadd.f32 %v18455_v22, %v18454_v12  ;;  %v18469_v39 = vadd.f32 %v18468_v7, %v18467_v9 }
0x29cd   :  { %v18480_v2 = vsel %vm18479_vm10, %v18469_v39, %v18456_v18 }
0x29ce   :  { %24822 = vmatmul.mubr.msk.f32.vlgmr.msra.gmra.mrb[184].mxu1 %vm395_vm3, %v18480_v2 }
0x2aa1   :  { %v18549_v26 = vpop.f32.mrb[184].mxu1 }
0x2aa2   :  { %v18550_v16 = vadd.f32 %v18549_v26, %v18475_v61  ;;  %v24823_v52 = vpop.f32.mrb[185].mxu1 }
0x2aa4   :  { %18554 = vst.msk [vmem:[%s31734_s15] sm:$0x3] %vm18553_vm11, %v18550_v16 }

</bundles_post_ra>
